<compile_context>
chip_gen: v7x
topology: tpu7x:2x2x1
jax: 0.10.0
libtpu: 0.0.40
codegen_flags: <defaults>
</compile_context>

<pallas_src>
import functools

import jax
import jax.numpy as jnp
from jax.experimental import pallas as pl
from jax.experimental.pallas import tpu as pltpu


# ----------------------------------------------------------------------------
# In-kernel helpers
# ----------------------------------------------------------------------------
def _gather_taps_slab(a_ref, t_ref, *, B, H, W):
    """Gather the 4 (kh, kw) tap matrices of a k=2/s=2 conv into slab layout.

    a_ref: (H*B*W, C) activation, row index = h*(B*W) + b*W + w.
    t_ref: (4, OH*B*OW, C); slab t = 2*kh + kw, row index = oh*(B*OW) + b*OW + ow,
           holding a[2*oh + kh, b, 2*ow + kw, :].
    All starts/sizes are static Python ints (loops fully unrolled).
    """
    OH, OW = H // 2, W // 2
    for t in range(4):
        kh, kw = divmod(t, 2)
        for oh in range(OH):
            src_row = (2 * oh + kh) * B * W + kw
            if W % 2 == 0:
                # b*W + 2*ow + kw == kw + 2*(b*W//2 + ow)  -> one stride-2 slice
                t_ref[t, pl.ds(oh * B * OW, B * OW), :] = (
                    a_ref[pl.ds(src_row, B * OW, 2), :])
            else:
                # odd W: the stride pattern breaks at batch boundaries -> per-sample
                for bb in range(B):
                    dst = (oh * B + bb) * OW
                    if OW > 1:
                        t_ref[t, pl.ds(dst, OW), :] = (
                            a_ref[pl.ds(src_row + bb * W, OW, 2), :])
                    else:
                        t_ref[t, pl.ds(dst, 1), :] = (
                            a_ref[pl.ds(src_row + bb * W, 1), :])


def _gather_taps_wide(a_ref, t_ref, *, B, H, W, cin):
    """Gather the 4 taps into wide layout: t_ref (OH*B*OW, 4*cin), tap t at lanes
    [t*cin : (t+1)*cin] (128-aligned when cin % 128 == 0), so the whole conv becomes a
    single (M, 4*cin) @ (4*cin, cout) MXU matmul."""
    OH, OW = H // 2, W // 2
    for t in range(4):
        kh, kw = divmod(t, 2)
        lanes = pl.ds(t * cin, cin)
        for oh in range(OH):
            src_row = (2 * oh + kh) * B * W + kw
            if W % 2 == 0:
                t_ref[pl.ds(oh * B * OW, B * OW), lanes] = (
                    a_ref[pl.ds(src_row, B * OW, 2), :])
            else:
                for bb in range(B):
                    dst = (oh * B + bb) * OW
                    if OW > 1:
                        t_ref[pl.ds(dst, OW), lanes] = (
                            a_ref[pl.ds(src_row + bb * W, OW, 2), :])
                    else:
                        t_ref[pl.ds(dst, 1), lanes] = (
                            a_ref[pl.ds(src_row + bb * W, 1), :])


# ----------------------------------------------------------------------------
# Fused forward kernel
# ----------------------------------------------------------------------------
def _cnn_kernel(p1_ref, w1_ref, b1_ref,
                w2_ref, b2_ref,
                w3_ref, b3_ref,
                w4_ref, b4_ref,
                wc_ref, bc_ref,
                logits_ref, feats_ref,
                a1_ref, t2_ref, a2_ref, t3_ref, a3_ref, t4_ref,
                *, batch):
    # Backbone runs once, on the first classifier tile; activations persist in VMEM.
    @pl.when(pl.program_id(0) == 0)
    def _backbone():
        # conv1 (1->64): one MXU matmul, K padded 4 -> 8 host-side (BN folded into W/b).
        a1_ref[...] = jnp.maximum(
            jnp.dot(p1_ref[...], w1_ref[...],
                    preferred_element_type=jnp.float32) + b1_ref[...], 0.0)

        # conv2: 14x14x64 -> 7x7x128.  cin=64 tap lane offsets aren't 128-aligned, so
        # keep the 4-slab gather + four K=64 matmuls with an f32 accumulator.
        _gather_taps_slab(a1_ref, t2_ref, B=batch, H=14, W=14)
        acc = None
        for t in range(4):
            part = jnp.dot(t2_ref[t].astype(jnp.bfloat16),
                           w2_ref[pl.ds(t * 64, 64), :],
                           preferred_element_type=jnp.float32)
            acc = part if acc is None else acc + part
        a2_ref[...] = jnp.maximum(acc + b2_ref[...], 0.0)

        # conv3: 7x7x128 -> 3x3x256 as ONE K=512 MXU matmul (taps at 128-aligned lanes).
        _gather_taps_wide(a2_ref, t3_ref, B=batch, H=7, W=7, cin=128)
        a3_ref[...] = jnp.maximum(
            jnp.dot(t3_ref[...].astype(jnp.bfloat16), w3_ref[...],
                    preferred_element_type=jnp.float32) + b3_ref[...], 0.0)

        # conv4: 3x3x256 -> 1x1x512 as ONE K=1024 matmul.  Spatial is 1x1, so
        # AdaptiveAvgPool2d(1) + Flatten is the identity: this IS the feature vector.
        _gather_taps_wide(a3_ref, t4_ref, B=batch, H=3, W=3, cin=256)
        feats_ref[...] = jnp.maximum(
            jnp.dot(t4_ref[...].astype(jnp.bfloat16), w4_ref[...],
                    preferred_element_type=jnp.float32) + b4_ref[...], 0.0)

    # Classifier tile j: feats @ Wc[:, j*tn:(j+1)*tn] + bc.  feats_ref has a constant
    # index_map, so the block written on step 0 stays resident across the grid axis.
    logits_ref[...] = (
        jnp.dot(feats_ref[...].astype(jnp.bfloat16), wc_ref[...],
                preferred_element_type=jnp.float32) + bc_ref[...])


# ----------------------------------------------------------------------------
# Host-side wrapper
# ----------------------------------------------------------------------------
def _fold_bn(w, conv_b, gamma, beta, mean, var, eps=1e-5):
    """Fold eval-mode BatchNorm into the conv weight/bias: y = taps @ (W*scale) + bias."""
    scale = gamma / jnp.sqrt(var + eps)
    w_folded = (w.astype(jnp.float32) * scale[None, :]).astype(w.dtype)
    bias = (beta + scale * (conv_b - mean)).reshape(1, -1).astype(jnp.float32)
    return w_folded, bias


def _resident(shape):
    return pl.BlockSpec(shape, lambda j: (0,) * len(shape))


@functools.partial(jax.jit, static_argnames=("return_feats",))
def cnn_forward(x, params, return_feats=False):
    batch = x.shape[0]
    x = x.reshape(batch, 28, 28).astype(jnp.float32)

    # Layer-1 2x2/s2 patches, rows ordered (oh, b, ow), cols (kh, kw) padded 4 -> 8 so
    # conv1 is a clean MXU contraction.  This touches only the raw 28x28 input (~3 KB per
    # sample) once in XLA; all later patch extraction happens inside the kernel.
    p1 = (x.reshape(batch, 14, 2, 14, 2)
           .transpose(1, 0, 3, 2, 4)
           .reshape(14 * batch * 14, 4))
    p1 = jnp.pad(p1, ((0, 0), (0, 4)))

    w1, cb1, g1, bt1, mu1, vr1 = params["conv0"]
    w2, cb2, g2, bt2, mu2, vr2 = params["conv1"]
    w3, cb3, g3, bt3, mu3, vr3 = params["conv2"]
    w4, cb4, g4, bt4, mu4, vr4 = params["conv3"]
    w1, f1 = _fold_bn(w1, cb1, g1, bt1, mu1, vr1)
    w2, f2 = _fold_bn(w2, cb2, g2, bt2, mu2, vr2)
    w3, f3 = _fold_bn(w3, cb3, g3, bt3, mu3, vr3)
    w4, f4 = _fold_bn(w4, cb4, g4, bt4, mu4, vr4)
    w1 = jnp.pad(w1.astype(jnp.float32), ((0, 4), (0, 0)))   # K: 4 -> 8 (zero rows)

    wc, bc = params["cls"]                                    # (512, N) bf16, (N,) f32
    n_cls = bc.shape[0]
    # Wide classifier tiles: as few grid steps as possible (each costs ~0.35 us fixed)
    # while a double-buffered (512, <=3584) bf16 tile (~7.3 MB) still fits scoped VMEM on
    # every generation.  n_pad is the smallest multiple of 128*n_tiles covering n_cls.
    n128 = ((n_cls + 127) // 128) * 128
    n_tiles = (n128 + 3583) // 3584
    tn = (((n128 + n_tiles - 1) // n_tiles) + 127) // 128 * 128
    n_pad = tn * n_tiles
    wc_p = jnp.pad(wc, ((0, 0), (0, n_pad - n_cls)))
    bc_p = jnp.pad(bc, (0, n_pad - n_cls)).reshape(1, n_pad).astype(jnp.float32)

    m1 = 14 * batch * 14   # conv1 output rows (14x14 spatial x batch)
    m2 = 7 * batch * 7     # conv2 output rows
    m3 = 3 * batch * 3     # conv3 output rows

    logits_pad, feats = pl.pallas_call(
        functools.partial(_cnn_kernel, batch=batch),
        out_shape=(jax.ShapeDtypeStruct((batch, n_pad), jnp.float32),
                   jax.ShapeDtypeStruct((batch, 512), jnp.float32)),
        grid_spec=pltpu.PrefetchScalarGridSpec(
            num_scalar_prefetch=0,
            grid=(n_tiles,),
            in_specs=[
                _resident((m1, 8)),                           # p1 patches
                _resident((8, 64)), _resident((1, 64)),       # conv1 W, bias
                _resident((256, 128)), _resident((1, 128)),   # conv2
                _resident((512, 256)), _resident((1, 256)),   # conv3
                _resident((1024, 512)), _resident((1, 512)),  # conv4
                pl.BlockSpec((512, tn), lambda j: (0, j)),    # Wc tile (streamed)
                pl.BlockSpec((1, tn), lambda j: (0, j)),      # bc tile
            ],
            out_specs=[pl.BlockSpec((batch, tn), lambda j: (0, j)),    # logits tile
                       pl.BlockSpec((batch, 512), lambda j: (0, 0))],  # feats (resident)
            scratch_shapes=[
                pltpu.VMEM((m1, 64), jnp.float32),       # a1 (14x14x64)
                pltpu.VMEM((4, m2, 64), jnp.float32),    # conv2 taps (slab layout)
                pltpu.VMEM((m2, 128), jnp.float32),      # a2 (7x7x128)
                pltpu.VMEM((m3, 512), jnp.float32),      # conv3 taps (wide layout)
                pltpu.VMEM((m3, 256), jnp.float32),      # a3 (3x3x256)
                pltpu.VMEM((batch, 1024), jnp.float32),  # conv4 taps (wide layout)
            ]),
        compiler_params=pltpu.CompilerParams(
            # Later classifier tiles read the step-0 resident feats block -> sequential.
            dimension_semantics=("arbitrary",),
            vmem_limit_bytes=32 * 1024 * 1024),
    )(p1, w1, f1, w2, f2, w3, f3, w4, f4, wc_p, bc_p)

    if return_feats:
        return feats
    return logits_pad[:, :n_cls]


# ----------------------------------------------------------------------------
# Parameter init (deterministic, synthetic) and pure-JAX reference
# ----------------------------------------------------------------------------
_CONV_CHANNELS = [(1, 64), (64, 128), (128, 256), (256, 512)]


def init_params(key, num_classes):
    params = {}
    for i, (cin, cout) in enumerate(_CONV_CHANNELS):
        key, k_w, k_b = jax.random.split(key, 3)
        fan_in = 4 * cin
        # (4*cin, cout) = PyTorch (cout, cin, 2, 2) permuted to (kh, kw, cin, cout).
        w = jax.random.normal(k_w, (4 * cin, cout), jnp.float32) / jnp.sqrt(fan_in)
        if i > 0:
            w = w.astype(jnp.bfloat16)       # MXU-native; halves VMEM/DMA
        b = jax.random.normal(k_b, (cout,), jnp.float32) * 0.01
        params[f"conv{i}"] = (w, b,
                              jnp.ones((cout,), jnp.float32),
                              jnp.zeros((cout,), jnp.float32),
                              jnp.zeros((cout,), jnp.float32),
                              jnp.ones((cout,), jnp.float32))
    key, k_w, k_b = jax.random.split(key, 3)
    w_cls = (jax.random.normal(k_w, (512, num_classes), jnp.float32)
             / jnp.sqrt(512.0)).astype(jnp.bfloat16)
    b_cls = jax.random.normal(k_b, (num_classes,), jnp.float32) * 0.01
    params["cls"] = (w_cls, b_cls)
    return params


def _reference_forward(x, params):
    """Pure-JAX reference (same math, f32) for a correctness check."""
    batch = x.shape[0]
    a = x.reshape(batch, 28, 28, 1).astype(jnp.float32)
    for i in range(4):
        w, cb, g, bt, mu, vr = params[f"conv{i}"]
        w = w.astype(jnp.float32)
        cin = a.shape[-1]
        oh, ow = a.shape[1] // 2, a.shape[2] // 2
        p = (a[:, :2 * oh, :2 * ow, :]
             .reshape(batch, oh, 2, ow, 2, cin)
             .transpose(0, 1, 3, 2, 4, 5)
             .reshape(batch, oh, ow, 4 * cin))
        y = jnp.einsum("bhwk,kc->bhwc", p, w) + cb
        scale = g / jnp.sqrt(vr + 1e-5)
        a = jnp.maximum((y - mu) * scale + bt, 0.0)
    feats = a.mean(axis=(1, 2))
    wc, bc = params["cls"]
    logits = feats @ wc.astype(jnp.float32) + bc
    return logits, feats


if __name__ == "__main__":
    # 4000 classes keeps the test small but still spans 2 classifier grid tiles, which
    # exercises the resident-feats read on later tiles (the default module uses 7000).
    num_classes = 4000
    key = jax.random.PRNGKey(0)
    k_params, k_x = jax.random.split(key)

    params = init_params(k_params, num_classes)
    x = jax.random.normal(k_x, (2, 784), jnp.float32)  # batch=2 MNIST-like input

    logits = cnn_forward(x, params, return_feats=False)
    feats = cnn_forward(x, params, return_feats=True)
    jax.block_until_ready((logits, feats))

    assert logits.shape == (2, num_classes), logits.shape
    assert feats.shape == (2, 512), feats.shape

    ref_logits, ref_feats = _reference_forward(x, params)
    assert jnp.allclose(feats, ref_feats, rtol=5e-2, atol=5e-2), (
        float(jnp.max(jnp.abs(feats - ref_feats))))
    assert jnp.allclose(logits, ref_logits, rtol=5e-2, atol=5e-2), (
        float(jnp.max(jnp.abs(logits - ref_logits))))
    print("KERNEL_OK")
</pallas_src>

<mosaic_0001>
module attributes {stable_mosaic.version = 11 : i64} {
  func.func @_cnn_kernel(%arg0: i32, %arg1: memref<392x8xf32, #tpu.memory_space<vmem>>, %arg2: memref<8x64xf32, #tpu.memory_space<vmem>>, %arg3: memref<1x64xf32, #tpu.memory_space<vmem>>, %arg4: memref<256x128xbf16, #tpu.memory_space<vmem>>, %arg5: memref<1x128xf32, #tpu.memory_space<vmem>>, %arg6: memref<512x256xbf16, #tpu.memory_space<vmem>>, %arg7: memref<1x256xf32, #tpu.memory_space<vmem>>, %arg8: memref<1024x512xbf16, #tpu.memory_space<vmem>>, %arg9: memref<1x512xf32, #tpu.memory_space<vmem>>, %arg10: memref<512x2048xbf16, #tpu.memory_space<vmem>>, %arg11: memref<1x2048xf32, #tpu.memory_space<vmem>>, %arg12: memref<2x2048xf32, #tpu.memory_space<vmem>>, %arg13: memref<2x512xf32, #tpu.memory_space<vmem>>, %arg14: memref<392x64xf32, #tpu.memory_space<vmem>>, %arg15: memref<4x98x64xf32, #tpu.memory_space<vmem>>, %arg16: memref<98x128xf32, #tpu.memory_space<vmem>>, %arg17: memref<18x512xf32, #tpu.memory_space<vmem>>, %arg18: memref<18x256xf32, #tpu.memory_space<vmem>>, %arg19: memref<2x1024xf32, #tpu.memory_space<vmem>>) attributes {dimension_semantics = [#tpu.dimension_semantics<arbitrary>], iteration_bounds = array<i64: 2>, scalar_prefetch = 0 : i64, scratch_operands = 6 : i64, tpu.core_type = #tpu.core_type<tc>, window_params = [{pipeline_mode = #tpu.pipeline_mode<synchronous>, transform_indices = @transform_0, window_bounds = array<i64: 392, 8>}, {pipeline_mode = #tpu.pipeline_mode<synchronous>, transform_indices = @transform_1, window_bounds = array<i64: 8, 64>}, {pipeline_mode = #tpu.pipeline_mode<synchronous>, transform_indices = @transform_2, window_bounds = array<i64: 1, 64>}, {pipeline_mode = #tpu.pipeline_mode<synchronous>, transform_indices = @transform_3, window_bounds = array<i64: 256, 128>}, {pipeline_mode = #tpu.pipeline_mode<synchronous>, transform_indices = @transform_4, window_bounds = array<i64: 1, 128>}, {pipeline_mode = #tpu.pipeline_mode<synchronous>, transform_indices = @transform_5, window_bounds = array<i64: 512, 256>}, {pipeline_mode = #tpu.pipeline_mode<synchronous>, transform_indices = @transform_6, window_bounds = array<i64: 1, 256>}, {pipeline_mode = #tpu.pipeline_mode<synchronous>, transform_indices = @transform_7, window_bounds = array<i64: 1024, 512>}, {pipeline_mode = #tpu.pipeline_mode<synchronous>, transform_indices = @transform_8, window_bounds = array<i64: 1, 512>}, {transform_indices = @transform_9, window_bounds = array<i64: 512, 2048>}, {transform_indices = @transform_10, window_bounds = array<i64: 1, 2048>}, {transform_indices = @transform_11, window_bounds = array<i64: 2, 2048>}, {pipeline_mode = #tpu.pipeline_mode<synchronous>, transform_indices = @transform_12, window_bounds = array<i64: 2, 512>}]} {
    %c0_i32 = arith.constant 0 : i32
    %0 = arith.cmpi eq, %arg0, %c0_i32 : i32
    %1 = arith.extui %0 : i1 to i32
    %c0_i32_0 = arith.constant 0 : i32
    %2 = arith.cmpi ne, %1, %c0_i32_0 : i32
    scf.if %2 {
      %c0_8 = arith.constant 0 : index
      %c0_9 = arith.constant 0 : index
      %11 = vector.load %arg1[%c0_8, %c0_9] : memref<392x8xf32, #tpu.memory_space<vmem>>, vector<392x8xf32>
      %c0_10 = arith.constant 0 : index
      %c0_11 = arith.constant 0 : index
      %12 = vector.load %arg2[%c0_10, %c0_11] : memref<8x64xf32, #tpu.memory_space<vmem>>, vector<8x64xf32>
      %cst_12 = arith.constant dense<0.000000e+00> : vector<392x64xf32>
      %13 = tpu.matmul %11, %12, %cst_12 {dimension_numbers = #tpu.dot_dimension_numbers<[1], [0], [0], [1], [0, 0, 1, 1], [], []>} : vector<392x8xf32>, vector<8x64xf32>, vector<392x64xf32> -> vector<392x64xf32>
      %c0_13 = arith.constant 0 : index
      %c0_14 = arith.constant 0 : index
      %14 = vector.load %arg3[%c0_13, %c0_14] : memref<1x64xf32, #tpu.memory_space<vmem>>, vector<1x64xf32>
      %15 = vector.broadcast %14 : vector<1x64xf32> to vector<392x64xf32>
      %16 = arith.addf %13, %15 : vector<392x64xf32>
      %cst_15 = arith.constant 0.000000e+00 : f32
      %17 = vector.broadcast %cst_15 : f32 to vector<392x64xf32>
      %18 = arith.maximumf %16, %17 : vector<392x64xf32>
      %c0_16 = arith.constant 0 : index
      %c0_17 = arith.constant 0 : index
      %19 = vector.load %arg14[%c0_16, %c0_17] : memref<392x64xf32, #tpu.memory_space<vmem>>, vector<392x64xf32>
      tpu.vector_store %arg14[%c0_16, %c0_17], %18 {strides = array<i32>} : memref<392x64xf32, #tpu.memory_space<vmem>>, vector<392x64xf32>,
      %c0_18 = arith.constant 0 : index
      %c0_19 = arith.constant 0 : index
      %20 = tpu.strided_load %arg14[%c0_18, %c0_19] {strides = array<i32: 2, 1>} : memref<392x64xf32, #tpu.memory_space<vmem>>, vector<14x64xf32>
      %c0_20 = arith.constant 0 : index
      %c0_21 = arith.constant 0 : index
      %c0_22 = arith.constant 0 : index
      %21 = vector.load %arg15[%c0_20, %c0_21, %c0_22] : memref<4x98x64xf32, #tpu.memory_space<vmem>>, vector<1x14x64xf32>
      %22 = vector.shape_cast %21 : vector<1x14x64xf32> to vector<14x64xf32>
      %23 = vector.shape_cast %20 : vector<14x64xf32> to vector<1x14x64xf32>
      tpu.vector_store %arg15[%c0_20, %c0_21, %c0_22], %23 {strides = array<i32>} : memref<4x98x64xf32, #tpu.memory_space<vmem>>, vector<1x14x64xf32>,
      %c56 = arith.constant 56 : index
      %c0_23 = arith.constant 0 : index
      %24 = tpu.strided_load %arg14[%c56, %c0_23] {strides = array<i32: 2, 1>} : memref<392x64xf32, #tpu.memory_space<vmem>>, vector<14x64xf32>
      %c0_24 = arith.constant 0 : index
      %c14 = arith.constant 14 : index
      %c0_25 = arith.constant 0 : index
      %25 = vector.load %arg15[%c0_24, %c14, %c0_25] : memref<4x98x64xf32, #tpu.memory_space<vmem>>, vector<1x14x64xf32>
      %26 = vector.shape_cast %25 : vector<1x14x64xf32> to vector<14x64xf32>
      %27 = vector.shape_cast %24 : vector<14x64xf32> to vector<1x14x64xf32>
      tpu.vector_store %arg15[%c0_24, %c14, %c0_25], %27 {strides = array<i32>} : memref<4x98x64xf32, #tpu.memory_space<vmem>>, vector<1x14x64xf32>,
      %c112 = arith.constant 112 : index
      %c0_26 = arith.constant 0 : index
      %28 = tpu.strided_load %arg14[%c112, %c0_26] {strides = array<i32: 2, 1>} : memref<392x64xf32, #tpu.memory_space<vmem>>, vector<14x64xf32>
      %c0_27 = arith.constant 0 : index
      %c28 = arith.constant 28 : index
      %c0_28 = arith.constant 0 : index
      %29 = vector.load %arg15[%c0_27, %c28, %c0_28] : memref<4x98x64xf32, #tpu.memory_space<vmem>>, vector<1x14x64xf32>
      %30 = vector.shape_cast %29 : vector<1x14x64xf32> to vector<14x64xf32>
      %31 = vector.shape_cast %28 : vector<14x64xf32> to vector<1x14x64xf32>
      tpu.vector_store %arg15[%c0_27, %c28, %c0_28], %31 {strides = array<i32>} : memref<4x98x64xf32, #tpu.memory_space<vmem>>, vector<1x14x64xf32>,
      %c168 = arith.constant 168 : index
      %c0_29 = arith.constant 0 : index
      %32 = tpu.strided_load %arg14[%c168, %c0_29] {strides = array<i32: 2, 1>} : memref<392x64xf32, #tpu.memory_space<vmem>>, vector<14x64xf32>
      %c0_30 = arith.constant 0 : index
      %c42 = arith.constant 42 : index
      %c0_31 = arith.constant 0 : index
      %33 = vector.load %arg15[%c0_30, %c42, %c0_31] : memref<4x98x64xf32, #tpu.memory_space<vmem>>, vector<1x14x64xf32>
      %34 = vector.shape_cast %33 : vector<1x14x64xf32> to vector<14x64xf32>
      %35 = vector.shape_cast %32 : vector<14x64xf32> to vector<1x14x64xf32>
      tpu.vector_store %arg15[%c0_30, %c42, %c0_31], %35 {strides = array<i32>} : memref<4x98x64xf32, #tpu.memory_space<vmem>>, vector<1x14x64xf32>,
      %c224 = arith.constant 224 : index
      %c0_32 = arith.constant 0 : index
      %36 = tpu.strided_load %arg14[%c224, %c0_32] {strides = array<i32: 2, 1>} : memref<392x64xf32, #tpu.memory_space<vmem>>, vector<14x64xf32>
      %c0_33 = arith.constant 0 : index
      %c56_34 = arith.constant 56 : index
      %c0_35 = arith.constant 0 : index
      %37 = vector.load %arg15[%c0_33, %c56_34, %c0_35] : memref<4x98x64xf32, #tpu.memory_space<vmem>>, vector<1x14x64xf32>
      %38 = vector.shape_cast %37 : vector<1x14x64xf32> to vector<14x64xf32>
      %39 = vector.shape_cast %36 : vector<14x64xf32> to vector<1x14x64xf32>
      tpu.vector_store %arg15[%c0_33, %c56_34, %c0_35], %39 {strides = array<i32>} : memref<4x98x64xf32, #tpu.memory_space<vmem>>, vector<1x14x64xf32>,
      %c280 = arith.constant 280 : index
      %c0_36 = arith.constant 0 : index
      %40 = tpu.strided_load %arg14[%c280, %c0_36] {strides = array<i32: 2, 1>} : memref<392x64xf32, #tpu.memory_space<vmem>>, vector<14x64xf32>
      %c0_37 = arith.constant 0 : index
      %c70 = arith.constant 70 : index
      %c0_38 = arith.constant 0 : index
      %41 = vector.load %arg15[%c0_37, %c70, %c0_38] : memref<4x98x64xf32, #tpu.memory_space<vmem>>, vector<1x14x64xf32>
      %42 = vector.shape_cast %41 : vector<1x14x64xf32> to vector<14x64xf32>
      %43 = vector.shape_cast %40 : vector<14x64xf32> to vector<1x14x64xf32>
      tpu.vector_store %arg15[%c0_37, %c70, %c0_38], %43 {strides = array<i32>} : memref<4x98x64xf32, #tpu.memory_space<vmem>>, vector<1x14x64xf32>,
      %c336 = arith.constant 336 : index
      %c0_39 = arith.constant 0 : index
      %44 = tpu.strided_load %arg14[%c336, %c0_39] {strides = array<i32: 2, 1>} : memref<392x64xf32, #tpu.memory_space<vmem>>, vector<14x64xf32>
      %c0_40 = arith.constant 0 : index
      %c84 = arith.constant 84 : index
      %c0_41 = arith.constant 0 : index
      %45 = vector.load %arg15[%c0_40, %c84, %c0_41] : memref<4x98x64xf32, #tpu.memory_space<vmem>>, vector<1x14x64xf32>
      %46 = vector.shape_cast %45 : vector<1x14x64xf32> to vector<14x64xf32>
      %47 = vector.shape_cast %44 : vector<14x64xf32> to vector<1x14x64xf32>
      tpu.vector_store %arg15[%c0_40, %c84, %c0_41], %47 {strides = array<i32>} : memref<4x98x64xf32, #tpu.memory_space<vmem>>, vector<1x14x64xf32>,
      %c1 = arith.constant 1 : index
      %c0_42 = arith.constant 0 : index
      %48 = tpu.strided_load %arg14[%c1, %c0_42] {strides = array<i32: 2, 1>} : memref<392x64xf32, #tpu.memory_space<vmem>>, vector<14x64xf32>
      %c1_43 = arith.constant 1 : index
      %c0_44 = arith.constant 0 : index
      %c0_45 = arith.constant 0 : index
      %49 = vector.load %arg15[%c1_43, %c0_44, %c0_45] : memref<4x98x64xf32, #tpu.memory_space<vmem>>, vector<1x14x64xf32>
      %50 = vector.shape_cast %49 : vector<1x14x64xf32> to vector<14x64xf32>
      %51 = vector.shape_cast %48 : vector<14x64xf32> to vector<1x14x64xf32>
      tpu.vector_store %arg15[%c1_43, %c0_44, %c0_45], %51 {strides = array<i32>} : memref<4x98x64xf32, #tpu.memory_space<vmem>>, vector<1x14x64xf32>,
      %c57 = arith.constant 57 : index
      %c0_46 = arith.constant 0 : index
      %52 = tpu.strided_load %arg14[%c57, %c0_46] {strides = array<i32: 2, 1>} : memref<392x64xf32, #tpu.memory_space<vmem>>, vector<14x64xf32>
      %c1_47 = arith.constant 1 : index
      %c14_48 = arith.constant 14 : index
      %c0_49 = arith.constant 0 : index
      %53 = vector.load %arg15[%c1_47, %c14_48, %c0_49] : memref<4x98x64xf32, #tpu.memory_space<vmem>>, vector<1x14x64xf32>
      %54 = vector.shape_cast %53 : vector<1x14x64xf32> to vector<14x64xf32>
      %55 = vector.shape_cast %52 : vector<14x64xf32> to vector<1x14x64xf32>
      tpu.vector_store %arg15[%c1_47, %c14_48, %c0_49], %55 {strides = array<i32>} : memref<4x98x64xf32, #tpu.memory_space<vmem>>, vector<1x14x64xf32>,
      %c113 = arith.constant 113 : index
      %c0_50 = arith.constant 0 : index
      %56 = tpu.strided_load %arg14[%c113, %c0_50] {strides = array<i32: 2, 1>} : memref<392x64xf32, #tpu.memory_space<vmem>>, vector<14x64xf32>
      %c1_51 = arith.constant 1 : index
      %c28_52 = arith.constant 28 : index
      %c0_53 = arith.constant 0 : index
      %57 = vector.load %arg15[%c1_51, %c28_52, %c0_53] : memref<4x98x64xf32, #tpu.memory_space<vmem>>, vector<1x14x64xf32>
      %58 = vector.shape_cast %57 : vector<1x14x64xf32> to vector<14x64xf32>
      %59 = vector.shape_cast %56 : vector<14x64xf32> to vector<1x14x64xf32>
      tpu.vector_store %arg15[%c1_51, %c28_52, %c0_53], %59 {strides = array<i32>} : memref<4x98x64xf32, #tpu.memory_space<vmem>>, vector<1x14x64xf32>,
      %c169 = arith.constant 169 : index
      %c0_54 = arith.constant 0 : index
      %60 = tpu.strided_load %arg14[%c169, %c0_54] {strides = array<i32: 2, 1>} : memref<392x64xf32, #tpu.memory_space<vmem>>, vector<14x64xf32>
      %c1_55 = arith.constant 1 : index
      %c42_56 = arith.constant 42 : index
      %c0_57 = arith.constant 0 : index
      %61 = vector.load %arg15[%c1_55, %c42_56, %c0_57] : memref<4x98x64xf32, #tpu.memory_space<vmem>>, vector<1x14x64xf32>
      %62 = vector.shape_cast %61 : vector<1x14x64xf32> to vector<14x64xf32>
      %63 = vector.shape_cast %60 : vector<14x64xf32> to vector<1x14x64xf32>
      tpu.vector_store %arg15[%c1_55, %c42_56, %c0_57], %63 {strides = array<i32>} : memref<4x98x64xf32, #tpu.memory_space<vmem>>, vector<1x14x64xf32>,
      %c225 = arith.constant 225 : index
      %c0_58 = arith.constant 0 : index
      %64 = tpu.strided_load %arg14[%c225, %c0_58] {strides = array<i32: 2, 1>} : memref<392x64xf32, #tpu.memory_space<vmem>>, vector<14x64xf32>
      %c1_59 = arith.constant 1 : index
      %c56_60 = arith.constant 56 : index
      %c0_61 = arith.constant 0 : index
      %65 = vector.load %arg15[%c1_59, %c56_60, %c0_61] : memref<4x98x64xf32, #tpu.memory_space<vmem>>, vector<1x14x64xf32>
      %66 = vector.shape_cast %65 : vector<1x14x64xf32> to vector<14x64xf32>
      %67 = vector.shape_cast %64 : vector<14x64xf32> to vector<1x14x64xf32>
      tpu.vector_store %arg15[%c1_59, %c56_60, %c0_61], %67 {strides = array<i32>} : memref<4x98x64xf32, #tpu.memory_space<vmem>>, vector<1x14x64xf32>,
      %c281 = arith.constant 281 : index
      %c0_62 = arith.constant 0 : index
      %68 = tpu.strided_load %arg14[%c281, %c0_62] {strides = array<i32: 2, 1>} : memref<392x64xf32, #tpu.memory_space<vmem>>, vector<14x64xf32>
      %c1_63 = arith.constant 1 : index
      %c70_64 = arith.constant 70 : index
      %c0_65 = arith.constant 0 : index
      %69 = vector.load %arg15[%c1_63, %c70_64, %c0_65] : memref<4x98x64xf32, #tpu.memory_space<vmem>>, vector<1x14x64xf32>
      %70 = vector.shape_cast %69 : vector<1x14x64xf32> to vector<14x64xf32>
      %71 = vector.shape_cast %68 : vector<14x64xf32> to vector<1x14x64xf32>
      tpu.vector_store %arg15[%c1_63, %c70_64, %c0_65], %71 {strides = array<i32>} : memref<4x98x64xf32, #tpu.memory_space<vmem>>, vector<1x14x64xf32>,
      %c337 = arith.constant 337 : index
      %c0_66 = arith.constant 0 : index
      %72 = tpu.strided_load %arg14[%c337, %c0_66] {strides = array<i32: 2, 1>} : memref<392x64xf32, #tpu.memory_space<vmem>>, vector<14x64xf32>
      %c1_67 = arith.constant 1 : index
      %c84_68 = arith.constant 84 : index
      %c0_69 = arith.constant 0 : index
      %73 = vector.load %arg15[%c1_67, %c84_68, %c0_69] : memref<4x98x64xf32, #tpu.memory_space<vmem>>, vector<1x14x64xf32>
      %74 = vector.shape_cast %73 : vector<1x14x64xf32> to vector<14x64xf32>
      %75 = vector.shape_cast %72 : vector<14x64xf32> to vector<1x14x64xf32>
      tpu.vector_store %arg15[%c1_67, %c84_68, %c0_69], %75 {strides = array<i32>} : memref<4x98x64xf32, #tpu.memory_space<vmem>>, vector<1x14x64xf32>,
      %c28_70 = arith.constant 28 : index
      %c0_71 = arith.constant 0 : index
      %76 = tpu.strided_load %arg14[%c28_70, %c0_71] {strides = array<i32: 2, 1>} : memref<392x64xf32, #tpu.memory_space<vmem>>, vector<14x64xf32>
      %c2 = arith.constant 2 : index
      %c0_72 = arith.constant 0 : index
      %c0_73 = arith.constant 0 : index
      %77 = vector.load %arg15[%c2, %c0_72, %c0_73] : memref<4x98x64xf32, #tpu.memory_space<vmem>>, vector<1x14x64xf32>
      %78 = vector.shape_cast %77 : vector<1x14x64xf32> to vector<14x64xf32>
      %79 = vector.shape_cast %76 : vector<14x64xf32> to vector<1x14x64xf32>
      tpu.vector_store %arg15[%c2, %c0_72, %c0_73], %79 {strides = array<i32>} : memref<4x98x64xf32, #tpu.memory_space<vmem>>, vector<1x14x64xf32>,
      %c84_74 = arith.constant 84 : index
      %c0_75 = arith.constant 0 : index
      %80 = tpu.strided_load %arg14[%c84_74, %c0_75] {strides = array<i32: 2, 1>} : memref<392x64xf32, #tpu.memory_space<vmem>>, vector<14x64xf32>
      %c2_76 = arith.constant 2 : index
      %c14_77 = arith.constant 14 : index
      %c0_78 = arith.constant 0 : index
      %81 = vector.load %arg15[%c2_76, %c14_77, %c0_78] : memref<4x98x64xf32, #tpu.memory_space<vmem>>, vector<1x14x64xf32>
      %82 = vector.shape_cast %81 : vector<1x14x64xf32> to vector<14x64xf32>
      %83 = vector.shape_cast %80 : vector<14x64xf32> to vector<1x14x64xf32>
      tpu.vector_store %arg15[%c2_76, %c14_77, %c0_78], %83 {strides = array<i32>} : memref<4x98x64xf32, #tpu.memory_space<vmem>>, vector<1x14x64xf32>,
      %c140 = arith.constant 140 : index
      %c0_79 = arith.constant 0 : index
      %84 = tpu.strided_load %arg14[%c140, %c0_79] {strides = array<i32: 2, 1>} : memref<392x64xf32, #tpu.memory_space<vmem>>, vector<14x64xf32>
      %c2_80 = arith.constant 2 : index
      %c28_81 = arith.constant 28 : index
      %c0_82 = arith.constant 0 : index
      %85 = vector.load %arg15[%c2_80, %c28_81, %c0_82] : memref<4x98x64xf32, #tpu.memory_space<vmem>>, vector<1x14x64xf32>
      %86 = vector.shape_cast %85 : vector<1x14x64xf32> to vector<14x64xf32>
      %87 = vector.shape_cast %84 : vector<14x64xf32> to vector<1x14x64xf32>
      tpu.vector_store %arg15[%c2_80, %c28_81, %c0_82], %87 {strides = array<i32>} : memref<4x98x64xf32, #tpu.memory_space<vmem>>, vector<1x14x64xf32>,
      %c196 = arith.constant 196 : index
      %c0_83 = arith.constant 0 : index
      %88 = tpu.strided_load %arg14[%c196, %c0_83] {strides = array<i32: 2, 1>} : memref<392x64xf32, #tpu.memory_space<vmem>>, vector<14x64xf32>
      %c2_84 = arith.constant 2 : index
      %c42_85 = arith.constant 42 : index
      %c0_86 = arith.constant 0 : index
      %89 = vector.load %arg15[%c2_84, %c42_85, %c0_86] : memref<4x98x64xf32, #tpu.memory_space<vmem>>, vector<1x14x64xf32>
      %90 = vector.shape_cast %89 : vector<1x14x64xf32> to vector<14x64xf32>
      %91 = vector.shape_cast %88 : vector<14x64xf32> to vector<1x14x64xf32>
      tpu.vector_store %arg15[%c2_84, %c42_85, %c0_86], %91 {strides = array<i32>} : memref<4x98x64xf32, #tpu.memory_space<vmem>>, vector<1x14x64xf32>,
      %c252 = arith.constant 252 : index
      %c0_87 = arith.constant 0 : index
      %92 = tpu.strided_load %arg14[%c252, %c0_87] {strides = array<i32: 2, 1>} : memref<392x64xf32, #tpu.memory_space<vmem>>, vector<14x64xf32>
      %c2_88 = arith.constant 2 : index
      %c56_89 = arith.constant 56 : index
      %c0_90 = arith.constant 0 : index
      %93 = vector.load %arg15[%c2_88, %c56_89, %c0_90] : memref<4x98x64xf32, #tpu.memory_space<vmem>>, vector<1x14x64xf32>
      %94 = vector.shape_cast %93 : vector<1x14x64xf32> to vector<14x64xf32>
      %95 = vector.shape_cast %92 : vector<14x64xf32> to vector<1x14x64xf32>
      tpu.vector_store %arg15[%c2_88, %c56_89, %c0_90], %95 {strides = array<i32>} : memref<4x98x64xf32, #tpu.memory_space<vmem>>, vector<1x14x64xf32>,
      %c308 = arith.constant 308 : index
      %c0_91 = arith.constant 0 : index
      %96 = tpu.strided_load %arg14[%c308, %c0_91] {strides = array<i32: 2, 1>} : memref<392x64xf32, #tpu.memory_space<vmem>>, vector<14x64xf32>
      %c2_92 = arith.constant 2 : index
      %c70_93 = arith.constant 70 : index
      %c0_94 = arith.constant 0 : index
      %97 = vector.load %arg15[%c2_92, %c70_93, %c0_94] : memref<4x98x64xf32, #tpu.memory_space<vmem>>, vector<1x14x64xf32>
      %98 = vector.shape_cast %97 : vector<1x14x64xf32> to vector<14x64xf32>
      %99 = vector.shape_cast %96 : vector<14x64xf32> to vector<1x14x64xf32>
      tpu.vector_store %arg15[%c2_92, %c70_93, %c0_94], %99 {strides = array<i32>} : memref<4x98x64xf32, #tpu.memory_space<vmem>>, vector<1x14x64xf32>,
      %c364 = arith.constant 364 : index
      %c0_95 = arith.constant 0 : index
      %100 = tpu.strided_load %arg14[%c364, %c0_95] {strides = array<i32: 2, 1>} : memref<392x64xf32, #tpu.memory_space<vmem>>, vector<14x64xf32>
      %c2_96 = arith.constant 2 : index
      %c84_97 = arith.constant 84 : index
      %c0_98 = arith.constant 0 : index
      %101 = vector.load %arg15[%c2_96, %c84_97, %c0_98] : memref<4x98x64xf32, #tpu.memory_space<vmem>>, vector<1x14x64xf32>
      %102 = vector.shape_cast %101 : vector<1x14x64xf32> to vector<14x64xf32>
      %103 = vector.shape_cast %100 : vector<14x64xf32> to vector<1x14x64xf32>
      tpu.vector_store %arg15[%c2_96, %c84_97, %c0_98], %103 {strides = array<i32>} : memref<4x98x64xf32, #tpu.memory_space<vmem>>, vector<1x14x64xf32>,
      %c29 = arith.constant 29 : index
      %c0_99 = arith.constant 0 : index
      %104 = tpu.strided_load %arg14[%c29, %c0_99] {strides = array<i32: 2, 1>} : memref<392x64xf32, #tpu.memory_space<vmem>>, vector<14x64xf32>
      %c3 = arith.constant 3 : index
      %c0_100 = arith.constant 0 : index
      %c0_101 = arith.constant 0 : index
      %105 = vector.load %arg15[%c3, %c0_100, %c0_101] : memref<4x98x64xf32, #tpu.memory_space<vmem>>, vector<1x14x64xf32>
      %106 = vector.shape_cast %105 : vector<1x14x64xf32> to vector<14x64xf32>
      %107 = vector.shape_cast %104 : vector<14x64xf32> to vector<1x14x64xf32>
      tpu.vector_store %arg15[%c3, %c0_100, %c0_101], %107 {strides = array<i32>} : memref<4x98x64xf32, #tpu.memory_space<vmem>>, vector<1x14x64xf32>,
      %c85 = arith.constant 85 : index
      %c0_102 = arith.constant 0 : index
      %108 = tpu.strided_load %arg14[%c85, %c0_102] {strides = array<i32: 2, 1>} : memref<392x64xf32, #tpu.memory_space<vmem>>, vector<14x64xf32>
      %c3_103 = arith.constant 3 : index
      %c14_104 = arith.constant 14 : index
      %c0_105 = arith.constant 0 : index
      %109 = vector.load %arg15[%c3_103, %c14_104, %c0_105] : memref<4x98x64xf32, #tpu.memory_space<vmem>>, vector<1x14x64xf32>
      %110 = vector.shape_cast %109 : vector<1x14x64xf32> to vector<14x64xf32>
      %111 = vector.shape_cast %108 : vector<14x64xf32> to vector<1x14x64xf32>
      tpu.vector_store %arg15[%c3_103, %c14_104, %c0_105], %111 {strides = array<i32>} : memref<4x98x64xf32, #tpu.memory_space<vmem>>, vector<1x14x64xf32>,
      %c141 = arith.constant 141 : index
      %c0_106 = arith.constant 0 : index
      %112 = tpu.strided_load %arg14[%c141, %c0_106] {strides = array<i32: 2, 1>} : memref<392x64xf32, #tpu.memory_space<vmem>>, vector<14x64xf32>
      %c3_107 = arith.constant 3 : index
      %c28_108 = arith.constant 28 : index
      %c0_109 = arith.constant 0 : index
      %113 = vector.load %arg15[%c3_107, %c28_108, %c0_109] : memref<4x98x64xf32, #tpu.memory_space<vmem>>, vector<1x14x64xf32>
      %114 = vector.shape_cast %113 : vector<1x14x64xf32> to vector<14x64xf32>
      %115 = vector.shape_cast %112 : vector<14x64xf32> to vector<1x14x64xf32>
      tpu.vector_store %arg15[%c3_107, %c28_108, %c0_109], %115 {strides = array<i32>} : memref<4x98x64xf32, #tpu.memory_space<vmem>>, vector<1x14x64xf32>,
      %c197 = arith.constant 197 : index
      %c0_110 = arith.constant 0 : index
      %116 = tpu.strided_load %arg14[%c197, %c0_110] {strides = array<i32: 2, 1>} : memref<392x64xf32, #tpu.memory_space<vmem>>, vector<14x64xf32>
      %c3_111 = arith.constant 3 : index
      %c42_112 = arith.constant 42 : index
      %c0_113 = arith.constant 0 : index
      %117 = vector.load %arg15[%c3_111, %c42_112, %c0_113] : memref<4x98x64xf32, #tpu.memory_space<vmem>>, vector<1x14x64xf32>
      %118 = vector.shape_cast %117 : vector<1x14x64xf32> to vector<14x64xf32>
      %119 = vector.shape_cast %116 : vector<14x64xf32> to vector<1x14x64xf32>
      tpu.vector_store %arg15[%c3_111, %c42_112, %c0_113], %119 {strides = array<i32>} : memref<4x98x64xf32, #tpu.memory_space<vmem>>, vector<1x14x64xf32>,
      %c253 = arith.constant 253 : index
      %c0_114 = arith.constant 0 : index
      %120 = tpu.strided_load %arg14[%c253, %c0_114] {strides = array<i32: 2, 1>} : memref<392x64xf32, #tpu.memory_space<vmem>>, vector<14x64xf32>
      %c3_115 = arith.constant 3 : index
      %c56_116 = arith.constant 56 : index
      %c0_117 = arith.constant 0 : index
      %121 = vector.load %arg15[%c3_115, %c56_116, %c0_117] : memref<4x98x64xf32, #tpu.memory_space<vmem>>, vector<1x14x64xf32>
      %122 = vector.shape_cast %121 : vector<1x14x64xf32> to vector<14x64xf32>
      %123 = vector.shape_cast %120 : vector<14x64xf32> to vector<1x14x64xf32>
      tpu.vector_store %arg15[%c3_115, %c56_116, %c0_117], %123 {strides = array<i32>} : memref<4x98x64xf32, #tpu.memory_space<vmem>>, vector<1x14x64xf32>,
      %c309 = arith.constant 309 : index
      %c0_118 = arith.constant 0 : index
      %124 = tpu.strided_load %arg14[%c309, %c0_118] {strides = array<i32: 2, 1>} : memref<392x64xf32, #tpu.memory_space<vmem>>, vector<14x64xf32>
      %c3_119 = arith.constant 3 : index
      %c70_120 = arith.constant 70 : index
      %c0_121 = arith.constant 0 : index
      %125 = vector.load %arg15[%c3_119, %c70_120, %c0_121] : memref<4x98x64xf32, #tpu.memory_space<vmem>>, vector<1x14x64xf32>
      %126 = vector.shape_cast %125 : vector<1x14x64xf32> to vector<14x64xf32>
      %127 = vector.shape_cast %124 : vector<14x64xf32> to vector<1x14x64xf32>
      tpu.vector_store %arg15[%c3_119, %c70_120, %c0_121], %127 {strides = array<i32>} : memref<4x98x64xf32, #tpu.memory_space<vmem>>, vector<1x14x64xf32>,
      %c365 = arith.constant 365 : index
      %c0_122 = arith.constant 0 : index
      %128 = tpu.strided_load %arg14[%c365, %c0_122] {strides = array<i32: 2, 1>} : memref<392x64xf32, #tpu.memory_space<vmem>>, vector<14x64xf32>
      %c3_123 = arith.constant 3 : index
      %c84_124 = arith.constant 84 : index
      %c0_125 = arith.constant 0 : index
      %129 = vector.load %arg15[%c3_123, %c84_124, %c0_125] : memref<4x98x64xf32, #tpu.memory_space<vmem>>, vector<1x14x64xf32>
      %130 = vector.shape_cast %129 : vector<1x14x64xf32> to vector<14x64xf32>
      %131 = vector.shape_cast %128 : vector<14x64xf32> to vector<1x14x64xf32>
      tpu.vector_store %arg15[%c3_123, %c84_124, %c0_125], %131 {strides = array<i32>} : memref<4x98x64xf32, #tpu.memory_space<vmem>>, vector<1x14x64xf32>,
      %c0_126 = arith.constant 0 : index
      %c0_127 = arith.constant 0 : index
      %c0_128 = arith.constant 0 : index
      %132 = vector.load %arg15[%c0_126, %c0_127, %c0_128] : memref<4x98x64xf32, #tpu.memory_space<vmem>>, vector<1x98x64xf32>
      %133 = vector.shape_cast %132 : vector<1x98x64xf32> to vector<98x64xf32>
      %134 = arith.truncf %133 : vector<98x64xf32> to vector<98x64xbf16>
      %c0_129 = arith.constant 0 : index
      %c0_130 = arith.constant 0 : index
      %135 = vector.load %arg4[%c0_129, %c0_130] : memref<256x128xbf16, #tpu.memory_space<vmem>>, vector<64x128xbf16>
      %cst_131 = arith.constant dense<0.000000e+00> : vector<98x128xf32>
      %136 = tpu.matmul %134, %135, %cst_131 {dimension_numbers = #tpu.dot_dimension_numbers<[1], [0], [0], [1], [0, 0, 1, 1], [], []>} : vector<98x64xbf16>, vector<64x128xbf16>, vector<98x128xf32> -> vector<98x128xf32>
      %c1_132 = arith.constant 1 : index
      %c0_133 = arith.constant 0 : index
      %c0_134 = arith.constant 0 : index
      %137 = vector.load %arg15[%c1_132, %c0_133, %c0_134] : memref<4x98x64xf32, #tpu.memory_space<vmem>>, vector<1x98x64xf32>
      %138 = vector.shape_cast %137 : vector<1x98x64xf32> to vector<98x64xf32>
      %139 = arith.truncf %138 : vector<98x64xf32> to vector<98x64xbf16>
      %c64 = arith.constant 64 : index
      %c0_135 = arith.constant 0 : index
      %140 = vector.load %arg4[%c64, %c0_135] : memref<256x128xbf16, #tpu.memory_space<vmem>>, vector<64x128xbf16>
      %cst_136 = arith.constant dense<0.000000e+00> : vector<98x128xf32>
      %141 = tpu.matmul %139, %140, %cst_136 {dimension_numbers = #tpu.dot_dimension_numbers<[1], [0], [0], [1], [0, 0, 1, 1], [], []>} : vector<98x64xbf16>, vector<64x128xbf16>, vector<98x128xf32> -> vector<98x128xf32>
      %142 = arith.addf %136, %141 : vector<98x128xf32>
      %c2_137 = arith.constant 2 : index
      %c0_138 = arith.constant 0 : index
      %c0_139 = arith.constant 0 : index
      %143 = vector.load %arg15[%c2_137, %c0_138, %c0_139] : memref<4x98x64xf32, #tpu.memory_space<vmem>>, vector<1x98x64xf32>
      %144 = vector.shape_cast %143 : vector<1x98x64xf32> to vector<98x64xf32>
      %145 = arith.truncf %144 : vector<98x64xf32> to vector<98x64xbf16>
      %c128 = arith.constant 128 : index
      %c0_140 = arith.constant 0 : index
      %146 = vector.load %arg4[%c128, %c0_140] : memref<256x128xbf16, #tpu.memory_space<vmem>>, vector<64x128xbf16>
      %cst_141 = arith.constant dense<0.000000e+00> : vector<98x128xf32>
      %147 = tpu.matmul %145, %146, %cst_141 {dimension_numbers = #tpu.dot_dimension_numbers<[1], [0], [0], [1], [0, 0, 1, 1], [], []>} : vector<98x64xbf16>, vector<64x128xbf16>, vector<98x128xf32> -> vector<98x128xf32>
      %148 = arith.addf %142, %147 : vector<98x128xf32>
      %c3_142 = arith.constant 3 : index
      %c0_143 = arith.constant 0 : index
      %c0_144 = arith.constant 0 : index
      %149 = vector.load %arg15[%c3_142, %c0_143, %c0_144] : memref<4x98x64xf32, #tpu.memory_space<vmem>>, vector<1x98x64xf32>
      %150 = vector.shape_cast %149 : vector<1x98x64xf32> to vector<98x64xf32>
      %151 = arith.truncf %150 : vector<98x64xf32> to vector<98x64xbf16>
      %c192 = arith.constant 192 : index
      %c0_145 = arith.constant 0 : index
      %152 = vector.load %arg4[%c192, %c0_145] : memref<256x128xbf16, #tpu.memory_space<vmem>>, vector<64x128xbf16>
      %cst_146 = arith.constant dense<0.000000e+00> : vector<98x128xf32>
      %153 = tpu.matmul %151, %152, %cst_146 {dimension_numbers = #tpu.dot_dimension_numbers<[1], [0], [0], [1], [0, 0, 1, 1], [], []>} : vector<98x64xbf16>, vector<64x128xbf16>, vector<98x128xf32> -> vector<98x128xf32>
      %154 = arith.addf %148, %153 : vector<98x128xf32>
      %c0_147 = arith.constant 0 : index
      %c0_148 = arith.constant 0 : index
      %155 = vector.load %arg5[%c0_147, %c0_148] : memref<1x128xf32, #tpu.memory_space<vmem>>, vector<1x128xf32>
      %156 = vector.broadcast %155 : vector<1x128xf32> to vector<98x128xf32>
      %157 = arith.addf %154, %156 : vector<98x128xf32>
      %cst_149 = arith.constant 0.000000e+00 : f32
      %158 = vector.broadcast %cst_149 : f32 to vector<98x128xf32>
      %159 = arith.maximumf %157, %158 : vector<98x128xf32>
      %c0_150 = arith.constant 0 : index
      %c0_151 = arith.constant 0 : index
      %160 = vector.load %arg16[%c0_150, %c0_151] : memref<98x128xf32, #tpu.memory_space<vmem>>, vector<98x128xf32>
      tpu.vector_store %arg16[%c0_150, %c0_151], %159 {strides = array<i32>} : memref<98x128xf32, #tpu.memory_space<vmem>>, vector<98x128xf32>,
      %c0_152 = arith.constant 0 : index
      %c0_153 = arith.constant 0 : index
      %161 = tpu.strided_load %arg16[%c0_152, %c0_153] {strides = array<i32: 2, 1>} : memref<98x128xf32, #tpu.memory_space<vmem>>, vector<3x128xf32>
      %c0_154 = arith.constant 0 : index
      %c0_155 = arith.constant 0 : index
      %162 = vector.load %arg17[%c0_154, %c0_155] : memref<18x512xf32, #tpu.memory_space<vmem>>, vector<3x128xf32>
      tpu.vector_store %arg17[%c0_154, %c0_155], %161 {strides = array<i32>} : memref<18x512xf32, #tpu.memory_space<vmem>>, vector<3x128xf32>,
      %c7 = arith.constant 7 : index
      %c0_156 = arith.constant 0 : index
      %163 = tpu.strided_load %arg16[%c7, %c0_156] {strides = array<i32: 2, 1>} : memref<98x128xf32, #tpu.memory_space<vmem>>, vector<3x128xf32>
      %c3_157 = arith.constant 3 : index
      %c0_158 = arith.constant 0 : index
      %164 = vector.load %arg17[%c3_157, %c0_158] : memref<18x512xf32, #tpu.memory_space<vmem>>, vector<3x128xf32>
      tpu.vector_store %arg17[%c3_157, %c0_158], %163 {strides = array<i32>} : memref<18x512xf32, #tpu.memory_space<vmem>>, vector<3x128xf32>,
      %c28_159 = arith.constant 28 : index
      %c0_160 = arith.constant 0 : index
      %165 = tpu.strided_load %arg16[%c28_159, %c0_160] {strides = array<i32: 2, 1>} : memref<98x128xf32, #tpu.memory_space<vmem>>, vector<3x128xf32>
      %c6 = arith.constant 6 : index
      %c0_161 = arith.constant 0 : index
      %166 = vector.load %arg17[%c6, %c0_161] : memref<18x512xf32, #tpu.memory_space<vmem>>, vector<3x128xf32>
      tpu.vector_store %arg17[%c6, %c0_161], %165 {strides = array<i32>} : memref<18x512xf32, #tpu.memory_space<vmem>>, vector<3x128xf32>,
      %c35 = arith.constant 35 : index
      %c0_162 = arith.constant 0 : index
      %167 = tpu.strided_load %arg16[%c35, %c0_162] {strides = array<i32: 2, 1>} : memref<98x128xf32, #tpu.memory_space<vmem>>, vector<3x128xf32>
      %c9 = arith.constant 9 : index
      %c0_163 = arith.constant 0 : index
      %168 = vector.load %arg17[%c9, %c0_163] : memref<18x512xf32, #tpu.memory_space<vmem>>, vector<3x128xf32>
      tpu.vector_store %arg17[%c9, %c0_163], %167 {strides = array<i32>} : memref<18x512xf32, #tpu.memory_space<vmem>>, vector<3x128xf32>,
      %c56_164 = arith.constant 56 : index
      %c0_165 = arith.constant 0 : index
      %169 = tpu.strided_load %arg16[%c56_164, %c0_165] {strides = array<i32: 2, 1>} : memref<98x128xf32, #tpu.memory_space<vmem>>, vector<3x128xf32>
      %c12 = arith.constant 12 : index
      %c0_166 = arith.constant 0 : index
      %170 = vector.load %arg17[%c12, %c0_166] : memref<18x512xf32, #tpu.memory_space<vmem>>, vector<3x128xf32>
      tpu.vector_store %arg17[%c12, %c0_166], %169 {strides = array<i32>} : memref<18x512xf32, #tpu.memory_space<vmem>>, vector<3x128xf32>,
      %c63 = arith.constant 63 : index
      %c0_167 = arith.constant 0 : index
      %171 = tpu.strided_load %arg16[%c63, %c0_167] {strides = array<i32: 2, 1>} : memref<98x128xf32, #tpu.memory_space<vmem>>, vector<3x128xf32>
      %c15 = arith.constant 15 : index
      %c0_168 = arith.constant 0 : index
      %172 = vector.load %arg17[%c15, %c0_168] : memref<18x512xf32, #tpu.memory_space<vmem>>, vector<3x128xf32>
      tpu.vector_store %arg17[%c15, %c0_168], %171 {strides = array<i32>} : memref<18x512xf32, #tpu.memory_space<vmem>>, vector<3x128xf32>,
      %c1_169 = arith.constant 1 : index
      %c0_170 = arith.constant 0 : index
      %173 = tpu.strided_load %arg16[%c1_169, %c0_170] {strides = array<i32: 2, 1>} : memref<98x128xf32, #tpu.memory_space<vmem>>, vector<3x128xf32>
      %c0_171 = arith.constant 0 : index
      %c128_172 = arith.constant 128 : index
      %174 = vector.load %arg17[%c0_171, %c128_172] : memref<18x512xf32, #tpu.memory_space<vmem>>, vector<3x128xf32>
      tpu.vector_store %arg17[%c0_171, %c128_172], %173 {strides = array<i32>} : memref<18x512xf32, #tpu.memory_space<vmem>>, vector<3x128xf32>,
      %c8 = arith.constant 8 : index
      %c0_173 = arith.constant 0 : index
      %175 = tpu.strided_load %arg16[%c8, %c0_173] {strides = array<i32: 2, 1>} : memref<98x128xf32, #tpu.memory_space<vmem>>, vector<3x128xf32>
      %c3_174 = arith.constant 3 : index
      %c128_175 = arith.constant 128 : index
      %176 = vector.load %arg17[%c3_174, %c128_175] : memref<18x512xf32, #tpu.memory_space<vmem>>, vector<3x128xf32>
      tpu.vector_store %arg17[%c3_174, %c128_175], %175 {strides = array<i32>} : memref<18x512xf32, #tpu.memory_space<vmem>>, vector<3x128xf32>,
      %c29_176 = arith.constant 29 : index
      %c0_177 = arith.constant 0 : index
      %177 = tpu.strided_load %arg16[%c29_176, %c0_177] {strides = array<i32: 2, 1>} : memref<98x128xf32, #tpu.memory_space<vmem>>, vector<3x128xf32>
      %c6_178 = arith.constant 6 : index
      %c128_179 = arith.constant 128 : index
      %178 = vector.load %arg17[%c6_178, %c128_179] : memref<18x512xf32, #tpu.memory_space<vmem>>, vector<3x128xf32>
      tpu.vector_store %arg17[%c6_178, %c128_179], %177 {strides = array<i32>} : memref<18x512xf32, #tpu.memory_space<vmem>>, vector<3x128xf32>,
      %c36 = arith.constant 36 : index
      %c0_180 = arith.constant 0 : index
      %179 = tpu.strided_load %arg16[%c36, %c0_180] {strides = array<i32: 2, 1>} : memref<98x128xf32, #tpu.memory_space<vmem>>, vector<3x128xf32>
      %c9_181 = arith.constant 9 : index
      %c128_182 = arith.constant 128 : index
      %180 = vector.load %arg17[%c9_181, %c128_182] : memref<18x512xf32, #tpu.memory_space<vmem>>, vector<3x128xf32>
      tpu.vector_store %arg17[%c9_181, %c128_182], %179 {strides = array<i32>} : memref<18x512xf32, #tpu.memory_space<vmem>>, vector<3x128xf32>,
      %c57_183 = arith.constant 57 : index
      %c0_184 = arith.constant 0 : index
      %181 = tpu.strided_load %arg16[%c57_183, %c0_184] {strides = array<i32: 2, 1>} : memref<98x128xf32, #tpu.memory_space<vmem>>, vector<3x128xf32>
      %c12_185 = arith.constant 12 : index
      %c128_186 = arith.constant 128 : index
      %182 = vector.load %arg17[%c12_185, %c128_186] : memref<18x512xf32, #tpu.memory_space<vmem>>, vector<3x128xf32>
      tpu.vector_store %arg17[%c12_185, %c128_186], %181 {strides = array<i32>} : memref<18x512xf32, #tpu.memory_space<vmem>>, vector<3x128xf32>,
      %c64_187 = arith.constant 64 : index
      %c0_188 = arith.constant 0 : index
      %183 = tpu.strided_load %arg16[%c64_187, %c0_188] {strides = array<i32: 2, 1>} : memref<98x128xf32, #tpu.memory_space<vmem>>, vector<3x128xf32>
      %c15_189 = arith.constant 15 : index
      %c128_190 = arith.constant 128 : index
      %184 = vector.load %arg17[%c15_189, %c128_190] : memref<18x512xf32, #tpu.memory_space<vmem>>, vector<3x128xf32>
      tpu.vector_store %arg17[%c15_189, %c128_190], %183 {strides = array<i32>} : memref<18x512xf32, #tpu.memory_space<vmem>>, vector<3x128xf32>,
      %c14_191 = arith.constant 14 : index
      %c0_192 = arith.constant 0 : index
      %185 = tpu.strided_load %arg16[%c14_191, %c0_192] {strides = array<i32: 2, 1>} : memref<98x128xf32, #tpu.memory_space<vmem>>, vector<3x128xf32>
      %c0_193 = arith.constant 0 : index
      %c256 = arith.constant 256 : index
      %186 = vector.load %arg17[%c0_193, %c256] : memref<18x512xf32, #tpu.memory_space<vmem>>, vector<3x128xf32>
      tpu.vector_store %arg17[%c0_193, %c256], %185 {strides = array<i32>} : memref<18x512xf32, #tpu.memory_space<vmem>>, vector<3x128xf32>,
      %c21 = arith.constant 21 : index
      %c0_194 = arith.constant 0 : index
      %187 = tpu.strided_load %arg16[%c21, %c0_194] {strides = array<i32: 2, 1>} : memref<98x128xf32, #tpu.memory_space<vmem>>, vector<3x128xf32>
      %c3_195 = arith.constant 3 : index
      %c256_196 = arith.constant 256 : index
      %188 = vector.load %arg17[%c3_195, %c256_196] : memref<18x512xf32, #tpu.memory_space<vmem>>, vector<3x128xf32>
      tpu.vector_store %arg17[%c3_195, %c256_196], %187 {strides = array<i32>} : memref<18x512xf32, #tpu.memory_space<vmem>>, vector<3x128xf32>,
      %c42_197 = arith.constant 42 : index
      %c0_198 = arith.constant 0 : index
      %189 = tpu.strided_load %arg16[%c42_197, %c0_198] {strides = array<i32: 2, 1>} : memref<98x128xf32, #tpu.memory_space<vmem>>, vector<3x128xf32>
      %c6_199 = arith.constant 6 : index
      %c256_200 = arith.constant 256 : index
      %190 = vector.load %arg17[%c6_199, %c256_200] : memref<18x512xf32, #tpu.memory_space<vmem>>, vector<3x128xf32>
      tpu.vector_store %arg17[%c6_199, %c256_200], %189 {strides = array<i32>} : memref<18x512xf32, #tpu.memory_space<vmem>>, vector<3x128xf32>,
      %c49 = arith.constant 49 : index
      %c0_201 = arith.constant 0 : index
      %191 = tpu.strided_load %arg16[%c49, %c0_201] {strides = array<i32: 2, 1>} : memref<98x128xf32, #tpu.memory_space<vmem>>, vector<3x128xf32>
      %c9_202 = arith.constant 9 : index
      %c256_203 = arith.constant 256 : index
      %192 = vector.load %arg17[%c9_202, %c256_203] : memref<18x512xf32, #tpu.memory_space<vmem>>, vector<3x128xf32>
      tpu.vector_store %arg17[%c9_202, %c256_203], %191 {strides = array<i32>} : memref<18x512xf32, #tpu.memory_space<vmem>>, vector<3x128xf32>,
      %c70_204 = arith.constant 70 : index
      %c0_205 = arith.constant 0 : index
      %193 = tpu.strided_load %arg16[%c70_204, %c0_205] {strides = array<i32: 2, 1>} : memref<98x128xf32, #tpu.memory_space<vmem>>, vector<3x128xf32>
      %c12_206 = arith.constant 12 : index
      %c256_207 = arith.constant 256 : index
      %194 = vector.load %arg17[%c12_206, %c256_207] : memref<18x512xf32, #tpu.memory_space<vmem>>, vector<3x128xf32>
      tpu.vector_store %arg17[%c12_206, %c256_207], %193 {strides = array<i32>} : memref<18x512xf32, #tpu.memory_space<vmem>>, vector<3x128xf32>,
      %c77 = arith.constant 77 : index
      %c0_208 = arith.constant 0 : index
      %195 = tpu.strided_load %arg16[%c77, %c0_208] {strides = array<i32: 2, 1>} : memref<98x128xf32, #tpu.memory_space<vmem>>, vector<3x128xf32>
      %c15_209 = arith.constant 15 : index
      %c256_210 = arith.constant 256 : index
      %196 = vector.load %arg17[%c15_209, %c256_210] : memref<18x512xf32, #tpu.memory_space<vmem>>, vector<3x128xf32>
      tpu.vector_store %arg17[%c15_209, %c256_210], %195 {strides = array<i32>} : memref<18x512xf32, #tpu.memory_space<vmem>>, vector<3x128xf32>,
      %c15_211 = arith.constant 15 : index
      %c0_212 = arith.constant 0 : index
      %197 = tpu.strided_load %arg16[%c15_211, %c0_212] {strides = array<i32: 2, 1>} : memref<98x128xf32, #tpu.memory_space<vmem>>, vector<3x128xf32>
      %c0_213 = arith.constant 0 : index
      %c384 = arith.constant 384 : index
      %198 = vector.load %arg17[%c0_213, %c384] : memref<18x512xf32, #tpu.memory_space<vmem>>, vector<3x128xf32>
      tpu.vector_store %arg17[%c0_213, %c384], %197 {strides = array<i32>} : memref<18x512xf32, #tpu.memory_space<vmem>>, vector<3x128xf32>,
      %c22 = arith.constant 22 : index
      %c0_214 = arith.constant 0 : index
      %199 = tpu.strided_load %arg16[%c22, %c0_214] {strides = array<i32: 2, 1>} : memref<98x128xf32, #tpu.memory_space<vmem>>, vector<3x128xf32>
      %c3_215 = arith.constant 3 : index
      %c384_216 = arith.constant 384 : index
      %200 = vector.load %arg17[%c3_215, %c384_216] : memref<18x512xf32, #tpu.memory_space<vmem>>, vector<3x128xf32>
      tpu.vector_store %arg17[%c3_215, %c384_216], %199 {strides = array<i32>} : memref<18x512xf32, #tpu.memory_space<vmem>>, vector<3x128xf32>,
      %c43 = arith.constant 43 : index
      %c0_217 = arith.constant 0 : index
      %201 = tpu.strided_load %arg16[%c43, %c0_217] {strides = array<i32: 2, 1>} : memref<98x128xf32, #tpu.memory_space<vmem>>, vector<3x128xf32>
      %c6_218 = arith.constant 6 : index
      %c384_219 = arith.constant 384 : index
      %202 = vector.load %arg17[%c6_218, %c384_219] : memref<18x512xf32, #tpu.memory_space<vmem>>, vector<3x128xf32>
      tpu.vector_store %arg17[%c6_218, %c384_219], %201 {strides = array<i32>} : memref<18x512xf32, #tpu.memory_space<vmem>>, vector<3x128xf32>,
      %c50 = arith.constant 50 : index
      %c0_220 = arith.constant 0 : index
      %203 = tpu.strided_load %arg16[%c50, %c0_220] {strides = array<i32: 2, 1>} : memref<98x128xf32, #tpu.memory_space<vmem>>, vector<3x128xf32>
      %c9_221 = arith.constant 9 : index
      %c384_222 = arith.constant 384 : index
      %204 = vector.load %arg17[%c9_221, %c384_222] : memref<18x512xf32, #tpu.memory_space<vmem>>, vector<3x128xf32>
      tpu.vector_store %arg17[%c9_221, %c384_222], %203 {strides = array<i32>} : memref<18x512xf32, #tpu.memory_space<vmem>>, vector<3x128xf32>,
      %c71 = arith.constant 71 : index
      %c0_223 = arith.constant 0 : index
      %205 = tpu.strided_load %arg16[%c71, %c0_223] {strides = array<i32: 2, 1>} : memref<98x128xf32, #tpu.memory_space<vmem>>, vector<3x128xf32>
      %c12_224 = arith.constant 12 : index
      %c384_225 = arith.constant 384 : index
      %206 = vector.load %arg17[%c12_224, %c384_225] : memref<18x512xf32, #tpu.memory_space<vmem>>, vector<3x128xf32>
      tpu.vector_store %arg17[%c12_224, %c384_225], %205 {strides = array<i32>} : memref<18x512xf32, #tpu.memory_space<vmem>>, vector<3x128xf32>,
      %c78 = arith.constant 78 : index
      %c0_226 = arith.constant 0 : index
      %207 = tpu.strided_load %arg16[%c78, %c0_226] {strides = array<i32: 2, 1>} : memref<98x128xf32, #tpu.memory_space<vmem>>, vector<3x128xf32>
      %c15_227 = arith.constant 15 : index
      %c384_228 = arith.constant 384 : index
      %208 = vector.load %arg17[%c15_227, %c384_228] : memref<18x512xf32, #tpu.memory_space<vmem>>, vector<3x128xf32>
      tpu.vector_store %arg17[%c15_227, %c384_228], %207 {strides = array<i32>} : memref<18x512xf32, #tpu.memory_space<vmem>>, vector<3x128xf32>,
      %c0_229 = arith.constant 0 : index
      %c0_230 = arith.constant 0 : index
      %209 = vector.load %arg17[%c0_229, %c0_230] : memref<18x512xf32, #tpu.memory_space<vmem>>, vector<18x512xf32>
      %210 = arith.truncf %209 : vector<18x512xf32> to vector<18x512xbf16>
      %c0_231 = arith.constant 0 : index
      %c0_232 = arith.constant 0 : index
      %211 = vector.load %arg6[%c0_231, %c0_232] : memref<512x256xbf16, #tpu.memory_space<vmem>>, vector<512x256xbf16>
      %cst_233 = arith.constant dense<0.000000e+00> : vector<18x256xf32>
      %212 = tpu.matmul %210, %211, %cst_233 {dimension_numbers = #tpu.dot_dimension_numbers<[1], [0], [0], [1], [0, 0, 1, 1], [], []>} : vector<18x512xbf16>, vector<512x256xbf16>, vector<18x256xf32> -> vector<18x256xf32>
      %c0_234 = arith.constant 0 : index
      %c0_235 = arith.constant 0 : index
      %213 = vector.load %arg7[%c0_234, %c0_235] : memref<1x256xf32, #tpu.memory_space<vmem>>, vector<1x256xf32>
      %214 = vector.broadcast %213 : vector<1x256xf32> to vector<18x256xf32>
      %215 = arith.addf %212, %214 : vector<18x256xf32>
      %cst_236 = arith.constant 0.000000e+00 : f32
      %216 = vector.broadcast %cst_236 : f32 to vector<18x256xf32>
      %217 = arith.maximumf %215, %216 : vector<18x256xf32>
      %c0_237 = arith.constant 0 : index
      %c0_238 = arith.constant 0 : index
      %218 = vector.load %arg18[%c0_237, %c0_238] : memref<18x256xf32, #tpu.memory_space<vmem>>, vector<18x256xf32>
      tpu.vector_store %arg18[%c0_237, %c0_238], %217 {strides = array<i32>} : memref<18x256xf32, #tpu.memory_space<vmem>>, vector<18x256xf32>,
      %c0_239 = arith.constant 0 : index
      %c0_240 = arith.constant 0 : index
      %219 = vector.load %arg18[%c0_239, %c0_240] : memref<18x256xf32, #tpu.memory_space<vmem>>, vector<1x256xf32>
      %c0_241 = arith.constant 0 : index
      %c0_242 = arith.constant 0 : index
      %220 = vector.load %arg19[%c0_241, %c0_242] : memref<2x1024xf32, #tpu.memory_space<vmem>>, vector<1x256xf32>
      tpu.vector_store %arg19[%c0_241, %c0_242], %219 {strides = array<i32>} : memref<2x1024xf32, #tpu.memory_space<vmem>>, vector<1x256xf32>,
      %c3_243 = arith.constant 3 : index
      %c0_244 = arith.constant 0 : index
      %221 = vector.load %arg18[%c3_243, %c0_244] : memref<18x256xf32, #tpu.memory_space<vmem>>, vector<1x256xf32>
      %c1_245 = arith.constant 1 : index
      %c0_246 = arith.constant 0 : index
      %222 = vector.load %arg19[%c1_245, %c0_246] : memref<2x1024xf32, #tpu.memory_space<vmem>>, vector<1x256xf32>
      tpu.vector_store %arg19[%c1_245, %c0_246], %221 {strides = array<i32>} : memref<2x1024xf32, #tpu.memory_space<vmem>>, vector<1x256xf32>,
      %c1_247 = arith.constant 1 : index
      %c0_248 = arith.constant 0 : index
      %223 = vector.load %arg18[%c1_247, %c0_248] : memref<18x256xf32, #tpu.memory_space<vmem>>, vector<1x256xf32>
      %c0_249 = arith.constant 0 : index
      %c256_250 = arith.constant 256 : index
      %224 = vector.load %arg19[%c0_249, %c256_250] : memref<2x1024xf32, #tpu.memory_space<vmem>>, vector<1x256xf32>
      tpu.vector_store %arg19[%c0_249, %c256_250], %223 {strides = array<i32>} : memref<2x1024xf32, #tpu.memory_space<vmem>>, vector<1x256xf32>,
      %c4 = arith.constant 4 : index
      %c0_251 = arith.constant 0 : index
      %225 = vector.load %arg18[%c4, %c0_251] : memref<18x256xf32, #tpu.memory_space<vmem>>, vector<1x256xf32>
      %c1_252 = arith.constant 1 : index
      %c256_253 = arith.constant 256 : index
      %226 = vector.load %arg19[%c1_252, %c256_253] : memref<2x1024xf32, #tpu.memory_space<vmem>>, vector<1x256xf32>
      tpu.vector_store %arg19[%c1_252, %c256_253], %225 {strides = array<i32>} : memref<2x1024xf32, #tpu.memory_space<vmem>>, vector<1x256xf32>,
      %c6_254 = arith.constant 6 : index
      %c0_255 = arith.constant 0 : index
      %227 = vector.load %arg18[%c6_254, %c0_255] : memref<18x256xf32, #tpu.memory_space<vmem>>, vector<1x256xf32>
      %c0_256 = arith.constant 0 : index
      %c512 = arith.constant 512 : index
      %228 = vector.load %arg19[%c0_256, %c512] : memref<2x1024xf32, #tpu.memory_space<vmem>>, vector<1x256xf32>
      tpu.vector_store %arg19[%c0_256, %c512], %227 {strides = array<i32>} : memref<2x1024xf32, #tpu.memory_space<vmem>>, vector<1x256xf32>,
      %c9_257 = arith.constant 9 : index
      %c0_258 = arith.constant 0 : index
      %229 = vector.load %arg18[%c9_257, %c0_258] : memref<18x256xf32, #tpu.memory_space<vmem>>, vector<1x256xf32>
      %c1_259 = arith.constant 1 : index
      %c512_260 = arith.constant 512 : index
      %230 = vector.load %arg19[%c1_259, %c512_260] : memref<2x1024xf32, #tpu.memory_space<vmem>>, vector<1x256xf32>
      tpu.vector_store %arg19[%c1_259, %c512_260], %229 {strides = array<i32>} : memref<2x1024xf32, #tpu.memory_space<vmem>>, vector<1x256xf32>,
      %c7_261 = arith.constant 7 : index
      %c0_262 = arith.constant 0 : index
      %231 = vector.load %arg18[%c7_261, %c0_262] : memref<18x256xf32, #tpu.memory_space<vmem>>, vector<1x256xf32>
      %c0_263 = arith.constant 0 : index
      %c768 = arith.constant 768 : index
      %232 = vector.load %arg19[%c0_263, %c768] : memref<2x1024xf32, #tpu.memory_space<vmem>>, vector<1x256xf32>
      tpu.vector_store %arg19[%c0_263, %c768], %231 {strides = array<i32>} : memref<2x1024xf32, #tpu.memory_space<vmem>>, vector<1x256xf32>,
      %c10 = arith.constant 10 : index
      %c0_264 = arith.constant 0 : index
      %233 = vector.load %arg18[%c10, %c0_264] : memref<18x256xf32, #tpu.memory_space<vmem>>, vector<1x256xf32>
      %c1_265 = arith.constant 1 : index
      %c768_266 = arith.constant 768 : index
      %234 = vector.load %arg19[%c1_265, %c768_266] : memref<2x1024xf32, #tpu.memory_space<vmem>>, vector<1x256xf32>
      tpu.vector_store %arg19[%c1_265, %c768_266], %233 {strides = array<i32>} : memref<2x1024xf32, #tpu.memory_space<vmem>>, vector<1x256xf32>,
      %c0_267 = arith.constant 0 : index
      %c0_268 = arith.constant 0 : index
      %235 = vector.load %arg19[%c0_267, %c0_268] : memref<2x1024xf32, #tpu.memory_space<vmem>>, vector<2x1024xf32>
      %236 = arith.truncf %235 : vector<2x1024xf32> to vector<2x1024xbf16>
      %c0_269 = arith.constant 0 : index
      %c0_270 = arith.constant 0 : index
      %237 = vector.load %arg8[%c0_269, %c0_270] : memref<1024x512xbf16, #tpu.memory_space<vmem>>, vector<1024x512xbf16>
      %cst_271 = arith.constant dense<0.000000e+00> : vector<2x512xf32>
      %238 = tpu.matmul %236, %237, %cst_271 {dimension_numbers = #tpu.dot_dimension_numbers<[1], [0], [0], [1], [0, 0, 1, 1], [], []>} : vector<2x1024xbf16>, vector<1024x512xbf16>, vector<2x512xf32> -> vector<2x512xf32>
      %c0_272 = arith.constant 0 : index
      %c0_273 = arith.constant 0 : index
      %239 = vector.load %arg9[%c0_272, %c0_273] : memref<1x512xf32, #tpu.memory_space<vmem>>, vector<1x512xf32>
      %240 = vector.broadcast %239 : vector<1x512xf32> to vector<2x512xf32>
      %241 = arith.addf %238, %240 : vector<2x512xf32>
      %cst_274 = arith.constant 0.000000e+00 : f32
      %242 = vector.broadcast %cst_274 : f32 to vector<2x512xf32>
      %243 = arith.maximumf %241, %242 : vector<2x512xf32>
      %c0_275 = arith.constant 0 : index
      %c0_276 = arith.constant 0 : index
      %244 = vector.load %arg13[%c0_275, %c0_276] : memref<2x512xf32, #tpu.memory_space<vmem>>, vector<2x512xf32>
      tpu.vector_store %arg13[%c0_275, %c0_276], %243 {strides = array<i32>} : memref<2x512xf32, #tpu.memory_space<vmem>>, vector<2x512xf32>,
    } else {
    }
    %c0 = arith.constant 0 : index
    %c0_1 = arith.constant 0 : index
    %3 = vector.load %arg13[%c0, %c0_1] : memref<2x512xf32, #tpu.memory_space<vmem>>, vector<2x512xf32>
    %4 = arith.truncf %3 : vector<2x512xf32> to vector<2x512xbf16>
    %c0_2 = arith.constant 0 : index
    %c0_3 = arith.constant 0 : index
    %5 = vector.load %arg10[%c0_2, %c0_3] : memref<512x2048xbf16, #tpu.memory_space<vmem>>, vector<512x2048xbf16>
    %cst = arith.constant dense<0.000000e+00> : vector<2x2048xf32>
    %6 = tpu.matmul %4, %5, %cst {dimension_numbers = #tpu.dot_dimension_numbers<[1], [0], [0], [1], [0, 0, 1, 1], [], []>} : vector<2x512xbf16>, vector<512x2048xbf16>, vector<2x2048xf32> -> vector<2x2048xf32>
    %c0_4 = arith.constant 0 : index
    %c0_5 = arith.constant 0 : index
    %7 = vector.load %arg11[%c0_4, %c0_5] : memref<1x2048xf32, #tpu.memory_space<vmem>>, vector<1x2048xf32>
    %8 = vector.broadcast %7 : vector<1x2048xf32> to vector<2x2048xf32>
    %9 = arith.addf %6, %8 : vector<2x2048xf32>
    %c0_6 = arith.constant 0 : index
    %c0_7 = arith.constant 0 : index
    %10 = vector.load %arg12[%c0_6, %c0_7] : memref<2x2048xf32, #tpu.memory_space<vmem>>, vector<2x2048xf32>
    tpu.vector_store %arg12[%c0_6, %c0_7], %9 {strides = array<i32>} : memref<2x2048xf32, #tpu.memory_space<vmem>>, vector<2x2048xf32>,
    return
  }
  func.func @transform_0(%arg0: i32) -> (i32, i32) {
    %c0_i32 = arith.constant 0 : i32
    %c0_i32_0 = arith.constant 0 : i32
    %c0_i32_1 = arith.constant 0 : i32
    return %c0_i32, %c0_i32_0 : i32, i32
  }
  func.func @transform_1(%arg0: i32) -> (i32, i32) {
    %c0_i32 = arith.constant 0 : i32
    %c0_i32_0 = arith.constant 0 : i32
    %c0_i32_1 = arith.constant 0 : i32
    return %c0_i32, %c0_i32_0 : i32, i32
  }
  func.func @transform_2(%arg0: i32) -> (i32, i32) {
    %c0_i32 = arith.constant 0 : i32
    %c0_i32_0 = arith.constant 0 : i32
    %c0_i32_1 = arith.constant 0 : i32
    return %c0_i32, %c0_i32_0 : i32, i32
  }
  func.func @transform_3(%arg0: i32) -> (i32, i32) {
    %c0_i32 = arith.constant 0 : i32
    %c0_i32_0 = arith.constant 0 : i32
    %c0_i32_1 = arith.constant 0 : i32
    return %c0_i32, %c0_i32_0 : i32, i32
  }
  func.func @transform_4(%arg0: i32) -> (i32, i32) {
    %c0_i32 = arith.constant 0 : i32
    %c0_i32_0 = arith.constant 0 : i32
    %c0_i32_1 = arith.constant 0 : i32
    return %c0_i32, %c0_i32_0 : i32, i32
  }
  func.func @transform_5(%arg0: i32) -> (i32, i32) {
    %c0_i32 = arith.constant 0 : i32
    %c0_i32_0 = arith.constant 0 : i32
    %c0_i32_1 = arith.constant 0 : i32
    return %c0_i32, %c0_i32_0 : i32, i32
  }
  func.func @transform_6(%arg0: i32) -> (i32, i32) {
    %c0_i32 = arith.constant 0 : i32
    %c0_i32_0 = arith.constant 0 : i32
    %c0_i32_1 = arith.constant 0 : i32
    return %c0_i32, %c0_i32_0 : i32, i32
  }
  func.func @transform_7(%arg0: i32) -> (i32, i32) {
    %c0_i32 = arith.constant 0 : i32
    %c0_i32_0 = arith.constant 0 : i32
    %c0_i32_1 = arith.constant 0 : i32
    return %c0_i32, %c0_i32_0 : i32, i32
  }
  func.func @transform_8(%arg0: i32) -> (i32, i32) {
    %c0_i32 = arith.constant 0 : i32
    %c0_i32_0 = arith.constant 0 : i32
    %c0_i32_1 = arith.constant 0 : i32
    return %c0_i32, %c0_i32_0 : i32, i32
  }
  func.func @transform_9(%arg0: i32) -> (i32, i32) {
    %c0_i32 = arith.constant 0 : i32
    %c0_i32_0 = arith.constant 0 : i32
    return %c0_i32, %arg0 : i32, i32
  }
  func.func @transform_10(%arg0: i32) -> (i32, i32) {
    %c0_i32 = arith.constant 0 : i32
    %c0_i32_0 = arith.constant 0 : i32
    return %c0_i32, %arg0 : i32, i32
  }
  func.func @transform_11(%arg0: i32) -> (i32, i32) {
    %c0_i32 = arith.constant 0 : i32
    %c0_i32_0 = arith.constant 0 : i32
    return %c0_i32, %arg0 : i32, i32
  }
  func.func @transform_12(%arg0: i32) -> (i32, i32) {
    %c0_i32 = arith.constant 0 : i32
    %c0_i32_0 = arith.constant 0 : i32
    %c0_i32_1 = arith.constant 0 : i32
    return %c0_i32, %c0_i32_0 : i32, i32
  }
}

</mosaic_0001>

<bundles_post_ra>
// kernel: cnn_forward.1
= control target key start
LH: loop header
LB: loop body
LE: loop exit
PB: predicated region body
PF: predicated region fallthrough
CT: control target
= control target key end

     0   :  { %s15351_s0 = inlined_call_operand.vmem [shape: f32[392,8], index: 0, kind: input, shape index: {}]   ;;  %s15352_s1 = inlined_call_operand.vmem [shape: f32[8,64], index: 1, kind: input, shape index: {}]   ;;  %s15353_s2 = inlined_call_operand.vmem [shape: f32[1,64], index: 2, kind: input, shape index: {}]   ;;  %s15354_s3 = inlined_call_operand.vmem [shape: bf16[256,128], index: 3, kind: input, shape index: {}]   ;;  %s15355_s4 = inlined_call_operand.vmem [shape: f32[1,128], index: 4, kind: input, shape index: {}]   ;;  %s15356_s5 = inlined_call_operand.vmem [shape: bf16[512,256], index: 5, kind: input, shape index: {}]   ;;  %s15357_s6 = inlined_call_operand.vmem [shape: f32[1,256], index: 6, kind: input, shape index: {}]   ;;  %s15358_s7 = inlined_call_operand.vmem [shape: bf16[1024,512], index: 7, kind: input, shape index: {}]   ;;  %s15359_s8 = inlined_call_operand.vmem [shape: f32[1,512], index: 8, kind: input, shape index: {}]   ;;  %s15360_s9 = inlined_call_operand.vmem [shape: bf16[512,4096], index: 9, kind: input, shape index: {}]   ;;  %s15361_s10 = inlined_call_operand.vmem [shape: f32[1,4096], index: 10, kind: input, shape index: {}]   ;;  %s15362_s11 = inlined_call_operand.hbm [shape: f32[2,4096], index: 11, kind: output, shape index: {0}]   ;;  %s15363_s12 = inlined_call_operand.hbm [shape: f32[2,512], index: 12, kind: output, shape index: {1}]  }
   0x1   :  { %15366 = sst [smem:[#allocation18_spill]] %s15351_s0 }
   0x2   :  { %15367 = sst [smem:[#allocation19_spill]] %s15360_s9 }
   0x3   :  { %18 = vsyncpa [#allocation10], 0 }
   0x4   :  { %20 = vsyncpa [#allocation10 + $0x1], 0 }
   0x5   :  { %21 = vsyncpa [#allocation12], 0  ;;  %s11832_s21 = smov 0   ;;  %s11834_s22 = smov 0  }
   0x6   :  { %s11836_s23 = smov 0   ;;  %s11838_s24 = smov 0  }
   0x7 LB: > { %15368 = sst [smem:[#allocation15_spill]] %s11751_s22  ;;  %s11853_s25 = sadd.s32 4294967295, %s11759_s24   ;;  %s11759_s24 = sphi %s11838_s24, %s15380_s24   ;;  %s11755_s23 = sphi %s11836_s23, %s15379_s23   ;;  %s11751_s22 = sphi %s11834_s22, %s15378_s22   ;;  %s11747_s21 = sphi %s11832_s21, %s15377_s21  }
   0x8   : > { %15369 = sst [smem:[#allocation16_spill]] %s11755_s23  ;;  %s9692_s26 = sadd.s32 4294967294, %s11759_s24  }
   0x9   : > { %s11857_s27 = sadd.s32 1, %s11759_s24   ;;  %s223_s28 = sadd.s32 1, %s11755_s23 }
   0xa   : > { %s220_s29 = ssub.s32 %s11759_s24, %s11857_s27  ;;  %p230_p0 = scmp.ne.s32.totalorder %s11755_s23, %s11751_s22 }
   0xb   : > { %p221_p1 = scmp.eq.s32.totalorder %s220_s29, 0  ;;  %p231_p2 = scmp.eq.s32.totalorder %s11759_s24, 0 }
   0xc   : > { %p286_p3 = scmp.eq.s32.totalorder %s11853_s25, 1  ;;  %p291_p4 = scmp.ne.s32.totalorder %s11751_s22, %s11747_s21 }
   0xd   : > { %s11869_s30 = scalar_select %p221_p1, %s11755_s23, %s223_s28  }
   0xe   : > { %p232_p5 = por %p231_p2, %p230_p0  ;;  %p11873_p6 = por %p286_p3, %p230_p0 }
   0xf   : > { %15370 = sst [smem:[#allocation17_spill]] %s11869_s30  ;;  %p292_p7 = scmp.eq.s32.totalorder %s9692_s26, 1 }
  0x10   : > { %p9694_p9 = scmp.ge.s32.totalorder %s11759_s24, 2 }
  0x11   : > { %p11877_p8 = por %p292_p7, %p291_p4 }
  0x12   : > { %356 = sbr.rel (%p9694_p9) target bundleno = 291 (0x123), region = 52 }
  0x19   : > { %359 = sbr.rel (!%p232_p5) target bundleno = 291 (0x123), region = 56  ;;  %s361_s15 = sand.u32 (%p232_p5), 1, %s11755_s23  }
  0x1a   : > { %s10637_s16 = sshll.u32 (%p232_p5), %s11759_s24, 6  ;;  %s9695_s17 = sshll.u32 (%p232_p5), %s361_s15, 12 }
  0x1b   : > { %s15373_s9 = sld [smem:[#allocation19_spill]] (%p232_p5)  ;;  %s11894_s26 = scalar_lea.vmem (%p232_p5), [#allocation8], %s9695_s17 }
  0x21   : > { %s11889_s20 = scalar_lea.vmem %s15373_s9, %s10637_s16 }
  0x22   : > { %v379_v0 = vld [vmem:[%s11889_s20] sm:$0xff]  ;;  %v381_v1 = vld [vmem:[%s11889_s20 + $0x8] sm:$0xff]  ;;  %v383_v2 = vld [vmem:[%s11889_s20 + $0x10] sm:$0xff] }
  0x23   : > { %380 = vst [vmem:[%s11894_s26] sm:$0xff] %v379_v0  ;;  %382 = vst [vmem:[%s11894_s26 + $0x8] sm:$0xff] %v381_v1  ;;  %v385_v3 = vld [vmem:[%s11889_s20 + $0x18] sm:$0xff]  ;;  %v387_v4 = vld [vmem:[%s11889_s20 + $0x20] sm:$0xff] }
  0x24   : > { %384 = vst [vmem:[%s11894_s26 + $0x10] sm:$0xff] %v383_v2  ;;  %v389_v5 = vld [vmem:[%s11889_s20 + $0x28] sm:$0xff]  ;;  %386 = vst [vmem:[%s11894_s26 + $0x18] sm:$0xff] %v385_v3  ;;  %v391_v6 = vld [vmem:[%s11889_s20 + $0x30] sm:$0xff] }
  0x25   : > { %388 = vst [vmem:[%s11894_s26 + $0x20] sm:$0xff] %v387_v4  ;;  %390 = vst [vmem:[%s11894_s26 + $0x28] sm:$0xff] %v389_v5  ;;  %v393_v7 = vld [vmem:[%s11889_s20 + $0x38] sm:$0xff]  ;;  %v395_v8 = vld [vmem:[%s11889_s20 + $0x80] sm:$0xff] }
  0x26   : > { %392 = vst [vmem:[%s11894_s26 + $0x30] sm:$0xff] %v391_v6  ;;  %394 = vst [vmem:[%s11894_s26 + $0x38] sm:$0xff] %v393_v7  ;;  %v397_v9 = vld [vmem:[%s11889_s20 + $0x88] sm:$0xff]  ;;  %v399_v10 = vld [vmem:[%s11889_s20 + $0x90] sm:$0xff] }
  0x27   : > { %396 = vst [vmem:[%s11894_s26 + $0x40] sm:$0xff] %v395_v8  ;;  %v401_v11 = vld [vmem:[%s11889_s20 + $0x98] sm:$0xff]  ;;  %398 = vst [vmem:[%s11894_s26 + $0x48] sm:$0xff] %v397_v9  ;;  %v403_v12 = vld [vmem:[%s11889_s20 + $0xa0] sm:$0xff] }
  0x28   : > { %400 = vst [vmem:[%s11894_s26 + $0x50] sm:$0xff] %v399_v10  ;;  %402 = vst [vmem:[%s11894_s26 + $0x58] sm:$0xff] %v401_v11  ;;  %v405_v13 = vld [vmem:[%s11889_s20 + $0xa8] sm:$0xff]  ;;  %v407_v14 = vld [vmem:[%s11889_s20 + $0xb0] sm:$0xff] }
  0x29   : > { %404 = vst [vmem:[%s11894_s26 + $0x60] sm:$0xff] %v403_v12  ;;  %406 = vst [vmem:[%s11894_s26 + $0x68] sm:$0xff] %v405_v13  ;;  %v409_v15 = vld [vmem:[%s11889_s20 + $0xb8] sm:$0xff]  ;;  %v411_v16 = vld [vmem:[%s11889_s20 + $0x100] sm:$0xff] }
  0x2a   : > { %408 = vst [vmem:[%s11894_s26 + $0x70] sm:$0xff] %v407_v14  ;;  %v413_v17 = vld [vmem:[%s11889_s20 + $0x108] sm:$0xff]  ;;  %410 = vst [vmem:[%s11894_s26 + $0x78] sm:$0xff] %v409_v15  ;;  %v415_v18 = vld [vmem:[%s11889_s20 + $0x110] sm:$0xff] }
  0x2b   : > { %412 = vst [vmem:[%s11894_s26 + $0x80] sm:$0xff] %v411_v16  ;;  %414 = vst [vmem:[%s11894_s26 + $0x88] sm:$0xff] %v413_v17  ;;  %v417_v19 = vld [vmem:[%s11889_s20 + $0x118] sm:$0xff]  ;;  %v419_v20 = vld [vmem:[%s11889_s20 + $0x120] sm:$0xff] }
  0x2c   : > { %416 = vst [vmem:[%s11894_s26 + $0x90] sm:$0xff] %v415_v18  ;;  %418 = vst [vmem:[%s11894_s26 + $0x98] sm:$0xff] %v417_v19  ;;  %v421_v21 = vld [vmem:[%s11889_s20 + $0x128] sm:$0xff]  ;;  %v423_v22 = vld [vmem:[%s11889_s20 + $0x130] sm:$0xff] }
  0x2d   : > { %420 = vst [vmem:[%s11894_s26 + $0xa0] sm:$0xff] %v419_v20  ;;  %v425_v23 = vld [vmem:[%s11889_s20 + $0x138] sm:$0xff]  ;;  %422 = vst [vmem:[%s11894_s26 + $0xa8] sm:$0xff] %v421_v21  ;;  %v427_v24 = vld [vmem:[%s11889_s20 + $0x180] sm:$0xff] }
  0x2e   : > { %424 = vst [vmem:[%s11894_s26 + $0xb0] sm:$0xff] %v423_v22  ;;  %426 = vst [vmem:[%s11894_s26 + $0xb8] sm:$0xff] %v425_v23  ;;  %v429_v25 = vld [vmem:[%s11889_s20 + $0x188] sm:$0xff]  ;;  %v431_v26 = vld [vmem:[%s11889_s20 + $0x190] sm:$0xff] }
  0x2f   : > { %428 = vst [vmem:[%s11894_s26 + $0xc0] sm:$0xff] %v427_v24  ;;  %430 = vst [vmem:[%s11894_s26 + $0xc8] sm:$0xff] %v429_v25  ;;  %v433_v27 = vld [vmem:[%s11889_s20 + $0x198] sm:$0xff]  ;;  %v435_v28 = vld [vmem:[%s11889_s20 + $0x1a0] sm:$0xff] }
  0x30   : > { %432 = vst [vmem:[%s11894_s26 + $0xd0] sm:$0xff] %v431_v26  ;;  %v437_v29 = vld [vmem:[%s11889_s20 + $0x1a8] sm:$0xff]  ;;  %434 = vst [vmem:[%s11894_s26 + $0xd8] sm:$0xff] %v433_v27  ;;  %v439_v30 = vld [vmem:[%s11889_s20 + $0x1b0] sm:$0xff] }
  0x31   : > { %436 = vst [vmem:[%s11894_s26 + $0xe0] sm:$0xff] %v435_v28  ;;  %438 = vst [vmem:[%s11894_s26 + $0xe8] sm:$0xff] %v437_v29  ;;  %v441_v31 = vld [vmem:[%s11889_s20 + $0x1b8] sm:$0xff]  ;;  %v443_v32 = vld [vmem:[%s11889_s20 + $0x200] sm:$0xff] }
  0x32   : > { %440 = vst [vmem:[%s11894_s26 + $0xf0] sm:$0xff] %v439_v30  ;;  %442 = vst [vmem:[%s11894_s26 + $0xf8] sm:$0xff] %v441_v31  ;;  %v445_v33 = vld [vmem:[%s11889_s20 + $0x208] sm:$0xff]  ;;  %v447_v34 = vld [vmem:[%s11889_s20 + $0x210] sm:$0xff] }
  0x33   : > { %444 = vst [vmem:[%s11894_s26 + $0x100] sm:$0xff] %v443_v32  ;;  %v449_v35 = vld [vmem:[%s11889_s20 + $0x218] sm:$0xff]  ;;  %446 = vst [vmem:[%s11894_s26 + $0x108] sm:$0xff] %v445_v33  ;;  %v451_v36 = vld [vmem:[%s11889_s20 + $0x220] sm:$0xff] }
  0x34   : > { %448 = vst [vmem:[%s11894_s26 + $0x110] sm:$0xff] %v447_v34  ;;  %450 = vst [vmem:[%s11894_s26 + $0x118] sm:$0xff] %v449_v35  ;;  %v453_v37 = vld [vmem:[%s11889_s20 + $0x228] sm:$0xff]  ;;  %v455_v38 = vld [vmem:[%s11889_s20 + $0x230] sm:$0xff] }
  0x35   : > { %452 = vst [vmem:[%s11894_s26 + $0x120] sm:$0xff] %v451_v36  ;;  %454 = vst [vmem:[%s11894_s26 + $0x128] sm:$0xff] %v453_v37  ;;  %v457_v39 = vld [vmem:[%s11889_s20 + $0x238] sm:$0xff]  ;;  %v459_v40 = vld [vmem:[%s11889_s20 + $0x280] sm:$0xff] }
  0x36   : > { %456 = vst [vmem:[%s11894_s26 + $0x130] sm:$0xff] %v455_v38  ;;  %v461_v41 = vld [vmem:[%s11889_s20 + $0x288] sm:$0xff]  ;;  %458 = vst [vmem:[%s11894_s26 + $0x138] sm:$0xff] %v457_v39  ;;  %v463_v42 = vld [vmem:[%s11889_s20 + $0x290] sm:$0xff] }
  0x37   : > { %460 = vst [vmem:[%s11894_s26 + $0x140] sm:$0xff] %v459_v40  ;;  %462 = vst [vmem:[%s11894_s26 + $0x148] sm:$0xff] %v461_v41  ;;  %v465_v43 = vld [vmem:[%s11889_s20 + $0x298] sm:$0xff]  ;;  %v467_v44 = vld [vmem:[%s11889_s20 + $0x2a0] sm:$0xff] }
  0x38   : > { %464 = vst [vmem:[%s11894_s26 + $0x150] sm:$0xff] %v463_v42  ;;  %466 = vst [vmem:[%s11894_s26 + $0x158] sm:$0xff] %v465_v43  ;;  %v469_v45 = vld [vmem:[%s11889_s20 + $0x2a8] sm:$0xff]  ;;  %v471_v46 = vld [vmem:[%s11889_s20 + $0x2b0] sm:$0xff] }
  0x39   : > { %468 = vst [vmem:[%s11894_s26 + $0x160] sm:$0xff] %v467_v44  ;;  %v473_v47 = vld [vmem:[%s11889_s20 + $0x2b8] sm:$0xff]  ;;  %470 = vst [vmem:[%s11894_s26 + $0x168] sm:$0xff] %v469_v45  ;;  %v475_v48 = vld [vmem:[%s11889_s20 + $0x300] sm:$0xff] }
  0x3a   : > { %472 = vst [vmem:[%s11894_s26 + $0x170] sm:$0xff] %v471_v46  ;;  %474 = vst [vmem:[%s11894_s26 + $0x178] sm:$0xff] %v473_v47  ;;  %v477_v49 = vld [vmem:[%s11889_s20 + $0x308] sm:$0xff]  ;;  %v479_v50 = vld [vmem:[%s11889_s20 + $0x310] sm:$0xff] }
  0x3b   : > { %476 = vst [vmem:[%s11894_s26 + $0x180] sm:$0xff] %v475_v48  ;;  %478 = vst [vmem:[%s11894_s26 + $0x188] sm:$0xff] %v477_v49  ;;  %v481_v51 = vld [vmem:[%s11889_s20 + $0x318] sm:$0xff]  ;;  %v483_v52 = vld [vmem:[%s11889_s20 + $0x320] sm:$0xff] }
  0x3c   : > { %480 = vst [vmem:[%s11894_s26 + $0x190] sm:$0xff] %v479_v50  ;;  %v485_v53 = vld [vmem:[%s11889_s20 + $0x328] sm:$0xff]  ;;  %482 = vst [vmem:[%s11894_s26 + $0x198] sm:$0xff] %v481_v51  ;;  %v487_v54 = vld [vmem:[%s11889_s20 + $0x330] sm:$0xff] }
  0x3d   : > { %484 = vst [vmem:[%s11894_s26 + $0x1a0] sm:$0xff] %v483_v52  ;;  %486 = vst [vmem:[%s11894_s26 + $0x1a8] sm:$0xff] %v485_v53  ;;  %v489_v55 = vld [vmem:[%s11889_s20 + $0x338] sm:$0xff]  ;;  %v491_v56 = vld [vmem:[%s11889_s20 + $0x380] sm:$0xff] }
  0x3e   : > { %488 = vst [vmem:[%s11894_s26 + $0x1b0] sm:$0xff] %v487_v54  ;;  %490 = vst [vmem:[%s11894_s26 + $0x1b8] sm:$0xff] %v489_v55  ;;  %v493_v57 = vld [vmem:[%s11889_s20 + $0x388] sm:$0xff]  ;;  %v495_v58 = vld [vmem:[%s11889_s20 + $0x390] sm:$0xff] }
  0x3f   : > { %492 = vst [vmem:[%s11894_s26 + $0x1c0] sm:$0xff] %v491_v56  ;;  %v497_v59 = vld [vmem:[%s11889_s20 + $0x398] sm:$0xff]  ;;  %494 = vst [vmem:[%s11894_s26 + $0x1c8] sm:$0xff] %v493_v57  ;;  %v499_v60 = vld [vmem:[%s11889_s20 + $0x3a0] sm:$0xff] }
  0x40   : > { %496 = vst [vmem:[%s11894_s26 + $0x1d0] sm:$0xff] %v495_v58  ;;  %498 = vst [vmem:[%s11894_s26 + $0x1d8] sm:$0xff] %v497_v59  ;;  %v501_v61 = vld [vmem:[%s11889_s20 + $0x3a8] sm:$0xff]  ;;  %v503_v62 = vld [vmem:[%s11889_s20 + $0x3b0] sm:$0xff] }
  0x41   : > { %500 = vst [vmem:[%s11894_s26 + $0x1e0] sm:$0xff] %v499_v60  ;;  %502 = vst [vmem:[%s11894_s26 + $0x1e8] sm:$0xff] %v501_v61  ;;  %v505_v63 = vld [vmem:[%s11889_s20 + $0x3b8] sm:$0xff]  ;;  %v507_v0 = vld [vmem:[%s11889_s20 + $0x400] sm:$0xff] }
  0x42   : > { %504 = vst [vmem:[%s11894_s26 + $0x1f0] sm:$0xff] %v503_v62  ;;  %v509_v1 = vld [vmem:[%s11889_s20 + $0x408] sm:$0xff]  ;;  %506 = vst [vmem:[%s11894_s26 + $0x1f8] sm:$0xff] %v505_v63  ;;  %v511_v2 = vld [vmem:[%s11889_s20 + $0x410] sm:$0xff] }
  0x43   : > { %508 = vst [vmem:[%s11894_s26 + $0x200] sm:$0xff] %v507_v0  ;;  %510 = vst [vmem:[%s11894_s26 + $0x208] sm:$0xff] %v509_v1  ;;  %v513_v3 = vld [vmem:[%s11889_s20 + $0x418] sm:$0xff]  ;;  %v515_v4 = vld [vmem:[%s11889_s20 + $0x420] sm:$0xff] }
  0x44   : > { %512 = vst [vmem:[%s11894_s26 + $0x210] sm:$0xff] %v511_v2  ;;  %514 = vst [vmem:[%s11894_s26 + $0x218] sm:$0xff] %v513_v3  ;;  %v517_v5 = vld [vmem:[%s11889_s20 + $0x428] sm:$0xff]  ;;  %v519_v6 = vld [vmem:[%s11889_s20 + $0x430] sm:$0xff] }
  0x45   : > { %516 = vst [vmem:[%s11894_s26 + $0x220] sm:$0xff] %v515_v4  ;;  %v521_v7 = vld [vmem:[%s11889_s20 + $0x438] sm:$0xff]  ;;  %518 = vst [vmem:[%s11894_s26 + $0x228] sm:$0xff] %v517_v5  ;;  %v523_v8 = vld [vmem:[%s11889_s20 + $0x480] sm:$0xff] }
  0x46   : > { %520 = vst [vmem:[%s11894_s26 + $0x230] sm:$0xff] %v519_v6  ;;  %522 = vst [vmem:[%s11894_s26 + $0x238] sm:$0xff] %v521_v7  ;;  %v525_v9 = vld [vmem:[%s11889_s20 + $0x488] sm:$0xff]  ;;  %v527_v10 = vld [vmem:[%s11889_s20 + $0x490] sm:$0xff] }
  0x47   : > { %524 = vst [vmem:[%s11894_s26 + $0x240] sm:$0xff] %v523_v8  ;;  %526 = vst [vmem:[%s11894_s26 + $0x248] sm:$0xff] %v525_v9  ;;  %v529_v11 = vld [vmem:[%s11889_s20 + $0x498] sm:$0xff]  ;;  %v531_v12 = vld [vmem:[%s11889_s20 + $0x4a0] sm:$0xff] }
  0x48   : > { %528 = vst [vmem:[%s11894_s26 + $0x250] sm:$0xff] %v527_v10  ;;  %v533_v13 = vld [vmem:[%s11889_s20 + $0x4a8] sm:$0xff]  ;;  %530 = vst [vmem:[%s11894_s26 + $0x258] sm:$0xff] %v529_v11  ;;  %v535_v14 = vld [vmem:[%s11889_s20 + $0x4b0] sm:$0xff] }
  0x49   : > { %532 = vst [vmem:[%s11894_s26 + $0x260] sm:$0xff] %v531_v12  ;;  %534 = vst [vmem:[%s11894_s26 + $0x268] sm:$0xff] %v533_v13  ;;  %v537_v15 = vld [vmem:[%s11889_s20 + $0x4b8] sm:$0xff]  ;;  %v539_v16 = vld [vmem:[%s11889_s20 + $0x500] sm:$0xff] }
  0x4a   : > { %536 = vst [vmem:[%s11894_s26 + $0x270] sm:$0xff] %v535_v14  ;;  %538 = vst [vmem:[%s11894_s26 + $0x278] sm:$0xff] %v537_v15  ;;  %v541_v17 = vld [vmem:[%s11889_s20 + $0x508] sm:$0xff]  ;;  %v543_v18 = vld [vmem:[%s11889_s20 + $0x510] sm:$0xff] }
  0x4b   : > { %540 = vst [vmem:[%s11894_s26 + $0x280] sm:$0xff] %v539_v16  ;;  %v545_v19 = vld [vmem:[%s11889_s20 + $0x518] sm:$0xff]  ;;  %542 = vst [vmem:[%s11894_s26 + $0x288] sm:$0xff] %v541_v17  ;;  %v547_v20 = vld [vmem:[%s11889_s20 + $0x520] sm:$0xff] }
  0x4c   : > { %544 = vst [vmem:[%s11894_s26 + $0x290] sm:$0xff] %v543_v18  ;;  %546 = vst [vmem:[%s11894_s26 + $0x298] sm:$0xff] %v545_v19  ;;  %v549_v21 = vld [vmem:[%s11889_s20 + $0x528] sm:$0xff]  ;;  %v551_v22 = vld [vmem:[%s11889_s20 + $0x530] sm:$0xff] }
  0x4d   : > { %548 = vst [vmem:[%s11894_s26 + $0x2a0] sm:$0xff] %v547_v20  ;;  %550 = vst [vmem:[%s11894_s26 + $0x2a8] sm:$0xff] %v549_v21  ;;  %v553_v23 = vld [vmem:[%s11889_s20 + $0x538] sm:$0xff]  ;;  %v555_v24 = vld [vmem:[%s11889_s20 + $0x580] sm:$0xff] }
  0x4e   : > { %552 = vst [vmem:[%s11894_s26 + $0x2b0] sm:$0xff] %v551_v22  ;;  %v557_v25 = vld [vmem:[%s11889_s20 + $0x588] sm:$0xff]  ;;  %554 = vst [vmem:[%s11894_s26 + $0x2b8] sm:$0xff] %v553_v23  ;;  %v559_v26 = vld [vmem:[%s11889_s20 + $0x590] sm:$0xff] }
  0x4f   : > { %556 = vst [vmem:[%s11894_s26 + $0x2c0] sm:$0xff] %v555_v24  ;;  %558 = vst [vmem:[%s11894_s26 + $0x2c8] sm:$0xff] %v557_v25  ;;  %v561_v27 = vld [vmem:[%s11889_s20 + $0x598] sm:$0xff]  ;;  %v563_v28 = vld [vmem:[%s11889_s20 + $0x5a0] sm:$0xff] }
  0x50   : > { %560 = vst [vmem:[%s11894_s26 + $0x2d0] sm:$0xff] %v559_v26  ;;  %562 = vst [vmem:[%s11894_s26 + $0x2d8] sm:$0xff] %v561_v27  ;;  %v565_v29 = vld [vmem:[%s11889_s20 + $0x5a8] sm:$0xff]  ;;  %v567_v30 = vld [vmem:[%s11889_s20 + $0x5b0] sm:$0xff] }
  0x51   : > { %564 = vst [vmem:[%s11894_s26 + $0x2e0] sm:$0xff] %v563_v28  ;;  %v569_v31 = vld [vmem:[%s11889_s20 + $0x5b8] sm:$0xff]  ;;  %566 = vst [vmem:[%s11894_s26 + $0x2e8] sm:$0xff] %v565_v29  ;;  %v571_v32 = vld [vmem:[%s11889_s20 + $0x600] sm:$0xff] }
  0x52   : > { %568 = vst [vmem:[%s11894_s26 + $0x2f0] sm:$0xff] %v567_v30  ;;  %570 = vst [vmem:[%s11894_s26 + $0x2f8] sm:$0xff] %v569_v31  ;;  %v573_v33 = vld [vmem:[%s11889_s20 + $0x608] sm:$0xff]  ;;  %v575_v34 = vld [vmem:[%s11889_s20 + $0x610] sm:$0xff] }
  0x53   : > { %572 = vst [vmem:[%s11894_s26 + $0x300] sm:$0xff] %v571_v32  ;;  %574 = vst [vmem:[%s11894_s26 + $0x308] sm:$0xff] %v573_v33  ;;  %v577_v35 = vld [vmem:[%s11889_s20 + $0x618] sm:$0xff]  ;;  %v579_v36 = vld [vmem:[%s11889_s20 + $0x620] sm:$0xff] }
  0x54   : > { %576 = vst [vmem:[%s11894_s26 + $0x310] sm:$0xff] %v575_v34  ;;  %v581_v37 = vld [vmem:[%s11889_s20 + $0x628] sm:$0xff]  ;;  %578 = vst [vmem:[%s11894_s26 + $0x318] sm:$0xff] %v577_v35  ;;  %v583_v38 = vld [vmem:[%s11889_s20 + $0x630] sm:$0xff] }
  0x55   : > { %580 = vst [vmem:[%s11894_s26 + $0x320] sm:$0xff] %v579_v36  ;;  %582 = vst [vmem:[%s11894_s26 + $0x328] sm:$0xff] %v581_v37  ;;  %v585_v39 = vld [vmem:[%s11889_s20 + $0x638] sm:$0xff]  ;;  %v587_v40 = vld [vmem:[%s11889_s20 + $0x680] sm:$0xff] }
  0x56   : > { %584 = vst [vmem:[%s11894_s26 + $0x330] sm:$0xff] %v583_v38  ;;  %586 = vst [vmem:[%s11894_s26 + $0x338] sm:$0xff] %v585_v39  ;;  %v589_v41 = vld [vmem:[%s11889_s20 + $0x688] sm:$0xff]  ;;  %v591_v42 = vld [vmem:[%s11889_s20 + $0x690] sm:$0xff] }
  0x57   : > { %588 = vst [vmem:[%s11894_s26 + $0x340] sm:$0xff] %v587_v40  ;;  %v593_v43 = vld [vmem:[%s11889_s20 + $0x698] sm:$0xff]  ;;  %590 = vst [vmem:[%s11894_s26 + $0x348] sm:$0xff] %v589_v41  ;;  %v595_v44 = vld [vmem:[%s11889_s20 + $0x6a0] sm:$0xff] }
  0x58   : > { %592 = vst [vmem:[%s11894_s26 + $0x350] sm:$0xff] %v591_v42  ;;  %594 = vst [vmem:[%s11894_s26 + $0x358] sm:$0xff] %v593_v43  ;;  %v597_v45 = vld [vmem:[%s11889_s20 + $0x6a8] sm:$0xff]  ;;  %v599_v46 = vld [vmem:[%s11889_s20 + $0x6b0] sm:$0xff] }
  0x59   : > { %596 = vst [vmem:[%s11894_s26 + $0x360] sm:$0xff] %v595_v44  ;;  %598 = vst [vmem:[%s11894_s26 + $0x368] sm:$0xff] %v597_v45  ;;  %v601_v47 = vld [vmem:[%s11889_s20 + $0x6b8] sm:$0xff]  ;;  %v603_v48 = vld [vmem:[%s11889_s20 + $0x700] sm:$0xff] }
  0x5a   : > { %600 = vst [vmem:[%s11894_s26 + $0x370] sm:$0xff] %v599_v46  ;;  %v605_v49 = vld [vmem:[%s11889_s20 + $0x708] sm:$0xff]  ;;  %602 = vst [vmem:[%s11894_s26 + $0x378] sm:$0xff] %v601_v47  ;;  %v607_v50 = vld [vmem:[%s11889_s20 + $0x710] sm:$0xff] }
  0x5b   : > { %604 = vst [vmem:[%s11894_s26 + $0x380] sm:$0xff] %v603_v48  ;;  %606 = vst [vmem:[%s11894_s26 + $0x388] sm:$0xff] %v605_v49  ;;  %v609_v51 = vld [vmem:[%s11889_s20 + $0x718] sm:$0xff]  ;;  %v611_v52 = vld [vmem:[%s11889_s20 + $0x720] sm:$0xff] }
  0x5c   : > { %608 = vst [vmem:[%s11894_s26 + $0x390] sm:$0xff] %v607_v50  ;;  %610 = vst [vmem:[%s11894_s26 + $0x398] sm:$0xff] %v609_v51  ;;  %v613_v53 = vld [vmem:[%s11889_s20 + $0x728] sm:$0xff]  ;;  %v615_v54 = vld [vmem:[%s11889_s20 + $0x730] sm:$0xff] }
  0x5d   : > { %612 = vst [vmem:[%s11894_s26 + $0x3a0] sm:$0xff] %v611_v52  ;;  %v617_v55 = vld [vmem:[%s11889_s20 + $0x738] sm:$0xff]  ;;  %614 = vst [vmem:[%s11894_s26 + $0x3a8] sm:$0xff] %v613_v53  ;;  %v619_v56 = vld [vmem:[%s11889_s20 + $0x780] sm:$0xff] }
  0x5e   : > { %616 = vst [vmem:[%s11894_s26 + $0x3b0] sm:$0xff] %v615_v54  ;;  %618 = vst [vmem:[%s11894_s26 + $0x3b8] sm:$0xff] %v617_v55  ;;  %v621_v57 = vld [vmem:[%s11889_s20 + $0x788] sm:$0xff]  ;;  %v623_v58 = vld [vmem:[%s11889_s20 + $0x790] sm:$0xff] }
  0x5f   : > { %620 = vst [vmem:[%s11894_s26 + $0x3c0] sm:$0xff] %v619_v56  ;;  %622 = vst [vmem:[%s11894_s26 + $0x3c8] sm:$0xff] %v621_v57  ;;  %v625_v59 = vld [vmem:[%s11889_s20 + $0x798] sm:$0xff]  ;;  %v627_v60 = vld [vmem:[%s11889_s20 + $0x7a0] sm:$0xff] }
  0x60   : > { %624 = vst [vmem:[%s11894_s26 + $0x3d0] sm:$0xff] %v623_v58  ;;  %v629_v61 = vld [vmem:[%s11889_s20 + $0x7a8] sm:$0xff]  ;;  %626 = vst [vmem:[%s11894_s26 + $0x3d8] sm:$0xff] %v625_v59  ;;  %v631_v62 = vld [vmem:[%s11889_s20 + $0x7b0] sm:$0xff] }
  0x61   : > { %628 = vst [vmem:[%s11894_s26 + $0x3e0] sm:$0xff] %v627_v60  ;;  %630 = vst [vmem:[%s11894_s26 + $0x3e8] sm:$0xff] %v629_v61  ;;  %v633_v63 = vld [vmem:[%s11889_s20 + $0x7b8] sm:$0xff]  ;;  %v635_v0 = vld [vmem:[%s11889_s20 + $0x800] sm:$0xff] }
  0x62   : > { %632 = vst [vmem:[%s11894_s26 + $0x3f0] sm:$0xff] %v631_v62  ;;  %634 = vst [vmem:[%s11894_s26 + $0x3f8] sm:$0xff] %v633_v63  ;;  %v637_v1 = vld [vmem:[%s11889_s20 + $0x808] sm:$0xff]  ;;  %v639_v2 = vld [vmem:[%s11889_s20 + $0x810] sm:$0xff] }
  0x63   : > { %636 = vst [vmem:[%s11894_s26 + $0x400] sm:$0xff] %v635_v0  ;;  %v641_v3 = vld [vmem:[%s11889_s20 + $0x818] sm:$0xff]  ;;  %638 = vst [vmem:[%s11894_s26 + $0x408] sm:$0xff] %v637_v1  ;;  %v643_v4 = vld [vmem:[%s11889_s20 + $0x820] sm:$0xff] }
  0x64   : > { %640 = vst [vmem:[%s11894_s26 + $0x410] sm:$0xff] %v639_v2  ;;  %642 = vst [vmem:[%s11894_s26 + $0x418] sm:$0xff] %v641_v3  ;;  %v645_v5 = vld [vmem:[%s11889_s20 + $0x828] sm:$0xff]  ;;  %v647_v6 = vld [vmem:[%s11889_s20 + $0x830] sm:$0xff] }
  0x65   : > { %644 = vst [vmem:[%s11894_s26 + $0x420] sm:$0xff] %v643_v4  ;;  %646 = vst [vmem:[%s11894_s26 + $0x428] sm:$0xff] %v645_v5  ;;  %v649_v7 = vld [vmem:[%s11889_s20 + $0x838] sm:$0xff]  ;;  %v651_v8 = vld [vmem:[%s11889_s20 + $0x880] sm:$0xff] }
  0x66   : > { %648 = vst [vmem:[%s11894_s26 + $0x430] sm:$0xff] %v647_v6  ;;  %v653_v9 = vld [vmem:[%s11889_s20 + $0x888] sm:$0xff]  ;;  %650 = vst [vmem:[%s11894_s26 + $0x438] sm:$0xff] %v649_v7  ;;  %v655_v10 = vld [vmem:[%s11889_s20 + $0x890] sm:$0xff] }
  0x67   : > { %652 = vst [vmem:[%s11894_s26 + $0x440] sm:$0xff] %v651_v8  ;;  %654 = vst [vmem:[%s11894_s26 + $0x448] sm:$0xff] %v653_v9  ;;  %v657_v11 = vld [vmem:[%s11889_s20 + $0x898] sm:$0xff]  ;;  %v659_v12 = vld [vmem:[%s11889_s20 + $0x8a0] sm:$0xff] }
  0x68   : > { %656 = vst [vmem:[%s11894_s26 + $0x450] sm:$0xff] %v655_v10  ;;  %658 = vst [vmem:[%s11894_s26 + $0x458] sm:$0xff] %v657_v11  ;;  %v661_v13 = vld [vmem:[%s11889_s20 + $0x8a8] sm:$0xff]  ;;  %v663_v14 = vld [vmem:[%s11889_s20 + $0x8b0] sm:$0xff] }
  0x69   : > { %660 = vst [vmem:[%s11894_s26 + $0x460] sm:$0xff] %v659_v12  ;;  %v665_v15 = vld [vmem:[%s11889_s20 + $0x8b8] sm:$0xff]  ;;  %662 = vst [vmem:[%s11894_s26 + $0x468] sm:$0xff] %v661_v13  ;;  %v667_v16 = vld [vmem:[%s11889_s20 + $0x900] sm:$0xff] }
  0x6a   : > { %664 = vst [vmem:[%s11894_s26 + $0x470] sm:$0xff] %v663_v14  ;;  %666 = vst [vmem:[%s11894_s26 + $0x478] sm:$0xff] %v665_v15  ;;  %v669_v17 = vld [vmem:[%s11889_s20 + $0x908] sm:$0xff]  ;;  %v671_v18 = vld [vmem:[%s11889_s20 + $0x910] sm:$0xff] }
  0x6b   : > { %668 = vst [vmem:[%s11894_s26 + $0x480] sm:$0xff] %v667_v16  ;;  %670 = vst [vmem:[%s11894_s26 + $0x488] sm:$0xff] %v669_v17  ;;  %v673_v19 = vld [vmem:[%s11889_s20 + $0x918] sm:$0xff]  ;;  %v675_v20 = vld [vmem:[%s11889_s20 + $0x920] sm:$0xff] }
  0x6c   : > { %672 = vst [vmem:[%s11894_s26 + $0x490] sm:$0xff] %v671_v18  ;;  %v677_v21 = vld [vmem:[%s11889_s20 + $0x928] sm:$0xff]  ;;  %674 = vst [vmem:[%s11894_s26 + $0x498] sm:$0xff] %v673_v19  ;;  %v679_v22 = vld [vmem:[%s11889_s20 + $0x930] sm:$0xff] }
  0x6d   : > { %676 = vst [vmem:[%s11894_s26 + $0x4a0] sm:$0xff] %v675_v20  ;;  %678 = vst [vmem:[%s11894_s26 + $0x4a8] sm:$0xff] %v677_v21  ;;  %v681_v23 = vld [vmem:[%s11889_s20 + $0x938] sm:$0xff]  ;;  %v683_v24 = vld [vmem:[%s11889_s20 + $0x980] sm:$0xff] }
  0x6e   : > { %680 = vst [vmem:[%s11894_s26 + $0x4b0] sm:$0xff] %v679_v22  ;;  %682 = vst [vmem:[%s11894_s26 + $0x4b8] sm:$0xff] %v681_v23  ;;  %v685_v25 = vld [vmem:[%s11889_s20 + $0x988] sm:$0xff]  ;;  %v687_v26 = vld [vmem:[%s11889_s20 + $0x990] sm:$0xff] }
  0x6f   : > { %684 = vst [vmem:[%s11894_s26 + $0x4c0] sm:$0xff] %v683_v24  ;;  %v689_v27 = vld [vmem:[%s11889_s20 + $0x998] sm:$0xff]  ;;  %686 = vst [vmem:[%s11894_s26 + $0x4c8] sm:$0xff] %v685_v25  ;;  %v691_v28 = vld [vmem:[%s11889_s20 + $0x9a0] sm:$0xff] }
  0x70   : > { %688 = vst [vmem:[%s11894_s26 + $0x4d0] sm:$0xff] %v687_v26  ;;  %690 = vst [vmem:[%s11894_s26 + $0x4d8] sm:$0xff] %v689_v27  ;;  %v693_v29 = vld [vmem:[%s11889_s20 + $0x9a8] sm:$0xff]  ;;  %v695_v30 = vld [vmem:[%s11889_s20 + $0x9b0] sm:$0xff] }
  0x71   : > { %692 = vst [vmem:[%s11894_s26 + $0x4e0] sm:$0xff] %v691_v28  ;;  %694 = vst [vmem:[%s11894_s26 + $0x4e8] sm:$0xff] %v693_v29  ;;  %v697_v31 = vld [vmem:[%s11889_s20 + $0x9b8] sm:$0xff]  ;;  %v699_v32 = vld [vmem:[%s11889_s20 + $0xa00] sm:$0xff] }
  0x72   : > { %696 = vst [vmem:[%s11894_s26 + $0x4f0] sm:$0xff] %v695_v30  ;;  %v701_v33 = vld [vmem:[%s11889_s20 + $0xa08] sm:$0xff]  ;;  %698 = vst [vmem:[%s11894_s26 + $0x4f8] sm:$0xff] %v697_v31  ;;  %v703_v34 = vld [vmem:[%s11889_s20 + $0xa10] sm:$0xff] }
  0x73   : > { %700 = vst [vmem:[%s11894_s26 + $0x500] sm:$0xff] %v699_v32  ;;  %702 = vst [vmem:[%s11894_s26 + $0x508] sm:$0xff] %v701_v33  ;;  %v705_v35 = vld [vmem:[%s11889_s20 + $0xa18] sm:$0xff]  ;;  %v707_v36 = vld [vmem:[%s11889_s20 + $0xa20] sm:$0xff] }
  0x74   : > { %704 = vst [vmem:[%s11894_s26 + $0x510] sm:$0xff] %v703_v34  ;;  %706 = vst [vmem:[%s11894_s26 + $0x518] sm:$0xff] %v705_v35  ;;  %v709_v37 = vld [vmem:[%s11889_s20 + $0xa28] sm:$0xff]  ;;  %v711_v38 = vld [vmem:[%s11889_s20 + $0xa30] sm:$0xff] }
  0x75   : > { %708 = vst [vmem:[%s11894_s26 + $0x520] sm:$0xff] %v707_v36  ;;  %v713_v39 = vld [vmem:[%s11889_s20 + $0xa38] sm:$0xff]  ;;  %710 = vst [vmem:[%s11894_s26 + $0x528] sm:$0xff] %v709_v37  ;;  %v715_v40 = vld [vmem:[%s11889_s20 + $0xa80] sm:$0xff] }
  0x76   : > { %712 = vst [vmem:[%s11894_s26 + $0x530] sm:$0xff] %v711_v38  ;;  %714 = vst [vmem:[%s11894_s26 + $0x538] sm:$0xff] %v713_v39  ;;  %v717_v41 = vld [vmem:[%s11889_s20 + $0xa88] sm:$0xff]  ;;  %v719_v42 = vld [vmem:[%s11889_s20 + $0xa90] sm:$0xff] }
  0x77   : > { %716 = vst [vmem:[%s11894_s26 + $0x540] sm:$0xff] %v715_v40  ;;  %718 = vst [vmem:[%s11894_s26 + $0x548] sm:$0xff] %v717_v41  ;;  %v721_v43 = vld [vmem:[%s11889_s20 + $0xa98] sm:$0xff]  ;;  %v723_v44 = vld [vmem:[%s11889_s20 + $0xaa0] sm:$0xff] }
  0x78   : > { %720 = vst [vmem:[%s11894_s26 + $0x550] sm:$0xff] %v719_v42  ;;  %v725_v45 = vld [vmem:[%s11889_s20 + $0xaa8] sm:$0xff]  ;;  %722 = vst [vmem:[%s11894_s26 + $0x558] sm:$0xff] %v721_v43  ;;  %v727_v46 = vld [vmem:[%s11889_s20 + $0xab0] sm:$0xff] }
  0x79   : > { %724 = vst [vmem:[%s11894_s26 + $0x560] sm:$0xff] %v723_v44  ;;  %726 = vst [vmem:[%s11894_s26 + $0x568] sm:$0xff] %v725_v45  ;;  %v729_v47 = vld [vmem:[%s11889_s20 + $0xab8] sm:$0xff]  ;;  %v731_v48 = vld [vmem:[%s11889_s20 + $0xb00] sm:$0xff] }
  0x7a   : > { %728 = vst [vmem:[%s11894_s26 + $0x570] sm:$0xff] %v727_v46  ;;  %730 = vst [vmem:[%s11894_s26 + $0x578] sm:$0xff] %v729_v47  ;;  %v733_v49 = vld [vmem:[%s11889_s20 + $0xb08] sm:$0xff]  ;;  %v735_v50 = vld [vmem:[%s11889_s20 + $0xb10] sm:$0xff] }
  0x7b   : > { %732 = vst [vmem:[%s11894_s26 + $0x580] sm:$0xff] %v731_v48  ;;  %v737_v51 = vld [vmem:[%s11889_s20 + $0xb18] sm:$0xff]  ;;  %734 = vst [vmem:[%s11894_s26 + $0x588] sm:$0xff] %v733_v49  ;;  %v739_v52 = vld [vmem:[%s11889_s20 + $0xb20] sm:$0xff] }
  0x7c   : > { %736 = vst [vmem:[%s11894_s26 + $0x590] sm:$0xff] %v735_v50  ;;  %738 = vst [vmem:[%s11894_s26 + $0x598] sm:$0xff] %v737_v51  ;;  %v741_v53 = vld [vmem:[%s11889_s20 + $0xb28] sm:$0xff]  ;;  %v743_v54 = vld [vmem:[%s11889_s20 + $0xb30] sm:$0xff] }
  0x7d   : > { %740 = vst [vmem:[%s11894_s26 + $0x5a0] sm:$0xff] %v739_v52  ;;  %742 = vst [vmem:[%s11894_s26 + $0x5a8] sm:$0xff] %v741_v53  ;;  %v745_v55 = vld [vmem:[%s11889_s20 + $0xb38] sm:$0xff]  ;;  %v747_v56 = vld [vmem:[%s11889_s20 + $0xb80] sm:$0xff] }
  0x7e   : > { %744 = vst [vmem:[%s11894_s26 + $0x5b0] sm:$0xff] %v743_v54  ;;  %v749_v57 = vld [vmem:[%s11889_s20 + $0xb88] sm:$0xff]  ;;  %746 = vst [vmem:[%s11894_s26 + $0x5b8] sm:$0xff] %v745_v55  ;;  %v751_v58 = vld [vmem:[%s11889_s20 + $0xb90] sm:$0xff] }
  0x7f   : > { %748 = vst [vmem:[%s11894_s26 + $0x5c0] sm:$0xff] %v747_v56  ;;  %750 = vst [vmem:[%s11894_s26 + $0x5c8] sm:$0xff] %v749_v57  ;;  %v753_v59 = vld [vmem:[%s11889_s20 + $0xb98] sm:$0xff]  ;;  %v755_v60 = vld [vmem:[%s11889_s20 + $0xba0] sm:$0xff] }
  0x80   : > { %752 = vst [vmem:[%s11894_s26 + $0x5d0] sm:$0xff] %v751_v58  ;;  %754 = vst [vmem:[%s11894_s26 + $0x5d8] sm:$0xff] %v753_v59  ;;  %v757_v61 = vld [vmem:[%s11889_s20 + $0xba8] sm:$0xff]  ;;  %v759_v62 = vld [vmem:[%s11889_s20 + $0xbb0] sm:$0xff] }
  0x81   : > { %756 = vst [vmem:[%s11894_s26 + $0x5e0] sm:$0xff] %v755_v60  ;;  %v761_v63 = vld [vmem:[%s11889_s20 + $0xbb8] sm:$0xff]  ;;  %758 = vst [vmem:[%s11894_s26 + $0x5e8] sm:$0xff] %v757_v61  ;;  %v763_v0 = vld [vmem:[%s11889_s20 + $0xc00] sm:$0xff] }
  0x82   : > { %760 = vst [vmem:[%s11894_s26 + $0x5f0] sm:$0xff] %v759_v62  ;;  %762 = vst [vmem:[%s11894_s26 + $0x5f8] sm:$0xff] %v761_v63  ;;  %v765_v1 = vld [vmem:[%s11889_s20 + $0xc08] sm:$0xff]  ;;  %v767_v2 = vld [vmem:[%s11889_s20 + $0xc10] sm:$0xff] }
  0x83   : > { %764 = vst [vmem:[%s11894_s26 + $0x600] sm:$0xff] %v763_v0  ;;  %766 = vst [vmem:[%s11894_s26 + $0x608] sm:$0xff] %v765_v1  ;;  %v769_v3 = vld [vmem:[%s11889_s20 + $0xc18] sm:$0xff]  ;;  %v771_v4 = vld [vmem:[%s11889_s20 + $0xc20] sm:$0xff] }
  0x84   : > { %768 = vst [vmem:[%s11894_s26 + $0x610] sm:$0xff] %v767_v2  ;;  %v773_v5 = vld [vmem:[%s11889_s20 + $0xc28] sm:$0xff]  ;;  %770 = vst [vmem:[%s11894_s26 + $0x618] sm:$0xff] %v769_v3  ;;  %v775_v6 = vld [vmem:[%s11889_s20 + $0xc30] sm:$0xff] }
  0x85   : > { %772 = vst [vmem:[%s11894_s26 + $0x620] sm:$0xff] %v771_v4  ;;  %774 = vst [vmem:[%s11894_s26 + $0x628] sm:$0xff] %v773_v5  ;;  %v777_v7 = vld [vmem:[%s11889_s20 + $0xc38] sm:$0xff]  ;;  %v779_v8 = vld [vmem:[%s11889_s20 + $0xc80] sm:$0xff] }
  0x86   : > { %776 = vst [vmem:[%s11894_s26 + $0x630] sm:$0xff] %v775_v6  ;;  %778 = vst [vmem:[%s11894_s26 + $0x638] sm:$0xff] %v777_v7  ;;  %v781_v9 = vld [vmem:[%s11889_s20 + $0xc88] sm:$0xff]  ;;  %v783_v10 = vld [vmem:[%s11889_s20 + $0xc90] sm:$0xff] }
  0x87   : > { %780 = vst [vmem:[%s11894_s26 + $0x640] sm:$0xff] %v779_v8  ;;  %v785_v11 = vld [vmem:[%s11889_s20 + $0xc98] sm:$0xff]  ;;  %782 = vst [vmem:[%s11894_s26 + $0x648] sm:$0xff] %v781_v9  ;;  %v787_v12 = vld [vmem:[%s11889_s20 + $0xca0] sm:$0xff] }
  0x88   : > { %784 = vst [vmem:[%s11894_s26 + $0x650] sm:$0xff] %v783_v10  ;;  %786 = vst [vmem:[%s11894_s26 + $0x658] sm:$0xff] %v785_v11  ;;  %v789_v13 = vld [vmem:[%s11889_s20 + $0xca8] sm:$0xff]  ;;  %v791_v14 = vld [vmem:[%s11889_s20 + $0xcb0] sm:$0xff] }
  0x89   : > { %788 = vst [vmem:[%s11894_s26 + $0x660] sm:$0xff] %v787_v12  ;;  %790 = vst [vmem:[%s11894_s26 + $0x668] sm:$0xff] %v789_v13  ;;  %v793_v15 = vld [vmem:[%s11889_s20 + $0xcb8] sm:$0xff]  ;;  %v795_v16 = vld [vmem:[%s11889_s20 + $0xd00] sm:$0xff] }
  0x8a   : > { %792 = vst [vmem:[%s11894_s26 + $0x670] sm:$0xff] %v791_v14  ;;  %v797_v17 = vld [vmem:[%s11889_s20 + $0xd08] sm:$0xff]  ;;  %794 = vst [vmem:[%s11894_s26 + $0x678] sm:$0xff] %v793_v15  ;;  %v799_v18 = vld [vmem:[%s11889_s20 + $0xd10] sm:$0xff] }
  0x8b   : > { %796 = vst [vmem:[%s11894_s26 + $0x680] sm:$0xff] %v795_v16  ;;  %798 = vst [vmem:[%s11894_s26 + $0x688] sm:$0xff] %v797_v17  ;;  %v801_v19 = vld [vmem:[%s11889_s20 + $0xd18] sm:$0xff]  ;;  %v803_v20 = vld [vmem:[%s11889_s20 + $0xd20] sm:$0xff] }
  0x8c   : > { %800 = vst [vmem:[%s11894_s26 + $0x690] sm:$0xff] %v799_v18  ;;  %802 = vst [vmem:[%s11894_s26 + $0x698] sm:$0xff] %v801_v19  ;;  %v805_v21 = vld [vmem:[%s11889_s20 + $0xd28] sm:$0xff]  ;;  %v807_v22 = vld [vmem:[%s11889_s20 + $0xd30] sm:$0xff] }
  0x8d   : > { %804 = vst [vmem:[%s11894_s26 + $0x6a0] sm:$0xff] %v803_v20  ;;  %v809_v23 = vld [vmem:[%s11889_s20 + $0xd38] sm:$0xff]  ;;  %806 = vst [vmem:[%s11894_s26 + $0x6a8] sm:$0xff] %v805_v21  ;;  %v811_v24 = vld [vmem:[%s11889_s20 + $0xd80] sm:$0xff] }
  0x8e   : > { %808 = vst [vmem:[%s11894_s26 + $0x6b0] sm:$0xff] %v807_v22  ;;  %810 = vst [vmem:[%s11894_s26 + $0x6b8] sm:$0xff] %v809_v23  ;;  %v813_v25 = vld [vmem:[%s11889_s20 + $0xd88] sm:$0xff]  ;;  %v815_v26 = vld [vmem:[%s11889_s20 + $0xd90] sm:$0xff] }
  0x8f   : > { %812 = vst [vmem:[%s11894_s26 + $0x6c0] sm:$0xff] %v811_v24  ;;  %814 = vst [vmem:[%s11894_s26 + $0x6c8] sm:$0xff] %v813_v25  ;;  %v817_v27 = vld [vmem:[%s11889_s20 + $0xd98] sm:$0xff]  ;;  %v819_v28 = vld [vmem:[%s11889_s20 + $0xda0] sm:$0xff] }
  0x90   : > { %816 = vst [vmem:[%s11894_s26 + $0x6d0] sm:$0xff] %v815_v26  ;;  %v821_v29 = vld [vmem:[%s11889_s20 + $0xda8] sm:$0xff]  ;;  %818 = vst [vmem:[%s11894_s26 + $0x6d8] sm:$0xff] %v817_v27  ;;  %v823_v30 = vld [vmem:[%s11889_s20 + $0xdb0] sm:$0xff] }
  0x91   : > { %820 = vst [vmem:[%s11894_s26 + $0x6e0] sm:$0xff] %v819_v28  ;;  %822 = vst [vmem:[%s11894_s26 + $0x6e8] sm:$0xff] %v821_v29  ;;  %v825_v31 = vld [vmem:[%s11889_s20 + $0xdb8] sm:$0xff]  ;;  %v827_v32 = vld [vmem:[%s11889_s20 + $0xe00] sm:$0xff] }
  0x92   : > { %824 = vst [vmem:[%s11894_s26 + $0x6f0] sm:$0xff] %v823_v30  ;;  %826 = vst [vmem:[%s11894_s26 + $0x6f8] sm:$0xff] %v825_v31  ;;  %v829_v33 = vld [vmem:[%s11889_s20 + $0xe08] sm:$0xff]  ;;  %v831_v34 = vld [vmem:[%s11889_s20 + $0xe10] sm:$0xff] }
  0x93   : > { %828 = vst [vmem:[%s11894_s26 + $0x700] sm:$0xff] %v827_v32  ;;  %v833_v35 = vld [vmem:[%s11889_s20 + $0xe18] sm:$0xff]  ;;  %830 = vst [vmem:[%s11894_s26 + $0x708] sm:$0xff] %v829_v33  ;;  %v835_v36 = vld [vmem:[%s11889_s20 + $0xe20] sm:$0xff] }
  0x94   : > { %832 = vst [vmem:[%s11894_s26 + $0x710] sm:$0xff] %v831_v34  ;;  %834 = vst [vmem:[%s11894_s26 + $0x718] sm:$0xff] %v833_v35  ;;  %v837_v37 = vld [vmem:[%s11889_s20 + $0xe28] sm:$0xff]  ;;  %v839_v38 = vld [vmem:[%s11889_s20 + $0xe30] sm:$0xff] }
  0x95   : > { %836 = vst [vmem:[%s11894_s26 + $0x720] sm:$0xff] %v835_v36  ;;  %838 = vst [vmem:[%s11894_s26 + $0x728] sm:$0xff] %v837_v37  ;;  %v841_v39 = vld [vmem:[%s11889_s20 + $0xe38] sm:$0xff]  ;;  %v843_v40 = vld [vmem:[%s11889_s20 + $0xe80] sm:$0xff] }
  0x96   : > { %840 = vst [vmem:[%s11894_s26 + $0x730] sm:$0xff] %v839_v38  ;;  %v845_v41 = vld [vmem:[%s11889_s20 + $0xe88] sm:$0xff]  ;;  %842 = vst [vmem:[%s11894_s26 + $0x738] sm:$0xff] %v841_v39  ;;  %v847_v42 = vld [vmem:[%s11889_s20 + $0xe90] sm:$0xff] }
  0x97   : > { %844 = vst [vmem:[%s11894_s26 + $0x740] sm:$0xff] %v843_v40  ;;  %846 = vst [vmem:[%s11894_s26 + $0x748] sm:$0xff] %v845_v41  ;;  %v849_v43 = vld [vmem:[%s11889_s20 + $0xe98] sm:$0xff]  ;;  %v851_v44 = vld [vmem:[%s11889_s20 + $0xea0] sm:$0xff] }
  0x98   : > { %848 = vst [vmem:[%s11894_s26 + $0x750] sm:$0xff] %v847_v42  ;;  %850 = vst [vmem:[%s11894_s26 + $0x758] sm:$0xff] %v849_v43  ;;  %v853_v45 = vld [vmem:[%s11889_s20 + $0xea8] sm:$0xff]  ;;  %v855_v46 = vld [vmem:[%s11889_s20 + $0xeb0] sm:$0xff] }
  0x99   : > { %852 = vst [vmem:[%s11894_s26 + $0x760] sm:$0xff] %v851_v44  ;;  %v857_v47 = vld [vmem:[%s11889_s20 + $0xeb8] sm:$0xff]  ;;  %854 = vst [vmem:[%s11894_s26 + $0x768] sm:$0xff] %v853_v45  ;;  %v859_v48 = vld [vmem:[%s11889_s20 + $0xf00] sm:$0xff] }
  0x9a   : > { %856 = vst [vmem:[%s11894_s26 + $0x770] sm:$0xff] %v855_v46  ;;  %858 = vst [vmem:[%s11894_s26 + $0x778] sm:$0xff] %v857_v47  ;;  %v861_v49 = vld [vmem:[%s11889_s20 + $0xf08] sm:$0xff]  ;;  %v863_v50 = vld [vmem:[%s11889_s20 + $0xf10] sm:$0xff] }
  0x9b   : > { %860 = vst [vmem:[%s11894_s26 + $0x780] sm:$0xff] %v859_v48  ;;  %862 = vst [vmem:[%s11894_s26 + $0x788] sm:$0xff] %v861_v49  ;;  %v865_v51 = vld [vmem:[%s11889_s20 + $0xf18] sm:$0xff]  ;;  %v867_v52 = vld [vmem:[%s11889_s20 + $0xf20] sm:$0xff] }
  0x9c   : > { %864 = vst [vmem:[%s11894_s26 + $0x790] sm:$0xff] %v863_v50  ;;  %v869_v53 = vld [vmem:[%s11889_s20 + $0xf28] sm:$0xff]  ;;  %866 = vst [vmem:[%s11894_s26 + $0x798] sm:$0xff] %v865_v51  ;;  %v871_v54 = vld [vmem:[%s11889_s20 + $0xf30] sm:$0xff] }
  0x9d   : > { %868 = vst [vmem:[%s11894_s26 + $0x7a0] sm:$0xff] %v867_v52  ;;  %870 = vst [vmem:[%s11894_s26 + $0x7a8] sm:$0xff] %v869_v53  ;;  %v873_v55 = vld [vmem:[%s11889_s20 + $0xf38] sm:$0xff]  ;;  %v875_v56 = vld [vmem:[%s11889_s20 + $0xf80] sm:$0xff] }
  0x9e   : > { %872 = vst [vmem:[%s11894_s26 + $0x7b0] sm:$0xff] %v871_v54  ;;  %874 = vst [vmem:[%s11894_s26 + $0x7b8] sm:$0xff] %v873_v55  ;;  %v877_v57 = vld [vmem:[%s11889_s20 + $0xf88] sm:$0xff]  ;;  %v879_v58 = vld [vmem:[%s11889_s20 + $0xf90] sm:$0xff] }
  0x9f   : > { %876 = vst [vmem:[%s11894_s26 + $0x7c0] sm:$0xff] %v875_v56  ;;  %v881_v59 = vld [vmem:[%s11889_s20 + $0xf98] sm:$0xff]  ;;  %878 = vst [vmem:[%s11894_s26 + $0x7c8] sm:$0xff] %v877_v57  ;;  %v883_v60 = vld [vmem:[%s11889_s20 + $0xfa0] sm:$0xff] }
  0xa0   : > { %880 = vst [vmem:[%s11894_s26 + $0x7d0] sm:$0xff] %v879_v58  ;;  %882 = vst [vmem:[%s11894_s26 + $0x7d8] sm:$0xff] %v881_v59  ;;  %v885_v61 = vld [vmem:[%s11889_s20 + $0xfa8] sm:$0xff]  ;;  %v887_v62 = vld [vmem:[%s11889_s20 + $0xfb0] sm:$0xff] }
  0xa1   : > { %884 = vst [vmem:[%s11894_s26 + $0x7e0] sm:$0xff] %v883_v60  ;;  %886 = vst [vmem:[%s11894_s26 + $0x7e8] sm:$0xff] %v885_v61  ;;  %v889_v63 = vld [vmem:[%s11889_s20 + $0xfb8] sm:$0xff]  ;;  %v891_v0 = vld [vmem:[%s11889_s20 + $0x1000] sm:$0xff] }
  0xa2   : > { %888 = vst [vmem:[%s11894_s26 + $0x7f0] sm:$0xff] %v887_v62  ;;  %v893_v1 = vld [vmem:[%s11889_s20 + $0x1008] sm:$0xff]  ;;  %890 = vst [vmem:[%s11894_s26 + $0x7f8] sm:$0xff] %v889_v63  ;;  %v895_v2 = vld [vmem:[%s11889_s20 + $0x1010] sm:$0xff] }
  0xa3   : > { %892 = vst [vmem:[%s11894_s26 + $0x800] sm:$0xff] %v891_v0  ;;  %894 = vst [vmem:[%s11894_s26 + $0x808] sm:$0xff] %v893_v1  ;;  %v897_v3 = vld [vmem:[%s11889_s20 + $0x1018] sm:$0xff]  ;;  %v899_v4 = vld [vmem:[%s11889_s20 + $0x1020] sm:$0xff] }
  0xa4   : > { %896 = vst [vmem:[%s11894_s26 + $0x810] sm:$0xff] %v895_v2  ;;  %898 = vst [vmem:[%s11894_s26 + $0x818] sm:$0xff] %v897_v3  ;;  %v901_v5 = vld [vmem:[%s11889_s20 + $0x1028] sm:$0xff]  ;;  %v903_v6 = vld [vmem:[%s11889_s20 + $0x1030] sm:$0xff] }
  0xa5   : > { %900 = vst [vmem:[%s11894_s26 + $0x820] sm:$0xff] %v899_v4  ;;  %v905_v7 = vld [vmem:[%s11889_s20 + $0x1038] sm:$0xff]  ;;  %902 = vst [vmem:[%s11894_s26 + $0x828] sm:$0xff] %v901_v5  ;;  %v907_v8 = vld [vmem:[%s11889_s20 + $0x1080] sm:$0xff] }
  0xa6   : > { %904 = vst [vmem:[%s11894_s26 + $0x830] sm:$0xff] %v903_v6  ;;  %906 = vst [vmem:[%s11894_s26 + $0x838] sm:$0xff] %v905_v7  ;;  %v909_v9 = vld [vmem:[%s11889_s20 + $0x1088] sm:$0xff]  ;;  %v911_v10 = vld [vmem:[%s11889_s20 + $0x1090] sm:$0xff] }
  0xa7   : > { %908 = vst [vmem:[%s11894_s26 + $0x840] sm:$0xff] %v907_v8  ;;  %910 = vst [vmem:[%s11894_s26 + $0x848] sm:$0xff] %v909_v9  ;;  %v913_v11 = vld [vmem:[%s11889_s20 + $0x1098] sm:$0xff]  ;;  %v915_v12 = vld [vmem:[%s11889_s20 + $0x10a0] sm:$0xff] }
  0xa8   : > { %912 = vst [vmem:[%s11894_s26 + $0x850] sm:$0xff] %v911_v10  ;;  %v917_v13 = vld [vmem:[%s11889_s20 + $0x10a8] sm:$0xff]  ;;  %914 = vst [vmem:[%s11894_s26 + $0x858] sm:$0xff] %v913_v11  ;;  %v919_v14 = vld [vmem:[%s11889_s20 + $0x10b0] sm:$0xff] }
  0xa9   : > { %916 = vst [vmem:[%s11894_s26 + $0x860] sm:$0xff] %v915_v12  ;;  %918 = vst [vmem:[%s11894_s26 + $0x868] sm:$0xff] %v917_v13  ;;  %v921_v15 = vld [vmem:[%s11889_s20 + $0x10b8] sm:$0xff]  ;;  %v923_v16 = vld [vmem:[%s11889_s20 + $0x1100] sm:$0xff] }
  0xaa   : > { %920 = vst [vmem:[%s11894_s26 + $0x870] sm:$0xff] %v919_v14  ;;  %922 = vst [vmem:[%s11894_s26 + $0x878] sm:$0xff] %v921_v15  ;;  %v925_v17 = vld [vmem:[%s11889_s20 + $0x1108] sm:$0xff]  ;;  %v927_v18 = vld [vmem:[%s11889_s20 + $0x1110] sm:$0xff] }
  0xab   : > { %924 = vst [vmem:[%s11894_s26 + $0x880] sm:$0xff] %v923_v16  ;;  %v929_v19 = vld [vmem:[%s11889_s20 + $0x1118] sm:$0xff]  ;;  %926 = vst [vmem:[%s11894_s26 + $0x888] sm:$0xff] %v925_v17  ;;  %v931_v20 = vld [vmem:[%s11889_s20 + $0x1120] sm:$0xff] }
  0xac   : > { %928 = vst [vmem:[%s11894_s26 + $0x890] sm:$0xff] %v927_v18  ;;  %930 = vst [vmem:[%s11894_s26 + $0x898] sm:$0xff] %v929_v19  ;;  %v933_v21 = vld [vmem:[%s11889_s20 + $0x1128] sm:$0xff]  ;;  %v935_v22 = vld [vmem:[%s11889_s20 + $0x1130] sm:$0xff] }
  0xad   : > { %932 = vst [vmem:[%s11894_s26 + $0x8a0] sm:$0xff] %v931_v20  ;;  %934 = vst [vmem:[%s11894_s26 + $0x8a8] sm:$0xff] %v933_v21  ;;  %v937_v23 = vld [vmem:[%s11889_s20 + $0x1138] sm:$0xff]  ;;  %v939_v24 = vld [vmem:[%s11889_s20 + $0x1180] sm:$0xff] }
  0xae   : > { %936 = vst [vmem:[%s11894_s26 + $0x8b0] sm:$0xff] %v935_v22  ;;  %v941_v25 = vld [vmem:[%s11889_s20 + $0x1188] sm:$0xff]  ;;  %938 = vst [vmem:[%s11894_s26 + $0x8b8] sm:$0xff] %v937_v23  ;;  %v943_v26 = vld [vmem:[%s11889_s20 + $0x1190] sm:$0xff] }
  0xaf   : > { %940 = vst [vmem:[%s11894_s26 + $0x8c0] sm:$0xff] %v939_v24  ;;  %942 = vst [vmem:[%s11894_s26 + $0x8c8] sm:$0xff] %v941_v25  ;;  %v945_v27 = vld [vmem:[%s11889_s20 + $0x1198] sm:$0xff]  ;;  %v947_v28 = vld [vmem:[%s11889_s20 + $0x11a0] sm:$0xff] }
  0xb0   : > { %944 = vst [vmem:[%s11894_s26 + $0x8d0] sm:$0xff] %v943_v26  ;;  %946 = vst [vmem:[%s11894_s26 + $0x8d8] sm:$0xff] %v945_v27  ;;  %v949_v29 = vld [vmem:[%s11889_s20 + $0x11a8] sm:$0xff]  ;;  %v951_v30 = vld [vmem:[%s11889_s20 + $0x11b0] sm:$0xff] }
  0xb1   : > { %948 = vst [vmem:[%s11894_s26 + $0x8e0] sm:$0xff] %v947_v28  ;;  %v953_v31 = vld [vmem:[%s11889_s20 + $0x11b8] sm:$0xff]  ;;  %950 = vst [vmem:[%s11894_s26 + $0x8e8] sm:$0xff] %v949_v29  ;;  %v955_v32 = vld [vmem:[%s11889_s20 + $0x1200] sm:$0xff] }
  0xb2   : > { %952 = vst [vmem:[%s11894_s26 + $0x8f0] sm:$0xff] %v951_v30  ;;  %954 = vst [vmem:[%s11894_s26 + $0x8f8] sm:$0xff] %v953_v31  ;;  %v957_v33 = vld [vmem:[%s11889_s20 + $0x1208] sm:$0xff]  ;;  %v959_v34 = vld [vmem:[%s11889_s20 + $0x1210] sm:$0xff] }
  0xb3   : > { %956 = vst [vmem:[%s11894_s26 + $0x900] sm:$0xff] %v955_v32  ;;  %958 = vst [vmem:[%s11894_s26 + $0x908] sm:$0xff] %v957_v33  ;;  %v961_v35 = vld [vmem:[%s11889_s20 + $0x1218] sm:$0xff]  ;;  %v963_v36 = vld [vmem:[%s11889_s20 + $0x1220] sm:$0xff] }
  0xb4   : > { %960 = vst [vmem:[%s11894_s26 + $0x910] sm:$0xff] %v959_v34  ;;  %v965_v37 = vld [vmem:[%s11889_s20 + $0x1228] sm:$0xff]  ;;  %962 = vst [vmem:[%s11894_s26 + $0x918] sm:$0xff] %v961_v35  ;;  %v967_v38 = vld [vmem:[%s11889_s20 + $0x1230] sm:$0xff] }
  0xb5   : > { %964 = vst [vmem:[%s11894_s26 + $0x920] sm:$0xff] %v963_v36  ;;  %966 = vst [vmem:[%s11894_s26 + $0x928] sm:$0xff] %v965_v37  ;;  %v969_v39 = vld [vmem:[%s11889_s20 + $0x1238] sm:$0xff]  ;;  %v971_v40 = vld [vmem:[%s11889_s20 + $0x1280] sm:$0xff] }
  0xb6   : > { %968 = vst [vmem:[%s11894_s26 + $0x930] sm:$0xff] %v967_v38  ;;  %970 = vst [vmem:[%s11894_s26 + $0x938] sm:$0xff] %v969_v39  ;;  %v973_v41 = vld [vmem:[%s11889_s20 + $0x1288] sm:$0xff]  ;;  %v975_v42 = vld [vmem:[%s11889_s20 + $0x1290] sm:$0xff] }
  0xb7   : > { %972 = vst [vmem:[%s11894_s26 + $0x940] sm:$0xff] %v971_v40  ;;  %v977_v43 = vld [vmem:[%s11889_s20 + $0x1298] sm:$0xff]  ;;  %974 = vst [vmem:[%s11894_s26 + $0x948] sm:$0xff] %v973_v41  ;;  %v979_v44 = vld [vmem:[%s11889_s20 + $0x12a0] sm:$0xff] }
  0xb8   : > { %976 = vst [vmem:[%s11894_s26 + $0x950] sm:$0xff] %v975_v42  ;;  %978 = vst [vmem:[%s11894_s26 + $0x958] sm:$0xff] %v977_v43  ;;  %v981_v45 = vld [vmem:[%s11889_s20 + $0x12a8] sm:$0xff]  ;;  %v983_v46 = vld [vmem:[%s11889_s20 + $0x12b0] sm:$0xff] }
  0xb9   : > { %980 = vst [vmem:[%s11894_s26 + $0x960] sm:$0xff] %v979_v44  ;;  %982 = vst [vmem:[%s11894_s26 + $0x968] sm:$0xff] %v981_v45  ;;  %v985_v47 = vld [vmem:[%s11889_s20 + $0x12b8] sm:$0xff]  ;;  %v987_v48 = vld [vmem:[%s11889_s20 + $0x1300] sm:$0xff] }
  0xba   : > { %984 = vst [vmem:[%s11894_s26 + $0x970] sm:$0xff] %v983_v46  ;;  %v989_v49 = vld [vmem:[%s11889_s20 + $0x1308] sm:$0xff]  ;;  %986 = vst [vmem:[%s11894_s26 + $0x978] sm:$0xff] %v985_v47  ;;  %v991_v50 = vld [vmem:[%s11889_s20 + $0x1310] sm:$0xff] }
  0xbb   : > { %988 = vst [vmem:[%s11894_s26 + $0x980] sm:$0xff] %v987_v48  ;;  %990 = vst [vmem:[%s11894_s26 + $0x988] sm:$0xff] %v989_v49  ;;  %v993_v51 = vld [vmem:[%s11889_s20 + $0x1318] sm:$0xff]  ;;  %v995_v52 = vld [vmem:[%s11889_s20 + $0x1320] sm:$0xff] }
  0xbc   : > { %992 = vst [vmem:[%s11894_s26 + $0x990] sm:$0xff] %v991_v50  ;;  %994 = vst [vmem:[%s11894_s26 + $0x998] sm:$0xff] %v993_v51  ;;  %v997_v53 = vld [vmem:[%s11889_s20 + $0x1328] sm:$0xff]  ;;  %v999_v54 = vld [vmem:[%s11889_s20 + $0x1330] sm:$0xff] }
  0xbd   : > { %996 = vst [vmem:[%s11894_s26 + $0x9a0] sm:$0xff] %v995_v52  ;;  %v1001_v55 = vld [vmem:[%s11889_s20 + $0x1338] sm:$0xff]  ;;  %998 = vst [vmem:[%s11894_s26 + $0x9a8] sm:$0xff] %v997_v53  ;;  %v1003_v56 = vld [vmem:[%s11889_s20 + $0x1380] sm:$0xff] }
  0xbe   : > { %1000 = vst [vmem:[%s11894_s26 + $0x9b0] sm:$0xff] %v999_v54  ;;  %1002 = vst [vmem:[%s11894_s26 + $0x9b8] sm:$0xff] %v1001_v55  ;;  %v1005_v57 = vld [vmem:[%s11889_s20 + $0x1388] sm:$0xff]  ;;  %v1007_v58 = vld [vmem:[%s11889_s20 + $0x1390] sm:$0xff] }
  0xbf   : > { %1004 = vst [vmem:[%s11894_s26 + $0x9c0] sm:$0xff] %v1003_v56  ;;  %1006 = vst [vmem:[%s11894_s26 + $0x9c8] sm:$0xff] %v1005_v57  ;;  %v1009_v59 = vld [vmem:[%s11889_s20 + $0x1398] sm:$0xff]  ;;  %v1011_v60 = vld [vmem:[%s11889_s20 + $0x13a0] sm:$0xff] }
  0xc0   : > { %1008 = vst [vmem:[%s11894_s26 + $0x9d0] sm:$0xff] %v1007_v58  ;;  %v1013_v61 = vld [vmem:[%s11889_s20 + $0x13a8] sm:$0xff]  ;;  %1010 = vst [vmem:[%s11894_s26 + $0x9d8] sm:$0xff] %v1009_v59  ;;  %v1015_v62 = vld [vmem:[%s11889_s20 + $0x13b0] sm:$0xff] }
  0xc1   : > { %1012 = vst [vmem:[%s11894_s26 + $0x9e0] sm:$0xff] %v1011_v60  ;;  %1014 = vst [vmem:[%s11894_s26 + $0x9e8] sm:$0xff] %v1013_v61  ;;  %v1017_v63 = vld [vmem:[%s11889_s20 + $0x13b8] sm:$0xff]  ;;  %v1019_v0 = vld [vmem:[%s11889_s20 + $0x1400] sm:$0xff] }
  0xc2   : > { %1016 = vst [vmem:[%s11894_s26 + $0x9f0] sm:$0xff] %v1015_v62  ;;  %1018 = vst [vmem:[%s11894_s26 + $0x9f8] sm:$0xff] %v1017_v63  ;;  %v1021_v1 = vld [vmem:[%s11889_s20 + $0x1408] sm:$0xff]  ;;  %v1023_v2 = vld [vmem:[%s11889_s20 + $0x1410] sm:$0xff] }
  0xc3   : > { %1020 = vst [vmem:[%s11894_s26 + $0xa00] sm:$0xff] %v1019_v0  ;;  %v1025_v3 = vld [vmem:[%s11889_s20 + $0x1418] sm:$0xff]  ;;  %1022 = vst [vmem:[%s11894_s26 + $0xa08] sm:$0xff] %v1021_v1  ;;  %v1027_v4 = vld [vmem:[%s11889_s20 + $0x1420] sm:$0xff] }
  0xc4   : > { %1024 = vst [vmem:[%s11894_s26 + $0xa10] sm:$0xff] %v1023_v2  ;;  %1026 = vst [vmem:[%s11894_s26 + $0xa18] sm:$0xff] %v1025_v3  ;;  %v1029_v5 = vld [vmem:[%s11889_s20 + $0x1428] sm:$0xff]  ;;  %v1031_v6 = vld [vmem:[%s11889_s20 + $0x1430] sm:$0xff] }
  0xc5   : > { %1028 = vst [vmem:[%s11894_s26 + $0xa20] sm:$0xff] %v1027_v4  ;;  %1030 = vst [vmem:[%s11894_s26 + $0xa28] sm:$0xff] %v1029_v5  ;;  %v1033_v7 = vld [vmem:[%s11889_s20 + $0x1438] sm:$0xff]  ;;  %v1035_v8 = vld [vmem:[%s11889_s20 + $0x1480] sm:$0xff] }
  0xc6   : > { %1032 = vst [vmem:[%s11894_s26 + $0xa30] sm:$0xff] %v1031_v6  ;;  %v1037_v9 = vld [vmem:[%s11889_s20 + $0x1488] sm:$0xff]  ;;  %1034 = vst [vmem:[%s11894_s26 + $0xa38] sm:$0xff] %v1033_v7  ;;  %v1039_v10 = vld [vmem:[%s11889_s20 + $0x1490] sm:$0xff] }
  0xc7   : > { %1036 = vst [vmem:[%s11894_s26 + $0xa40] sm:$0xff] %v1035_v8  ;;  %1038 = vst [vmem:[%s11894_s26 + $0xa48] sm:$0xff] %v1037_v9  ;;  %v1041_v11 = vld [vmem:[%s11889_s20 + $0x1498] sm:$0xff]  ;;  %v1043_v12 = vld [vmem:[%s11889_s20 + $0x14a0] sm:$0xff] }
  0xc8   : > { %1040 = vst [vmem:[%s11894_s26 + $0xa50] sm:$0xff] %v1039_v10  ;;  %1042 = vst [vmem:[%s11894_s26 + $0xa58] sm:$0xff] %v1041_v11  ;;  %v1045_v13 = vld [vmem:[%s11889_s20 + $0x14a8] sm:$0xff]  ;;  %v1047_v14 = vld [vmem:[%s11889_s20 + $0x14b0] sm:$0xff] }
  0xc9   : > { %1044 = vst [vmem:[%s11894_s26 + $0xa60] sm:$0xff] %v1043_v12  ;;  %v1049_v15 = vld [vmem:[%s11889_s20 + $0x14b8] sm:$0xff]  ;;  %1046 = vst [vmem:[%s11894_s26 + $0xa68] sm:$0xff] %v1045_v13  ;;  %v1051_v16 = vld [vmem:[%s11889_s20 + $0x1500] sm:$0xff] }
  0xca   : > { %1048 = vst [vmem:[%s11894_s26 + $0xa70] sm:$0xff] %v1047_v14  ;;  %1050 = vst [vmem:[%s11894_s26 + $0xa78] sm:$0xff] %v1049_v15  ;;  %v1053_v17 = vld [vmem:[%s11889_s20 + $0x1508] sm:$0xff]  ;;  %v1055_v18 = vld [vmem:[%s11889_s20 + $0x1510] sm:$0xff] }
  0xcb   : > { %1052 = vst [vmem:[%s11894_s26 + $0xa80] sm:$0xff] %v1051_v16  ;;  %1054 = vst [vmem:[%s11894_s26 + $0xa88] sm:$0xff] %v1053_v17  ;;  %v1057_v19 = vld [vmem:[%s11889_s20 + $0x1518] sm:$0xff]  ;;  %v1059_v20 = vld [vmem:[%s11889_s20 + $0x1520] sm:$0xff] }
  0xcc   : > { %1056 = vst [vmem:[%s11894_s26 + $0xa90] sm:$0xff] %v1055_v18  ;;  %v1061_v21 = vld [vmem:[%s11889_s20 + $0x1528] sm:$0xff]  ;;  %1058 = vst [vmem:[%s11894_s26 + $0xa98] sm:$0xff] %v1057_v19  ;;  %v1063_v22 = vld [vmem:[%s11889_s20 + $0x1530] sm:$0xff] }
  0xcd   : > { %1060 = vst [vmem:[%s11894_s26 + $0xaa0] sm:$0xff] %v1059_v20  ;;  %1062 = vst [vmem:[%s11894_s26 + $0xaa8] sm:$0xff] %v1061_v21  ;;  %v1065_v23 = vld [vmem:[%s11889_s20 + $0x1538] sm:$0xff]  ;;  %v1067_v24 = vld [vmem:[%s11889_s20 + $0x1580] sm:$0xff] }
  0xce   : > { %1064 = vst [vmem:[%s11894_s26 + $0xab0] sm:$0xff] %v1063_v22  ;;  %1066 = vst [vmem:[%s11894_s26 + $0xab8] sm:$0xff] %v1065_v23  ;;  %v1069_v25 = vld [vmem:[%s11889_s20 + $0x1588] sm:$0xff]  ;;  %v1071_v26 = vld [vmem:[%s11889_s20 + $0x1590] sm:$0xff] }
  0xcf   : > { %1068 = vst [vmem:[%s11894_s26 + $0xac0] sm:$0xff] %v1067_v24  ;;  %v1073_v27 = vld [vmem:[%s11889_s20 + $0x1598] sm:$0xff]  ;;  %1070 = vst [vmem:[%s11894_s26 + $0xac8] sm:$0xff] %v1069_v25  ;;  %v1075_v28 = vld [vmem:[%s11889_s20 + $0x15a0] sm:$0xff] }
  0xd0   : > { %1072 = vst [vmem:[%s11894_s26 + $0xad0] sm:$0xff] %v1071_v26  ;;  %1074 = vst [vmem:[%s11894_s26 + $0xad8] sm:$0xff] %v1073_v27  ;;  %v1077_v29 = vld [vmem:[%s11889_s20 + $0x15a8] sm:$0xff]  ;;  %v1079_v30 = vld [vmem:[%s11889_s20 + $0x15b0] sm:$0xff] }
  0xd1   : > { %1076 = vst [vmem:[%s11894_s26 + $0xae0] sm:$0xff] %v1075_v28  ;;  %1078 = vst [vmem:[%s11894_s26 + $0xae8] sm:$0xff] %v1077_v29  ;;  %v1081_v31 = vld [vmem:[%s11889_s20 + $0x15b8] sm:$0xff]  ;;  %v1083_v32 = vld [vmem:[%s11889_s20 + $0x1600] sm:$0xff] }
  0xd2   : > { %1080 = vst [vmem:[%s11894_s26 + $0xaf0] sm:$0xff] %v1079_v30  ;;  %v1085_v33 = vld [vmem:[%s11889_s20 + $0x1608] sm:$0xff]  ;;  %1082 = vst [vmem:[%s11894_s26 + $0xaf8] sm:$0xff] %v1081_v31  ;;  %v1087_v34 = vld [vmem:[%s11889_s20 + $0x1610] sm:$0xff] }
  0xd3   : > { %1084 = vst [vmem:[%s11894_s26 + $0xb00] sm:$0xff] %v1083_v32  ;;  %1086 = vst [vmem:[%s11894_s26 + $0xb08] sm:$0xff] %v1085_v33  ;;  %v1089_v35 = vld [vmem:[%s11889_s20 + $0x1618] sm:$0xff]  ;;  %v1091_v36 = vld [vmem:[%s11889_s20 + $0x1620] sm:$0xff] }
  0xd4   : > { %1088 = vst [vmem:[%s11894_s26 + $0xb10] sm:$0xff] %v1087_v34  ;;  %1090 = vst [vmem:[%s11894_s26 + $0xb18] sm:$0xff] %v1089_v35  ;;  %v1093_v37 = vld [vmem:[%s11889_s20 + $0x1628] sm:$0xff]  ;;  %v1095_v38 = vld [vmem:[%s11889_s20 + $0x1630] sm:$0xff] }
  0xd5   : > { %1092 = vst [vmem:[%s11894_s26 + $0xb20] sm:$0xff] %v1091_v36  ;;  %v1097_v39 = vld [vmem:[%s11889_s20 + $0x1638] sm:$0xff]  ;;  %1094 = vst [vmem:[%s11894_s26 + $0xb28] sm:$0xff] %v1093_v37  ;;  %v1099_v40 = vld [vmem:[%s11889_s20 + $0x1680] sm:$0xff] }
  0xd6   : > { %1096 = vst [vmem:[%s11894_s26 + $0xb30] sm:$0xff] %v1095_v38  ;;  %1098 = vst [vmem:[%s11894_s26 + $0xb38] sm:$0xff] %v1097_v39  ;;  %v1101_v41 = vld [vmem:[%s11889_s20 + $0x1688] sm:$0xff]  ;;  %v1103_v42 = vld [vmem:[%s11889_s20 + $0x1690] sm:$0xff] }
  0xd7   : > { %1100 = vst [vmem:[%s11894_s26 + $0xb40] sm:$0xff] %v1099_v40  ;;  %1102 = vst [vmem:[%s11894_s26 + $0xb48] sm:$0xff] %v1101_v41  ;;  %v1105_v43 = vld [vmem:[%s11889_s20 + $0x1698] sm:$0xff]  ;;  %v1107_v44 = vld [vmem:[%s11889_s20 + $0x16a0] sm:$0xff] }
  0xd8   : > { %1104 = vst [vmem:[%s11894_s26 + $0xb50] sm:$0xff] %v1103_v42  ;;  %v1109_v45 = vld [vmem:[%s11889_s20 + $0x16a8] sm:$0xff]  ;;  %1106 = vst [vmem:[%s11894_s26 + $0xb58] sm:$0xff] %v1105_v43  ;;  %v1111_v46 = vld [vmem:[%s11889_s20 + $0x16b0] sm:$0xff] }
  0xd9   : > { %1108 = vst [vmem:[%s11894_s26 + $0xb60] sm:$0xff] %v1107_v44  ;;  %1110 = vst [vmem:[%s11894_s26 + $0xb68] sm:$0xff] %v1109_v45  ;;  %v1113_v47 = vld [vmem:[%s11889_s20 + $0x16b8] sm:$0xff]  ;;  %v1115_v48 = vld [vmem:[%s11889_s20 + $0x1700] sm:$0xff] }
  0xda   : > { %1112 = vst [vmem:[%s11894_s26 + $0xb70] sm:$0xff] %v1111_v46  ;;  %1114 = vst [vmem:[%s11894_s26 + $0xb78] sm:$0xff] %v1113_v47  ;;  %v1117_v49 = vld [vmem:[%s11889_s20 + $0x1708] sm:$0xff]  ;;  %v1119_v50 = vld [vmem:[%s11889_s20 + $0x1710] sm:$0xff] }
  0xdb   : > { %1116 = vst [vmem:[%s11894_s26 + $0xb80] sm:$0xff] %v1115_v48  ;;  %v1121_v51 = vld [vmem:[%s11889_s20 + $0x1718] sm:$0xff]  ;;  %1118 = vst [vmem:[%s11894_s26 + $0xb88] sm:$0xff] %v1117_v49  ;;  %v1123_v52 = vld [vmem:[%s11889_s20 + $0x1720] sm:$0xff] }
  0xdc   : > { %1120 = vst [vmem:[%s11894_s26 + $0xb90] sm:$0xff] %v1119_v50  ;;  %1122 = vst [vmem:[%s11894_s26 + $0xb98] sm:$0xff] %v1121_v51  ;;  %v1125_v53 = vld [vmem:[%s11889_s20 + $0x1728] sm:$0xff]  ;;  %v1127_v54 = vld [vmem:[%s11889_s20 + $0x1730] sm:$0xff] }
  0xdd   : > { %1124 = vst [vmem:[%s11894_s26 + $0xba0] sm:$0xff] %v1123_v52  ;;  %1126 = vst [vmem:[%s11894_s26 + $0xba8] sm:$0xff] %v1125_v53  ;;  %v1129_v55 = vld [vmem:[%s11889_s20 + $0x1738] sm:$0xff]  ;;  %v1131_v56 = vld [vmem:[%s11889_s20 + $0x1780] sm:$0xff] }
  0xde   : > { %1128 = vst [vmem:[%s11894_s26 + $0xbb0] sm:$0xff] %v1127_v54  ;;  %v1133_v57 = vld [vmem:[%s11889_s20 + $0x1788] sm:$0xff]  ;;  %1130 = vst [vmem:[%s11894_s26 + $0xbb8] sm:$0xff] %v1129_v55  ;;  %v1135_v58 = vld [vmem:[%s11889_s20 + $0x1790] sm:$0xff] }
  0xdf   : > { %1132 = vst [vmem:[%s11894_s26 + $0xbc0] sm:$0xff] %v1131_v56  ;;  %1134 = vst [vmem:[%s11894_s26 + $0xbc8] sm:$0xff] %v1133_v57  ;;  %v1137_v59 = vld [vmem:[%s11889_s20 + $0x1798] sm:$0xff]  ;;  %v1139_v60 = vld [vmem:[%s11889_s20 + $0x17a0] sm:$0xff] }
  0xe0   : > { %1136 = vst [vmem:[%s11894_s26 + $0xbd0] sm:$0xff] %v1135_v58  ;;  %1138 = vst [vmem:[%s11894_s26 + $0xbd8] sm:$0xff] %v1137_v59  ;;  %v1141_v61 = vld [vmem:[%s11889_s20 + $0x17a8] sm:$0xff]  ;;  %v1143_v62 = vld [vmem:[%s11889_s20 + $0x17b0] sm:$0xff] }
  0xe1   : > { %1140 = vst [vmem:[%s11894_s26 + $0xbe0] sm:$0xff] %v1139_v60  ;;  %v1145_v63 = vld [vmem:[%s11889_s20 + $0x17b8] sm:$0xff]  ;;  %1142 = vst [vmem:[%s11894_s26 + $0xbe8] sm:$0xff] %v1141_v61  ;;  %v1147_v0 = vld [vmem:[%s11889_s20 + $0x1800] sm:$0xff] }
  0xe2   : > { %1144 = vst [vmem:[%s11894_s26 + $0xbf0] sm:$0xff] %v1143_v62  ;;  %1146 = vst [vmem:[%s11894_s26 + $0xbf8] sm:$0xff] %v1145_v63  ;;  %v1149_v1 = vld [vmem:[%s11889_s20 + $0x1808] sm:$0xff]  ;;  %v1151_v2 = vld [vmem:[%s11889_s20 + $0x1810] sm:$0xff] }
  0xe3   : > { %1148 = vst [vmem:[%s11894_s26 + $0xc00] sm:$0xff] %v1147_v0  ;;  %1150 = vst [vmem:[%s11894_s26 + $0xc08] sm:$0xff] %v1149_v1  ;;  %v1153_v3 = vld [vmem:[%s11889_s20 + $0x1818] sm:$0xff]  ;;  %v1155_v4 = vld [vmem:[%s11889_s20 + $0x1820] sm:$0xff] }
  0xe4   : > { %1152 = vst [vmem:[%s11894_s26 + $0xc10] sm:$0xff] %v1151_v2  ;;  %v1157_v5 = vld [vmem:[%s11889_s20 + $0x1828] sm:$0xff]  ;;  %1154 = vst [vmem:[%s11894_s26 + $0xc18] sm:$0xff] %v1153_v3  ;;  %v1159_v6 = vld [vmem:[%s11889_s20 + $0x1830] sm:$0xff] }
  0xe5   : > { %1156 = vst [vmem:[%s11894_s26 + $0xc20] sm:$0xff] %v1155_v4  ;;  %1158 = vst [vmem:[%s11894_s26 + $0xc28] sm:$0xff] %v1157_v5  ;;  %v1161_v7 = vld [vmem:[%s11889_s20 + $0x1838] sm:$0xff]  ;;  %v1163_v8 = vld [vmem:[%s11889_s20 + $0x1880] sm:$0xff] }
  0xe6   : > { %1160 = vst [vmem:[%s11894_s26 + $0xc30] sm:$0xff] %v1159_v6  ;;  %1162 = vst [vmem:[%s11894_s26 + $0xc38] sm:$0xff] %v1161_v7  ;;  %v1165_v9 = vld [vmem:[%s11889_s20 + $0x1888] sm:$0xff]  ;;  %v1167_v10 = vld [vmem:[%s11889_s20 + $0x1890] sm:$0xff] }
  0xe7   : > { %1164 = vst [vmem:[%s11894_s26 + $0xc40] sm:$0xff] %v1163_v8  ;;  %v1169_v11 = vld [vmem:[%s11889_s20 + $0x1898] sm:$0xff]  ;;  %1166 = vst [vmem:[%s11894_s26 + $0xc48] sm:$0xff] %v1165_v9  ;;  %v1171_v12 = vld [vmem:[%s11889_s20 + $0x18a0] sm:$0xff] }
  0xe8   : > { %1168 = vst [vmem:[%s11894_s26 + $0xc50] sm:$0xff] %v1167_v10  ;;  %1170 = vst [vmem:[%s11894_s26 + $0xc58] sm:$0xff] %v1169_v11  ;;  %v1173_v13 = vld [vmem:[%s11889_s20 + $0x18a8] sm:$0xff]  ;;  %v1175_v14 = vld [vmem:[%s11889_s20 + $0x18b0] sm:$0xff] }
  0xe9   : > { %1172 = vst [vmem:[%s11894_s26 + $0xc60] sm:$0xff] %v1171_v12  ;;  %1174 = vst [vmem:[%s11894_s26 + $0xc68] sm:$0xff] %v1173_v13  ;;  %v1177_v15 = vld [vmem:[%s11889_s20 + $0x18b8] sm:$0xff]  ;;  %v1179_v16 = vld [vmem:[%s11889_s20 + $0x1900] sm:$0xff] }
  0xea   : > { %1176 = vst [vmem:[%s11894_s26 + $0xc70] sm:$0xff] %v1175_v14  ;;  %v1181_v17 = vld [vmem:[%s11889_s20 + $0x1908] sm:$0xff]  ;;  %1178 = vst [vmem:[%s11894_s26 + $0xc78] sm:$0xff] %v1177_v15  ;;  %v1183_v18 = vld [vmem:[%s11889_s20 + $0x1910] sm:$0xff] }
  0xeb   : > { %1180 = vst [vmem:[%s11894_s26 + $0xc80] sm:$0xff] %v1179_v16  ;;  %1182 = vst [vmem:[%s11894_s26 + $0xc88] sm:$0xff] %v1181_v17  ;;  %v1185_v19 = vld [vmem:[%s11889_s20 + $0x1918] sm:$0xff]  ;;  %v1187_v20 = vld [vmem:[%s11889_s20 + $0x1920] sm:$0xff] }
  0xec   : > { %1184 = vst [vmem:[%s11894_s26 + $0xc90] sm:$0xff] %v1183_v18  ;;  %1186 = vst [vmem:[%s11894_s26 + $0xc98] sm:$0xff] %v1185_v19  ;;  %v1189_v21 = vld [vmem:[%s11889_s20 + $0x1928] sm:$0xff]  ;;  %v1191_v22 = vld [vmem:[%s11889_s20 + $0x1930] sm:$0xff] }
  0xed   : > { %1188 = vst [vmem:[%s11894_s26 + $0xca0] sm:$0xff] %v1187_v20  ;;  %v1193_v23 = vld [vmem:[%s11889_s20 + $0x1938] sm:$0xff]  ;;  %1190 = vst [vmem:[%s11894_s26 + $0xca8] sm:$0xff] %v1189_v21  ;;  %v1195_v24 = vld [vmem:[%s11889_s20 + $0x1980] sm:$0xff] }
  0xee   : > { %1192 = vst [vmem:[%s11894_s26 + $0xcb0] sm:$0xff] %v1191_v22  ;;  %1194 = vst [vmem:[%s11894_s26 + $0xcb8] sm:$0xff] %v1193_v23  ;;  %v1197_v25 = vld [vmem:[%s11889_s20 + $0x1988] sm:$0xff]  ;;  %v1199_v26 = vld [vmem:[%s11889_s20 + $0x1990] sm:$0xff] }
  0xef   : > { %1196 = vst [vmem:[%s11894_s26 + $0xcc0] sm:$0xff] %v1195_v24  ;;  %1198 = vst [vmem:[%s11894_s26 + $0xcc8] sm:$0xff] %v1197_v25  ;;  %v1201_v27 = vld [vmem:[%s11889_s20 + $0x1998] sm:$0xff]  ;;  %v1203_v28 = vld [vmem:[%s11889_s20 + $0x19a0] sm:$0xff] }
  0xf0   : > { %1200 = vst [vmem:[%s11894_s26 + $0xcd0] sm:$0xff] %v1199_v26  ;;  %v1205_v29 = vld [vmem:[%s11889_s20 + $0x19a8] sm:$0xff]  ;;  %1202 = vst [vmem:[%s11894_s26 + $0xcd8] sm:$0xff] %v1201_v27  ;;  %v1207_v30 = vld [vmem:[%s11889_s20 + $0x19b0] sm:$0xff] }
  0xf1   : > { %1204 = vst [vmem:[%s11894_s26 + $0xce0] sm:$0xff] %v1203_v28  ;;  %1206 = vst [vmem:[%s11894_s26 + $0xce8] sm:$0xff] %v1205_v29  ;;  %v1209_v31 = vld [vmem:[%s11889_s20 + $0x19b8] sm:$0xff]  ;;  %v1211_v32 = vld [vmem:[%s11889_s20 + $0x1a00] sm:$0xff] }
  0xf2   : > { %1208 = vst [vmem:[%s11894_s26 + $0xcf0] sm:$0xff] %v1207_v30  ;;  %1210 = vst [vmem:[%s11894_s26 + $0xcf8] sm:$0xff] %v1209_v31  ;;  %v1213_v33 = vld [vmem:[%s11889_s20 + $0x1a08] sm:$0xff]  ;;  %v1215_v34 = vld [vmem:[%s11889_s20 + $0x1a10] sm:$0xff] }
  0xf3   : > { %1212 = vst [vmem:[%s11894_s26 + $0xd00] sm:$0xff] %v1211_v32  ;;  %v1217_v35 = vld [vmem:[%s11889_s20 + $0x1a18] sm:$0xff]  ;;  %1214 = vst [vmem:[%s11894_s26 + $0xd08] sm:$0xff] %v1213_v33  ;;  %v1219_v36 = vld [vmem:[%s11889_s20 + $0x1a20] sm:$0xff] }
  0xf4   : > { %1216 = vst [vmem:[%s11894_s26 + $0xd10] sm:$0xff] %v1215_v34  ;;  %1218 = vst [vmem:[%s11894_s26 + $0xd18] sm:$0xff] %v1217_v35  ;;  %v1221_v37 = vld [vmem:[%s11889_s20 + $0x1a28] sm:$0xff]  ;;  %v1223_v38 = vld [vmem:[%s11889_s20 + $0x1a30] sm:$0xff] }
  0xf5   : > { %1220 = vst [vmem:[%s11894_s26 + $0xd20] sm:$0xff] %v1219_v36  ;;  %1222 = vst [vmem:[%s11894_s26 + $0xd28] sm:$0xff] %v1221_v37  ;;  %v1225_v39 = vld [vmem:[%s11889_s20 + $0x1a38] sm:$0xff]  ;;  %v1227_v40 = vld [vmem:[%s11889_s20 + $0x1a80] sm:$0xff] }
  0xf6   : > { %1224 = vst [vmem:[%s11894_s26 + $0xd30] sm:$0xff] %v1223_v38  ;;  %v1229_v41 = vld [vmem:[%s11889_s20 + $0x1a88] sm:$0xff]  ;;  %1226 = vst [vmem:[%s11894_s26 + $0xd38] sm:$0xff] %v1225_v39  ;;  %v1231_v42 = vld [vmem:[%s11889_s20 + $0x1a90] sm:$0xff] }
  0xf7   : > { %1228 = vst [vmem:[%s11894_s26 + $0xd40] sm:$0xff] %v1227_v40  ;;  %1230 = vst [vmem:[%s11894_s26 + $0xd48] sm:$0xff] %v1229_v41  ;;  %v1233_v43 = vld [vmem:[%s11889_s20 + $0x1a98] sm:$0xff]  ;;  %v1235_v44 = vld [vmem:[%s11889_s20 + $0x1aa0] sm:$0xff] }
  0xf8   : > { %1232 = vst [vmem:[%s11894_s26 + $0xd50] sm:$0xff] %v1231_v42  ;;  %1234 = vst [vmem:[%s11894_s26 + $0xd58] sm:$0xff] %v1233_v43  ;;  %v1237_v45 = vld [vmem:[%s11889_s20 + $0x1aa8] sm:$0xff]  ;;  %v1239_v46 = vld [vmem:[%s11889_s20 + $0x1ab0] sm:$0xff] }
  0xf9   : > { %1236 = vst [vmem:[%s11894_s26 + $0xd60] sm:$0xff] %v1235_v44  ;;  %v1241_v47 = vld [vmem:[%s11889_s20 + $0x1ab8] sm:$0xff]  ;;  %1238 = vst [vmem:[%s11894_s26 + $0xd68] sm:$0xff] %v1237_v45  ;;  %v1243_v48 = vld [vmem:[%s11889_s20 + $0x1b00] sm:$0xff] }
  0xfa   : > { %1240 = vst [vmem:[%s11894_s26 + $0xd70] sm:$0xff] %v1239_v46  ;;  %1242 = vst [vmem:[%s11894_s26 + $0xd78] sm:$0xff] %v1241_v47  ;;  %v1245_v49 = vld [vmem:[%s11889_s20 + $0x1b08] sm:$0xff]  ;;  %v1247_v50 = vld [vmem:[%s11889_s20 + $0x1b10] sm:$0xff] }
  0xfb   : > { %1244 = vst [vmem:[%s11894_s26 + $0xd80] sm:$0xff] %v1243_v48  ;;  %1246 = vst [vmem:[%s11894_s26 + $0xd88] sm:$0xff] %v1245_v49  ;;  %v1249_v51 = vld [vmem:[%s11889_s20 + $0x1b18] sm:$0xff]  ;;  %v1251_v52 = vld [vmem:[%s11889_s20 + $0x1b20] sm:$0xff] }
  0xfc   : > { %1248 = vst [vmem:[%s11894_s26 + $0xd90] sm:$0xff] %v1247_v50  ;;  %v1253_v53 = vld [vmem:[%s11889_s20 + $0x1b28] sm:$0xff]  ;;  %1250 = vst [vmem:[%s11894_s26 + $0xd98] sm:$0xff] %v1249_v51  ;;  %v1255_v54 = vld [vmem:[%s11889_s20 + $0x1b30] sm:$0xff] }
  0xfd   : > { %1252 = vst [vmem:[%s11894_s26 + $0xda0] sm:$0xff] %v1251_v52  ;;  %1254 = vst [vmem:[%s11894_s26 + $0xda8] sm:$0xff] %v1253_v53  ;;  %v1257_v55 = vld [vmem:[%s11889_s20 + $0x1b38] sm:$0xff]  ;;  %v1259_v56 = vld [vmem:[%s11889_s20 + $0x1b80] sm:$0xff] }
  0xfe   : > { %1256 = vst [vmem:[%s11894_s26 + $0xdb0] sm:$0xff] %v1255_v54  ;;  %1258 = vst [vmem:[%s11894_s26 + $0xdb8] sm:$0xff] %v1257_v55  ;;  %v1261_v57 = vld [vmem:[%s11889_s20 + $0x1b88] sm:$0xff]  ;;  %v1263_v58 = vld [vmem:[%s11889_s20 + $0x1b90] sm:$0xff] }
  0xff   : > { %1260 = vst [vmem:[%s11894_s26 + $0xdc0] sm:$0xff] %v1259_v56  ;;  %v1265_v59 = vld [vmem:[%s11889_s20 + $0x1b98] sm:$0xff]  ;;  %1262 = vst [vmem:[%s11894_s26 + $0xdc8] sm:$0xff] %v1261_v57  ;;  %v1267_v60 = vld [vmem:[%s11889_s20 + $0x1ba0] sm:$0xff] }
 0x100   : > { %1264 = vst [vmem:[%s11894_s26 + $0xdd0] sm:$0xff] %v1263_v58  ;;  %1266 = vst [vmem:[%s11894_s26 + $0xdd8] sm:$0xff] %v1265_v59  ;;  %v1269_v61 = vld [vmem:[%s11889_s20 + $0x1ba8] sm:$0xff]  ;;  %v1271_v62 = vld [vmem:[%s11889_s20 + $0x1bb0] sm:$0xff] }
 0x101   : > { %1268 = vst [vmem:[%s11894_s26 + $0xde0] sm:$0xff] %v1267_v60  ;;  %1270 = vst [vmem:[%s11894_s26 + $0xde8] sm:$0xff] %v1269_v61  ;;  %v1273_v63 = vld [vmem:[%s11889_s20 + $0x1bb8] sm:$0xff]  ;;  %v1275_v0 = vld [vmem:[%s11889_s20 + $0x1c00] sm:$0xff] }
 0x102   : > { %1272 = vst [vmem:[%s11894_s26 + $0xdf0] sm:$0xff] %v1271_v62  ;;  %v1277_v1 = vld [vmem:[%s11889_s20 + $0x1c08] sm:$0xff]  ;;  %1274 = vst [vmem:[%s11894_s26 + $0xdf8] sm:$0xff] %v1273_v63  ;;  %v1279_v2 = vld [vmem:[%s11889_s20 + $0x1c10] sm:$0xff] }
 0x103   : > { %1276 = vst [vmem:[%s11894_s26 + $0xe00] sm:$0xff] %v1275_v0  ;;  %1278 = vst [vmem:[%s11894_s26 + $0xe08] sm:$0xff] %v1277_v1  ;;  %v1281_v3 = vld [vmem:[%s11889_s20 + $0x1c18] sm:$0xff]  ;;  %v1283_v4 = vld [vmem:[%s11889_s20 + $0x1c20] sm:$0xff] }
 0x104   : > { %1280 = vst [vmem:[%s11894_s26 + $0xe10] sm:$0xff] %v1279_v2  ;;  %1282 = vst [vmem:[%s11894_s26 + $0xe18] sm:$0xff] %v1281_v3  ;;  %v1285_v5 = vld [vmem:[%s11889_s20 + $0x1c28] sm:$0xff]  ;;  %v1287_v6 = vld [vmem:[%s11889_s20 + $0x1c30] sm:$0xff] }
 0x105   : > { %1284 = vst [vmem:[%s11894_s26 + $0xe20] sm:$0xff] %v1283_v4  ;;  %v1289_v7 = vld [vmem:[%s11889_s20 + $0x1c38] sm:$0xff]  ;;  %1286 = vst [vmem:[%s11894_s26 + $0xe28] sm:$0xff] %v1285_v5  ;;  %v1291_v8 = vld [vmem:[%s11889_s20 + $0x1c80] sm:$0xff] }
 0x106   : > { %1288 = vst [vmem:[%s11894_s26 + $0xe30] sm:$0xff] %v1287_v6  ;;  %1290 = vst [vmem:[%s11894_s26 + $0xe38] sm:$0xff] %v1289_v7  ;;  %v1293_v9 = vld [vmem:[%s11889_s20 + $0x1c88] sm:$0xff]  ;;  %v1295_v10 = vld [vmem:[%s11889_s20 + $0x1c90] sm:$0xff] }
 0x107   : > { %1292 = vst [vmem:[%s11894_s26 + $0xe40] sm:$0xff] %v1291_v8  ;;  %1294 = vst [vmem:[%s11894_s26 + $0xe48] sm:$0xff] %v1293_v9  ;;  %v1297_v11 = vld [vmem:[%s11889_s20 + $0x1c98] sm:$0xff]  ;;  %v1299_v12 = vld [vmem:[%s11889_s20 + $0x1ca0] sm:$0xff] }
 0x108   : > { %1296 = vst [vmem:[%s11894_s26 + $0xe50] sm:$0xff] %v1295_v10  ;;  %v1301_v13 = vld [vmem:[%s11889_s20 + $0x1ca8] sm:$0xff]  ;;  %1298 = vst [vmem:[%s11894_s26 + $0xe58] sm:$0xff] %v1297_v11  ;;  %v1303_v14 = vld [vmem:[%s11889_s20 + $0x1cb0] sm:$0xff] }
 0x109   : > { %1300 = vst [vmem:[%s11894_s26 + $0xe60] sm:$0xff] %v1299_v12  ;;  %1302 = vst [vmem:[%s11894_s26 + $0xe68] sm:$0xff] %v1301_v13  ;;  %v1305_v15 = vld [vmem:[%s11889_s20 + $0x1cb8] sm:$0xff]  ;;  %v1307_v16 = vld [vmem:[%s11889_s20 + $0x1d00] sm:$0xff] }
 0x10a   : > { %1304 = vst [vmem:[%s11894_s26 + $0xe70] sm:$0xff] %v1303_v14  ;;  %1306 = vst [vmem:[%s11894_s26 + $0xe78] sm:$0xff] %v1305_v15  ;;  %v1309_v17 = vld [vmem:[%s11889_s20 + $0x1d08] sm:$0xff]  ;;  %v1311_v18 = vld [vmem:[%s11889_s20 + $0x1d10] sm:$0xff] }
 0x10b   : > { %1308 = vst [vmem:[%s11894_s26 + $0xe80] sm:$0xff] %v1307_v16  ;;  %v1313_v19 = vld [vmem:[%s11889_s20 + $0x1d18] sm:$0xff]  ;;  %1310 = vst [vmem:[%s11894_s26 + $0xe88] sm:$0xff] %v1309_v17  ;;  %v1315_v20 = vld [vmem:[%s11889_s20 + $0x1d20] sm:$0xff] }
 0x10c   : > { %1312 = vst [vmem:[%s11894_s26 + $0xe90] sm:$0xff] %v1311_v18  ;;  %1314 = vst [vmem:[%s11894_s26 + $0xe98] sm:$0xff] %v1313_v19  ;;  %v1317_v21 = vld [vmem:[%s11889_s20 + $0x1d28] sm:$0xff]  ;;  %v1319_v22 = vld [vmem:[%s11889_s20 + $0x1d30] sm:$0xff] }
 0x10d   : > { %1316 = vst [vmem:[%s11894_s26 + $0xea0] sm:$0xff] %v1315_v20  ;;  %1318 = vst [vmem:[%s11894_s26 + $0xea8] sm:$0xff] %v1317_v21  ;;  %v1321_v23 = vld [vmem:[%s11889_s20 + $0x1d38] sm:$0xff]  ;;  %v1323_v24 = vld [vmem:[%s11889_s20 + $0x1d80] sm:$0xff] }
 0x10e   : > { %1320 = vst [vmem:[%s11894_s26 + $0xeb0] sm:$0xff] %v1319_v22  ;;  %v1325_v25 = vld [vmem:[%s11889_s20 + $0x1d88] sm:$0xff]  ;;  %1322 = vst [vmem:[%s11894_s26 + $0xeb8] sm:$0xff] %v1321_v23  ;;  %v1327_v26 = vld [vmem:[%s11889_s20 + $0x1d90] sm:$0xff] }
 0x10f   : > { %1324 = vst [vmem:[%s11894_s26 + $0xec0] sm:$0xff] %v1323_v24  ;;  %1326 = vst [vmem:[%s11894_s26 + $0xec8] sm:$0xff] %v1325_v25  ;;  %v1329_v27 = vld [vmem:[%s11889_s20 + $0x1d98] sm:$0xff]  ;;  %v1331_v28 = vld [vmem:[%s11889_s20 + $0x1da0] sm:$0xff] }
 0x110   : > { %1328 = vst [vmem:[%s11894_s26 + $0xed0] sm:$0xff] %v1327_v26  ;;  %1330 = vst [vmem:[%s11894_s26 + $0xed8] sm:$0xff] %v1329_v27  ;;  %v1333_v29 = vld [vmem:[%s11889_s20 + $0x1da8] sm:$0xff]  ;;  %v1335_v30 = vld [vmem:[%s11889_s20 + $0x1db0] sm:$0xff] }
 0x111   : > { %1332 = vst [vmem:[%s11894_s26 + $0xee0] sm:$0xff] %v1331_v28  ;;  %v1337_v31 = vld [vmem:[%s11889_s20 + $0x1db8] sm:$0xff]  ;;  %1334 = vst [vmem:[%s11894_s26 + $0xee8] sm:$0xff] %v1333_v29  ;;  %v1339_v32 = vld [vmem:[%s11889_s20 + $0x1e00] sm:$0xff] }
 0x112   : > { %1336 = vst [vmem:[%s11894_s26 + $0xef0] sm:$0xff] %v1335_v30  ;;  %1338 = vst [vmem:[%s11894_s26 + $0xef8] sm:$0xff] %v1337_v31  ;;  %v1341_v33 = vld [vmem:[%s11889_s20 + $0x1e08] sm:$0xff]  ;;  %v1343_v34 = vld [vmem:[%s11889_s20 + $0x1e10] sm:$0xff] }
 0x113   : > { %1340 = vst [vmem:[%s11894_s26 + $0xf00] sm:$0xff] %v1339_v32  ;;  %1342 = vst [vmem:[%s11894_s26 + $0xf08] sm:$0xff] %v1341_v33  ;;  %v1345_v35 = vld [vmem:[%s11889_s20 + $0x1e18] sm:$0xff]  ;;  %v1347_v36 = vld [vmem:[%s11889_s20 + $0x1e20] sm:$0xff] }
 0x114   : > { %1344 = vst [vmem:[%s11894_s26 + $0xf10] sm:$0xff] %v1343_v34  ;;  %v1349_v37 = vld [vmem:[%s11889_s20 + $0x1e28] sm:$0xff]  ;;  %1346 = vst [vmem:[%s11894_s26 + $0xf18] sm:$0xff] %v1345_v35  ;;  %v1351_v38 = vld [vmem:[%s11889_s20 + $0x1e30] sm:$0xff] }
 0x115   : > { %1348 = vst [vmem:[%s11894_s26 + $0xf20] sm:$0xff] %v1347_v36  ;;  %1350 = vst [vmem:[%s11894_s26 + $0xf28] sm:$0xff] %v1349_v37  ;;  %v1353_v39 = vld [vmem:[%s11889_s20 + $0x1e38] sm:$0xff]  ;;  %v1355_v40 = vld [vmem:[%s11889_s20 + $0x1e80] sm:$0xff] }
 0x116   : > { %1352 = vst [vmem:[%s11894_s26 + $0xf30] sm:$0xff] %v1351_v38  ;;  %1354 = vst [vmem:[%s11894_s26 + $0xf38] sm:$0xff] %v1353_v39  ;;  %v1357_v41 = vld [vmem:[%s11889_s20 + $0x1e88] sm:$0xff]  ;;  %v1359_v42 = vld [vmem:[%s11889_s20 + $0x1e90] sm:$0xff] }
 0x117   : > { %1356 = vst [vmem:[%s11894_s26 + $0xf40] sm:$0xff] %v1355_v40  ;;  %v1361_v43 = vld [vmem:[%s11889_s20 + $0x1e98] sm:$0xff]  ;;  %1358 = vst [vmem:[%s11894_s26 + $0xf48] sm:$0xff] %v1357_v41  ;;  %v1363_v44 = vld [vmem:[%s11889_s20 + $0x1ea0] sm:$0xff] }
 0x118   : > { %1360 = vst [vmem:[%s11894_s26 + $0xf50] sm:$0xff] %v1359_v42  ;;  %1362 = vst [vmem:[%s11894_s26 + $0xf58] sm:$0xff] %v1361_v43  ;;  %v1365_v45 = vld [vmem:[%s11889_s20 + $0x1ea8] sm:$0xff]  ;;  %v1367_v46 = vld [vmem:[%s11889_s20 + $0x1eb0] sm:$0xff] }
 0x119   : > { %1364 = vst [vmem:[%s11894_s26 + $0xf60] sm:$0xff] %v1363_v44  ;;  %1366 = vst [vmem:[%s11894_s26 + $0xf68] sm:$0xff] %v1365_v45  ;;  %v1369_v47 = vld [vmem:[%s11889_s20 + $0x1eb8] sm:$0xff]  ;;  %v1371_v48 = vld [vmem:[%s11889_s20 + $0x1f00] sm:$0xff] }
 0x11a   : > { %1368 = vst [vmem:[%s11894_s26 + $0xf70] sm:$0xff] %v1367_v46  ;;  %v1373_v49 = vld [vmem:[%s11889_s20 + $0x1f08] sm:$0xff]  ;;  %1370 = vst [vmem:[%s11894_s26 + $0xf78] sm:$0xff] %v1369_v47  ;;  %v1375_v50 = vld [vmem:[%s11889_s20 + $0x1f10] sm:$0xff] }
 0x11b   : > { %1372 = vst [vmem:[%s11894_s26 + $0xf80] sm:$0xff] %v1371_v48  ;;  %1374 = vst [vmem:[%s11894_s26 + $0xf88] sm:$0xff] %v1373_v49  ;;  %v1377_v51 = vld [vmem:[%s11889_s20 + $0x1f18] sm:$0xff]  ;;  %v1379_v52 = vld [vmem:[%s11889_s20 + $0x1f20] sm:$0xff] }
 0x11c   : > { %1376 = vst [vmem:[%s11894_s26 + $0xf90] sm:$0xff] %v1375_v50  ;;  %1378 = vst [vmem:[%s11894_s26 + $0xf98] sm:$0xff] %v1377_v51  ;;  %v1381_v53 = vld [vmem:[%s11889_s20 + $0x1f28] sm:$0xff]  ;;  %v1383_v54 = vld [vmem:[%s11889_s20 + $0x1f30] sm:$0xff] }
 0x11d   : > { %1380 = vst [vmem:[%s11894_s26 + $0xfa0] sm:$0xff] %v1379_v52  ;;  %v1385_v55 = vld [vmem:[%s11889_s20 + $0x1f38] sm:$0xff]  ;;  %1382 = vst [vmem:[%s11894_s26 + $0xfa8] sm:$0xff] %v1381_v53  ;;  %v1387_v56 = vld [vmem:[%s11889_s20 + $0x1f80] sm:$0xff] }
 0x11e   : > { %1384 = vst [vmem:[%s11894_s26 + $0xfb0] sm:$0xff] %v1383_v54  ;;  %1386 = vst [vmem:[%s11894_s26 + $0xfb8] sm:$0xff] %v1385_v55  ;;  %v1389_v57 = vld [vmem:[%s11889_s20 + $0x1f88] sm:$0xff]  ;;  %v1391_v58 = vld [vmem:[%s11889_s20 + $0x1f90] sm:$0xff] }
 0x11f   : > { %1388 = vst [vmem:[%s11894_s26 + $0xfc0] sm:$0xff] %v1387_v56  ;;  %1390 = vst [vmem:[%s11894_s26 + $0xfc8] sm:$0xff] %v1389_v57  ;;  %v1393_v59 = vld [vmem:[%s11889_s20 + $0x1f98] sm:$0xff]  ;;  %v1395_v60 = vld [vmem:[%s11889_s20 + $0x1fa0] sm:$0xff] }
 0x120   : > { %1392 = vst [vmem:[%s11894_s26 + $0xfd0] sm:$0xff] %v1391_v58  ;;  %v1397_v61 = vld [vmem:[%s11889_s20 + $0x1fa8] sm:$0xff]  ;;  %1394 = vst [vmem:[%s11894_s26 + $0xfd8] sm:$0xff] %v1393_v59  ;;  %v1399_v62 = vld [vmem:[%s11889_s20 + $0x1fb0] sm:$0xff] }
 0x121   : > { %1396 = vst [vmem:[%s11894_s26 + $0xfe0] sm:$0xff] %v1395_v60  ;;  %1398 = vst [vmem:[%s11894_s26 + $0xfe8] sm:$0xff] %v1397_v61  ;;  %v1401_v63 = vld [vmem:[%s11889_s20 + $0x1fb8] sm:$0xff] }
 0x122   : > { %1400 = vst [vmem:[%s11894_s26 + $0xff0] sm:$0xff] %v1399_v62  ;;  %1402 = vst [vmem:[%s11894_s26 + $0xff8] sm:$0xff] %v1401_v63 }
 0x123 PF: > { %p9698_p10 = scmp.ge.s32.totalorder %s11759_s24, 1  ;;  %p1415_p11 = scmp.lt.s32.totalorder %s11759_s24, 3 }
 0x125   : > { %p1416_p12 = pnand %p9698_p10, %p1415_p11 }
 0x126   : > { %s12920_s28 = sand.u32 (!%p1416_p12), 1, %s11751_s22   ;;  %s9701_s29 = sshll.u32 (!%p1416_p12), %s11853_s25, 4 }
 0x127   : > { %1419 = sbr.rel (%p1416_p12) target bundleno = 2580 (0xa14), region = 83  ;;  %s9699_s15 = sshll.u32 (!%p1416_p12), %s12920_s28, 12 }
 0x128   : > { %s9700_s16 = sshll.u32 (!%p1416_p12), %s12920_s28, 5  ;;  %p1469_p13 = scmp.lt.s32.totalorder (!%p1416_p12), %s9701_s29, 31 }
 0x129   : > { %s12930_s20 = scalar_lea.vmem (!%p1416_p12), [#allocation8], %s9699_s15  ;;  %s12932_s26 = scalar_lea.vmem (!%p1416_p12), [#allocation9], %s9700_s16 }
 0x12a   : > { %p9702_p0 = scmp.ne.s32.totalorder (!%p1416_p12), %s11853_s25, 0 }
 0x12e   : > { %s15382_s29 = smov (!%p1469_p13, %s9701_s29), 31  ;;  %1478 = sbr.rel (%p9702_p0) target bundleno = 1827 (0x723), region = 91 }
 0x12f   : > { %s12928_s19 = scalar_lea.vmem %s15361_s10, %s15382_s29  ;;  %v1528_v0 = vld [vmem:[%s15352_s1] sm:$0xff] (!%p9702_p0)  ;;  %s15374_s0 = sld [smem:[#allocation18_spill]] (!%p9702_p0)  ;;  %vm1536_vm0 = vcmask (!%p9702_p0), 64512   ;;  %v11761_v2 = vmov (!%p9702_p0), 0.0   ;;  %vm11762_vm1 = vmmov (!%p9702_p0), 0   ;;  %v11169_v47 = vld [vmem:[%s15354_s3 + $0x28] sm:$0xff] (!%p9702_p0)  }
 0x130   : > { %10733 = vmatprep.subr.mxu0 (!%p9702_p0), %v11761_v2  ;;  %10735 = vmatprep.mubr.msk.f32.mxu0 (!%p9702_p0), %vm11762_vm1, %v11761_v2  ;;  %v11168_v45 = vld [vmem:[%s15354_s3 + $0x20] sm:$0xff] (!%p9702_p0)   ;;  %v11170_v49 = vld [vmem:[%s15354_s3 + $0x30] sm:$0xff] (!%p9702_p0)   ;;  %v11171_v51 = vld [vmem:[%s15354_s3 + $0x38] sm:$0xff] (!%p9702_p0)   ;;  %vm2043_vm2 = vcmask (!%p9702_p0), 523264   ;;  %vm2097_vm3 = vcmask (!%p9702_p0), 521216  }
 0x131   : > { %10734 = vmatpush3.msra.mxu0 (!%p9702_p0), %v1528_v0  ;;  %11026 = vmatprep.subr.mxu1 (!%p9702_p0), %v11761_v2  ;;  %v13256_v55 = vld [vmem:[%s15353_s2] ss:$0 sm:$0xff] (!%p9702_p0) }
 0x132   : > { %11027 = vmatpush3.msra.mxu1 (!%p9702_p0), %v1528_v0  ;;  %10849 = vmatprep.mubr.msk.f32.mxu1 (!%p9702_p0), %vm11762_vm1, %v11761_v2 }
 0x133   : > { %10882 = vmatprep.subr.bf16.mxu1 (!%p9702_p0), %v11761_v2 }
 0x135   : > { %v1479_v1 = vld [vmem:[%s15374_s0] sm:$0xff]  ;;  %v1480_v3 = vld [vmem:[%s15374_s0 + $0x8] sm:$0xff]  ;;  %v1481_v4 = vld [vmem:[%s15374_s0 + $0x10] sm:$0xff] }
 0x136   : > { %10736 = vmatmul.mubr.msk.f32.vlgmr.msra.gmra.mrb[0].mxu0 %vm1536_vm0, %v1479_v1  ;;  %v1517_v5 = vld [vmem:[%s15374_s0 + $0x130] sm:$0xff]  ;;  %v1518_v6 = vld [vmem:[%s15374_s0 + $0x138] sm:$0xff]  ;;  %v1519_v8 = vld [vmem:[%s15374_s0 + $0x140] sm:$0xff] }
 0x137   : > { %10738 = vmatprep.mubr.msk.f32.mxu0 %vm11762_vm1, %v11761_v2  ;;  %10850 = vmatmul.mubr.msk.f32.vlgmr.msra.gmra.mrb[0].mxu1 %vm1536_vm0, %v1517_v5  ;;  %v1482_v7 = vld [vmem:[%s15374_s0 + $0x18] sm:$0xff]  ;;  %v1483_v9 = vld [vmem:[%s15374_s0 + $0x20] sm:$0xff]  ;;  %v1520_v10 = vld [vmem:[%s15374_s0 + $0x148] sm:$0xff] }
 0x138   : > { %10852 = vmatprep.mubr.msk.f32.mxu1 %vm11762_vm1, %v11761_v2  ;;  %v1484_v11 = vld [vmem:[%s15374_s0 + $0x28] sm:$0xff]  ;;  %v1521_v12 = vld [vmem:[%s15374_s0 + $0x150] sm:$0xff]  ;;  %v1522_v14 = vld [vmem:[%s15374_s0 + $0x158] sm:$0xff]  ;;  %10883 = vmatpush3.bf16.msra.mxu1 %v11168_v45 }
 0x139   : > { %v1485_v13 = vld [vmem:[%s15374_s0 + $0x30] sm:$0xff]  ;;  %v1486_v15 = vld [vmem:[%s15374_s0 + $0x38] sm:$0xff]  ;;  %v1523_v16 = vld [vmem:[%s15374_s0 + $0x160] sm:$0xff]  ;;  %10884 = vmatprep.subr.bf16.mxu1 %v11761_v2 }
 0x13a   : > { %10739 = vmatmul.mubr.msk.f32.gmra.mrb[2].mxu0 %vm1536_vm0, %v1480_v3  ;;  %v1487_v17 = vld [vmem:[%s15374_s0 + $0x40] sm:$0xff]  ;;  %v1524_v18 = vld [vmem:[%s15374_s0 + $0x168] sm:$0xff]  ;;  %v1525_v20 = vld [vmem:[%s15374_s0 + $0x170] sm:$0xff] }
 0x13b   : > { %10741 = vmatprep.mubr.msk.f32.mxu0 %vm11762_vm1, %v11761_v2  ;;  %10853 = vmatmul.mubr.msk.f32.gmra.mrb[2].mxu1 %vm1536_vm0, %v1518_v6  ;;  %v1488_v19 = vld [vmem:[%s15374_s0 + $0x48] sm:$0xff]  ;;  %v1489_v21 = vld [vmem:[%s15374_s0 + $0x50] sm:$0xff]  ;;  %v1526_v22 = vld [vmem:[%s15374_s0 + $0x178] sm:$0xff] }
 0x13c   : > { %10855 = vmatprep.mubr.msk.f32.mxu1 %vm11762_vm1, %v11761_v2  ;;  %v1490_v23 = vld [vmem:[%s15374_s0 + $0x58] sm:$0xff]  ;;  %v1527_v24 = vld [vmem:[%s15374_s0 + $0x180] sm:$0xff]  ;;  %v1492_v26 = vld [vmem:[%s15374_s0 + $0x68] sm:$0xff]  ;;  %10885 = vmatpush3.bf16.msra.mxu1 %v11169_v47 }
 0x13d   : > { %v1491_v25 = vld [vmem:[%s15374_s0 + $0x60] sm:$0xff]  ;;  %v1493_v27 = vld [vmem:[%s15374_s0 + $0x70] sm:$0xff]  ;;  %v1494_v28 = vld [vmem:[%s15374_s0 + $0x78] sm:$0xff]  ;;  %10886 = vmatprep.subr.bf16.mxu1 %v11761_v2 }
 0x13e   : > { %10742 = vmatmul.mubr.msk.f32.gmra.mrb[4].mxu0 %vm1536_vm0, %v1481_v4  ;;  %v1495_v29 = vld [vmem:[%s15374_s0 + $0x80] sm:$0xff]  ;;  %v1496_v30 = vld [vmem:[%s15374_s0 + $0x88] sm:$0xff]  ;;  %v1497_v31 = vld [vmem:[%s15374_s0 + $0x90] sm:$0xff] }
 0x13f   : > { %10744 = vmatprep.mubr.msk.f32.mxu0 %vm11762_vm1, %v11761_v2  ;;  %10856 = vmatmul.mubr.msk.f32.gmra.mrb[4].mxu1 %vm1536_vm0, %v1519_v8  ;;  %v1498_v32 = vld [vmem:[%s15374_s0 + $0x98] sm:$0xff]  ;;  %v1499_v33 = vld [vmem:[%s15374_s0 + $0xa0] sm:$0xff]  ;;  %v1500_v34 = vld [vmem:[%s15374_s0 + $0xa8] sm:$0xff] }
 0x140   : > { %10858 = vmatprep.mubr.msk.f32.mxu1 %vm11762_vm1, %v11761_v2  ;;  %v1501_v35 = vld [vmem:[%s15374_s0 + $0xb0] sm:$0xff]  ;;  %v1502_v36 = vld [vmem:[%s15374_s0 + $0xb8] sm:$0xff]  ;;  %v1503_v37 = vld [vmem:[%s15374_s0 + $0xc0] sm:$0xff]  ;;  %10887 = vmatpush3.bf16.msra.mxu1 %v11170_v49 }
 0x141   : > { %v1504_v38 = vld [vmem:[%s15374_s0 + $0xc8] sm:$0xff]  ;;  %v1505_v39 = vld [vmem:[%s15374_s0 + $0xd0] sm:$0xff]  ;;  %v1506_v40 = vld [vmem:[%s15374_s0 + $0xd8] sm:$0xff]  ;;  %10888 = vmatprep.subr.bf16.mxu1 %v11761_v2 }
 0x142   : > { %10745 = vmatmul.mubr.msk.f32.gmra.mrb[6].mxu0 %vm1536_vm0, %v1482_v7  ;;  %v1507_v41 = vld [vmem:[%s15374_s0 + $0xe0] sm:$0xff]  ;;  %v1508_v42 = vld [vmem:[%s15374_s0 + $0xe8] sm:$0xff]  ;;  %v1509_v43 = vld [vmem:[%s15374_s0 + $0xf0] sm:$0xff] }
 0x143   : > { %10747 = vmatprep.mubr.msk.f32.mxu0 %vm11762_vm1, %v11761_v2  ;;  %10859 = vmatmul.mubr.msk.f32.gmra.mrb[6].mxu1 %vm1536_vm0, %v1520_v10  ;;  %v1510_v44 = vld [vmem:[%s15374_s0 + $0xf8] sm:$0xff]  ;;  %v1511_v46 = vld [vmem:[%s15374_s0 + $0x100] sm:$0xff]  ;;  %v1512_v48 = vld [vmem:[%s15374_s0 + $0x108] sm:$0xff] }
 0x144   : > { %10861 = vmatprep.mubr.msk.f32.mxu1 %vm11762_vm1, %v11761_v2  ;;  %v1513_v50 = vld [vmem:[%s15374_s0 + $0x110] sm:$0xff]  ;;  %10889 = vmatpush3.bf16.msra.mxu1 %v11171_v51  ;;  %v1514_v52 = vld [vmem:[%s15374_s0 + $0x118] sm:$0xff]  ;;  %v1515_v53 = vld [vmem:[%s15374_s0 + $0x120] sm:$0xff] }
 0x145   : > { %10918 = vmatprep.subr.bf16.mxu1 %v11761_v2  ;;  %v1516_v54 = vld [vmem:[%s15374_s0 + $0x128] sm:$0xff] }
 0x146   : > { %10748 = vmatmul.mubr.msk.f32.gmra.mrb[8].mxu0 %vm1536_vm0, %v1483_v9 }
 0x147   : > { %10750 = vmatprep.mubr.msk.f32.mxu0 %vm11762_vm1, %v11761_v2  ;;  %10862 = vmatmul.mubr.msk.f32.gmra.mrb[8].mxu1 %vm1536_vm0, %v1521_v12 }
 0x148   : > { %10864 = vmatprep.mubr.msk.f32.mxu1 %vm11762_vm1, %v11761_v2 }
 0x14a   : > { %10751 = vmatmul.mubr.msk.f32.gmra.mrb[10].mxu0 %vm1536_vm0, %v1484_v11 }
 0x14b   : > { %10753 = vmatprep.mubr.msk.f32.mxu0 %vm11762_vm1, %v11761_v2  ;;  %10865 = vmatmul.mubr.msk.f32.gmra.mrb[10].mxu1 %vm1536_vm0, %v1522_v14 }
 0x14c   : > { %10867 = vmatprep.mubr.msk.f32.mxu1 %vm11762_vm1, %v11761_v2 }
 0x14e   : > { %10754 = vmatmul.mubr.msk.f32.gmra.mrb[12].mxu0 %vm1536_vm0, %v1485_v13 }
 0x14f   : > { %10756 = vmatprep.mubr.msk.f32.mxu0 %vm11762_vm1, %v11761_v2  ;;  %10868 = vmatmul.mubr.msk.f32.gmra.mrb[12].mxu1 %vm1536_vm0, %v1523_v16 }
 0x150   : > { %10870 = vmatprep.mubr.msk.f32.mxu1 %vm11762_vm1, %v11761_v2 }
 0x152   : > { %10757 = vmatmul.mubr.msk.f32.gmra.mrb[14].mxu0 %vm1536_vm0, %v1486_v15 }
 0x153   : > { %10759 = vmatprep.mubr.msk.f32.mxu0 %vm11762_vm1, %v11761_v2  ;;  %10871 = vmatmul.mubr.msk.f32.gmra.mrb[14].mxu1 %vm1536_vm0, %v1524_v18 }
 0x154   : > { %10873 = vmatprep.mubr.msk.f32.mxu1 %vm11762_vm1, %v11761_v2 }
 0x156   : > { %10760 = vmatmul.mubr.msk.f32.gmra.mrb[16].mxu0 %vm1536_vm0, %v1487_v17 }
 0x157   : > { %10762 = vmatprep.mubr.msk.f32.mxu0 %vm11762_vm1, %v11761_v2  ;;  %10874 = vmatmul.mubr.msk.f32.gmra.mrb[16].mxu1 %vm1536_vm0, %v1525_v20 }
 0x158   : > { %10876 = vmatprep.mubr.msk.f32.mxu1 %vm11762_vm1, %v11761_v2 }
 0x15a   : > { %10763 = vmatmul.mubr.msk.f32.gmra.mrb[18].mxu0 %vm1536_vm0, %v1488_v19 }
 0x15b   : > { %10765 = vmatprep.mubr.msk.f32.mxu0 %vm11762_vm1, %v11761_v2  ;;  %10877 = vmatmul.mubr.msk.f32.gmra.mrb[18].mxu1 %vm1536_vm0, %v1526_v22 }
 0x15c   : > { %10879 = vmatprep.mubr.msk.f32.mxu1 %vm11762_vm1, %v11761_v2 }
 0x15e   : > { %10766 = vmatmul.mubr.msk.f32.gmra.mrb[20].mxu0 %vm1536_vm0, %v1489_v21 }
 0x15f   : > { %10768 = vmatprep.mubr.msk.f32.mxu0 %vm11762_vm1, %v11761_v2  ;;  %10880 = vmatmul.mubr.msk.f32.gmra.mrb[20].mxu1 %vm1536_vm0, %v1527_v24 }
 0x160   : > { %10890 = vmatprep.mubr.msk.bf16.mxu1 %vm11762_vm1, %v11761_v2 }
 0x162   : > { %10769 = vmatmul.mubr.msk.f32.gmra.mrb[22].mxu0 %vm1536_vm0, %v1490_v23 }
 0x163   : > { %10771 = vmatprep.mubr.msk.f32.mxu0 %vm11762_vm1, %v11761_v2 }
 0x166   : > { %10772 = vmatmul.mubr.msk.f32.gmra.mrb[24].mxu0 %vm1536_vm0, %v1491_v25 }
 0x167   : > { %10774 = vmatprep.mubr.msk.f32.mxu0 %vm11762_vm1, %v11761_v2 }
 0x16a   : > { %10775 = vmatmul.mubr.msk.f32.gmra.mrb[26].mxu0 %vm1536_vm0, %v1492_v26 }
 0x16b   : > { %10777 = vmatprep.mubr.msk.f32.mxu0 %vm11762_vm1, %v11761_v2 }
 0x16e   : > { %10778 = vmatmul.mubr.msk.f32.gmra.mrb[28].mxu0 %vm1536_vm0, %v1493_v27 }
 0x16f   : > { %10780 = vmatprep.mubr.msk.f32.mxu0 %vm11762_vm1, %v11761_v2 }
 0x172   : > { %10781 = vmatmul.mubr.msk.f32.gmra.mrb[30].mxu0 %vm1536_vm0, %v1494_v28 }
 0x173   : > { %10783 = vmatprep.mubr.msk.f32.mxu0 %vm11762_vm1, %v11761_v2 }
 0x176   : > { %10784 = vmatmul.mubr.msk.f32.gmra.mrb[32].mxu0 %vm1536_vm0, %v1495_v29 }
 0x177   : > { %10786 = vmatprep.mubr.msk.f32.mxu0 %vm11762_vm1, %v11761_v2 }
 0x17a   : > { %10787 = vmatmul.mubr.msk.f32.gmra.mrb[34].mxu0 %vm1536_vm0, %v1496_v30 }
 0x17b   : > { %10789 = vmatprep.mubr.msk.f32.mxu0 %vm11762_vm1, %v11761_v2 }
 0x17e   : > { %10790 = vmatmul.mubr.msk.f32.gmra.mrb[36].mxu0 %vm1536_vm0, %v1497_v31 }
 0x17f   : > { %10792 = vmatprep.mubr.msk.f32.mxu0 %vm11762_vm1, %v11761_v2 }
 0x182   : > { %10793 = vmatmul.mubr.msk.f32.gmra.mrb[38].mxu0 %vm1536_vm0, %v1498_v32 }
 0x183   : > { %10795 = vmatprep.mubr.msk.f32.mxu0 %vm11762_vm1, %v11761_v2 }
 0x186   : > { %10796 = vmatmul.mubr.msk.f32.gmra.mrb[40].mxu0 %vm1536_vm0, %v1499_v33 }
 0x187   : > { %10798 = vmatprep.mubr.msk.f32.mxu0 %vm11762_vm1, %v11761_v2 }
 0x18a   : > { %10799 = vmatmul.mubr.msk.f32.gmra.mrb[42].mxu0 %vm1536_vm0, %v1500_v34 }
 0x18b   : > { %10801 = vmatprep.mubr.msk.f32.mxu0 %vm11762_vm1, %v11761_v2 }
 0x18e   : > { %10802 = vmatmul.mubr.msk.f32.gmra.mrb[44].mxu0 %vm1536_vm0, %v1501_v35 }
 0x18f   : > { %10804 = vmatprep.mubr.msk.f32.mxu0 %vm11762_vm1, %v11761_v2 }
 0x192   : > { %10805 = vmatmul.mubr.msk.f32.gmra.mrb[46].mxu0 %vm1536_vm0, %v1502_v36 }
 0x193   : > { %10807 = vmatprep.mubr.msk.f32.mxu0 %vm11762_vm1, %v11761_v2 }
 0x196   : > { %10808 = vmatmul.mubr.msk.f32.gmra.mrb[48].mxu0 %vm1536_vm0, %v1503_v37 }
 0x197   : > { %10810 = vmatprep.mubr.msk.f32.mxu0 %vm11762_vm1, %v11761_v2 }
 0x19a   : > { %10811 = vmatmul.mubr.msk.f32.gmra.mrb[50].mxu0 %vm1536_vm0, %v1504_v38 }
 0x19b   : > { %10813 = vmatprep.mubr.msk.f32.mxu0 %vm11762_vm1, %v11761_v2 }
 0x19e   : > { %10814 = vmatmul.mubr.msk.f32.gmra.mrb[52].mxu0 %vm1536_vm0, %v1505_v39 }
 0x19f   : > { %10816 = vmatprep.mubr.msk.f32.mxu0 %vm11762_vm1, %v11761_v2 }
 0x1a2   : > { %10817 = vmatmul.mubr.msk.f32.gmra.mrb[54].mxu0 %vm1536_vm0, %v1506_v40 }
 0x1a3   : > { %10819 = vmatprep.mubr.msk.f32.mxu0 %vm11762_vm1, %v11761_v2 }
 0x1a6   : > { %10820 = vmatmul.mubr.msk.f32.gmra.mrb[56].mxu0 %vm1536_vm0, %v1507_v41 }
 0x1a7   : > { %10822 = vmatprep.mubr.msk.f32.mxu0 %vm11762_vm1, %v11761_v2 }
 0x1aa   : > { %10823 = vmatmul.mubr.msk.f32.gmra.mrb[58].mxu0 %vm1536_vm0, %v1508_v42 }
 0x1ab   : > { %10825 = vmatprep.mubr.msk.f32.mxu0 %vm11762_vm1, %v11761_v2 }
 0x1ae   : > { %10826 = vmatmul.mubr.msk.f32.gmra.mrb[60].mxu0 %vm1536_vm0, %v1509_v43 }
 0x1af   : > { %10828 = vmatprep.mubr.msk.f32.mxu0 %vm11762_vm1, %v11761_v2 }
 0x1b2   : > { %10829 = vmatmul.mubr.msk.f32.gmra.mrb[62].mxu0 %vm1536_vm0, %v1510_v44 }
 0x1b3   : > { %10831 = vmatprep.mubr.msk.f32.mxu0 %vm11762_vm1, %v11761_v2 }
 0x1b6   : > { %10832 = vmatmul.mubr.msk.f32.gmra.mrb[64].mxu0 %vm1536_vm0, %v1511_v46 }
 0x1b7   : > { %10834 = vmatprep.mubr.msk.f32.mxu0 %vm11762_vm1, %v11761_v2 }
 0x1ba   : > { %10835 = vmatmul.mubr.msk.f32.gmra.mrb[66].mxu0 %vm1536_vm0, %v1512_v48 }
 0x1bb   : > { %10837 = vmatprep.mubr.msk.f32.mxu0 %vm11762_vm1, %v11761_v2 }
 0x1be   : > { %10838 = vmatmul.mubr.msk.f32.gmra.mrb[68].mxu0 %vm1536_vm0, %v1513_v50 }
 0x1bf   : > { %10840 = vmatprep.mubr.msk.f32.mxu0 %vm11762_vm1, %v11761_v2 }
 0x1c2   : > { %10841 = vmatmul.mubr.msk.f32.gmra.mrb[70].mxu0 %vm1536_vm0, %v1514_v52 }
 0x1c3   : > { %10843 = vmatprep.mubr.msk.f32.mxu0 %vm11762_vm1, %v11761_v2 }
 0x1c6   : > { %10844 = vmatmul.mubr.msk.f32.gmra.mrb[72].mxu0 %vm1536_vm0, %v1515_v53 }
 0x1c7   : > { %10846 = vmatprep.mubr.msk.f32.mxu0 %vm11762_vm1, %v11761_v2 }
 0x1ca   : > { %10847 = vmatmul.mubr.msk.f32.gmra.mrb[74].mxu0 %vm1536_vm0, %v1516_v54 }
 0x209   : > { %v1750_v56 = vpop.f32.mrb[0].mxu0 }
 0x20a   : > { %v1751_v57 = vadd.f32 %v13256_v55, %v1750_v56  ;;  %v10737_v58 = vpop.f32.mrb[1].mxu0  ;;  %v1940_v63 = vpop.f32.mrb[0].mxu1 }
 0x20b   : > { %v1941_v1 = vadd.f32 %v13256_v55, %v1940_v63  ;;  %v10851_v3 = vpop.f32.mrb[1].mxu1 }
 0x20c   : > { %v1994_v59 = vmax.f32 %v1751_v57, 0.0 }
 0x20d   : > { %v1755_v60 = vpop.f32.mrb[2].mxu0  ;;  %v2032_v7 = vmax.f32 %v1941_v1, 0.0 }
 0x20e   : > { %2044 = vst.msk [vmem:[#allocation2] sm:$0xff] %vm2043_vm2, %v1994_v59  ;;  %v1756_v61 = vadd.f32 %v13256_v55, %v1755_v60  ;;  %v10740_v62 = vpop.f32.mrb[3].mxu0  ;;  %v1945_v8 = vpop.f32.mrb[2].mxu1 }
 0x20f   : > { %2082 = vst.msk [vmem:[#allocation2 + $0x130] sm:$0xff] %vm2043_vm2, %v2032_v7  ;;  %v1946_v10 = vadd.f32 %v13256_v55, %v1945_v8  ;;  %v10854_v11 = vpop.f32.mrb[3].mxu1 }
 0x210   : > { %v1995_v0 = vmax.f32 %v1756_v61, 0.0 }
 0x211   : > { %v1760_v4 = vpop.f32.mrb[4].mxu0  ;;  %v2033_v15 = vmax.f32 %v1946_v10, 0.0 }
 0x212   : > { %2045 = vst.msk [vmem:[#allocation2 + $0x8] sm:$0xff] %vm2043_vm2, %v1995_v0  ;;  %v1761_v5 = vadd.f32 %v13256_v55, %v1760_v4  ;;  %v10743_v6 = vpop.f32.mrb[5].mxu0  ;;  %v1950_v16 = vpop.f32.mrb[4].mxu1 }
 0x213   : > { %2083 = vst.msk [vmem:[#allocation2 + $0x138] sm:$0xff] %vm2043_vm2, %v2033_v15  ;;  %v1951_v18 = vadd.f32 %v13256_v55, %v1950_v16  ;;  %v10857_v19 = vpop.f32.mrb[5].mxu1 }
 0x214   : > { %v1996_v9 = vmax.f32 %v1761_v5, 0.0 }
 0x215   : > { %v1765_v12 = vpop.f32.mrb[6].mxu0  ;;  %v2034_v25 = vmax.f32 %v1951_v18, 0.0 }
 0x216   : > { %2046 = vst.msk [vmem:[#allocation2 + $0x10] sm:$0xff] %vm2043_vm2, %v1996_v9  ;;  %v1766_v13 = vadd.f32 %v13256_v55, %v1765_v12  ;;  %v10746_v14 = vpop.f32.mrb[7].mxu0  ;;  %v1955_v26 = vpop.f32.mrb[6].mxu1 }
 0x217   : > { %2084 = vst.msk [vmem:[#allocation2 + $0x140] sm:$0xff] %vm2043_vm2, %v2034_v25  ;;  %v1956_v28 = vadd.f32 %v13256_v55, %v1955_v26  ;;  %v10860_v29 = vpop.f32.mrb[7].mxu1 }
 0x218   : > { %v1997_v17 = vmax.f32 %v1766_v13, 0.0 }
 0x219   : > { %v2093_v20 = vld [vmem:[#allocation2] ss:$2 sm:$0xff]  ;;  %v2136_v21 = vld [vmem:[#allocation2 + $0x1] ss:$2 sm:$0xff]  ;;  %v1770_v22 = vpop.f32.mrb[8].mxu0  ;;  %v2035_v33 = vmax.f32 %v1956_v28, 0.0 }
 0x21a   : > { %2096 = vst.msk [vmem:[#allocation3] sm:$0xff] %vm2043_vm2, %v2093_v20  ;;  %2140 = vst.msk [vmem:[#allocation3 + $0x68] sm:$0xff] %vm2043_vm2, %v2136_v21  ;;  %v1771_v23 = vadd.f32 %v13256_v55, %v1770_v22  ;;  %v10749_v24 = vpop.f32.mrb[9].mxu0  ;;  %v1960_v34 = vpop.f32.mrb[8].mxu1 }
 0x21b   : > { %2047 = vst.msk [vmem:[#allocation2 + $0x18] sm:$0xff] %vm2043_vm2, %v1997_v17  ;;  %2085 = vst.msk [vmem:[#allocation2 + $0x148] sm:$0xff] %vm2043_vm2, %v2035_v33  ;;  %v1961_v36 = vadd.f32 %v13256_v55, %v1960_v34  ;;  %v10863_v37 = vpop.f32.mrb[9].mxu1 }
 0x21c   : > { %v1998_v27 = vmax.f32 %v1771_v23, 0.0 }
 0x21d   : > { %v1775_v30 = vpop.f32.mrb[10].mxu0  ;;  %v2036_v41 = vmax.f32 %v1961_v36, 0.0 }
 0x21e   : > { %2048 = vst.msk [vmem:[#allocation2 + $0x20] sm:$0xff] %vm2043_vm2, %v1998_v27  ;;  %v1776_v31 = vadd.f32 %v13256_v55, %v1775_v30  ;;  %v10752_v32 = vpop.f32.mrb[11].mxu0  ;;  %v2210_v44 = vld [vmem:[#allocation2 + $0x134] ss:$2 sm:$0xff]  ;;  %v2253_v45 = vld [vmem:[#allocation2 + $0x135] ss:$2 sm:$0xff] }
 0x21f   : > { %v1965_v46 = vpop.f32.mrb[10].mxu1  ;;  %2213 = vst.msk [vmem:[#allocation3 + $0x116] sm:$0xff] %vm2043_vm2, %v2210_v44  ;;  %2256 = vst.msk [vmem:[#allocation3 + $0x17e] sm:$0xff] %vm2043_vm2, %v2253_v45 }
 0x220   : > { %v1999_v35 = vmax.f32 %v1776_v31, 0.0  ;;  %2086 = vst.msk [vmem:[#allocation2 + $0x150] sm:$0xff] %vm2043_vm2, %v2036_v41  ;;  %v1966_v47 = vadd.f32 %v13256_v55, %v1965_v46  ;;  %v10866_v48 = vpop.f32.mrb[11].mxu1 }
 0x221   : > { %v1780_v40 = vpop.f32.mrb[12].mxu0  ;;  %v2292_v48 = vld [vmem:[#allocation3 + $0x68] sm:$0xff] }
 0x222   : > { %v2095_v38 = vld [vmem:[#allocation2 + $0x10] ss:$2 sm:$0x3f]  ;;  %v2138_v39 = vld [vmem:[#allocation2 + $0x11] ss:$2 sm:$0x3f]  ;;  %v1781_v42 = vadd.f32 %v13256_v55, %v1780_v40 }
 0x223   : > { %2098 = vst.msk [vmem:[#allocation3 + $0x8] sm:$0x3f] %vm2097_vm3, %v2095_v38  ;;  %2141 = vst.msk [vmem:[#allocation3 + $0x70] sm:$0x3f] %vm2097_vm3, %v2138_v39  ;;  %v10755_v43 = vpop.f32.mrb[13].mxu0  ;;  %v2037_v53 = vmax.f32 %v1966_v47, 0.0 }
 0x224   : > { %2049 = vst.msk [vmem:[#allocation2 + $0x28] sm:$0xff] %vm2043_vm2, %v1999_v35  ;;  %v2000_v49 = vmax.f32 %v1781_v42, 0.0  ;;  %v2212_v54 = vld [vmem:[#allocation2 + $0x144] ss:$2 sm:$0x3f]  ;;  %v1970_v58 = vpop.f32.mrb[12].mxu1 }
 0x225   : > { %v1785_v50 = vpop.f32.mrb[14].mxu0  ;;  %v2255_v56 = vld [vmem:[#allocation2 + $0x145] ss:$2 sm:$0x3f]  ;;  %2214 = vst.msk [vmem:[#allocation3 + $0x11e] sm:$0x3f] %vm2097_vm3, %v2212_v54  ;;  %v1971_v62 = vadd.f32 %v13256_v55, %v1970_v58 }
 0x226   : > { %v1786_v51 = vadd.f32 %v13256_v55, %v1785_v50  ;;  %v10758_v52 = vpop.f32.mrb[15].mxu0  ;;  %2050 = vst.msk [vmem:[#allocation2 + $0x30] sm:$0xff] %vm2043_vm2, %v2000_v49  ;;  %2087 = vst.msk [vmem:[#allocation2 + $0x158] sm:$0xff] %vm2043_vm2, %v2037_v53  ;;  %v10869_v63 = vpop.f32.mrb[13].mxu1  ;;  %v11172_v50 = vld [vmem:[%s15354_s3] sm:$0xff]  }
 0x227   : > { %2257 = vst.msk [vmem:[#allocation3 + $0x186] sm:$0x3f] %vm2097_vm3, %v2255_v56  ;;  %v2038_v3 = vmax.f32 %v1971_v62, 0.0  ;;  %v1975_v4 = vpop.f32.mrb[14].mxu1 }
 0x228   : > { %v2001_v57 = vmax.f32 %v1786_v51, 0.0  ;;  %v1976_v6 = vadd.f32 %v13256_v55, %v1975_v4  ;;  %v10872_v7 = vpop.f32.mrb[15].mxu1 }
 0x229   : > { %v1790_v61 = vpop.f32.mrb[16].mxu0  ;;  %2088 = vst.msk [vmem:[#allocation2 + $0x160] sm:$0xff] %vm2043_vm2, %v2038_v3  ;;  %v11174_v7 = vld [vmem:[%s15354_s3 + $0x10] sm:$0xff]  }
 0x22a   : > { %2051 = vst.msk [vmem:[#allocation2 + $0x38] sm:$0xff] %vm2043_vm2, %v2001_v57  ;;  %v1791_v0 = vadd.f32 %v13256_v55, %v1790_v61  ;;  %v10761_v1 = vpop.f32.mrb[17].mxu0  ;;  %v2039_v15 = vmax.f32 %v1976_v6, 0.0  ;;  %v1980_v17 = vpop.f32.mrb[16].mxu1  ;;  %v11173_v61 = vld [vmem:[%s15354_s3 + $0x8] sm:$0xff]  }
 0x22b   : > { %v2179_v59 = vld [vmem:[#allocation2 + $0x1c] ss:$2 sm:$0xff]  ;;  %v2222_v60 = vld [vmem:[#allocation2 + $0x1d] ss:$2 sm:$0xff]  ;;  %v1981_v19 = vadd.f32 %v13256_v55, %v1980_v17  ;;  %v10875_v20 = vpop.f32.mrb[17].mxu1 }
 0x22c   : > { %2183 = vst.msk [vmem:[#allocation3 + $0xd0] sm:$0xff] %vm2043_vm2, %v2179_v59  ;;  %2226 = vst.msk [vmem:[#allocation3 + $0x138] sm:$0xff] %vm2043_vm2, %v2222_v60  ;;  %v2002_v5 = vmax.f32 %v1791_v0, 0.0 }
 0x22d   : > { %v1795_v8 = vpop.f32.mrb[18].mxu0  ;;  %v2181_v9 = vld [vmem:[#allocation2 + $0x2c] ss:$2 sm:$0x3f]  ;;  %v2173_v14 = vld [vmem:[#allocation2 + $0x151] ss:$2 sm:$0xff] }
 0x22e   : > { %v2224_v10 = vld [vmem:[#allocation2 + $0x2d] ss:$2 sm:$0x3f]  ;;  %2052 = vst.msk [vmem:[#allocation2 + $0x40] sm:$0xff] %vm2043_vm2, %v2002_v5  ;;  %v1796_v11 = vadd.f32 %v13256_v55, %v1795_v8  ;;  %v10764_v12 = vpop.f32.mrb[19].mxu0  ;;  %2176 = vst.msk [vmem:[#allocation3 + $0xbc] sm:$0xff] %vm2043_vm2, %v2173_v14 }
 0x22f   : > { %2184 = vst.msk [vmem:[#allocation3 + $0xd8] sm:$0x3f] %vm2097_vm3, %v2181_v9  ;;  %2227 = vst.msk [vmem:[#allocation3 + $0x140] sm:$0x3f] %vm2097_vm3, %v2224_v10  ;;  %v2130_v13 = vld [vmem:[#allocation2 + $0x150] ss:$2 sm:$0xff] }
 0x230   : > { %v2003_v16 = vmax.f32 %v1796_v11, 0.0  ;;  %2133 = vst.msk [vmem:[#allocation3 + $0x54] sm:$0xff] %vm2043_vm2, %v2130_v13  ;;  %2089 = vst.msk [vmem:[#allocation2 + $0x168] sm:$0xff] %vm2043_vm2, %v2039_v15  ;;  %v2040_v23 = vmax.f32 %v1981_v19, 0.0  ;;  %v1985_v24 = vpop.f32.mrb[18].mxu1  ;;  %v11175_v10 = vld [vmem:[%s15354_s3 + $0x18] sm:$0xff]  }
 0x231   : > { %v1800_v18 = vpop.f32.mrb[20].mxu0  ;;  %v1986_v26 = vadd.f32 %v13256_v55, %v1985_v24  ;;  %v10878_v27 = vpop.f32.mrb[19].mxu1 }
 0x232   : > { %2053 = vst.msk [vmem:[#allocation2 + $0x48] sm:$0xff] %vm2043_vm2, %v2003_v16  ;;  %v1801_v21 = vadd.f32 %v13256_v55, %v1800_v18  ;;  %v10767_v22 = vpop.f32.mrb[21].mxu0  ;;  %2090 = vst.msk [vmem:[#allocation2 + $0x170] sm:$0xff] %vm2043_vm2, %v2040_v23  ;;  %v1990_v34 = vpop.f32.mrb[20].mxu1 }
 0x233   : > { %v2041_v33 = vmax.f32 %v1986_v26, 0.0  ;;  %v1991_v37 = vadd.f32 %v13256_v55, %v1990_v34  ;;  %v10881_v38 = vpop.f32.mrb[21].mxu1 }
 0x234   : > { %v2004_v25 = vmax.f32 %v1801_v21, 0.0 }
 0x235   : > { %v2100_v28 = vld [vmem:[#allocation2 + $0x38] ss:$2 sm:$0xff]  ;;  %v2143_v29 = vld [vmem:[#allocation2 + $0x39] ss:$2 sm:$0xff]  ;;  %v1805_v30 = vpop.f32.mrb[22].mxu0  ;;  %2091 = vst.msk [vmem:[#allocation2 + $0x178] sm:$0xff] %vm2043_vm2, %v2041_v33 }
 0x236   : > { %2103 = vst.msk [vmem:[#allocation3 + $0xe] sm:$0xff] %vm2043_vm2, %v2100_v28  ;;  %2146 = vst.msk [vmem:[#allocation3 + $0x76] sm:$0xff] %vm2043_vm2, %v2143_v29  ;;  %v1806_v31 = vadd.f32 %v13256_v55, %v1805_v30  ;;  %v10770_v32 = vpop.f32.mrb[23].mxu0  ;;  %v2042_v43 = vmax.f32 %v1991_v37, 0.0 }
 0x237   : > { %2054 = vst.msk [vmem:[#allocation2 + $0x50] sm:$0xff] %vm2043_vm2, %v2004_v25  ;;  %v2132_v36 = vld [vmem:[#allocation2 + $0x160] ss:$2 sm:$0x3f] }
 0x238   : > { %v2005_v35 = vmax.f32 %v1806_v31, 0.0  ;;  %2134 = vst.msk [vmem:[#allocation3 + $0x5c] sm:$0x3f] %vm2097_vm3, %v2132_v36  ;;  %v2175_v40 = vld [vmem:[#allocation2 + $0x161] ss:$2 sm:$0x3f] }
 0x239   : > { %v1810_v39 = vpop.f32.mrb[24].mxu0  ;;  %2177 = vst.msk [vmem:[#allocation3 + $0xc4] sm:$0x3f] %vm2097_vm3, %v2175_v40 }
 0x23a   : > { %2055 = vst.msk [vmem:[#allocation2 + $0x58] sm:$0xff] %vm2043_vm2, %v2005_v35  ;;  %v1811_v41 = vadd.f32 %v13256_v55, %v1810_v39  ;;  %v10773_v42 = vpop.f32.mrb[25].mxu0  ;;  %2092 = vst.msk [vmem:[#allocation2 + $0x180] sm:$0xff] %vm2043_vm2, %v2042_v43 }
 0x23c   : > { %v2006_v44 = vmax.f32 %v1811_v41, 0.0  ;;  %v2216_v54 = vld [vmem:[#allocation2 + $0x16c] ss:$2 sm:$0xff]  ;;  %v2259_v56 = vld [vmem:[#allocation2 + $0x16d] ss:$2 sm:$0xff] }
 0x23d   : > { %v1815_v47 = vpop.f32.mrb[26].mxu0  ;;  %v2293_v49 = vld [vmem:[#allocation3 + $0x70] sm:$0xff]  ;;  %2219 = vst.msk [vmem:[#allocation3 + $0x124] sm:$0xff] %vm2043_vm2, %v2216_v54  ;;  %2262 = vst.msk [vmem:[#allocation3 + $0x18c] sm:$0xff] %vm2043_vm2, %v2259_v56 }
 0x23e   : > { %v2102_v45 = vld [vmem:[#allocation2 + $0x48] ss:$2 sm:$0x3f]  ;;  %v2145_v46 = vld [vmem:[#allocation2 + $0x49] ss:$2 sm:$0x3f]  ;;  %v1816_v51 = vadd.f32 %v13256_v55, %v1815_v47  ;;  %v2305_v53 = vpack.c.bf16 %v2293_v49, %v2292_v48 }
 0x23f   : > { %2104 = vst.msk [vmem:[#allocation3 + $0x16] sm:$0x3f] %vm2097_vm3, %v2102_v45  ;;  %2147 = vst.msk [vmem:[#allocation3 + $0x7e] sm:$0x3f] %vm2097_vm3, %v2145_v46  ;;  %v10776_v52 = vpop.f32.mrb[27].mxu0 }
 0x240   : > { %2056 = vst.msk [vmem:[#allocation2 + $0x60] sm:$0xff] %vm2043_vm2, %v2006_v44  ;;  %v2007_v57 = vmax.f32 %v1816_v51, 0.0  ;;  %10891 = vmatmul.mubr.msk.bf16.vlgmr.msra.gmra.mrb[24].mxu1 %vm2043_vm2, %v2305_v53 }
 0x241   : > { %v1820_v58 = vpop.f32.mrb[28].mxu0  ;;  %10894 = vmatprep.mubr.msk.bf16.mxu1 %vm11762_vm1, %v11761_v2  ;;  %10919 = vmatpush3.bf16.msra.mxu1 %v11172_v50  ;;  %v2218_v62 = vld [vmem:[#allocation2 + $0x17c] ss:$2 sm:$0x3f] }
 0x242   : > { %v1821_v59 = vadd.f32 %v13256_v55, %v1820_v58  ;;  %v10779_v60 = vpop.f32.mrb[29].mxu0  ;;  %2057 = vst.msk [vmem:[#allocation2 + $0x68] sm:$0xff] %vm2043_vm2, %v2007_v57  ;;  %v2261_v63 = vld [vmem:[#allocation2 + $0x17d] ss:$2 sm:$0x3f]  ;;  %10920 = vmatprep.subr.bf16.mxu1 %v11761_v2 }
 0x243   : > { %2220 = vst.msk [vmem:[#allocation3 + $0x12c] sm:$0x3f] %vm2097_vm3, %v2218_v62  ;;  %2263 = vst.msk [vmem:[#allocation3 + $0x194] sm:$0x3f] %vm2097_vm3, %v2261_v63 }
 0x244   : > { %v2008_v0 = vmax.f32 %v1821_v59, 0.0 }
 0x245   : > { %v1825_v4 = vpop.f32.mrb[30].mxu0  ;;  %10921 = vmatpush3.bf16.msra.mxu1 %v11173_v61 }
 0x246   : > { %2058 = vst.msk [vmem:[#allocation2 + $0x70] sm:$0xff] %vm2043_vm2, %v2008_v0  ;;  %v1826_v5 = vadd.f32 %v13256_v55, %v1825_v4  ;;  %v10782_v6 = vpop.f32.mrb[31].mxu0  ;;  %10922 = vmatprep.subr.bf16.mxu1 %v11761_v2  ;;  %v2294_v33 = vld [vmem:[#allocation3 + $0x78] sm:$0xff] }
 0x247   : > { %v2186_v1 = vld [vmem:[#allocation2 + $0x54] ss:$2 sm:$0xff]  ;;  %v2229_v3 = vld [vmem:[#allocation2 + $0x55] ss:$2 sm:$0xff] }
 0x248   : > { %2189 = vst.msk [vmem:[#allocation3 + $0xde] sm:$0xff] %vm2043_vm2, %v2186_v1  ;;  %2232 = vst.msk [vmem:[#allocation3 + $0x146] sm:$0xff] %vm2043_vm2, %v2229_v3  ;;  %v2009_v8 = vmax.f32 %v1826_v5, 0.0 }
 0x249   : > { %v1830_v9 = vpop.f32.mrb[32].mxu0  ;;  %v2188_v11 = vld [vmem:[#allocation2 + $0x64] ss:$2 sm:$0x3f]  ;;  %10923 = vmatpush3.bf16.msra.mxu1 %v11174_v7 }
 0x24a   : > { %v2231_v12 = vld [vmem:[#allocation2 + $0x65] ss:$2 sm:$0x3f]  ;;  %2059 = vst.msk [vmem:[#allocation2 + $0x78] sm:$0xff] %vm2043_vm2, %v2009_v8  ;;  %v1831_v13 = vadd.f32 %v13256_v55, %v1830_v9  ;;  %v10785_v14 = vpop.f32.mrb[33].mxu0  ;;  %10924 = vmatprep.subr.bf16.mxu1 %v11761_v2 }
 0x24b   : > { %2190 = vst.msk [vmem:[#allocation3 + $0xe6] sm:$0x3f] %vm2097_vm3, %v2188_v11  ;;  %2233 = vst.msk [vmem:[#allocation3 + $0x14e] sm:$0x3f] %vm2097_vm3, %v2231_v12 }
 0x24c   : > { %v2010_v15 = vmax.f32 %v1831_v13, 0.0 }
 0x24d   : > { %v1835_v16 = vpop.f32.mrb[34].mxu0  ;;  %10925 = vmatpush3.bf16.msra.mxu1 %v11175_v10 }
 0x24e   : > { %2060 = vst.msk [vmem:[#allocation2 + $0x80] sm:$0xff] %vm2043_vm2, %v2010_v15  ;;  %v1836_v17 = vadd.f32 %v13256_v55, %v1835_v16  ;;  %v10788_v18 = vpop.f32.mrb[35].mxu0  ;;  %10954 = vmatprep.subr.bf16.mxu1 %v11761_v2 }
 0x250   : > { %v2011_v19 = vmax.f32 %v1836_v17, 0.0 }
 0x251   : > { %v2106_v20 = vld [vmem:[#allocation2 + $0x70] ss:$2 sm:$0xff]  ;;  %v2149_v21 = vld [vmem:[#allocation2 + $0x71] ss:$2 sm:$0xff]  ;;  %v1840_v22 = vpop.f32.mrb[36].mxu0 }
 0x252   : > { %2109 = vst.msk [vmem:[#allocation3 + $0x1c] sm:$0xff] %vm2043_vm2, %v2106_v20  ;;  %2152 = vst.msk [vmem:[#allocation3 + $0x84] sm:$0xff] %vm2043_vm2, %v2149_v21  ;;  %v1841_v23 = vadd.f32 %v13256_v55, %v1840_v22  ;;  %v10791_v24 = vpop.f32.mrb[37].mxu0 }
 0x253   : > { %2061 = vst.msk [vmem:[#allocation2 + $0x88] sm:$0xff] %vm2043_vm2, %v2011_v19 }
 0x254   : > { %v2012_v25 = vmax.f32 %v1841_v23, 0.0 }
 0x255   : > { %v1845_v26 = vpop.f32.mrb[38].mxu0 }
 0x256   : > { %2062 = vst.msk [vmem:[#allocation2 + $0x90] sm:$0xff] %vm2043_vm2, %v2012_v25  ;;  %v1846_v27 = vadd.f32 %v13256_v55, %v1845_v26  ;;  %v10794_v28 = vpop.f32.mrb[39].mxu0 }
 0x258   : > { %v2013_v29 = vmax.f32 %v1846_v27, 0.0 }
 0x259   : > { %v1850_v32 = vpop.f32.mrb[40].mxu0  ;;  %v2295_v34 = vld [vmem:[#allocation3 + $0x80] sm:$0xff] }
 0x25a   : > { %v2108_v30 = vld [vmem:[#allocation2 + $0x80] ss:$2 sm:$0x3f]  ;;  %v2151_v31 = vld [vmem:[#allocation2 + $0x81] ss:$2 sm:$0x3f]  ;;  %v1851_v35 = vadd.f32 %v13256_v55, %v1850_v32  ;;  %v2306_v37 = vpack.c.bf16 %v2295_v34, %v2294_v33 }
 0x25b   : > { %2110 = vst.msk [vmem:[#allocation3 + $0x24] sm:$0x3f] %vm2097_vm3, %v2108_v30  ;;  %2153 = vst.msk [vmem:[#allocation3 + $0x8c] sm:$0x3f] %vm2097_vm3, %v2151_v31  ;;  %v10797_v36 = vpop.f32.mrb[41].mxu0 }
 0x25c   : > { %2063 = vst.msk [vmem:[#allocation2 + $0x98] sm:$0xff] %vm2043_vm2, %v2013_v29  ;;  %v2014_v38 = vmax.f32 %v1851_v35, 0.0  ;;  %10895 = vmatmul.mubr.msk.bf16.gmra.mrb[28].mxu1 %vm2043_vm2, %v2306_v37 }
 0x25d   : > { %v1855_v39 = vpop.f32.mrb[42].mxu0  ;;  %10898 = vmatprep.mubr.msk.bf16.mxu1 %vm11762_vm1, %v11761_v2 }
 0x25e   : > { %v1856_v40 = vadd.f32 %v13256_v55, %v1855_v39  ;;  %v10800_v41 = vpop.f32.mrb[43].mxu0  ;;  %2064 = vst.msk [vmem:[#allocation2 + $0xa0] sm:$0xff] %vm2043_vm2, %v2014_v38 }
 0x260   : > { %v2015_v42 = vmax.f32 %v1856_v40, 0.0 }
 0x261   : > { %v1860_v45 = vpop.f32.mrb[44].mxu0 }
 0x262   : > { %2065 = vst.msk [vmem:[#allocation2 + $0xa8] sm:$0xff] %vm2043_vm2, %v2015_v42  ;;  %v1861_v46 = vadd.f32 %v13256_v55, %v1860_v45  ;;  %v10803_v47 = vpop.f32.mrb[45].mxu0  ;;  %v2296_v10 = vld [vmem:[#allocation3 + $0x88] sm:$0xff] }
 0x263   : > { %v2192_v43 = vld [vmem:[#allocation2 + $0x8c] ss:$2 sm:$0xff]  ;;  %v2235_v44 = vld [vmem:[#allocation2 + $0x8d] ss:$2 sm:$0xff] }
 0x264   : > { %2195 = vst.msk [vmem:[#allocation3 + $0xec] sm:$0xff] %vm2043_vm2, %v2192_v43  ;;  %2238 = vst.msk [vmem:[#allocation3 + $0x154] sm:$0xff] %vm2043_vm2, %v2235_v44  ;;  %v2016_v48 = vmax.f32 %v1861_v46, 0.0 }
 0x265   : > { %v1865_v49 = vpop.f32.mrb[46].mxu0  ;;  %v2194_v50 = vld [vmem:[#allocation2 + $0x9c] ss:$2 sm:$0x3f] }
 0x266   : > { %v2237_v51 = vld [vmem:[#allocation2 + $0x9d] ss:$2 sm:$0x3f]  ;;  %2066 = vst.msk [vmem:[#allocation2 + $0xb0] sm:$0xff] %vm2043_vm2, %v2016_v48  ;;  %v1866_v52 = vadd.f32 %v13256_v55, %v1865_v49  ;;  %v10806_v53 = vpop.f32.mrb[47].mxu0 }
 0x267   : > { %2196 = vst.msk [vmem:[#allocation3 + $0xf4] sm:$0x3f] %vm2097_vm3, %v2194_v50  ;;  %2239 = vst.msk [vmem:[#allocation3 + $0x15c] sm:$0x3f] %vm2097_vm3, %v2237_v51 }
 0x268   : > { %v2017_v54 = vmax.f32 %v1866_v52, 0.0 }
 0x269   : > { %v1870_v56 = vpop.f32.mrb[48].mxu0 }
 0x26a   : > { %2067 = vst.msk [vmem:[#allocation2 + $0xb8] sm:$0xff] %vm2043_vm2, %v2017_v54  ;;  %v1871_v57 = vadd.f32 %v13256_v55, %v1870_v56  ;;  %v10809_v58 = vpop.f32.mrb[49].mxu0 }
 0x26c   : > { %v2018_v59 = vmax.f32 %v1871_v57, 0.0 }
 0x26d   : > { %v2112_v60 = vld [vmem:[#allocation2 + $0xa8] ss:$2 sm:$0xff]  ;;  %v2155_v61 = vld [vmem:[#allocation2 + $0xa9] ss:$2 sm:$0xff]  ;;  %v1875_v62 = vpop.f32.mrb[50].mxu0 }
 0x26e   : > { %2115 = vst.msk [vmem:[#allocation3 + $0x2a] sm:$0xff] %vm2043_vm2, %v2112_v60  ;;  %2158 = vst.msk [vmem:[#allocation3 + $0x92] sm:$0xff] %vm2043_vm2, %v2155_v61  ;;  %v1876_v63 = vadd.f32 %v13256_v55, %v1875_v62  ;;  %v10812_v0 = vpop.f32.mrb[51].mxu0 }
 0x26f   : > { %2068 = vst.msk [vmem:[#allocation2 + $0xc0] sm:$0xff] %vm2043_vm2, %v2018_v59 }
 0x270   : > { %v2019_v1 = vmax.f32 %v1876_v63, 0.0 }
 0x271   : > { %v1880_v3 = vpop.f32.mrb[52].mxu0 }
 0x272   : > { %2069 = vst.msk [vmem:[#allocation2 + $0xc8] sm:$0xff] %vm2043_vm2, %v2019_v1  ;;  %v1881_v4 = vadd.f32 %v13256_v55, %v1880_v3  ;;  %v10815_v5 = vpop.f32.mrb[53].mxu0 }
 0x274   : > { %v2020_v6 = vmax.f32 %v1881_v4, 0.0 }
 0x275   : > { %v1885_v9 = vpop.f32.mrb[54].mxu0  ;;  %v2297_v11 = vld [vmem:[#allocation3 + $0x90] sm:$0xff] }
 0x276   : > { %v2114_v7 = vld [vmem:[#allocation2 + $0xb8] ss:$2 sm:$0x3f]  ;;  %v2157_v8 = vld [vmem:[#allocation2 + $0xb9] ss:$2 sm:$0x3f]  ;;  %v1886_v12 = vadd.f32 %v13256_v55, %v1885_v9  ;;  %v2307_v14 = vpack.c.bf16 %v2297_v11, %v2296_v10 }
 0x277   : > { %2116 = vst.msk [vmem:[#allocation3 + $0x32] sm:$0x3f] %vm2097_vm3, %v2114_v7  ;;  %2159 = vst.msk [vmem:[#allocation3 + $0x9a] sm:$0x3f] %vm2097_vm3, %v2157_v8  ;;  %v10818_v13 = vpop.f32.mrb[55].mxu0 }
 0x278   : > { %2070 = vst.msk [vmem:[#allocation2 + $0xd0] sm:$0xff] %vm2043_vm2, %v2020_v6  ;;  %v2021_v15 = vmax.f32 %v1886_v12, 0.0  ;;  %10899 = vmatmul.mubr.msk.bf16.gmra.mrb[32].mxu1 %vm2043_vm2, %v2307_v14 }
 0x279   : > { %v1890_v16 = vpop.f32.mrb[56].mxu0  ;;  %10902 = vmatprep.mubr.msk.bf16.mxu1 %vm11762_vm1, %v11761_v2 }
 0x27a   : > { %v1891_v17 = vadd.f32 %v13256_v55, %v1890_v16  ;;  %v10821_v18 = vpop.f32.mrb[57].mxu0  ;;  %2071 = vst.msk [vmem:[#allocation2 + $0xd8] sm:$0xff] %vm2043_vm2, %v2021_v15  ;;  %v2303_v16 = vld [vmem:[#allocation3 + $0xc0] sm:$0xff] }
 0x27b   : > { %v2304_v18 = vld [vmem:[#allocation3 + $0xc8] sm:$0x3] }
 0x27c   : > { %v2022_v19 = vmax.f32 %v1891_v17, 0.0 }
 0x27d   : > { %v1895_v22 = vpop.f32.mrb[58].mxu0 }
 0x27e   : > { %2072 = vst.msk [vmem:[#allocation2 + $0xe0] sm:$0xff] %vm2043_vm2, %v2022_v19  ;;  %v1896_v23 = vadd.f32 %v13256_v55, %v1895_v22  ;;  %v10824_v24 = vpop.f32.mrb[59].mxu0  ;;  %v2298_v49 = vld [vmem:[#allocation3 + $0x98] sm:$0xff]  ;;  %v2311_v19 = vpack.c.bf16 %v2304_v18, %v2304_v18  ;;  %v11187_v18 = vld [vmem:[%s15356_s5 + $0x10] ss:$8 sps:$4 sm:$0xff]  }
 0x27f   : > { %v2198_v20 = vld [vmem:[#allocation2 + $0xc4] ss:$2 sm:$0xff]  ;;  %v2241_v21 = vld [vmem:[#allocation2 + $0xc5] ss:$2 sm:$0xff] }
 0x280   : > { %2201 = vst.msk [vmem:[#allocation3 + $0xfa] sm:$0xff] %vm2043_vm2, %v2198_v20  ;;  %2244 = vst.msk [vmem:[#allocation3 + $0x162] sm:$0xff] %vm2043_vm2, %v2241_v21  ;;  %v2023_v25 = vmax.f32 %v1896_v23, 0.0  ;;  %v2265_v20 = vld [vmem:[#allocation3 + $0x8] sm:$0xff]  ;;  %v2264_v21 = vld [vmem:[#allocation3] sm:$0xff] }
 0x281   : > { %v1900_v26 = vpop.f32.mrb[60].mxu0  ;;  %v2200_v27 = vld [vmem:[#allocation2 + $0xd4] ss:$2 sm:$0x3f]  ;;  %v11176_v22 = vld [vmem:[%s15354_s3 + $0x40] sm:$0xff]   ;;  %v2277_v23 = vpack.c.bf16 %v2265_v20, %v2264_v21  ;;  %v11177_v24 = vld [vmem:[%s15354_s3 + $0x48] sm:$0xff]  }
 0x282   : > { %v2243_v28 = vld [vmem:[#allocation2 + $0xd5] ss:$2 sm:$0x3f]  ;;  %2073 = vst.msk [vmem:[#allocation2 + $0xe8] sm:$0xff] %vm2043_vm2, %v2023_v25  ;;  %v1901_v29 = vadd.f32 %v13256_v55, %v1900_v26  ;;  %v10827_v30 = vpop.f32.mrb[61].mxu0  ;;  %v2267_v25 = vld [vmem:[#allocation3 + $0x18] sm:$0xff] }
 0x283   : > { %2202 = vst.msk [vmem:[#allocation3 + $0x102] sm:$0x3f] %vm2097_vm3, %v2200_v27  ;;  %2245 = vst.msk [vmem:[#allocation3 + $0x16a] sm:$0x3f] %vm2097_vm3, %v2243_v28  ;;  %v2266_v26 = vld [vmem:[#allocation3 + $0x10] sm:$0xff]  ;;  %v11178_v27 = vld [vmem:[%s15354_s3 + $0x50] sm:$0xff]  }
 0x284   : > { %v2024_v31 = vmax.f32 %v1901_v29, 0.0  ;;  %v2278_v28 = vpack.c.bf16 %v2267_v25, %v2266_v26  ;;  %v11179_v29 = vld [vmem:[%s15354_s3 + $0x58] sm:$0xff]   ;;  %v2269_v30 = vld [vmem:[#allocation3 + $0x28] sm:$0xff]  ;;  %v2764_v26 = vld [vmem:[#allocation3 + $0x158] sm:$0xff] }
 0x285   : > { %v1905_v32 = vpop.f32.mrb[62].mxu0  ;;  %v2763_v20 = vld [vmem:[#allocation3 + $0x150] sm:$0xff]  ;;  %v2762_v21 = vld [vmem:[#allocation3 + $0x148] sm:$0xff] }
 0x286   : > { %2074 = vst.msk [vmem:[#allocation2 + $0xf0] sm:$0xff] %vm2043_vm2, %v2024_v31  ;;  %v1906_v33 = vadd.f32 %v13256_v55, %v1905_v32  ;;  %v10830_v34 = vpop.f32.mrb[63].mxu0  ;;  %v2268_v31 = vld [vmem:[#allocation3 + $0x20] sm:$0xff] }
 0x287   : > { %v2279_v32 = vpack.c.bf16 %v2269_v30, %v2268_v31  ;;  %v2270_v34 = vld [vmem:[#allocation3 + $0x30] sm:$0xff]  ;;  %v2765_v25 = vld [vmem:[#allocation3 + $0x160] sm:$0xff] }
 0x288   : > { %v2025_v35 = vmax.f32 %v1906_v33, 0.0 }
 0x289   : > { %v2118_v36 = vld [vmem:[#allocation2 + $0xe0] ss:$2 sm:$0xff]  ;;  %v2161_v37 = vld [vmem:[#allocation2 + $0xe1] ss:$2 sm:$0xff]  ;;  %v1910_v38 = vpop.f32.mrb[64].mxu0 }
 0x28a   : > { %2121 = vst.msk [vmem:[#allocation3 + $0x38] sm:$0xff] %vm2043_vm2, %v2118_v36  ;;  %2164 = vst.msk [vmem:[#allocation3 + $0xa0] sm:$0xff] %vm2043_vm2, %v2161_v37  ;;  %v1911_v39 = vadd.f32 %v13256_v55, %v1910_v38  ;;  %v10833_v40 = vpop.f32.mrb[65].mxu0 }
 0x28b   : > { %2075 = vst.msk [vmem:[#allocation2 + $0xf8] sm:$0xff] %vm2043_vm2, %v2025_v35  ;;  %v2275_v40 = vld [vmem:[#allocation3 + $0x58] sm:$0xff] }
 0x28c   : > { %v2026_v41 = vmax.f32 %v1911_v39, 0.0 }
 0x28d   : > { %v1915_v42 = vpop.f32.mrb[66].mxu0 }
 0x28e   : > { %2076 = vst.msk [vmem:[#allocation2 + $0x100] sm:$0xff] %vm2043_vm2, %v2026_v41  ;;  %v1916_v43 = vadd.f32 %v13256_v55, %v1915_v42  ;;  %v10836_v44 = vpop.f32.mrb[67].mxu0  ;;  %v2276_v42 = vld [vmem:[#allocation3 + $0x60] sm:$0x3] }
 0x28f   : > { %v2587_v44 = vld [vmem:[#allocation3 + $0xd8] sm:$0xff] }
 0x290   : > { %v2027_v45 = vmax.f32 %v1916_v43, 0.0  ;;  %v2283_v43 = vpack.c.bf16 %v2276_v42, %v2276_v42  ;;  %v2770_v42 = vld [vmem:[#allocation3 + $0x188] sm:$0xff] }
 0x291   : > { %v1920_v48 = vpop.f32.mrb[68].mxu0  ;;  %v2299_v50 = vld [vmem:[#allocation3 + $0xa0] sm:$0xff]  ;;  %v2271_v33 = vld [vmem:[#allocation3 + $0x38] sm:$0xff] }
 0x292   : > { %v2120_v46 = vld [vmem:[#allocation2 + $0xf0] ss:$2 sm:$0x3f]  ;;  %v2163_v47 = vld [vmem:[#allocation2 + $0xf1] ss:$2 sm:$0x3f]  ;;  %v1921_v51 = vadd.f32 %v13256_v55, %v1920_v48  ;;  %v2308_v53 = vpack.c.bf16 %v2299_v50, %v2298_v49  ;;  %v2280_v35 = vpack.c.bf16 %v2271_v33, %v2270_v34 }
 0x293   : > { %2122 = vst.msk [vmem:[#allocation3 + $0x40] sm:$0x3f] %vm2097_vm3, %v2120_v46  ;;  %2165 = vst.msk [vmem:[#allocation3 + $0xa8] sm:$0x3f] %vm2097_vm3, %v2163_v47  ;;  %v10839_v52 = vpop.f32.mrb[69].mxu0  ;;  %v11180_v46 = vld [vmem:[%s15354_s3 + $0x60] sm:$0xff]  }
 0x294   : > { %2077 = vst.msk [vmem:[#allocation2 + $0x108] sm:$0xff] %vm2043_vm2, %v2027_v45  ;;  %v2028_v54 = vmax.f32 %v1921_v51, 0.0  ;;  %10903 = vmatmul.mubr.msk.bf16.gmra.mrb[36].mxu1 %vm2043_vm2, %v2308_v53  ;;  %v2586_v45 = vld [vmem:[#allocation3 + $0xd0] sm:$0xff]  ;;  %v11181_v48 = vld [vmem:[%s15354_s3 + $0x68] sm:$0xff]   ;;  %v2589_v49 = vld [vmem:[#allocation3 + $0xe8] sm:$0xff] }
 0x295   : > { %v1925_v56 = vpop.f32.mrb[70].mxu0  ;;  %10906 = vmatprep.mubr.msk.bf16.mxu1 %vm11762_vm1, %v11761_v2  ;;  %v2599_v47 = vpack.c.bf16 %v2587_v44, %v2586_v45  ;;  %v2588_v50 = vld [vmem:[#allocation3 + $0xe0] sm:$0xff]  ;;  %v11182_v51 = vld [vmem:[%s15354_s3 + $0x70] sm:$0xff]   ;;  %v11183_v53 = vld [vmem:[%s15354_s3 + $0x78] sm:$0xff]  }
 0x296   : > { %v1926_v57 = vadd.f32 %v13256_v55, %v1925_v56  ;;  %v10842_v58 = vpop.f32.mrb[71].mxu0  ;;  %2078 = vst.msk [vmem:[#allocation2 + $0x110] sm:$0xff] %vm2043_vm2, %v2028_v54  ;;  %v2600_v52 = vpack.c.bf16 %v2589_v49, %v2588_v50  ;;  %v2591_v54 = vld [vmem:[#allocation3 + $0xf8] sm:$0xff]  ;;  %v2590_v56 = vld [vmem:[#allocation3 + $0xf0] sm:$0xff] }
 0x297   : > { %v11193_v33 = vld [vmem:[%s15356_s5 + $0x30] ss:$8 sps:$4 sm:$0xff]   ;;  %v11195_v34 = vld [vmem:[%s15356_s5 + $0x34] ss:$8 sps:$4 sm:$0xff]  }
 0x298   : > { %v2029_v59 = vmax.f32 %v1926_v57, 0.0  ;;  %v2601_v57 = vpack.c.bf16 %v2591_v54, %v2590_v56  ;;  %v11199_v45 = vld [vmem:[%s15356_s5 + $0x50] ss:$8 sps:$4 sm:$0xff]   ;;  %v11207_v56 = vld [vmem:[%s15356_s5 + $0x74] ss:$8 sps:$4 sm:$0xff]  }
 0x299   : > { %v1930_v62 = vpop.f32.mrb[72].mxu0 }
 0x29a   : > { %2079 = vst.msk [vmem:[#allocation2 + $0x118] sm:$0xff] %vm2043_vm2, %v2029_v59  ;;  %v1931_v63 = vadd.f32 %v13256_v55, %v1930_v62  ;;  %v10845_v0 = vpop.f32.mrb[73].mxu0 }
 0x29b   : > { %v2204_v60 = vld [vmem:[#allocation2 + $0xfc] ss:$2 sm:$0xff]  ;;  %v2247_v61 = vld [vmem:[#allocation2 + $0xfd] ss:$2 sm:$0xff] }
 0x29c   : > { %2207 = vst.msk [vmem:[#allocation3 + $0x108] sm:$0xff] %vm2043_vm2, %v2204_v60  ;;  %2250 = vst.msk [vmem:[#allocation3 + $0x170] sm:$0xff] %vm2043_vm2, %v2247_v61  ;;  %v2030_v1 = vmax.f32 %v1931_v63, 0.0  ;;  %v2592_v63 = vld [vmem:[#allocation3 + $0x100] sm:$0xff] }
 0x29d   : > { %v1935_v3 = vpop.f32.mrb[74].mxu0  ;;  %v2206_v4 = vld [vmem:[#allocation2 + $0x10c] ss:$2 sm:$0x3f] }
 0x29e   : > { %v2249_v5 = vld [vmem:[#allocation2 + $0x10d] ss:$2 sm:$0x3f]  ;;  %2080 = vst.msk [vmem:[#allocation2 + $0x120] sm:$0xff] %vm2043_vm2, %v2030_v1  ;;  %v1936_v6 = vadd.f32 %v13256_v55, %v1935_v3  ;;  %v10848_v7 = vpop.f32.mrb[75].mxu0  ;;  %v2595_v3 = vld [vmem:[#allocation3 + $0x118] sm:$0xff] }
 0x29f   : > { %2208 = vst.msk [vmem:[#allocation3 + $0x110] sm:$0x3f] %vm2097_vm3, %v2206_v4  ;;  %2251 = vst.msk [vmem:[#allocation3 + $0x178] sm:$0x3f] %vm2097_vm3, %v2249_v5  ;;  %v2596_v5 = vld [vmem:[#allocation3 + $0x120] sm:$0xff] }
 0x2a0   : > { %v2031_v8 = vmax.f32 %v1936_v6, 0.0  ;;  %v2597_v6 = vld [vmem:[#allocation3 + $0x128] sm:$0xff] }
 0x2a1   : > { %v2604_v7 = vpack.c.bf16 %v2597_v6, %v2596_v5 }
 0x2a2   : > { %2081 = vst.msk [vmem:[#allocation2 + $0x128] sm:$0xff] %vm2043_vm2, %v2031_v8  ;;  %v2598_v8 = vld [vmem:[#allocation3 + $0x130] sm:$0x3] }
 0x2a3   : > { %v2593_v62 = vld [vmem:[#allocation3 + $0x108] sm:$0xff] }
 0x2a4   : > { %v2602_v0 = vpack.c.bf16 %v2593_v62, %v2592_v63  ;;  %v11211_v63 = vld [vmem:[%s15356_s5 + $0x90] ss:$8 sps:$4 sm:$0xff]  }
 0x2a5   : > { %v2124_v9 = vld [vmem:[#allocation2 + $0x118] ss:$2 sm:$0xff]  ;;  %v2167_v10 = vld [vmem:[#allocation2 + $0x119] ss:$2 sm:$0xff] }
 0x2a6   : > { %2127 = vst.msk [vmem:[#allocation3 + $0x46] sm:$0xff] %vm2043_vm2, %v2124_v9  ;;  %2170 = vst.msk [vmem:[#allocation3 + $0xae] sm:$0xff] %vm2043_vm2, %v2167_v10  ;;  %v2594_v1 = vld [vmem:[#allocation3 + $0x110] sm:$0xff] }
 0x2a7   : > { %v2603_v4 = vpack.c.bf16 %v2595_v3, %v2594_v1 }
 0x2a9   : > { %v2126_v11 = vld [vmem:[#allocation2 + $0x128] ss:$2 sm:$0x3f]  ;;  %v2169_v12 = vld [vmem:[#allocation2 + $0x129] ss:$2 sm:$0x3f] }
 0x2aa   : > { %2128 = vst.msk [vmem:[#allocation3 + $0x4e] sm:$0x3f] %vm2097_vm3, %v2126_v11  ;;  %2171 = vst.msk [vmem:[#allocation3 + $0xb6] sm:$0x3f] %vm2097_vm3, %v2169_v12  ;;  %v2605_v12 = vpack.c.bf16 %v2598_v8, %v2598_v8 }
 0x2ad   : > { %v2300_v55 = vld [vmem:[#allocation3 + $0xa8] sm:$0xff]  ;;  %v2272_v37 = vld [vmem:[#allocation3 + $0x40] sm:$0xff] }
 0x2b1   : > { %v2301_v13 = vld [vmem:[#allocation3 + $0xb0] sm:$0xff]  ;;  %v2302_v15 = vld [vmem:[#allocation3 + $0xb8] sm:$0xff]  ;;  %v2273_v36 = vld [vmem:[#allocation3 + $0x48] sm:$0xff] }
 0x2b2   : > { %v2309_v14 = vpack.c.bf16 %v2301_v13, %v2300_v55  ;;  %v2310_v17 = vpack.c.bf16 %v2303_v16, %v2302_v15  ;;  %v2281_v38 = vpack.c.bf16 %v2273_v36, %v2272_v37  ;;  %v2274_v39 = vld [vmem:[#allocation3 + $0x50] sm:$0xff]  ;;  %v11184_v55 = vld [vmem:[%s15356_s5] ss:$8 sps:$4 sm:$0xff]   ;;  %v11186_v13 = vld [vmem:[%s15356_s5 + $0x4] ss:$8 sps:$4 sm:$0xff]  }
 0x2b3   : > { %v2282_v41 = vpack.c.bf16 %v2275_v40, %v2274_v39  ;;  %3535 = vmatprep.subr.bf16.mxu0 %v11186_v13  ;;  %v2761_v15 = vld [vmem:[#allocation3 + $0x140] sm:$0xff]  ;;  %v2760_v16 = vld [vmem:[#allocation3 + $0x138] sm:$0xff] }
 0x2b4   : > { %10907 = vmatmul.mubr.msk.bf16.gmra.mrb[40].mxu1 %vm2043_vm2, %v2309_v14  ;;  %3536 = vmatpush1.bf16.msra.mxu0 %v11184_v55  ;;  %v2768_v37 = vld [vmem:[#allocation3 + $0x178] sm:$0xff]  ;;  %v2769_v40 = vld [vmem:[#allocation3 + $0x180] sm:$0xff] }
 0x2b5   : > { %10910 = vmatprep.mubr.msk.bf16.mxu1 %vm11762_vm1, %v11761_v2  ;;  %v11198_v39 = vld [vmem:[%s15356_s5 + $0x44] ss:$8 sps:$4 sm:$0xff]  }
 0x2bc   : > { %10911 = vmatmul.mubr.msk.bf16.gmra.mrb[44].mxu1 %vm2043_vm2, %v2310_v17  ;;  %v2773_v17 = vpack.c.bf16 %v2761_v15, %v2760_v16 }
 0x2bd   : > { %10914 = vmatprep.mubr.msk.bf16.mxu1 %vm11762_vm1, %v11761_v2 }
 0x2c4   : > { %10915 = vmatmul.mubr.msk.bf16.gmra.mrb[48].mxu1 %vm2043_vm2, %v2311_v19  ;;  %v11189_v19 = vld [vmem:[%s15356_s5 + $0x14] ss:$8 sps:$4 sm:$0xff]  }
 0x2c5   : > { %10926 = vmatprep.mubr.msk.bf16.mxu1 %vm11762_vm1, %v11761_v2  ;;  %3537 = vmatprep.subr.bf16.mxu0 %v11189_v19  ;;  %v11214_v19 = vld [vmem:[%s15356_s5 + $0xa0] ss:$8 sps:$4 sm:$0xff]  }
 0x2c6   : > { %3538 = vmatpush1.bf16.msra.mxu0 %v11187_v18 }
 0x2cc   : > { %10927 = vmatmul.mubr.msk.bf16.vlgmr.msra.gmra.mrb[52].mxu1 %vm2043_vm2, %v2277_v23  ;;  %v11190_v23 = vld [vmem:[%s15356_s5 + $0x20] ss:$8 sps:$4 sm:$0xff]  }
 0x2cd   : > { %10955 = vmatpush3.bf16.msra.mxu1 %v11176_v22  ;;  %10930 = vmatprep.mubr.msk.bf16.mxu1 %vm11762_vm1, %v11761_v2  ;;  %v2774_v22 = vpack.c.bf16 %v2763_v20, %v2762_v21  ;;  %v11216_v20 = vld [vmem:[%s15356_s5 + $0xa4] ss:$8 sps:$4 sm:$0xff]  }
 0x2ce   : > { %10956 = vmatprep.subr.bf16.mxu1 %v11761_v2 }
 0x2d1   : > { %10957 = vmatpush3.bf16.msra.mxu1 %v11177_v24  ;;  %v11192_v24 = vld [vmem:[%s15356_s5 + $0x24] ss:$8 sps:$4 sm:$0xff]  }
 0x2d2   : > { %10958 = vmatprep.subr.bf16.mxu1 %v11761_v2  ;;  %3539 = vmatprep.subr.bf16.mxu0 %v11192_v24 }
 0x2d3   : > { %3540 = vmatpush1.bf16.msra.mxu0 %v11190_v23 }
 0x2d4   : > { %10931 = vmatmul.mubr.msk.bf16.gmra.mrb[56].mxu1 %vm2043_vm2, %v2278_v28  ;;  %3541 = vmatprep.subr.bf16.mxu0 %v11195_v34  ;;  %v11222_v34 = vld [vmem:[%s15356_s5 + $0xc4] ss:$8 sps:$4 sm:$0xff]  }
 0x2d5   : > { %10934 = vmatprep.mubr.msk.bf16.mxu1 %vm11762_vm1, %v11761_v2  ;;  %10959 = vmatpush3.bf16.msra.mxu1 %v11178_v27  ;;  %v2775_v27 = vpack.c.bf16 %v2765_v25, %v2764_v26  ;;  %v11217_v25 = vld [vmem:[%s15356_s5 + $0xb0] ss:$8 sps:$4 sm:$0xff]   ;;  %v11219_v26 = vld [vmem:[%s15356_s5 + $0xb4] ss:$8 sps:$4 sm:$0xff]  }
 0x2d6   : > { %10960 = vmatprep.subr.bf16.mxu1 %v11761_v2 }
 0x2d7   : > { %3542 = vmatpush1.bf16.msra.mxu0 %v11193_v33 }
 0x2d8   : > { %3543 = vmatprep.subr.bf16.mxu0 %v11198_v39 }
 0x2d9   : > { %10961 = vmatpush3.bf16.msra.mxu1 %v11179_v29 }
 0x2da   : > { %10990 = vmatprep.subr.bf16.mxu1 %v11761_v2 }
 0x2dc   : > { %10935 = vmatmul.mubr.msk.bf16.gmra.mrb[60].mxu1 %vm2043_vm2, %v2279_v32  ;;  %v2767_v32 = vld [vmem:[#allocation3 + $0x170] sm:$0xff] }
 0x2dd   : > { %10938 = vmatprep.mubr.msk.bf16.mxu1 %vm11762_vm1, %v11761_v2 }
 0x2e4   : > { %10939 = vmatmul.mubr.msk.bf16.gmra.mrb[64].mxu1 %vm2043_vm2, %v2280_v35  ;;  %v2766_v35 = vld [vmem:[#allocation3 + $0x168] sm:$0xff] }
 0x2e5   : > { %10942 = vmatprep.mubr.msk.bf16.mxu1 %vm11762_vm1, %v11761_v2  ;;  %v2776_v36 = vpack.c.bf16 %v2767_v32, %v2766_v35 }
 0x2ec   : > { %10943 = vmatmul.mubr.msk.bf16.gmra.mrb[68].mxu1 %vm2043_vm2, %v2281_v38  ;;  %v11196_v38 = vld [vmem:[%s15356_s5 + $0x40] ss:$8 sps:$4 sm:$0xff]  }
 0x2ed   : > { %10946 = vmatprep.mubr.msk.bf16.mxu1 %vm11762_vm1, %v11761_v2  ;;  %3544 = vmatpush1.bf16.msra.mxu0 %v11196_v38 }
 0x2f4   : > { %10947 = vmatmul.mubr.msk.bf16.gmra.mrb[72].mxu1 %vm2043_vm2, %v2282_v41  ;;  %v2777_v41 = vpack.c.bf16 %v2769_v40, %v2768_v37  ;;  %v11225_v40 = vld [vmem:[%s15356_s5 + $0xd4] ss:$8 sps:$4 sm:$0xff]  }
 0x2f5   : > { %10950 = vmatprep.mubr.msk.bf16.mxu1 %vm11762_vm1, %v11761_v2 }
 0x2fc   : > { %10951 = vmatmul.mubr.msk.bf16.gmra.mrb[76].mxu1 %vm2043_vm2, %v2283_v43  ;;  %v2771_v43 = vld [vmem:[#allocation3 + $0x190] sm:$0xff] }
 0x2fd   : > { %10962 = vmatprep.mubr.msk.bf16.mxu1 %vm11762_vm1, %v11761_v2  ;;  %v2778_v44 = vpack.c.bf16 %v2771_v43, %v2770_v42 }
 0x304   : > { %10963 = vmatmul.mubr.msk.bf16.vlgmr.msra.gmra.mrb[80].mxu1 %vm2043_vm2, %v2599_v47  ;;  %v2772_v47 = vld [vmem:[#allocation3 + $0x198] sm:$0x3] }
 0x305   : > { %10991 = vmatpush3.bf16.msra.mxu1 %v11180_v46  ;;  %10966 = vmatprep.mubr.msk.bf16.mxu1 %vm11762_vm1, %v11761_v2  ;;  %v11201_v46 = vld [vmem:[%s15356_s5 + $0x54] ss:$8 sps:$4 sm:$0xff]  }
 0x306   : > { %10992 = vmatprep.subr.bf16.mxu1 %v11761_v2  ;;  %3545 = vmatprep.subr.bf16.mxu0 %v11201_v46 }
 0x307   : > { %3546 = vmatpush1.bf16.msra.mxu0 %v11199_v45 }
 0x309   : > { %10993 = vmatpush3.bf16.msra.mxu1 %v11181_v48 }
 0x30a   : > { %10994 = vmatprep.subr.bf16.mxu1 %v11761_v2 }
 0x30c   : > { %10967 = vmatmul.mubr.msk.bf16.gmra.mrb[84].mxu1 %vm2043_vm2, %v2600_v52  ;;  %v11202_v52 = vld [vmem:[%s15356_s5 + $0x60] ss:$8 sps:$4 sm:$0xff]  }
 0x30d   : > { %10970 = vmatprep.mubr.msk.bf16.mxu1 %vm11762_vm1, %v11761_v2  ;;  %10995 = vmatpush3.bf16.msra.mxu1 %v11182_v51  ;;  %v2779_v51 = vpack.c.bf16 %v2772_v47, %v2772_v47  ;;  %v11228_v47 = vld [vmem:[%s15356_s5 + $0xe4] ss:$8 sps:$4 sm:$0xff]  }
 0x30e   : > { %10996 = vmatprep.subr.bf16.mxu1 %v11761_v2 }
 0x311   : > { %10997 = vmatpush3.bf16.msra.mxu1 %v11183_v53  ;;  %v11204_v53 = vld [vmem:[%s15356_s5 + $0x64] ss:$8 sps:$4 sm:$0xff]  }
 0x312   : > { %3547 = vmatprep.subr.bf16.mxu0 %v11204_v53  ;;  %v11231_v53 = vld [vmem:[%s15356_s5 + $0xf4] ss:$8 sps:$4 sm:$0xff]  }
 0x313   : > { %v13507_v58 = vpop.f32.mrb[24].mxu1  ;;  %3548 = vmatpush1.bf16.msra.mxu0 %v11202_v52  ;;  %v11229_v52 = vld [vmem:[%s15356_s5 + $0xf0] ss:$8 sps:$4 sm:$0xff]  }
 0x314   : > { %10971 = vmatmul.mubr.msk.bf16.gmra.mrb[88].mxu1 %vm2043_vm2, %v2601_v57  ;;  %v10892_v59 = vpop.f32.mrb[25].mxu1  ;;  %3549 = vmatprep.subr.bf16.mxu0 %v11207_v56  ;;  %v11208_v57 = vld [vmem:[%s15356_s5 + $0x80] ss:$8 sps:$4 sm:$0xff]   ;;  %v11234_v56 = vld [vmem:[%s15356_s5 + $0x104] ss:$8 sps:$4 sm:$0xff]  }
 0x315   : > { %10974 = vmatprep.mubr.msk.bf16.mxu1 %vm11762_vm1, %v11761_v2  ;;  %v13512_v60 = vpop.f32.mrb[26].mxu1  ;;  %v11210_v59 = vld [vmem:[%s15356_s5 + $0x84] ss:$8 sps:$4 sm:$0xff]  }
 0x316   : > { %v10893_v61 = vpop.f32.mrb[27].mxu1 }
 0x31c   : > { %10975 = vmatmul.mubr.msk.bf16.gmra.mrb[92].mxu1 %vm2043_vm2, %v2602_v0  ;;  %v11213_v0 = vld [vmem:[%s15356_s5 + $0x94] ss:$8 sps:$4 sm:$0xff]  }
 0x31d   : > { %10978 = vmatprep.mubr.msk.bf16.mxu1 %vm11762_vm1, %v11761_v2 }
 0x324   : > { %10979 = vmatmul.mubr.msk.bf16.gmra.mrb[96].mxu1 %vm2043_vm2, %v2603_v4 }
 0x325   : > { %10982 = vmatprep.mubr.msk.bf16.mxu1 %vm11762_vm1, %v11761_v2 }
 0x32c   : > { %10983 = vmatmul.mubr.msk.bf16.gmra.mrb[100].mxu1 %vm2043_vm2, %v2604_v7 }
 0x32d   : > { %10986 = vmatprep.mubr.msk.bf16.mxu1 %vm11762_vm1, %v11761_v2 }
 0x32f   : > { %v13523_v9 = vpop.f32.mrb[28].mxu1 }
 0x330   : > { %v10896_v10 = vpop.f32.mrb[29].mxu1 }
 0x331   : > { %v13525_v11 = vpop.f32.mrb[30].mxu1 }
 0x332   : > { %v10897_v14 = vpop.f32.mrb[31].mxu1 }
 0x334   : > { %10987 = vmatmul.mubr.msk.bf16.gmra.mrb[104].mxu1 %vm2043_vm2, %v2605_v12 }
 0x335   : > { %10998 = vmatprep.mubr.msk.bf16.mxu1 %vm11762_vm1, %v11761_v2 }
 0x33c   : > { %10999 = vmatmul.mubr.msk.bf16.vlgmr.msra.gmra.mrb[108].mxu1 %vm2043_vm2, %v2773_v17 }
 0x33d   : > { %11002 = vmatprep.mubr.msk.bf16.mxu1 %vm11762_vm1, %v11761_v2 }
 0x344   : > { %11003 = vmatmul.mubr.msk.bf16.gmra.mrb[112].mxu1 %vm2043_vm2, %v2774_v22 }
 0x345   : > { %11006 = vmatprep.mubr.msk.bf16.mxu1 %vm11762_vm1, %v11761_v2 }
 0x34b   : > { %v13554_v28 = vpop.f32.mrb[32].mxu1 }
 0x34c   : > { %11007 = vmatmul.mubr.msk.bf16.gmra.mrb[116].mxu1 %vm2043_vm2, %v2775_v27  ;;  %v10900_v29 = vpop.f32.mrb[33].mxu1 }
 0x34d   : > { %11010 = vmatprep.mubr.msk.bf16.mxu1 %vm11762_vm1, %v11761_v2  ;;  %v13559_v30 = vpop.f32.mrb[34].mxu1 }
 0x34e   : > { %v10901_v31 = vpop.f32.mrb[35].mxu1 }
 0x354   : > { %11011 = vmatmul.mubr.msk.bf16.gmra.mrb[120].mxu1 %vm2043_vm2, %v2776_v36 }
 0x355   : > { %11014 = vmatprep.mubr.msk.bf16.mxu1 %vm11762_vm1, %v11761_v2 }
 0x35c   : > { %11015 = vmatmul.mubr.msk.bf16.gmra.mrb[124].mxu1 %vm2043_vm2, %v2777_v41 }
 0x35d   : > { %11018 = vmatprep.mubr.msk.bf16.mxu1 %vm11762_vm1, %v11761_v2 }
 0x364   : > { %11019 = vmatmul.mubr.msk.bf16.gmra.mrb[128].mxu1 %vm2043_vm2, %v2778_v44 }
 0x365   : > { %11022 = vmatprep.mubr.msk.bf16.mxu1 %vm11762_vm1, %v11761_v2  ;;  %v11205_v2 = vld [vmem:[%s15356_s5 + $0x70] ss:$8 sps:$4 sm:$0xff]  }
 0x366   : > { %3550 = vmatpush1.bf16.msra.mxu0 %v11205_v2 }
 0x367   : > { %v13588_v48 = vpop.f32.mrb[36].mxu1  ;;  %3551 = vmatprep.subr.bf16.mxu0 %v11210_v59 }
 0x368   : > { %v10904_v49 = vpop.f32.mrb[37].mxu1 }
 0x369   : > { %v13590_v50 = vpop.f32.mrb[38].mxu1 }
 0x36a   : > { %v10905_v54 = vpop.f32.mrb[39].mxu1  ;;  %3552 = vmatpush1.bf16.msra.mxu0 %v11208_v57 }
 0x36b   : > { %3553 = vmatprep.subr.bf16.mxu0 %v11213_v0 }
 0x36c   : > { %11023 = vmatmul.mubr.msk.bf16.gmra.mrb[132].mxu1 %vm2043_vm2, %v2779_v51 }
 0x36e   : > { %3554 = vmatpush1.bf16.msra.mxu0 %v11211_v63 }
 0x36f   : > { %3555 = vmatprep.subr.bf16.mxu0 %v11216_v20 }
 0x372   : > { %3556 = vmatpush1.bf16.msra.mxu0 %v11214_v19 }
 0x373   : > { %3557 = vmatprep.subr.bf16.mxu0 %v11219_v26 }
 0x376   : > { %3558 = vmatpush1.bf16.msra.mxu0 %v11217_v25 }
 0x377   : > { %3559 = vmatprep.subr.bf16.mxu0 %v11222_v34 }
 0x387   : > { %v2431_v61 = vpop.f32.mrb[40].mxu1 }
 0x388   : > { %v10908_v62 = vpop.f32.mrb[41].mxu1 }
 0x389   : > { %v2434_v1 = vpop.f32.mrb[42].mxu1 }
 0x38a   : > { %v10909_v3 = vpop.f32.mrb[43].mxu1 }
 0x38f   : > { %v2439_v4 = vpop.f32.mrb[44].mxu1 }
 0x390   : > { %v10912_v5 = vpop.f32.mrb[45].mxu1 }
 0x391   : > { %v2442_v6 = vpop.f32.mrb[46].mxu1 }
 0x392   : > { %v10913_v7 = vpop.f32.mrb[47].mxu1 }
 0x397   : > { %v2447_v8 = vpop.f32.mrb[48].mxu1 }
 0x398   : > { %v10916_v10 = vpop.f32.mrb[49].mxu1 }
 0x399   : > { %v2450_v12 = vpop.f32.mrb[50].mxu1 }
 0x39a   : > { %v10917_v55 = vpop.f32.mrb[51].mxu1 }
 0x39f   : > { %v2532_v13 = vpop.f32.mrb[52].mxu1 }
 0x3a0   : > { %v13618_v14 = vadd.f32 %v2532_v13, %v13507_v58  ;;  %v10928_v15 = vpop.f32.mrb[53].mxu1 }
 0x3a1   : > { %v2535_v16 = vpop.f32.mrb[54].mxu1 }
 0x3a2   : > { %v13621_v17 = vadd.f32 %v2535_v16, %v13512_v60  ;;  %v10929_v18 = vpop.f32.mrb[55].mxu1 }
 0x3a7   : > { %v2540_v21 = vpop.f32.mrb[56].mxu1 }
 0x3a8   : > { %v2541_v58 = vadd.f32 %v2540_v21, %v13523_v9  ;;  %v10932_v22 = vpop.f32.mrb[57].mxu1 }
 0x3a9   : > { %v2543_v23 = vpop.f32.mrb[58].mxu1 }
 0x3aa   : > { %v2544_v24 = vadd.f32 %v2543_v23, %v13525_v11  ;;  %v10933_v60 = vpop.f32.mrb[59].mxu1  ;;  %v11220_v11 = vld [vmem:[%s15356_s5 + $0xc0] ss:$8 sps:$4 sm:$0xff]  }
 0x3ab   : > { %3560 = vmatpush1.bf16.msra.mxu0 %v11220_v11 }
 0x3ac   : > { %3561 = vmatprep.subr.bf16.mxu0 %v11225_v40 }
 0x3af   : > { %v2548_v27 = vpop.f32.mrb[60].mxu1 }
 0x3b0   : > { %v2549_v29 = vadd.f32 %v2548_v27, %v13554_v28  ;;  %v10936_v31 = vpop.f32.mrb[61].mxu1 }
 0x3b1   : > { %v2551_v9 = vpop.f32.mrb[62].mxu1 }
 0x3b2   : > { %v2552_v32 = vadd.f32 %v2551_v9, %v13559_v30  ;;  %v10937_v33 = vpop.f32.mrb[63].mxu1  ;;  %v11223_v30 = vld [vmem:[%s15356_s5 + $0xd0] ss:$8 sps:$4 sm:$0xff]  }
 0x3b3   : > { %3562 = vmatpush1.bf16.msra.mxu0 %v11223_v30 }
 0x3b4   : > { %3563 = vmatprep.subr.bf16.mxu0 %v11228_v47  ;;  %v11280_v47 = vld [vmem:[%s15358_s7] ss:$16 sps:$4 sm:$0xff]  }
 0x3b7   : > { %v2556_v35 = vpop.f32.mrb[64].mxu1 }
 0x3b8   : > { %v2557_v36 = vadd.f32 %v2556_v35, %v13588_v48  ;;  %v10940_v37 = vpop.f32.mrb[65].mxu1  ;;  %v11226_v48 = vld [vmem:[%s15356_s5 + $0xe0] ss:$8 sps:$4 sm:$0xff]  }
 0x3b9   : > { %v2559_v38 = vpop.f32.mrb[66].mxu1  ;;  %3564 = vmatpush1.bf16.msra.mxu0 %v11226_v48  ;;  %v11282_v48 = vld [vmem:[%s15358_s7 + $0x4] ss:$16 sps:$4 sm:$0xff]  }
 0x3ba   : > { %v2560_v28 = vadd.f32 %v2559_v38, %v13590_v50  ;;  %v10941_v39 = vpop.f32.mrb[67].mxu1  ;;  %3565 = vmatprep.subr.bf16.mxu0 %v11231_v53  ;;  %5295 = vmatprep.subr.bf16.mxu1 %v11282_v48 }
 0x3bb   : > { %5296 = vmatpush1.bf16.msra.mxu1 %v11280_v47 }
 0x3bd   : > { %3566 = vmatpush1.bf16.msra.mxu0 %v11229_v52  ;;  %v11288_v52 = vld [vmem:[%s15358_s7 + $0x24] ss:$16 sps:$4 sm:$0xff]  }
 0x3be   : > { %3586 = vmatprep.subr.bf16.mxu0 %v11234_v56  ;;  %5297 = vmatprep.subr.bf16.mxu1 %v11288_v52 }
 0x3bf   : > { %v2564_v41 = vpop.f32.mrb[68].mxu1 }
 0x3c0   : > { %v2565_v42 = vadd.f32 %v2564_v41, %v2431_v61  ;;  %v10944_v43 = vpop.f32.mrb[69].mxu1 }
 0x3c1   : > { %v2567_v44 = vpop.f32.mrb[70].mxu1 }
 0x3c2   : > { %v2568_v45 = vadd.f32 %v2567_v44, %v2434_v1  ;;  %v10945_v46 = vpop.f32.mrb[71].mxu1 }
 0x3c7   : > { %v2572_v49 = vpop.f32.mrb[72].mxu1 }
 0x3c8   : > { %v2573_v50 = vadd.f32 %v2572_v49, %v2439_v4  ;;  %v10948_v51 = vpop.f32.mrb[73].mxu1 }
 0x3c9   : > { %v2575_v54 = vpop.f32.mrb[74].mxu1 }
 0x3ca   : > { %v10949_v2 = vpop.f32.mrb[75].mxu1  ;;  %v11286_v54 = vld [vmem:[%s15358_s7 + $0x20] ss:$16 sps:$4 sm:$0xff]  }
 0x3cb   : > { %5298 = vmatpush1.bf16.msra.mxu1 %v11286_v54 }
 0x3cf   : > { %v2580_v57 = vpop.f32.mrb[76].mxu1 }
 0x3d0   : > { %v10952_v59 = vpop.f32.mrb[77].mxu1 }
 0x3d1   : > { %v2583_v61 = vpop.f32.mrb[78].mxu1  ;;  %v11294_v59 = vld [vmem:[%s15358_s7 + $0x44] ss:$16 sps:$4 sm:$0xff]  }
 0x3d2   : > { %v10953_v62 = vpop.f32.mrb[79].mxu1  ;;  %5299 = vmatprep.subr.bf16.mxu1 %v11294_v59 }
 0x3d7   : > { %v2693_v63 = vpop.f32.mrb[80].mxu1 }
 0x3d8   : > { %v2747_v0 = vadd.f32 %v2693_v63, %v13618_v14  ;;  %v10964_v1 = vpop.f32.mrb[81].mxu1  ;;  %v11292_v63 = vld [vmem:[%s15358_s7 + $0x40] ss:$16 sps:$4 sm:$0xff]  }
 0x3d9   : > { %v2696_v3 = vpop.f32.mrb[82].mxu1  ;;  %5300 = vmatpush1.bf16.msra.mxu1 %v11292_v63 }
 0x3da   : > { %v2748_v4 = vadd.f32 %v2696_v3, %v13621_v17  ;;  %v10965_v5 = vpop.f32.mrb[83].mxu1 }
 0x3df   : > { %v2701_v6 = vpop.f32.mrb[84].mxu1 }
 0x3e0   : > { %v2749_v7 = vadd.f32 %v2701_v6, %v2541_v58  ;;  %v10968_v8 = vpop.f32.mrb[85].mxu1 }
 0x3e1   : > { %v2704_v10 = vpop.f32.mrb[86].mxu1 }
 0x3e2   : > { %v2750_v12 = vadd.f32 %v2704_v10, %v2544_v24  ;;  %v10969_v55 = vpop.f32.mrb[87].mxu1 }
 0x3e7   : > { %v2709_v13 = vpop.f32.mrb[88].mxu1 }
 0x3e8   : > { %v13670_v15 = vadd.f32 %v2709_v13, %v2549_v29  ;;  %v10972_v16 = vpop.f32.mrb[89].mxu1  ;;  %v11298_v13 = vld [vmem:[%s15358_s7 + $0x60] ss:$16 sps:$4 sm:$0xff]  }
 0x3e9   : > { %v2712_v18 = vpop.f32.mrb[90].mxu1 }
 0x3ea   : > { %v13672_v19 = vadd.f32 %v2712_v18, %v2552_v32  ;;  %v10973_v20 = vpop.f32.mrb[91].mxu1  ;;  %v11306_v18 = vld [vmem:[%s15358_s7 + $0x84] ss:$16 sps:$4 sm:$0xff]  }
 0x3ef   : > { %v2717_v14 = vpop.f32.mrb[92].mxu1 }
 0x3f0   : > { %v13674_v21 = vadd.f32 %v2717_v14, %v2557_v36  ;;  %v10976_v22 = vpop.f32.mrb[93].mxu1 }
 0x3f1   : > { %v2720_v17 = vpop.f32.mrb[94].mxu1 }
 0x3f2   : > { %v13676_v23 = vadd.f32 %v2720_v17, %v2560_v28  ;;  %v10977_v58 = vpop.f32.mrb[95].mxu1  ;;  %v13687_v28 = vld [vmem:[%s15355_s4] ss:$0 sm:$0xff] }
 0x3f7   : > { %v2725_v60 = vpop.f32.mrb[96].mxu1 }
 0x3f8   : > { %v13678_v25 = vadd.f32 %v2725_v60, %v2565_v42  ;;  %v10980_v24 = vpop.f32.mrb[97].mxu1 }
 0x3f9   : > { %v2728_v26 = vpop.f32.mrb[98].mxu1 }
 0x3fa   : > { %v13680_v27 = vadd.f32 %v2728_v26, %v2568_v45  ;;  %v10981_v29 = vpop.f32.mrb[99].mxu1  ;;  %v11312_v26 = vld [vmem:[%s15358_s7 + $0xa4] ss:$16 sps:$4 sm:$0xff]  }
 0x3ff   : > { %v2733_v31 = vpop.f32.mrb[100].mxu1 }
 0x400   : > { %v13682_v9 = vadd.f32 %v2733_v31, %v2573_v50  ;;  %v10984_v32 = vpop.f32.mrb[101].mxu1 }
 0x401   : > { %v2736_v33 = vpop.f32.mrb[102].mxu1 }
 0x402   : > { %v10985_v11 = vpop.f32.mrb[103].mxu1 }
 0x407   : > { %v2741_v34 = vpop.f32.mrb[104].mxu1 }
 0x408   : > { %v10988_v35 = vpop.f32.mrb[105].mxu1 }
 0x409   : > { %v2744_v36 = vpop.f32.mrb[106].mxu1 }
 0x40a   : > { %v10989_v37 = vpop.f32.mrb[107].mxu1  ;;  %v11310_v36 = vld [vmem:[%s15358_s7 + $0xa0] ss:$16 sps:$4 sm:$0xff]  }
 0x40f   : > { %v2867_v38 = vpop.f32.mrb[108].mxu1 }
 0x410   : > { %v2921_v39 = vadd.f32 %v2867_v38, %v2747_v0  ;;  %v11000_v30 = vpop.f32.mrb[109].mxu1  ;;  %v11318_v38 = vld [vmem:[%s15358_s7 + $0xc4] ss:$16 sps:$4 sm:$0xff]  }
 0x411   : > { %v2870_v40 = vpop.f32.mrb[110].mxu1 }
 0x412   : > { %v2941_v41 = vadd.f32 %v13687_v28, %v2921_v39  ;;  %v2922_v42 = vadd.f32 %v2870_v40, %v2748_v4  ;;  %v11001_v43 = vpop.f32.mrb[111].mxu1  ;;  %v11300_v4 = vld [vmem:[%s15358_s7 + $0x64] ss:$16 sps:$4 sm:$0xff]  }
 0x413   : > { %5301 = vmatprep.subr.bf16.mxu1 %v11300_v4  ;;  %v11324_v43 = vld [vmem:[%s15358_s7 + $0xe4] ss:$16 sps:$4 sm:$0xff]   ;;  %v11328_v4 = vld [vmem:[%s15358_s7 + $0x100] ss:$16 sps:$4 sm:$0xff]  }
 0x414   : > { %v2954_v44 = vmax.f32 %v2941_v41, 0.0  ;;  %v2942_v45 = vadd.f32 %v13687_v28, %v2922_v42  ;;  %5302 = vmatpush1.bf16.msra.mxu1 %v11298_v13  ;;  %v11316_v42 = vld [vmem:[%s15358_s7 + $0xc0] ss:$16 sps:$4 sm:$0xff]  }
 0x415   : > { %5303 = vmatprep.subr.bf16.mxu1 %v11306_v18 }
 0x416   : > { %2967 = vst [vmem:[#allocation4] sm:$0xff] %v2954_v44  ;;  %v2955_v46 = vmax.f32 %v2942_v45, 0.0 }
 0x417   : > { %v2875_v49 = vpop.f32.mrb[112].mxu1 }
 0x418   : > { %2968 = vst [vmem:[#allocation4 + $0x8] sm:$0xff] %v2955_v46  ;;  %v2923_v50 = vadd.f32 %v2875_v49, %v2749_v7  ;;  %v11004_v51 = vpop.f32.mrb[113].mxu1 }
 0x419   : > { %v2878_v53 = vpop.f32.mrb[114].mxu1 }
 0x41a   : > { %v2943_v2 = vadd.f32 %v13687_v28, %v2923_v50  ;;  %v2924_v56 = vadd.f32 %v2878_v53, %v2750_v12  ;;  %v11005_v57 = vpop.f32.mrb[115].mxu1  ;;  %v11330_v50 = vld [vmem:[%s15358_s7 + $0x104] ss:$16 sps:$4 sm:$0xff]  }
 0x41c   : > { %v2956_v61 = vmax.f32 %v2943_v2, 0.0  ;;  %v2944_v62 = vadd.f32 %v13687_v28, %v2924_v56 }
 0x41d   : > { %v2980_v0 = vld [vmem:[#allocation4] ss:$2 sm:$0x7]  ;;  %v3015_v1 = vld [vmem:[#allocation4 + $0x1] ss:$2 sm:$0x7] }
 0x41e   : > { %2981 = vst [vmem:[#allocation5] sm:$0x7] %v2980_v0  ;;  %3016 = vst [vmem:[#allocation5 + $0x8] sm:$0x7] %v3015_v1  ;;  %v2957_v3 = vmax.f32 %v2944_v62, 0.0 }
 0x41f   : > { %2969 = vst [vmem:[#allocation4 + $0x10] sm:$0xff] %v2956_v61  ;;  %v2983_v5 = vld [vmem:[#allocation4 + $0x7] ss:$2 sm:$0x7]  ;;  %v2883_v10 = vpop.f32.mrb[116].mxu1 }
 0x420   : > { %v3018_v6 = vld [vmem:[#allocation4 + $0x8] ss:$2 sm:$0x7]  ;;  %v2985_v7 = vrot.slane %v2983_v5, 5  ;;  %2970 = vst [vmem:[#allocation4 + $0x18] sm:$0xff] %v2957_v3  ;;  %v2925_v12 = vadd.f32 %v2883_v10, %v13670_v15  ;;  %v11008_v55 = vpop.f32.mrb[117].mxu1 }
 0x421   : > { %v3020_v8 = vrot.slane %v3018_v6, 5  ;;  %v2886_v16 = vpop.f32.mrb[118].mxu1  ;;  %v11304_v15 = vld [vmem:[%s15358_s7 + $0x80] ss:$16 sps:$4 sm:$0xff]  }
 0x422   : > { %2987 = vst [vmem:[#allocation5] sm:$0x38] %v2985_v7  ;;  %v2945_v20 = vadd.f32 %v13687_v28, %v2925_v12  ;;  %v2926_v14 = vadd.f32 %v2886_v16, %v13672_v19  ;;  %v11009_v22 = vpop.f32.mrb[119].mxu1  ;;  %5304 = vmatpush1.bf16.msra.mxu1 %v11304_v15 }
 0x423   : > { %3022 = vst [vmem:[#allocation5 + $0x8] sm:$0x38] %v3020_v8  ;;  %5305 = vmatprep.subr.bf16.mxu1 %v11312_v26 }
 0x424   : > { %v2946_v60 = vadd.f32 %v13687_v28, %v2926_v14  ;;  %v2958_v24 = vmax.f32 %v2945_v20, 0.0 }
 0x426   : > { %v3050_v17 = vld [vmem:[#allocation4 + $0xe] ss:$2 sm:$0x7]  ;;  %v3085_v58 = vld [vmem:[#allocation4 + $0xf] ss:$2 sm:$0x7]  ;;  %5306 = vmatpush1.bf16.msra.mxu1 %v11310_v36 }
 0x427   : > { %3051 = vst [vmem:[#allocation5 + $0x10] sm:$0x7] %v3050_v17  ;;  %3086 = vst [vmem:[#allocation5 + $0x18] sm:$0x7] %v3085_v58  ;;  %v2959_v33 = vmax.f32 %v2946_v60, 0.0  ;;  %v2891_v11 = vpop.f32.mrb[120].mxu1  ;;  %5307 = vmatprep.subr.bf16.mxu1 %v11318_v38 }
 0x428   : > { %v3053_v29 = vld [vmem:[#allocation4 + $0x15] ss:$2 sm:$0x7]  ;;  %v3088_v19 = vld [vmem:[#allocation4 + $0x16] ss:$2 sm:$0x7]  ;;  %v2927_v34 = vadd.f32 %v2891_v11, %v13674_v21 }
 0x429   : > { %v3055_v31 = vrot.slane %v3053_v29, 5  ;;  %v3090_v32 = vrot.slane %v3088_v19, 5  ;;  %2971 = vst [vmem:[#allocation4 + $0x20] sm:$0xff] %v2958_v24  ;;  %v11012_v35 = vpop.f32.mrb[121].mxu1  ;;  %2972 = vst [vmem:[#allocation4 + $0x28] sm:$0xff] %v2959_v33 }
 0x42a   : > { %v2894_v37 = vpop.f32.mrb[122].mxu1  ;;  %v2947_v39 = vadd.f32 %v13687_v28, %v2927_v34  ;;  %5308 = vmatpush1.bf16.msra.mxu1 %v11316_v42 }
 0x42b   : > { %3057 = vst [vmem:[#allocation5 + $0x10] sm:$0x38] %v3055_v31  ;;  %3092 = vst [vmem:[#allocation5 + $0x18] sm:$0x38] %v3090_v32  ;;  %v2928_v30 = vadd.f32 %v2894_v37, %v13676_v23  ;;  %v11013_v21 = vpop.f32.mrb[123].mxu1  ;;  %5309 = vmatprep.subr.bf16.mxu1 %v11324_v43 }
 0x42c   : > { %v2960_v40 = vmax.f32 %v2947_v39, 0.0  ;;  %v11322_v23 = vld [vmem:[%s15358_s7 + $0xe0] ss:$16 sps:$4 sm:$0xff]  }
 0x42d   : > { %v2948_v41 = vadd.f32 %v13687_v28, %v2928_v30  ;;  %v11232_v43 = vld [vmem:[%s15356_s5 + $0x100] ss:$8 sps:$4 sm:$0xff]  }
 0x42e   : > { %2973 = vst [vmem:[#allocation4 + $0x30] sm:$0xff] %v2960_v40  ;;  %5310 = vmatpush1.bf16.msra.mxu1 %v11322_v23 }
 0x42f   : > { %v2961_v49 = vmax.f32 %v2948_v41, 0.0  ;;  %v2899_v53 = vpop.f32.mrb[124].mxu1  ;;  %5311 = vmatprep.subr.bf16.mxu1 %v11330_v50  ;;  %v11238_v50 = vld [vmem:[%s15356_s5 + $0x120] ss:$8 sps:$4 sm:$0xff]  }
 0x430   : > { %v2989_v44 = vld [vmem:[#allocation4 + $0x1c] ss:$2 sm:$0x7]  ;;  %v2996_v45 = vld [vmem:[#allocation4 + $0x23] ss:$2 sm:$0x7]  ;;  %v2929_v56 = vadd.f32 %v2899_v53, %v13678_v25 }
 0x431   : > { %v2991_v46 = vrot.slane %v2989_v44, 2  ;;  %v2998_v47 = vrot.slane %v2996_v45, 7  ;;  %v3024_v48 = vld [vmem:[#allocation4 + $0x1d] ss:$2 sm:$0x7]  ;;  %2974 = vst [vmem:[#allocation4 + $0x38] sm:$0xff] %v2961_v49 }
 0x432   : > { %v3026_v51 = vrot.slane %v3024_v48, 2  ;;  %v3031_v52 = vld [vmem:[#allocation4 + $0x24] ss:$2 sm:$0x7]  ;;  %v11016_v57 = vpop.f32.mrb[125].mxu1  ;;  %v2949_v0 = vadd.f32 %v13687_v28, %v2929_v56  ;;  %5312 = vmatpush1.bf16.msra.mxu1 %v11328_v4 }
 0x433   : > { %2993 = vst [vmem:[#allocation5 + $0x20] ss:$-28 sps:$4 sm:$0xc1] %v2991_v46   ;;  %3000 = vst [vmem:[#allocation5 + $0x20] sm:$0xe] %v2998_v47  ;;  %v3033_v54 = vrot.slane %v3031_v52, 7 }
 0x434   : > { %v3059_v2 = vld [vmem:[#allocation4 + $0x2a] ss:$2 sm:$0x7]  ;;  %3028 = vst [vmem:[#allocation5 + $0x28] ss:$-28 sps:$4 sm:$0xc1] %v3026_v51  }
 0x435   : > { %v3061_v59 = vrot.slane %v3059_v2, 2  ;;  %v3094_v61 = vld [vmem:[#allocation4 + $0x2b] ss:$2 sm:$0x7]  ;;  %v2902_v62 = vpop.f32.mrb[126].mxu1  ;;  %v2962_v10 = vmax.f32 %v2949_v0, 0.0 }
 0x436   : > { %3035 = vst [vmem:[#allocation5 + $0x28] sm:$0xe] %v3033_v54  ;;  %v3096_v63 = vrot.slane %v3094_v61, 2  ;;  %v2930_v1 = vadd.f32 %v2902_v62, %v13680_v27  ;;  %v11017_v3 = vpop.f32.mrb[127].mxu1  ;;  %v11237_v45 = vld [vmem:[%s15356_s5 + $0x114] ss:$8 sps:$4 sm:$0xff]  }
 0x437   : > { %3063 = vst [vmem:[#allocation5 + $0x30] ss:$-28 sps:$4 sm:$0xc1] %v3061_v59   ;;  %v3066_v25 = vld [vmem:[#allocation4 + $0x31] ss:$2 sm:$0x7] }
 0x438   : > { %3098 = vst [vmem:[#allocation5 + $0x38] ss:$-28 sps:$4 sm:$0xc1] %v3096_v63   ;;  %v3101_v5 = vld [vmem:[#allocation4 + $0x32] ss:$2 sm:$0x7]  ;;  %v2950_v6 = vadd.f32 %v13687_v28, %v2930_v1 }
 0x439   : > { %v3068_v7 = vrot.slane %v3066_v25, 7  ;;  %v3103_v8 = vrot.slane %v3101_v5, 7  ;;  %v2907_v12 = vpop.f32.mrb[128].mxu1  ;;  %v3002_v16 = vld [vmem:[#allocation4 + $0x38] ss:$2 sm:$0x7] }
 0x43a   : > { %v2963_v55 = vmax.f32 %v2950_v6, 0.0  ;;  %v2931_v27 = vadd.f32 %v2907_v12, %v13682_v9  ;;  %v11020_v13 = vpop.f32.mrb[129].mxu1  ;;  %v3037_v18 = vld [vmem:[#allocation4 + $0x39] ss:$2 sm:$0x7]  ;;  %2975 = vst [vmem:[#allocation4 + $0x40] sm:$0xff] %v2962_v10 }
 0x43b   : > { %3070 = vst [vmem:[#allocation5 + $0x30] sm:$0xe] %v3068_v7  ;;  %3105 = vst [vmem:[#allocation5 + $0x38] sm:$0xe] %v3103_v8  ;;  %v3004_v20 = vrot.slane %v3002_v16, 4  ;;  %v3039_v14 = vrot.slane %v3037_v18, 4 }
 0x43c   : > { %2976 = vst [vmem:[#allocation4 + $0x48] sm:$0xff] %v2963_v55  ;;  %v2951_v22 = vadd.f32 %v13687_v28, %v2931_v27  ;;  %v2910_v15 = vpop.f32.mrb[130].mxu1  ;;  %v3120_v39 = vld [vmem:[#allocation5 + $0x8] sm:$0xff]  ;;  %v3119_v30 = vld [vmem:[#allocation5] sm:$0xff]  ;;  %v11240_v47 = vld [vmem:[%s15356_s5 + $0x124] ss:$8 sps:$4 sm:$0xff]  }
 0x43d   : > { %v11021_v17 = vpop.f32.mrb[131].mxu1  ;;  %3006 = vst [vmem:[#allocation5 + $0x20] sm:$0x70] %v3004_v20  ;;  %3041 = vst [vmem:[#allocation5 + $0x28] sm:$0x70] %v3039_v14 }
 0x43e   : > { %v2964_v58 = vmax.f32 %v2951_v22, 0.0  ;;  %v11235_v46 = vld [vmem:[%s15356_s5 + $0x110] ss:$8 sps:$4 sm:$0xff]   ;;  %v11243_v53 = vld [vmem:[%s15356_s5 + $0x134] ss:$8 sps:$4 sm:$0xff]  }
 0x43f   : > { %v2915_v60 = vpop.f32.mrb[132].mxu1  ;;  %v3122_v52 = vld [vmem:[#allocation5 + $0x18] sm:$0xff]  ;;  %v11241_v2 = vld [vmem:[%s15356_s5 + $0x130] ss:$8 sps:$4 sm:$0xff]   ;;  %v11249_v59 = vld [vmem:[%s15356_s5 + $0x154] ss:$8 sps:$4 sm:$0xff]  }
 0x440   : > { %2977 = vst [vmem:[#allocation4 + $0x50] sm:$0xff] %v2964_v58  ;;  %v11024_v31 = vpop.f32.mrb[133].mxu1  ;;  %v11246_v56 = vld [vmem:[%s15356_s5 + $0x144] ss:$8 sps:$4 sm:$0xff]   ;;  %v11244_v57 = vld [vmem:[%s15356_s5 + $0x140] ss:$8 sps:$4 sm:$0xff]  }
 0x441   : > { %v3008_v9 = vld [vmem:[#allocation4 + $0x3f] ss:$2 sm:$0x7]  ;;  %v3043_v24 = vld [vmem:[#allocation4 + $0x40] ss:$2 sm:$0x7] }
 0x442   : > { %v3010_v26 = vrot.slane %v3008_v9, 1  ;;  %v3045_v29 = vrot.slane %v3043_v24, 1  ;;  %v2918_v11 = vpop.f32.mrb[134].mxu1  ;;  %v11247_v61 = vld [vmem:[%s15356_s5 + $0x150] ss:$8 sps:$4 sm:$0xff]   ;;  %v3121_v58 = vld [vmem:[#allocation5 + $0x10] sm:$0xff] }
 0x443   : > { %v3072_v19 = vld [vmem:[#allocation4 + $0x46] ss:$2 sm:$0x7]  ;;  %v3107_v33 = vld [vmem:[#allocation4 + $0x47] ss:$2 sm:$0x7] }
 0x444   : > { %v3074_v32 = vrot.slane %v3072_v19, 4  ;;  %3012 = vst [vmem:[#allocation5 + $0x40] ss:$-28 sps:$4 sm:$0x83] %v3010_v26   ;;  %v3109_v34 = vrot.slane %v3107_v33, 4  ;;  %v11025_v28 = vpop.f32.mrb[135].mxu1 }
 0x445   : > { %3047 = vst [vmem:[#allocation5 + $0x48] ss:$-28 sps:$4 sm:$0x83] %v3045_v29   ;;  %v11252_v62 = vld [vmem:[%s15356_s5 + $0x164] ss:$8 sps:$4 sm:$0xff]  }
 0x446   : > { %3076 = vst [vmem:[#allocation5 + $0x30] sm:$0x70] %v3074_v32  ;;  %3111 = vst [vmem:[#allocation5 + $0x38] sm:$0x70] %v3109_v34  ;;  %v11250_v63 = vld [vmem:[%s15356_s5 + $0x160] ss:$8 sps:$4 sm:$0xff]  }
 0x447   : > { %v3078_v35 = vld [vmem:[#allocation4 + $0x4d] ss:$2 sm:$0x7]  ;;  %v3113_v36 = vld [vmem:[#allocation4 + $0x4e] ss:$2 sm:$0x7] }
 0x448   : > { %v3080_v37 = vrot.slane %v3078_v35, 1  ;;  %v3115_v38 = vrot.slane %v3113_v36, 1  ;;  %v11255_v0 = vld [vmem:[%s15356_s5 + $0x174] ss:$8 sps:$4 sm:$0xff]   ;;  %v11253_v1 = vld [vmem:[%s15356_s5 + $0x170] ss:$8 sps:$4 sm:$0xff]  }
 0x449   : > { %v11258_v3 = vld [vmem:[%s15356_s5 + $0x184] ss:$8 sps:$4 sm:$0xff]   ;;  %v11256_v4 = vld [vmem:[%s15356_s5 + $0x180] ss:$8 sps:$4 sm:$0xff]   ;;  %v11261_v25 = vld [vmem:[%s15356_s5 + $0x194] ss:$8 sps:$4 sm:$0xff]  }
 0x44a   : > { %3082 = vst [vmem:[#allocation5 + $0x50] ss:$-28 sps:$4 sm:$0x83] %v3080_v37   ;;  %3117 = vst [vmem:[#allocation5 + $0x58] ss:$-28 sps:$4 sm:$0x83] %v3115_v38  }
 0x44b   : > { %v3123_v40 = vld [vmem:[#allocation5 + $0x20] sm:$0xff]  ;;  %v11264_v6 = vld [vmem:[%s15356_s5 + $0x1a4] ss:$8 sps:$4 sm:$0xff]   ;;  %v11262_v7 = vld [vmem:[%s15356_s5 + $0x1a0] ss:$8 sps:$4 sm:$0xff]  }
 0x44c   : > { %v3124_v21 = vld [vmem:[#allocation5 + $0x28] sm:$0xff]  ;;  %v3131_v44 = vpack.c.bf16 %v3123_v40, %v3119_v30  ;;  %v3127_v48 = vld [vmem:[#allocation5 + $0x40] sm:$0x3]  ;;  %v11270_v12 = vld [vmem:[%s15356_s5 + $0x1c4] ss:$8 sps:$4 sm:$0xff]  }
 0x44d   : > { %v3128_v41 = vld [vmem:[#allocation5 + $0x48] sm:$0x3]  ;;  %v3132_v42 = vpack.c.bf16 %v3124_v21, %v3120_v39  ;;  %v3135_v51 = vpack.c.bf16 %v3127_v48, %v3127_v48  ;;  %v11267_v8 = vld [vmem:[%s15356_s5 + $0x1b4] ss:$8 sps:$4 sm:$0xff]   ;;  %v11268_v55 = vld [vmem:[%s15356_s5 + $0x1c0] ss:$8 sps:$4 sm:$0xff]  }
 0x44e   : > { %v3136_v23 = vpack.c.bf16 %v3128_v41, %v3128_v41  ;;  %v11259_v5 = vld [vmem:[%s15356_s5 + $0x190] ss:$8 sps:$4 sm:$0xff]   ;;  %v11273_v27 = vld [vmem:[%s15356_s5 + $0x1d4] ss:$8 sps:$4 sm:$0xff]   ;;  %v11276_v16 = vld [vmem:[%s15356_s5 + $0x1e4] ss:$8 sps:$4 sm:$0xff]  }
 0x44f   : > { %3567 = vmatprep.mubr.bf16.mxu0 %v3132_v42  ;;  %v11265_v10 = vld [vmem:[%s15356_s5 + $0x1b0] ss:$8 sps:$4 sm:$0xff]   ;;  %v11274_v18 = vld [vmem:[%s15356_s5 + $0x1e0] ss:$8 sps:$4 sm:$0xff]   ;;  %v11279_v20 = vld [vmem:[%s15356_s5 + $0x1f4] ss:$8 sps:$4 sm:$0xff]  }
 0x450   : > { %3568 = vmatmul.mubr.bf16.vlgmr.msra.gmra.mrb[76].mxu0 %v3131_v44  ;;  %v11271_v13 = vld [vmem:[%s15356_s5 + $0x1d0] ss:$8 sps:$4 sm:$0xff]   ;;  %v11285_v22 = vld [vmem:[%s15358_s7 + $0xc] ss:$16 sps:$4 sm:$0xff]   ;;  %v11336_v42 = vld [vmem:[%s15358_s7 + $0x124] ss:$16 sps:$4 sm:$0xff]  }
 0x451   : > { %3587 = vmatpush1.bf16.msra.mxu0 %v11232_v43  ;;  %3577 = vmatprep.mubr.bf16.mxu0 %v3136_v23  ;;  %v3126_v49 = vld [vmem:[#allocation5 + $0x38] sm:$0xff]  ;;  %v11277_v14 = vld [vmem:[%s15356_s5 + $0x1f0] ss:$8 sps:$4 sm:$0xff]   ;;  %v3125_v15 = vld [vmem:[#allocation5 + $0x30] sm:$0xff] }
 0x452   : > { %3588 = vmatprep.subr.bf16.mxu0 %v11237_v45  ;;  %v3134_v54 = vpack.c.bf16 %v3126_v49, %v3122_v52  ;;  %v3130_v17 = vld [vmem:[#allocation5 + $0x58] sm:$0x3]  ;;  %v3133_v9 = vpack.c.bf16 %v3125_v15, %v3121_v58  ;;  %v11291_v24 = vld [vmem:[%s15358_s7 + $0x2c] ss:$16 sps:$4 sm:$0xff]   ;;  %v3129_v31 = vld [vmem:[#allocation5 + $0x50] sm:$0x3]  ;;  %5313 = vmatprep.subr.bf16.mxu1 %v11336_v42 }
 0x453   : > { %v11283_v60 = vld [vmem:[%s15358_s7 + $0x8] ss:$16 sps:$4 sm:$0xff]   ;;  %v3138_v26 = vpack.c.bf16 %v3130_v17, %v3130_v17  ;;  %v11297_v19 = vld [vmem:[%s15358_s7 + $0x4c] ss:$16 sps:$4 sm:$0xff]   ;;  %v3137_v33 = vpack.c.bf16 %v3129_v31, %v3129_v31  ;;  %v11334_v44 = vld [vmem:[%s15358_s7 + $0x120] ss:$16 sps:$4 sm:$0xff]  }
 0x454   : > { %v11289_v29 = vld [vmem:[%s15358_s7 + $0x28] ss:$16 sps:$4 sm:$0xff]   ;;  %v11303_v11 = vld [vmem:[%s15358_s7 + $0x6c] ss:$16 sps:$4 sm:$0xff]   ;;  %5314 = vmatpush1.bf16.msra.mxu1 %v11334_v44  ;;  %v11342_v23 = vld [vmem:[%s15358_s7 + $0x144] ss:$16 sps:$4 sm:$0xff]  }
 0x455   : > { %3589 = vmatpush1.bf16.msra.mxu0 %v11235_v46  ;;  %v11295_v32 = vld [vmem:[%s15358_s7 + $0x48] ss:$16 sps:$4 sm:$0xff]   ;;  %v11309_v28 = vld [vmem:[%s15358_s7 + $0x8c] ss:$16 sps:$4 sm:$0xff]   ;;  %5315 = vmatprep.subr.bf16.mxu1 %v11342_v23  ;;  %v11348_v49 = vld [vmem:[%s15358_s7 + $0x164] ss:$16 sps:$4 sm:$0xff]  }
 0x456   : > { %3590 = vmatprep.subr.bf16.mxu0 %v11240_v47  ;;  %v11301_v34 = vld [vmem:[%s15358_s7 + $0x68] ss:$16 sps:$4 sm:$0xff]   ;;  %v11315_v36 = vld [vmem:[%s15358_s7 + $0xac] ss:$16 sps:$4 sm:$0xff]   ;;  %v11340_v47 = vld [vmem:[%s15358_s7 + $0x140] ss:$16 sps:$4 sm:$0xff]  }
 0x457   : > { %v11307_v35 = vld [vmem:[%s15358_s7 + $0x88] ss:$16 sps:$4 sm:$0xff]   ;;  %v11321_v38 = vld [vmem:[%s15358_s7 + $0xcc] ss:$16 sps:$4 sm:$0xff]  }
 0x458   : > { %3578 = vmatmul.mubr.bf16.gmra.mrb[80].mxu0 %v3135_v51  ;;  %v11313_v37 = vld [vmem:[%s15358_s7 + $0xa8] ss:$16 sps:$4 sm:$0xff]   ;;  %v11327_v30 = vld [vmem:[%s15358_s7 + $0xec] ss:$16 sps:$4 sm:$0xff]   ;;  %5316 = vmatpush1.bf16.msra.mxu1 %v11340_v47  ;;  %v11346_v51 = vld [vmem:[%s15358_s7 + $0x160] ss:$16 sps:$4 sm:$0xff]  }
 0x459   : > { %3591 = vmatpush1.bf16.msra.mxu0 %v11238_v50  ;;  %3618 = vmatprep.mubr.bf16.mxu0 %v3134_v54  ;;  %v11319_v39 = vld [vmem:[%s15358_s7 + $0xc8] ss:$16 sps:$4 sm:$0xff]   ;;  %v11333_v40 = vld [vmem:[%s15358_s7 + $0x10c] ss:$16 sps:$4 sm:$0xff]  }
 0x45a   : > { %3592 = vmatprep.subr.bf16.mxu0 %v11243_v53  ;;  %v11325_v21 = vld [vmem:[%s15358_s7 + $0xe8] ss:$16 sps:$4 sm:$0xff]   ;;  %v11339_v43 = vld [vmem:[%s15358_s7 + $0x12c] ss:$16 sps:$4 sm:$0xff]   ;;  %5317 = vmatprep.subr.bf16.mxu1 %v11348_v49  ;;  %v11354_v53 = vld [vmem:[%s15358_s7 + $0x184] ss:$16 sps:$4 sm:$0xff]  }
 0x45b   : > { %v11331_v41 = vld [vmem:[%s15358_s7 + $0x108] ss:$16 sps:$4 sm:$0xff]   ;;  %v11345_v46 = vld [vmem:[%s15358_s7 + $0x14c] ss:$16 sps:$4 sm:$0xff]   ;;  %v11376_v49 = vld [vmem:[%s15358_s7 + $0x200] ss:$16 sps:$4 sm:$0xff]  }
 0x45c   : > { %v11337_v45 = vld [vmem:[%s15358_s7 + $0x128] ss:$16 sps:$4 sm:$0xff]   ;;  %v11351_v50 = vld [vmem:[%s15358_s7 + $0x16c] ss:$16 sps:$4 sm:$0xff]   ;;  %5318 = vmatpush1.bf16.msra.mxu1 %v11346_v51 }
 0x45d   : > { %3593 = vmatpush1.bf16.msra.mxu0 %v11241_v2  ;;  %v11343_v48 = vld [vmem:[%s15358_s7 + $0x148] ss:$16 sps:$4 sm:$0xff]   ;;  %v11357_v54 = vld [vmem:[%s15358_s7 + $0x18c] ss:$16 sps:$4 sm:$0xff]   ;;  %v11352_v2 = vld [vmem:[%s15358_s7 + $0x180] ss:$16 sps:$4 sm:$0xff]   ;;  %5319 = vmatprep.subr.bf16.mxu1 %v11354_v53 }
 0x45e   : > { %3594 = vmatprep.subr.bf16.mxu0 %v11246_v56  ;;  %v11349_v52 = vld [vmem:[%s15358_s7 + $0x168] ss:$16 sps:$4 sm:$0xff]  }
 0x45f   : > { %v11355_v56 = vld [vmem:[%s15358_s7 + $0x188] ss:$16 sps:$4 sm:$0xff]  }
 0x460   : > { %5320 = vmatpush1.bf16.msra.mxu1 %v11352_v2  ;;  %v11388_v2 = vld [vmem:[%s15358_s7 + $0x22c] ss:$16 sps:$4 sm:$0xff]  }
 0x461   : > { %3595 = vmatpush1.bf16.msra.mxu0 %v11244_v57  ;;  %v11360_v57 = vld [vmem:[%s15358_s7 + $0x1a4] ss:$16 sps:$4 sm:$0xff]  }
 0x462   : > { %3596 = vmatprep.subr.bf16.mxu0 %v11249_v59  ;;  %v11363_v59 = vld [vmem:[%s15358_s7 + $0x1ac] ss:$16 sps:$4 sm:$0xff]   ;;  %5321 = vmatprep.subr.bf16.mxu1 %v11360_v57  ;;  %v11386_v57 = vld [vmem:[%s15358_s7 + $0x228] ss:$16 sps:$4 sm:$0xff]  }
 0x465   : > { %3597 = vmatpush1.bf16.msra.mxu0 %v11247_v61  ;;  %v11358_v61 = vld [vmem:[%s15358_s7 + $0x1a0] ss:$16 sps:$4 sm:$0xff]  }
 0x466   : > { %3598 = vmatprep.subr.bf16.mxu0 %v11252_v62  ;;  %v11361_v62 = vld [vmem:[%s15358_s7 + $0x1a8] ss:$16 sps:$4 sm:$0xff]   ;;  %5322 = vmatpush1.bf16.msra.mxu1 %v11358_v61  ;;  %v11394_v61 = vld [vmem:[%s15358_s7 + $0x24c] ss:$16 sps:$4 sm:$0xff]  }
 0x469   : > { %3599 = vmatpush1.bf16.msra.mxu0 %v11250_v63  ;;  %v11366_v63 = vld [vmem:[%s15358_s7 + $0x1c4] ss:$16 sps:$4 sm:$0xff]  }
 0x46a   : > { %3600 = vmatprep.subr.bf16.mxu0 %v11255_v0  ;;  %v11369_v0 = vld [vmem:[%s15358_s7 + $0x1cc] ss:$16 sps:$4 sm:$0xff]   ;;  %5323 = vmatprep.subr.bf16.mxu1 %v11366_v63  ;;  %v11392_v63 = vld [vmem:[%s15358_s7 + $0x248] ss:$16 sps:$4 sm:$0xff]  }
 0x46d   : > { %3601 = vmatpush1.bf16.msra.mxu0 %v11253_v1  ;;  %v11364_v1 = vld [vmem:[%s15358_s7 + $0x1c0] ss:$16 sps:$4 sm:$0xff]  }
 0x46e   : > { %3602 = vmatprep.subr.bf16.mxu0 %v11258_v3  ;;  %v11367_v3 = vld [vmem:[%s15358_s7 + $0x1c8] ss:$16 sps:$4 sm:$0xff]   ;;  %5324 = vmatpush1.bf16.msra.mxu1 %v11364_v1  ;;  %v11400_v1 = vld [vmem:[%s15358_s7 + $0x26c] ss:$16 sps:$4 sm:$0xff]  }
 0x471   : > { %3603 = vmatpush1.bf16.msra.mxu0 %v11256_v4  ;;  %v11372_v4 = vld [vmem:[%s15358_s7 + $0x1e4] ss:$16 sps:$4 sm:$0xff]  }
 0x472   : > { %3604 = vmatprep.subr.bf16.mxu0 %v11261_v25  ;;  %v11375_v25 = vld [vmem:[%s15358_s7 + $0x1ec] ss:$16 sps:$4 sm:$0xff]   ;;  %5325 = vmatprep.subr.bf16.mxu1 %v11372_v4  ;;  %v11398_v4 = vld [vmem:[%s15358_s7 + $0x268] ss:$16 sps:$4 sm:$0xff]  }
 0x475   : > { %3605 = vmatpush1.bf16.msra.mxu0 %v11259_v5  ;;  %v11370_v5 = vld [vmem:[%s15358_s7 + $0x1e0] ss:$16 sps:$4 sm:$0xff]  }
 0x476   : > { %3606 = vmatprep.subr.bf16.mxu0 %v11264_v6  ;;  %v11373_v6 = vld [vmem:[%s15358_s7 + $0x1e8] ss:$16 sps:$4 sm:$0xff]   ;;  %5326 = vmatpush1.bf16.msra.mxu1 %v11370_v5  ;;  %v11406_v5 = vld [vmem:[%s15358_s7 + $0x28c] ss:$16 sps:$4 sm:$0xff]  }
 0x479   : > { %3607 = vmatpush1.bf16.msra.mxu0 %v11262_v7  ;;  %v11378_v7 = vld [vmem:[%s15358_s7 + $0x204] ss:$16 sps:$4 sm:$0xff]  }
 0x47a   : > { %3608 = vmatprep.subr.bf16.mxu0 %v11267_v8  ;;  %v11381_v8 = vld [vmem:[%s15358_s7 + $0x20c] ss:$16 sps:$4 sm:$0xff]   ;;  %5336 = vmatprep.subr.bf16.mxu1 %v11378_v7  ;;  %v11404_v7 = vld [vmem:[%s15358_s7 + $0x288] ss:$16 sps:$4 sm:$0xff]  }
 0x47d   : > { %3609 = vmatpush1.bf16.msra.mxu0 %v11265_v10  ;;  %v3205_v10 = vlaneseq }
 0x47e   : > { %3610 = vmatprep.subr.bf16.mxu0 %v11270_v12 }
 0x47f   : > { %v13998_v12 = vshrl.u32 %v3205_v10, 7  ;;  %vm14009_vm4 = vcmp.lt.s32.totalorder %v3205_v10, 256  ;;  %v11412_v10 = vld [vmem:[%s15358_s7 + $0x2ac] ss:$16 sps:$4 sm:$0xff]  }
 0x481   : > { %3611 = vmatpush1.bf16.msra.mxu0 %v11268_v55  ;;  %v3207_v55 = vsub.s32 0, %v13998_v12 }
 0x482   : > { %3612 = vmatprep.subr.bf16.mxu0 %v11273_v27  ;;  %v3203_v27 = vld [vmem:[%s15357_s6] sm:$0x3] }
 0x485   : > { %3613 = vmatpush1.bf16.msra.mxu0 %v11271_v13  ;;  %v3211_v13 = vsub.s32 1, %v13998_v12 }
 0x486   : > { %3614 = vmatprep.subr.bf16.mxu0 %v11276_v16  ;;  %v3208_v16 = vrot.slane %v3203_v27, %v3207_v55 }
 0x489   : > { %3615 = vmatpush1.bf16.msra.mxu0 %v11274_v18  ;;  %v3212_v18 = vrot.slane %v3203_v27, %v3211_v13  ;;  %v11407_v27 = vld [vmem:[%s15358_s7 + $0x2a0] ss:$16 sps:$4 sm:$0xff]  }
 0x48a   : > { %3616 = vmatprep.subr.bf16.mxu0 %v11279_v20 }
 0x48d   : > { %3617 = vmatpush1.bf16.msra.mxu0 %v11277_v14 }
 0x48e   : > { %5459 = vmatprep.subr.bf16.mxu0 %v11285_v22 }
 0x490   : > { %3619 = vmatmul.mubr.bf16.vlgmr.msra.gmra.mrb[76].mxu0 %v3133_v9 }
 0x491   : > { %3628 = vmatprep.mubr.bf16.mxu0 %v3138_v26  ;;  %5460 = vmatpush1.bf16.msra.mxu0 %v11283_v60 }
 0x492   : > { %5461 = vmatprep.subr.bf16.mxu0 %v11291_v24 }
 0x495   : > { %5462 = vmatpush1.bf16.msra.mxu0 %v11289_v29 }
 0x496   : > { %5463 = vmatprep.subr.bf16.mxu0 %v11297_v19 }
 0x498   : > { %3629 = vmatmul.mubr.bf16.gmra.mrb[80].mxu0 %v3137_v33 }
 0x499   : > { %5464 = vmatpush1.bf16.msra.mxu0 %v11295_v32 }
 0x49a   : > { %5465 = vmatprep.subr.bf16.mxu0 %v11303_v11  ;;  %v11439_v11 = vld [vmem:[%s15358_s7 + $0x344] ss:$16 sps:$4 sm:$0xff]  }
 0x49d   : > { %5466 = vmatpush1.bf16.msra.mxu0 %v11301_v34 }
 0x49e   : > { %5467 = vmatprep.subr.bf16.mxu0 %v11309_v28  ;;  %v11763_v28 = vmov 1983009808  }
 0x4a1   : > { %5468 = vmatpush1.bf16.msra.mxu0 %v11307_v35  ;;  %v3689_v35 = vunpack.c.l.s4 %v11763_v28  ;;  %v11437_v28 = vld [vmem:[%s15358_s7 + $0x340] ss:$16 sps:$4 sm:$0xff]  }
 0x4a2   : > { %5469 = vmatprep.subr.bf16.mxu0 %v11315_v36 }
 0x4a5   : > { %5470 = vmatpush1.bf16.msra.mxu0 %v11313_v37 }
 0x4a6   : > { %5471 = vmatprep.subr.bf16.mxu0 %v11321_v38 }
 0x4a9   : > { %5472 = vmatpush1.bf16.msra.mxu0 %v11319_v39 }
 0x4aa   : > { %5473 = vmatprep.subr.bf16.mxu0 %v11327_v30 }
 0x4ad   : > { %5474 = vmatpush1.bf16.msra.mxu0 %v11325_v21 }
 0x4ae   : > { %5475 = vmatprep.subr.bf16.mxu0 %v11333_v40  ;;  %v3690_v40 = vunpack.c.0.s8 %v3689_v35  ;;  %v11440_v35 = vld [vmem:[%s15358_s7 + $0x348] ss:$16 sps:$4 sm:$0xff]  }
 0x4b1   : > { %5476 = vmatpush1.bf16.msra.mxu0 %v11331_v41 }
 0x4b2   : > { %5477 = vmatprep.subr.bf16.mxu0 %v11339_v43  ;;  %v14030_v43 = vsub.s32 %v3690_v40, %v13998_v12  ;;  %v11449_v40 = vld [vmem:[%s15358_s7 + $0x380] ss:$16 sps:$4 sm:$0xff]  }
 0x4b5   : > { %5478 = vmatpush1.bf16.msra.mxu0 %v11337_v45 }
 0x4b6   : > { %5479 = vmatprep.subr.bf16.mxu0 %v11345_v46 }
 0x4b9   : > { %5480 = vmatpush1.bf16.msra.mxu0 %v11343_v48 }
 0x4ba   : > { %5481 = vmatprep.subr.bf16.mxu0 %v11351_v50  ;;  %v11379_v50 = vld [vmem:[%s15358_s7 + $0x208] ss:$16 sps:$4 sm:$0xff]  }
 0x4bd   : > { %5482 = vmatpush1.bf16.msra.mxu0 %v11349_v52 }
 0x4be   : > { %5483 = vmatprep.subr.bf16.mxu0 %v11357_v54  ;;  %v11385_v54 = vld [vmem:[%s15358_s7 + $0x224] ss:$16 sps:$4 sm:$0xff]  }
 0x4c1   : > { %5484 = vmatpush1.bf16.msra.mxu0 %v11355_v56  ;;  %v11383_v56 = vld [vmem:[%s15358_s7 + $0x220] ss:$16 sps:$4 sm:$0xff]  }
 0x4c2   : > { %5485 = vmatprep.subr.bf16.mxu0 %v11363_v59  ;;  %v11391_v59 = vld [vmem:[%s15358_s7 + $0x244] ss:$16 sps:$4 sm:$0xff]  }
 0x4c5   : > { %5486 = vmatpush1.bf16.msra.mxu0 %v11361_v62  ;;  %v11389_v62 = vld [vmem:[%s15358_s7 + $0x240] ss:$16 sps:$4 sm:$0xff]  }
 0x4c6   : > { %5487 = vmatprep.subr.bf16.mxu0 %v11369_v0  ;;  %v11397_v0 = vld [vmem:[%s15358_s7 + $0x264] ss:$16 sps:$4 sm:$0xff]  }
 0x4c9   : > { %5488 = vmatpush1.bf16.msra.mxu0 %v11367_v3  ;;  %v11395_v3 = vld [vmem:[%s15358_s7 + $0x260] ss:$16 sps:$4 sm:$0xff]  }
 0x4ca   : > { %5489 = vmatprep.subr.bf16.mxu0 %v11375_v25  ;;  %v11403_v25 = vld [vmem:[%s15358_s7 + $0x284] ss:$16 sps:$4 sm:$0xff]  }
 0x4cd   : > { %5490 = vmatpush1.bf16.msra.mxu0 %v11373_v6  ;;  %v11401_v6 = vld [vmem:[%s15358_s7 + $0x280] ss:$16 sps:$4 sm:$0xff]  }
 0x4ce   : > { %5500 = vmatprep.subr.bf16.mxu0 %v11381_v8  ;;  %v11409_v8 = vld [vmem:[%s15358_s7 + $0x2a4] ss:$16 sps:$4 sm:$0xff]  }
 0x563   : > { %v3620_v20 = vpop.f32.mrb[76].mxu0 }
 0x564   : > { %v11028_v14 = vadd.f32 %v3620_v20, %v3208_v16  ;;  %v3622_v22 = vpop.f32.mrb[77].mxu0  ;;  %v11418_v20 = vld [vmem:[%s15358_s7 + $0x2cc] ss:$16 sps:$4 sm:$0xff]  }
 0x565   : > { %v11029_v15 = vadd.f32 %v3622_v22, %v3212_v18  ;;  %v3624_v17 = vpop.f32.mrb[78].mxu0  ;;  %v11416_v22 = vld [vmem:[%s15358_s7 + $0x2c8] ss:$16 sps:$4 sm:$0xff]  }
 0x566   : > { %v3637_v58 = vmax.f32 %v11028_v14, 0.0  ;;  %v11030_v60 = vadd.f32 %v3624_v17, %v3208_v16  ;;  %v3626_v9 = vpop.f32.mrb[79].mxu0  ;;  %v11410_v16 = vld [vmem:[%s15358_s7 + $0x2a8] ss:$16 sps:$4 sm:$0xff]   ;;  %v11413_v14 = vld [vmem:[%s15358_s7 + $0x2c0] ss:$16 sps:$4 sm:$0xff]  }
 0x567   : > { %v3638_v24 = vmax.f32 %v11029_v15, 0.0  ;;  %v11031_v26 = vadd.f32 %v3626_v9, %v3212_v18  ;;  %v11415_v18 = vld [vmem:[%s15358_s7 + $0x2c4] ss:$16 sps:$4 sm:$0xff]   ;;  %v11424_v17 = vld [vmem:[%s15358_s7 + $0x2ec] ss:$16 sps:$4 sm:$0xff]  }
 0x568   : > { %3643 = vst [vmem:[#allocation6] sm:$0xff] %v3637_v58  ;;  %v3639_v29 = vmax.f32 %v11030_v60, 0.0  ;;  %v11421_v15 = vld [vmem:[%s15358_s7 + $0x2e4] ss:$16 sps:$4 sm:$0xff]   ;;  %v11419_v58 = vld [vmem:[%s15358_s7 + $0x2e0] ss:$16 sps:$4 sm:$0xff]  }
 0x569   : > { %3644 = vst [vmem:[#allocation6 + $0x8] sm:$0xff] %v3638_v24  ;;  %v3640_v19 = vmax.f32 %v11031_v26, 0.0  ;;  %v11422_v60 = vld [vmem:[%s15358_s7 + $0x2e8] ss:$16 sps:$4 sm:$0xff]   ;;  %v11427_v9 = vld [vmem:[%s15358_s7 + $0x304] ss:$16 sps:$4 sm:$0xff]  }
 0x56a   : > { %3645 = vst [vmem:[#allocation6 + $0x10] sm:$0xff] %v3639_v29  ;;  %v11430_v24 = vld [vmem:[%s15358_s7 + $0x30c] ss:$16 sps:$4 sm:$0xff]   ;;  %v11425_v26 = vld [vmem:[%s15358_s7 + $0x300] ss:$16 sps:$4 sm:$0xff]  }
 0x56b   : > { %3646 = vst [vmem:[#allocation6 + $0x18] sm:$0xff] %v3640_v19  ;;  %v3630_v31 = vpop.f32.mrb[80].mxu0  ;;  %v11428_v29 = vld [vmem:[%s15358_s7 + $0x308] ss:$16 sps:$4 sm:$0xff]   ;;  %v11433_v19 = vld [vmem:[%s15358_s7 + $0x324] ss:$16 sps:$4 sm:$0xff]  }
 0x56c   : > { %v3632_v32 = vpop.f32.mrb[81].mxu0  ;;  %v11436_v31 = vld [vmem:[%s15358_s7 + $0x32c] ss:$16 sps:$4 sm:$0xff]  }
 0x56d   : > { %v3634_v33 = vpop.f32.mrb[82].mxu0  ;;  %v11431_v32 = vld [vmem:[%s15358_s7 + $0x320] ss:$16 sps:$4 sm:$0xff]  }
 0x56e   : > { %v3635_v34 = vpop.f32.mrb[83].mxu0  ;;  %v11434_v33 = vld [vmem:[%s15358_s7 + $0x328] ss:$16 sps:$4 sm:$0xff]  }
 0x56f   : > { %v11442_v34 = vld [vmem:[%s15358_s7 + $0x34c] ss:$16 sps:$4 sm:$0xff]  }
 0x570   : > { %v3649_v36 = vld [vmem:[#allocation6] ss:$8 sm:$0x3]  ;;  %v3656_v37 = vld [vmem:[#allocation6 + $0x3] ss:$8 sm:$0x3] }
 0x571   : > { %3654 = vst.msk [vmem:[#allocation7] ss:$2 sm:$0x3] %vm14009_vm4, %v3649_v36  ;;  %3658 = vst.msk [vmem:[#allocation7 + $0x1] ss:$2 sm:$0x3] %vm14009_vm4, %v3656_v37 }
 0x572   : > { %v3660_v38 = vld [vmem:[#allocation6 + $0x1] ss:$8 sm:$0x3]  ;;  %v3664_v39 = vld [vmem:[#allocation6 + $0x4] ss:$8 sm:$0x3] }
 0x573   : > { %3662 = vst.msk [vmem:[#allocation7 + $0x4] ss:$2 sm:$0x3] %vm14009_vm4, %v3660_v38  ;;  %3666 = vst.msk [vmem:[#allocation7 + $0x5] ss:$2 sm:$0x3] %vm14009_vm4, %v3664_v39 }
 0x574   : > { %v3668_v30 = vld [vmem:[#allocation6 + $0x6] ss:$8 sm:$0x3]  ;;  %v3676_v21 = vld [vmem:[#allocation6 + $0x7] ss:$8 sm:$0x3] }
 0x575   : > { %3670 = vst.msk [vmem:[#allocation7 + $0x8] ss:$2 sm:$0x3] %vm14009_vm4, %v3668_v30  ;;  %3678 = vst.msk [vmem:[#allocation7 + $0xc] ss:$2 sm:$0x3] %vm14009_vm4, %v3676_v21 }
 0x576   : > { %v3672_v41 = vld [vmem:[#allocation6 + $0x11] ss:$8 sm:$0x3]  ;;  %v3680_v42 = vld [vmem:[#allocation6 + $0x12] ss:$8 sm:$0x3] }
 0x577   : > { %3674 = vst.msk [vmem:[#allocation7 + $0x9] ss:$2 sm:$0x3] %vm14009_vm4, %v3672_v41  ;;  %3682 = vst.msk [vmem:[#allocation7 + $0xd] ss:$2 sm:$0x3] %vm14009_vm4, %v3680_v42 }
 0x578   : > { %v11445_v36 = vld [vmem:[%s15358_s7 + $0x364] ss:$16 sps:$4 sm:$0xff]   ;;  %v11448_v37 = vld [vmem:[%s15358_s7 + $0x36c] ss:$16 sps:$4 sm:$0xff]   ;;  %v11443_v38 = vld [vmem:[%s15358_s7 + $0x360] ss:$16 sps:$4 sm:$0xff]  }
 0x579   : > { %v11446_v39 = vld [vmem:[%s15358_s7 + $0x368] ss:$16 sps:$4 sm:$0xff]   ;;  %v11451_v30 = vld [vmem:[%s15358_s7 + $0x384] ss:$16 sps:$4 sm:$0xff]   ;;  %v11454_v21 = vld [vmem:[%s15358_s7 + $0x38c] ss:$16 sps:$4 sm:$0xff]  }
 0x57a   : > { %v3683_v44 = vld [vmem:[#allocation7] sm:$0xff]  ;;  %v11452_v41 = vld [vmem:[%s15358_s7 + $0x388] ss:$16 sps:$4 sm:$0xff]  }
 0x57b   : > { %v3694_v45 = vrot.slane %v3683_v44, %v14030_v43  ;;  %v3687_v23 = vcombine.high %v3683_v44, %v3683_v44  ;;  %v11457_v42 = vld [vmem:[%s15358_s7 + $0x3a4] ss:$16 sps:$4 sm:$0xff]   ;;  %v11460_v44 = vld [vmem:[%s15358_s7 + $0x3ac] ss:$16 sps:$4 sm:$0xff]  }
 0x57d   : > { %v3702_v46 = vcombine.high %v3694_v45, %v3694_v45  ;;  %v14034_v47 = vrot.slane %v3687_v23, %v14030_v43  ;;  %v3729_v52 = vpack.c.bf16 %v3694_v45, %v3694_v45  ;;  %v11455_v45 = vld [vmem:[%s15358_s7 + $0x3a0] ss:$16 sps:$4 sm:$0xff]   ;;  %v11458_v23 = vld [vmem:[%s15358_s7 + $0x3a8] ss:$16 sps:$4 sm:$0xff]  }
 0x57f   : > { %v3730_v48 = vpack.c.bf16 %v3702_v46, %v3702_v46  ;;  %v3703_v51 = vcombine.high %v14034_v47, %v14034_v47  ;;  %v11463_v46 = vld [vmem:[%s15358_s7 + $0x3c4] ss:$16 sps:$4 sm:$0xff]  }
 0x581   : > { %5327 = vmatprep.mubr.bf16.mxu1 %v3730_v48  ;;  %5491 = vmatprep.mubr.bf16.mxu0 %v3730_v48  ;;  %v3732_v53 = vpack.c.bf16 %v3703_v51, %v3703_v51  ;;  %v11466_v48 = vld [vmem:[%s15358_s7 + $0x3cc] ss:$16 sps:$4 sm:$0xff]   ;;  %v11464_v51 = vld [vmem:[%s15358_s7 + $0x3c8] ss:$16 sps:$4 sm:$0xff]  }
 0x582   : > { %5328 = vmatmul.mubr.bf16.vlgmr.msra.gmra.mrb[136].mxu1 %v3729_v52  ;;  %5492 = vmatmul.mubr.bf16.vlgmr.msra.gmra.mrb[84].mxu0 %v3729_v52  ;;  %v11469_v52 = vld [vmem:[%s15358_s7 + $0x3e4] ss:$16 sps:$4 sm:$0xff]  }
 0x583   : > { %5337 = vmatpush1.bf16.msra.mxu1 %v11376_v49  ;;  %5501 = vmatpush1.bf16.msra.mxu0 %v11379_v50  ;;  %v14206_v49 = vld [vmem:[#allocation7 + $0x8] sm:$0xff]  ;;  %v11461_v50 = vld [vmem:[%s15358_s7 + $0x3c0] ss:$16 sps:$4 sm:$0xff]  }
 0x584   : > { %5368 = vmatprep.mubr.bf16.mxu1 %v3732_v53  ;;  %5532 = vmatprep.mubr.bf16.mxu0 %v3732_v53  ;;  %v11472_v53 = vld [vmem:[%s15358_s7 + $0x3ec] ss:$16 sps:$4 sm:$0xff]  }
 0x585   : > { %5338 = vmatprep.subr.bf16.mxu1 %v11385_v54  ;;  %5502 = vmatprep.subr.bf16.mxu0 %v11388_v2  ;;  %v14222_v54 = vrot.slane %v14206_v49, %v14030_v43  ;;  %v11467_v2 = vld [vmem:[%s15358_s7 + $0x3e0] ss:$16 sps:$4 sm:$0xff]  }
 0x587   : > { %5339 = vmatpush1.bf16.msra.mxu1 %v11383_v56  ;;  %5503 = vmatpush1.bf16.msra.mxu0 %v11386_v57  ;;  %v11470_v56 = vld [vmem:[%s15358_s7 + $0x3e8] ss:$16 sps:$4 sm:$0xff]   ;;  %v11475_v57 = vld [vmem:[%s15358_s7 + $0x404] ss:$16 sps:$4 sm:$0xff]  }
 0x588   : > { %5340 = vmatprep.subr.bf16.mxu1 %v11391_v59  ;;  %5504 = vmatprep.subr.bf16.mxu0 %v11394_v61  ;;  %v11478_v59 = vld [vmem:[%s15358_s7 + $0x40c] ss:$16 sps:$4 sm:$0xff]   ;;  %v3719_v61 = vcombine.high %v14222_v54, %v14222_v54 }
 0x58b   : > { %5341 = vmatpush1.bf16.msra.mxu1 %v11389_v62  ;;  %5505 = vmatpush1.bf16.msra.mxu0 %v11392_v63  ;;  %v11473_v62 = vld [vmem:[%s15358_s7 + $0x400] ss:$16 sps:$4 sm:$0xff]   ;;  %v3731_v63 = vpack.c.bf16 %v14034_v47, %v14034_v47 }
 0x58c   : > { %5342 = vmatprep.subr.bf16.mxu1 %v11397_v0  ;;  %5506 = vmatprep.subr.bf16.mxu0 %v11400_v1  ;;  %v11476_v0 = vld [vmem:[%s15358_s7 + $0x408] ss:$16 sps:$4 sm:$0xff]   ;;  %v3734_v1 = vpack.c.bf16 %v3719_v61, %v3719_v61  ;;  %v11479_v47 = vld [vmem:[%s15358_s7 + $0x420] ss:$16 sps:$4 sm:$0xff]   ;;  %v11562_v61 = vld [vmem:[%s15358_s7 + $0x5cc] ss:$16 sps:$4 sm:$0xff]  }
 0x58f   : > { %5343 = vmatpush1.bf16.msra.mxu1 %v11395_v3  ;;  %5507 = vmatpush1.bf16.msra.mxu0 %v11398_v4  ;;  %v11481_v3 = vld [vmem:[%s15358_s7 + $0x424] ss:$16 sps:$4 sm:$0xff]   ;;  %v11484_v4 = vld [vmem:[%s15358_s7 + $0x42c] ss:$16 sps:$4 sm:$0xff]  }
 0x590   : > { %5344 = vmatprep.subr.bf16.mxu1 %v11403_v25  ;;  %5508 = vmatprep.subr.bf16.mxu0 %v11406_v5  ;;  %v11482_v25 = vld [vmem:[%s15358_s7 + $0x428] ss:$16 sps:$4 sm:$0xff]   ;;  %v11487_v5 = vld [vmem:[%s15358_s7 + $0x444] ss:$16 sps:$4 sm:$0xff]  }
 0x593   : > { %5345 = vmatpush1.bf16.msra.mxu1 %v11401_v6  ;;  %5509 = vmatpush1.bf16.msra.mxu0 %v11404_v7  ;;  %v11490_v6 = vld [vmem:[%s15358_s7 + $0x44c] ss:$16 sps:$4 sm:$0xff]   ;;  %v11485_v7 = vld [vmem:[%s15358_s7 + $0x440] ss:$16 sps:$4 sm:$0xff]  }
 0x594   : > { %5346 = vmatprep.subr.bf16.mxu1 %v11409_v8  ;;  %5510 = vmatprep.subr.bf16.mxu0 %v11412_v10  ;;  %v11488_v8 = vld [vmem:[%s15358_s7 + $0x448] ss:$16 sps:$4 sm:$0xff]   ;;  %v11493_v10 = vld [vmem:[%s15358_s7 + $0x464] ss:$16 sps:$4 sm:$0xff]  }
 0x597   : > { %5347 = vmatpush1.bf16.msra.mxu1 %v11407_v27  ;;  %5511 = vmatpush1.bf16.msra.mxu0 %v11410_v16  ;;  %v11496_v27 = vld [vmem:[%s15358_s7 + $0x46c] ss:$16 sps:$4 sm:$0xff]   ;;  %v11491_v16 = vld [vmem:[%s15358_s7 + $0x460] ss:$16 sps:$4 sm:$0xff]  }
 0x598   : > { %5348 = vmatprep.subr.bf16.mxu1 %v11415_v18  ;;  %5512 = vmatprep.subr.bf16.mxu0 %v11418_v20  ;;  %v11494_v18 = vld [vmem:[%s15358_s7 + $0x468] ss:$16 sps:$4 sm:$0xff]   ;;  %v11499_v20 = vld [vmem:[%s15358_s7 + $0x484] ss:$16 sps:$4 sm:$0xff]  }
 0x59b   : > { %5349 = vmatpush1.bf16.msra.mxu1 %v11413_v14  ;;  %5513 = vmatpush1.bf16.msra.mxu0 %v11416_v22  ;;  %v11502_v14 = vld [vmem:[%s15358_s7 + $0x48c] ss:$16 sps:$4 sm:$0xff]   ;;  %v11497_v22 = vld [vmem:[%s15358_s7 + $0x480] ss:$16 sps:$4 sm:$0xff]  }
 0x59c   : > { %5350 = vmatprep.subr.bf16.mxu1 %v11421_v15  ;;  %5514 = vmatprep.subr.bf16.mxu0 %v11424_v17  ;;  %v11500_v15 = vld [vmem:[%s15358_s7 + $0x488] ss:$16 sps:$4 sm:$0xff]   ;;  %v11505_v17 = vld [vmem:[%s15358_s7 + $0x4a4] ss:$16 sps:$4 sm:$0xff]  }
 0x59f   : > { %5351 = vmatpush1.bf16.msra.mxu1 %v11419_v58  ;;  %5515 = vmatpush1.bf16.msra.mxu0 %v11422_v60  ;;  %v11508_v58 = vld [vmem:[%s15358_s7 + $0x4ac] ss:$16 sps:$4 sm:$0xff]   ;;  %v11503_v60 = vld [vmem:[%s15358_s7 + $0x4a0] ss:$16 sps:$4 sm:$0xff]  }
 0x5a0   : > { %5352 = vmatprep.subr.bf16.mxu1 %v11427_v9  ;;  %5516 = vmatprep.subr.bf16.mxu0 %v11430_v24  ;;  %v11506_v9 = vld [vmem:[%s15358_s7 + $0x4a8] ss:$16 sps:$4 sm:$0xff]   ;;  %v11511_v24 = vld [vmem:[%s15358_s7 + $0x4c4] ss:$16 sps:$4 sm:$0xff]  }
 0x5a3   : > { %5353 = vmatpush1.bf16.msra.mxu1 %v11425_v26  ;;  %5517 = vmatpush1.bf16.msra.mxu0 %v11428_v29  ;;  %v11514_v26 = vld [vmem:[%s15358_s7 + $0x4cc] ss:$16 sps:$4 sm:$0xff]   ;;  %v11509_v29 = vld [vmem:[%s15358_s7 + $0x4c0] ss:$16 sps:$4 sm:$0xff]  }
 0x5a4   : > { %5354 = vmatprep.subr.bf16.mxu1 %v11433_v19  ;;  %5518 = vmatprep.subr.bf16.mxu0 %v11436_v31  ;;  %v11512_v19 = vld [vmem:[%s15358_s7 + $0x4c8] ss:$16 sps:$4 sm:$0xff]   ;;  %v11517_v31 = vld [vmem:[%s15358_s7 + $0x4e4] ss:$16 sps:$4 sm:$0xff]  }
 0x5a7   : > { %5355 = vmatpush1.bf16.msra.mxu1 %v11431_v32  ;;  %5519 = vmatpush1.bf16.msra.mxu0 %v11434_v33  ;;  %v11520_v32 = vld [vmem:[%s15358_s7 + $0x4ec] ss:$16 sps:$4 sm:$0xff]   ;;  %v11515_v33 = vld [vmem:[%s15358_s7 + $0x4e0] ss:$16 sps:$4 sm:$0xff]  }
 0x5a8   : > { %5356 = vmatprep.subr.bf16.mxu1 %v11439_v11  ;;  %5520 = vmatprep.subr.bf16.mxu0 %v11442_v34  ;;  %v11518_v11 = vld [vmem:[%s15358_s7 + $0x4e8] ss:$16 sps:$4 sm:$0xff]   ;;  %v11523_v34 = vld [vmem:[%s15358_s7 + $0x504] ss:$16 sps:$4 sm:$0xff]  }
 0x5ab   : > { %5357 = vmatpush1.bf16.msra.mxu1 %v11437_v28  ;;  %5521 = vmatpush1.bf16.msra.mxu0 %v11440_v35  ;;  %v11526_v28 = vld [vmem:[%s15358_s7 + $0x50c] ss:$16 sps:$4 sm:$0xff]   ;;  %v11521_v35 = vld [vmem:[%s15358_s7 + $0x500] ss:$16 sps:$4 sm:$0xff]  }
 0x5ac   : > { %5358 = vmatprep.subr.bf16.mxu1 %v11445_v36  ;;  %5522 = vmatprep.subr.bf16.mxu0 %v11448_v37  ;;  %v11524_v36 = vld [vmem:[%s15358_s7 + $0x508] ss:$16 sps:$4 sm:$0xff]   ;;  %v11529_v37 = vld [vmem:[%s15358_s7 + $0x524] ss:$16 sps:$4 sm:$0xff]  }
 0x5af   : > { %5359 = vmatpush1.bf16.msra.mxu1 %v11443_v38  ;;  %5523 = vmatpush1.bf16.msra.mxu0 %v11446_v39  ;;  %v11532_v38 = vld [vmem:[%s15358_s7 + $0x52c] ss:$16 sps:$4 sm:$0xff]   ;;  %v11527_v39 = vld [vmem:[%s15358_s7 + $0x520] ss:$16 sps:$4 sm:$0xff]  }
 0x5b0   : > { %5360 = vmatprep.subr.bf16.mxu1 %v11451_v30  ;;  %5524 = vmatprep.subr.bf16.mxu0 %v11454_v21  ;;  %v11530_v30 = vld [vmem:[%s15358_s7 + $0x528] ss:$16 sps:$4 sm:$0xff]   ;;  %v11535_v21 = vld [vmem:[%s15358_s7 + $0x544] ss:$16 sps:$4 sm:$0xff]  }
 0x5b3   : > { %5361 = vmatpush1.bf16.msra.mxu1 %v11449_v40  ;;  %5525 = vmatpush1.bf16.msra.mxu0 %v11452_v41  ;;  %v11538_v40 = vld [vmem:[%s15358_s7 + $0x54c] ss:$16 sps:$4 sm:$0xff]   ;;  %v11533_v41 = vld [vmem:[%s15358_s7 + $0x540] ss:$16 sps:$4 sm:$0xff]  }
 0x5b4   : > { %5362 = vmatprep.subr.bf16.mxu1 %v11457_v42  ;;  %5526 = vmatprep.subr.bf16.mxu0 %v11460_v44  ;;  %v11536_v42 = vld [vmem:[%s15358_s7 + $0x548] ss:$16 sps:$4 sm:$0xff]   ;;  %v11541_v44 = vld [vmem:[%s15358_s7 + $0x564] ss:$16 sps:$4 sm:$0xff]  }
 0x5b7   : > { %5363 = vmatpush1.bf16.msra.mxu1 %v11455_v45  ;;  %5527 = vmatpush1.bf16.msra.mxu0 %v11458_v23  ;;  %v11544_v45 = vld [vmem:[%s15358_s7 + $0x56c] ss:$16 sps:$4 sm:$0xff]   ;;  %v11539_v23 = vld [vmem:[%s15358_s7 + $0x560] ss:$16 sps:$4 sm:$0xff]  }
 0x5b8   : > { %5364 = vmatprep.subr.bf16.mxu1 %v11463_v46  ;;  %5528 = vmatprep.subr.bf16.mxu0 %v11466_v48  ;;  %v11542_v46 = vld [vmem:[%s15358_s7 + $0x568] ss:$16 sps:$4 sm:$0xff]   ;;  %v11547_v48 = vld [vmem:[%s15358_s7 + $0x584] ss:$16 sps:$4 sm:$0xff]  }
 0x5bb   : > { %5365 = vmatpush1.bf16.msra.mxu1 %v11461_v50  ;;  %5529 = vmatpush1.bf16.msra.mxu0 %v11464_v51  ;;  %v11550_v50 = vld [vmem:[%s15358_s7 + $0x58c] ss:$16 sps:$4 sm:$0xff]   ;;  %v11545_v51 = vld [vmem:[%s15358_s7 + $0x580] ss:$16 sps:$4 sm:$0xff]  }
 0x5bc   : > { %5366 = vmatprep.subr.bf16.mxu1 %v11469_v52  ;;  %5530 = vmatprep.subr.bf16.mxu0 %v11472_v53  ;;  %v11548_v52 = vld [vmem:[%s15358_s7 + $0x588] ss:$16 sps:$4 sm:$0xff]   ;;  %v11553_v53 = vld [vmem:[%s15358_s7 + $0x5a4] ss:$16 sps:$4 sm:$0xff]  }
 0x5bf   : > { %5367 = vmatpush1.bf16.msra.mxu1 %v11467_v2  ;;  %5531 = vmatpush1.bf16.msra.mxu0 %v11470_v56  ;;  %v11556_v2 = vld [vmem:[%s15358_s7 + $0x5ac] ss:$16 sps:$4 sm:$0xff]   ;;  %v11551_v56 = vld [vmem:[%s15358_s7 + $0x5a0] ss:$16 sps:$4 sm:$0xff]  }
 0x5c0   : > { %5377 = vmatprep.subr.bf16.mxu1 %v11475_v57  ;;  %5541 = vmatprep.subr.bf16.mxu0 %v11478_v59  ;;  %v11554_v57 = vld [vmem:[%s15358_s7 + $0x5a8] ss:$16 sps:$4 sm:$0xff]   ;;  %v11559_v59 = vld [vmem:[%s15358_s7 + $0x5c4] ss:$16 sps:$4 sm:$0xff]  }
 0x5c2   : > { %5369 = vmatmul.mubr.bf16.vlgmr.msra.gmra.mrb[136].mxu1 %v3731_v63  ;;  %5533 = vmatmul.mubr.bf16.vlgmr.msra.gmra.mrb[84].mxu0 %v3731_v63  ;;  %v11557_v63 = vld [vmem:[%s15358_s7 + $0x5c0] ss:$16 sps:$4 sm:$0xff]  }
 0x5c3   : > { %5378 = vmatpush1.bf16.msra.mxu1 %v11473_v62  ;;  %5409 = vmatprep.mubr.bf16.mxu1 %v3734_v1  ;;  %v3704_v62 = vcombine.high %v14206_v49, %v14206_v49  ;;  %v11568_v49 = vld [vmem:[%s15358_s7 + $0x5ec] ss:$16 sps:$4 sm:$0xff]  }
 0x5c4   : > { %5542 = vmatpush1.bf16.msra.mxu0 %v11476_v0  ;;  %5573 = vmatprep.mubr.bf16.mxu0 %v3734_v1  ;;  %v11560_v0 = vld [vmem:[%s15358_s7 + $0x5c8] ss:$16 sps:$4 sm:$0xff]   ;;  %v11565_v1 = vld [vmem:[%s15358_s7 + $0x5e4] ss:$16 sps:$4 sm:$0xff]  }
 0x5c5   : > { %5379 = vmatprep.subr.bf16.mxu1 %v11481_v3  ;;  %5543 = vmatprep.subr.bf16.mxu0 %v11484_v4  ;;  %v14423_v3 = vrot.slane %v3704_v62, %v14030_v43  ;;  %v11563_v4 = vld [vmem:[%s15358_s7 + $0x5e0] ss:$16 sps:$4 sm:$0xff]   ;;  %v11647_v62 = vld [vmem:[%s15358_s7 + $0x78c] ss:$16 sps:$4 sm:$0xff]  }
 0x5c7   : > { %5380 = vmatpush1.bf16.msra.mxu1 %v11479_v47  ;;  %v11566_v47 = vld [vmem:[%s15358_s7 + $0x5e8] ss:$16 sps:$4 sm:$0xff]  }
 0x5c8   : > { %5544 = vmatpush1.bf16.msra.mxu0 %v11482_v25  ;;  %5381 = vmatprep.subr.bf16.mxu1 %v11487_v5  ;;  %v11571_v25 = vld [vmem:[%s15358_s7 + $0x604] ss:$16 sps:$4 sm:$0xff]   ;;  %v11574_v5 = vld [vmem:[%s15358_s7 + $0x60c] ss:$16 sps:$4 sm:$0xff]  }
 0x5c9   : > { %5545 = vmatprep.subr.bf16.mxu0 %v11490_v6  ;;  %v3720_v6 = vcombine.high %v14423_v3, %v14423_v3 }
 0x5cb   : > { %5382 = vmatpush1.bf16.msra.mxu1 %v11485_v7  ;;  %v11569_v7 = vld [vmem:[%s15358_s7 + $0x600] ss:$16 sps:$4 sm:$0xff]  }
 0x5cc   : > { %5546 = vmatpush1.bf16.msra.mxu0 %v11488_v8  ;;  %5383 = vmatprep.subr.bf16.mxu1 %v11493_v10  ;;  %v3733_v8 = vpack.c.bf16 %v14222_v54, %v14222_v54  ;;  %v11572_v10 = vld [vmem:[%s15358_s7 + $0x608] ss:$16 sps:$4 sm:$0xff]   ;;  %v11576_v54 = vld [vmem:[%s15358_s7 + $0x620] ss:$16 sps:$4 sm:$0xff]  }
 0x5cd   : > { %5547 = vmatprep.subr.bf16.mxu0 %v11496_v27  ;;  %v11578_v27 = vld [vmem:[%s15358_s7 + $0x624] ss:$16 sps:$4 sm:$0xff]  }
 0x5cf   : > { %5384 = vmatpush1.bf16.msra.mxu1 %v11491_v16  ;;  %v3736_v16 = vpack.c.bf16 %v3720_v6, %v3720_v6  ;;  %v11654_v6 = vld [vmem:[%s15358_s7 + $0x7c0] ss:$16 sps:$4 sm:$0xff]  }
 0x5d0   : > { %5548 = vmatpush1.bf16.msra.mxu0 %v11494_v18  ;;  %5385 = vmatprep.subr.bf16.mxu1 %v11499_v20  ;;  %v11581_v18 = vld [vmem:[%s15358_s7 + $0x62c] ss:$16 sps:$4 sm:$0xff]   ;;  %v11579_v20 = vld [vmem:[%s15358_s7 + $0x628] ss:$16 sps:$4 sm:$0xff]  }
 0x5d1   : > { %5549 = vmatprep.subr.bf16.mxu0 %v11502_v14  ;;  %v11584_v14 = vld [vmem:[%s15358_s7 + $0x644] ss:$16 sps:$4 sm:$0xff]  }
 0x5d3   : > { %5386 = vmatpush1.bf16.msra.mxu1 %v11497_v22  ;;  %v11587_v22 = vld [vmem:[%s15358_s7 + $0x64c] ss:$16 sps:$4 sm:$0xff]  }
 0x5d4   : > { %5550 = vmatpush1.bf16.msra.mxu0 %v11500_v15  ;;  %5387 = vmatprep.subr.bf16.mxu1 %v11505_v17  ;;  %v11582_v15 = vld [vmem:[%s15358_s7 + $0x640] ss:$16 sps:$4 sm:$0xff]   ;;  %v11585_v17 = vld [vmem:[%s15358_s7 + $0x648] ss:$16 sps:$4 sm:$0xff]  }
 0x5d5   : > { %5551 = vmatprep.subr.bf16.mxu0 %v11508_v58  ;;  %v11590_v58 = vld [vmem:[%s15358_s7 + $0x664] ss:$16 sps:$4 sm:$0xff]  }
 0x5d7   : > { %5388 = vmatpush1.bf16.msra.mxu1 %v11503_v60  ;;  %v11593_v60 = vld [vmem:[%s15358_s7 + $0x66c] ss:$16 sps:$4 sm:$0xff]  }
 0x5d8   : > { %5552 = vmatpush1.bf16.msra.mxu0 %v11506_v9  ;;  %5389 = vmatprep.subr.bf16.mxu1 %v11511_v24  ;;  %v11588_v9 = vld [vmem:[%s15358_s7 + $0x660] ss:$16 sps:$4 sm:$0xff]   ;;  %v11591_v24 = vld [vmem:[%s15358_s7 + $0x668] ss:$16 sps:$4 sm:$0xff]  }
 0x5d9   : > { %5553 = vmatprep.subr.bf16.mxu0 %v11514_v26  ;;  %v11596_v26 = vld [vmem:[%s15358_s7 + $0x684] ss:$16 sps:$4 sm:$0xff]  }
 0x5db   : > { %5390 = vmatpush1.bf16.msra.mxu1 %v11509_v29  ;;  %v11599_v29 = vld [vmem:[%s15358_s7 + $0x68c] ss:$16 sps:$4 sm:$0xff]  }
 0x5dc   : > { %5554 = vmatpush1.bf16.msra.mxu0 %v11512_v19  ;;  %5391 = vmatprep.subr.bf16.mxu1 %v11517_v31  ;;  %v11594_v19 = vld [vmem:[%s15358_s7 + $0x680] ss:$16 sps:$4 sm:$0xff]   ;;  %v11597_v31 = vld [vmem:[%s15358_s7 + $0x688] ss:$16 sps:$4 sm:$0xff]  }
 0x5dd   : > { %5555 = vmatprep.subr.bf16.mxu0 %v11520_v32  ;;  %v11602_v32 = vld [vmem:[%s15358_s7 + $0x6a4] ss:$16 sps:$4 sm:$0xff]  }
 0x5df   : > { %5392 = vmatpush1.bf16.msra.mxu1 %v11515_v33  ;;  %v11605_v33 = vld [vmem:[%s15358_s7 + $0x6ac] ss:$16 sps:$4 sm:$0xff]  }
 0x5e0   : > { %5556 = vmatpush1.bf16.msra.mxu0 %v11518_v11  ;;  %5393 = vmatprep.subr.bf16.mxu1 %v11523_v34  ;;  %v11600_v11 = vld [vmem:[%s15358_s7 + $0x6a0] ss:$16 sps:$4 sm:$0xff]   ;;  %v11603_v34 = vld [vmem:[%s15358_s7 + $0x6a8] ss:$16 sps:$4 sm:$0xff]  }
 0x5e1   : > { %5557 = vmatprep.subr.bf16.mxu0 %v11526_v28  ;;  %v11608_v28 = vld [vmem:[%s15358_s7 + $0x6c4] ss:$16 sps:$4 sm:$0xff]  }
 0x5e3   : > { %5394 = vmatpush1.bf16.msra.mxu1 %v11521_v35  ;;  %v11611_v35 = vld [vmem:[%s15358_s7 + $0x6cc] ss:$16 sps:$4 sm:$0xff]  }
 0x5e4   : > { %5558 = vmatpush1.bf16.msra.mxu0 %v11524_v36  ;;  %5395 = vmatprep.subr.bf16.mxu1 %v11529_v37  ;;  %v11606_v36 = vld [vmem:[%s15358_s7 + $0x6c0] ss:$16 sps:$4 sm:$0xff]   ;;  %v11609_v37 = vld [vmem:[%s15358_s7 + $0x6c8] ss:$16 sps:$4 sm:$0xff]  }
 0x5e5   : > { %5559 = vmatprep.subr.bf16.mxu0 %v11532_v38  ;;  %v11614_v38 = vld [vmem:[%s15358_s7 + $0x6e4] ss:$16 sps:$4 sm:$0xff]  }
 0x5e7   : > { %5396 = vmatpush1.bf16.msra.mxu1 %v11527_v39  ;;  %v11617_v39 = vld [vmem:[%s15358_s7 + $0x6ec] ss:$16 sps:$4 sm:$0xff]  }
 0x5e8   : > { %5560 = vmatpush1.bf16.msra.mxu0 %v11530_v30  ;;  %5397 = vmatprep.subr.bf16.mxu1 %v11535_v21  ;;  %v11612_v30 = vld [vmem:[%s15358_s7 + $0x6e0] ss:$16 sps:$4 sm:$0xff]   ;;  %v11615_v21 = vld [vmem:[%s15358_s7 + $0x6e8] ss:$16 sps:$4 sm:$0xff]  }
 0x5e9   : > { %5561 = vmatprep.subr.bf16.mxu0 %v11538_v40  ;;  %v11620_v40 = vld [vmem:[%s15358_s7 + $0x704] ss:$16 sps:$4 sm:$0xff]  }
 0x5eb   : > { %5398 = vmatpush1.bf16.msra.mxu1 %v11533_v41  ;;  %v11623_v41 = vld [vmem:[%s15358_s7 + $0x70c] ss:$16 sps:$4 sm:$0xff]  }
 0x5ec   : > { %5562 = vmatpush1.bf16.msra.mxu0 %v11536_v42  ;;  %5399 = vmatprep.subr.bf16.mxu1 %v11541_v44  ;;  %v11618_v42 = vld [vmem:[%s15358_s7 + $0x700] ss:$16 sps:$4 sm:$0xff]   ;;  %v11621_v44 = vld [vmem:[%s15358_s7 + $0x708] ss:$16 sps:$4 sm:$0xff]  }
 0x5ed   : > { %5563 = vmatprep.subr.bf16.mxu0 %v11544_v45  ;;  %v11626_v45 = vld [vmem:[%s15358_s7 + $0x724] ss:$16 sps:$4 sm:$0xff]  }
 0x5ef   : > { %5400 = vmatpush1.bf16.msra.mxu1 %v11539_v23  ;;  %v11629_v23 = vld [vmem:[%s15358_s7 + $0x72c] ss:$16 sps:$4 sm:$0xff]  }
 0x5f0   : > { %5564 = vmatpush1.bf16.msra.mxu0 %v11542_v46  ;;  %5401 = vmatprep.subr.bf16.mxu1 %v11547_v48  ;;  %v11624_v46 = vld [vmem:[%s15358_s7 + $0x720] ss:$16 sps:$4 sm:$0xff]   ;;  %v11627_v48 = vld [vmem:[%s15358_s7 + $0x728] ss:$16 sps:$4 sm:$0xff]  }
 0x5f1   : > { %5565 = vmatprep.subr.bf16.mxu0 %v11550_v50  ;;  %v11632_v50 = vld [vmem:[%s15358_s7 + $0x744] ss:$16 sps:$4 sm:$0xff]  }
 0x5f3   : > { %5402 = vmatpush1.bf16.msra.mxu1 %v11545_v51  ;;  %v11635_v51 = vld [vmem:[%s15358_s7 + $0x74c] ss:$16 sps:$4 sm:$0xff]  }
 0x5f4   : > { %5566 = vmatpush1.bf16.msra.mxu0 %v11548_v52  ;;  %5403 = vmatprep.subr.bf16.mxu1 %v11553_v53  ;;  %v11630_v52 = vld [vmem:[%s15358_s7 + $0x740] ss:$16 sps:$4 sm:$0xff]   ;;  %v11633_v53 = vld [vmem:[%s15358_s7 + $0x748] ss:$16 sps:$4 sm:$0xff]  }
 0x5f5   : > { %5567 = vmatprep.subr.bf16.mxu0 %v11556_v2  ;;  %v11638_v2 = vld [vmem:[%s15358_s7 + $0x764] ss:$16 sps:$4 sm:$0xff]  }
 0x5f7   : > { %5404 = vmatpush1.bf16.msra.mxu1 %v11551_v56  ;;  %v11641_v56 = vld [vmem:[%s15358_s7 + $0x76c] ss:$16 sps:$4 sm:$0xff]  }
 0x5f8   : > { %5568 = vmatpush1.bf16.msra.mxu0 %v11554_v57  ;;  %5405 = vmatprep.subr.bf16.mxu1 %v11559_v59  ;;  %v11636_v57 = vld [vmem:[%s15358_s7 + $0x760] ss:$16 sps:$4 sm:$0xff]   ;;  %v11639_v59 = vld [vmem:[%s15358_s7 + $0x768] ss:$16 sps:$4 sm:$0xff]  }
 0x5f9   : > { %5569 = vmatprep.subr.bf16.mxu0 %v11562_v61  ;;  %v11644_v61 = vld [vmem:[%s15358_s7 + $0x784] ss:$16 sps:$4 sm:$0xff]  }
 0x5fb   : > { %5406 = vmatpush1.bf16.msra.mxu1 %v11557_v63  ;;  %v11642_v63 = vld [vmem:[%s15358_s7 + $0x780] ss:$16 sps:$4 sm:$0xff]  }
 0x5fc   : > { %5570 = vmatpush1.bf16.msra.mxu0 %v11560_v0  ;;  %5407 = vmatprep.subr.bf16.mxu1 %v11565_v1  ;;  %v11645_v0 = vld [vmem:[%s15358_s7 + $0x788] ss:$16 sps:$4 sm:$0xff]   ;;  %v11650_v1 = vld [vmem:[%s15358_s7 + $0x7a4] ss:$16 sps:$4 sm:$0xff]  }
 0x5fd   : > { %5571 = vmatprep.subr.bf16.mxu0 %v11568_v49  ;;  %v11653_v49 = vld [vmem:[%s15358_s7 + $0x7ac] ss:$16 sps:$4 sm:$0xff]  }
 0x5ff   : > { %5408 = vmatpush1.bf16.msra.mxu1 %v11563_v4  ;;  %v11648_v4 = vld [vmem:[%s15358_s7 + $0x7a0] ss:$16 sps:$4 sm:$0xff]  }
 0x600   : > { %5572 = vmatpush1.bf16.msra.mxu0 %v11566_v47  ;;  %5418 = vmatprep.subr.bf16.mxu1 %v11571_v25  ;;  %v11651_v47 = vld [vmem:[%s15358_s7 + $0x7a8] ss:$16 sps:$4 sm:$0xff]   ;;  %v11656_v25 = vld [vmem:[%s15358_s7 + $0x7c4] ss:$16 sps:$4 sm:$0xff]  }
 0x601   : > { %5582 = vmatprep.subr.bf16.mxu0 %v11574_v5  ;;  %v11659_v5 = vld [vmem:[%s15358_s7 + $0x7cc] ss:$16 sps:$4 sm:$0xff]  }
 0x602   : > { %5410 = vmatmul.mubr.bf16.vlgmr.msra.gmra.mrb[136].mxu1 %v3733_v8 }
 0x603   : > { %5574 = vmatmul.mubr.bf16.vlgmr.msra.gmra.mrb[84].mxu0 %v3733_v8  ;;  %5419 = vmatpush1.bf16.msra.mxu1 %v11569_v7  ;;  %v11657_v7 = vld [vmem:[%s15358_s7 + $0x7c8] ss:$16 sps:$4 sm:$0xff]   ;;  %v11662_v8 = vld [vmem:[%s15358_s7 + $0x7e4] ss:$16 sps:$4 sm:$0xff]  }
 0x604   : > { %5450 = vmatprep.mubr.bf16.mxu1 %v3736_v16  ;;  %5583 = vmatpush1.bf16.msra.mxu0 %v11572_v10  ;;  %v11665_v10 = vld [vmem:[%s15358_s7 + $0x7ec] ss:$16 sps:$4 sm:$0xff]  }
 0x605   : > { %5614 = vmatprep.mubr.bf16.mxu0 %v3736_v16  ;;  %5420 = vmatprep.subr.bf16.mxu1 %v11578_v27  ;;  %v11660_v27 = vld [vmem:[%s15358_s7 + $0x7e0] ss:$16 sps:$4 sm:$0xff]   ;;  %v11663_v16 = vld [vmem:[%s15358_s7 + $0x7e8] ss:$16 sps:$4 sm:$0xff]  }
 0x606   : > { %5584 = vmatprep.subr.bf16.mxu0 %v11581_v18  ;;  %v3735_v18 = vpack.c.bf16 %v14423_v3, %v14423_v3 }
 0x607   : > { %5421 = vmatpush1.bf16.msra.mxu1 %v11576_v54  ;;  %v3993_v54 = vld [vmem:[%s15359_s8] sm:$0xf] }
 0x608   : > { %5585 = vmatpush1.bf16.msra.mxu0 %v11579_v20  ;;  %5422 = vmatprep.subr.bf16.mxu1 %v11584_v14  ;;  %v4005_v20 = vsub.s32 2, %v13998_v12  ;;  %v4009_v14 = vsub.s32 3, %v13998_v12 }
 0x609   : > { %5586 = vmatprep.subr.bf16.mxu0 %v11587_v22  ;;  %v3998_v22 = vrot.slane %v3993_v54, %v3207_v55 }
 0x60b   : > { %5423 = vmatpush1.bf16.msra.mxu1 %v11582_v15  ;;  %v4006_v15 = vrot.slane %v3993_v54, %v4005_v20 }
 0x60c   : > { %5587 = vmatpush1.bf16.msra.mxu0 %v11585_v17  ;;  %5424 = vmatprep.subr.bf16.mxu1 %v11590_v58  ;;  %v4002_v17 = vrot.slane %v3993_v54, %v3211_v13  ;;  %v4010_v58 = vrot.slane %v3993_v54, %v4009_v14 }
 0x60d   : > { %5588 = vmatprep.subr.bf16.mxu0 %v11593_v60 }
 0x60f   : > { %5425 = vmatpush1.bf16.msra.mxu1 %v11588_v9 }
 0x610   : > { %5589 = vmatpush1.bf16.msra.mxu0 %v11591_v24  ;;  %5426 = vmatprep.subr.bf16.mxu1 %v11596_v26 }
 0x611   : > { %5590 = vmatprep.subr.bf16.mxu0 %v11599_v29 }
 0x613   : > { %5427 = vmatpush1.bf16.msra.mxu1 %v11594_v19 }
 0x614   : > { %5591 = vmatpush1.bf16.msra.mxu0 %v11597_v31  ;;  %5428 = vmatprep.subr.bf16.mxu1 %v11602_v32 }
 0x615   : > { %5592 = vmatprep.subr.bf16.mxu0 %v11605_v33 }
 0x617   : > { %5429 = vmatpush1.bf16.msra.mxu1 %v11600_v11 }
 0x618   : > { %5593 = vmatpush1.bf16.msra.mxu0 %v11603_v34  ;;  %5430 = vmatprep.subr.bf16.mxu1 %v11608_v28 }
 0x619   : > { %5594 = vmatprep.subr.bf16.mxu0 %v11611_v35 }
 0x61b   : > { %5431 = vmatpush1.bf16.msra.mxu1 %v11606_v36 }
 0x61c   : > { %5595 = vmatpush1.bf16.msra.mxu0 %v11609_v37  ;;  %5432 = vmatprep.subr.bf16.mxu1 %v11614_v38 }
 0x61d   : > { %5596 = vmatprep.subr.bf16.mxu0 %v11617_v39 }
 0x61f   : > { %5433 = vmatpush1.bf16.msra.mxu1 %v11612_v30 }
 0x620   : > { %5597 = vmatpush1.bf16.msra.mxu0 %v11615_v21  ;;  %5434 = vmatprep.subr.bf16.mxu1 %v11620_v40 }
 0x621   : > { %5598 = vmatprep.subr.bf16.mxu0 %v11623_v41 }
 0x623   : > { %5435 = vmatpush1.bf16.msra.mxu1 %v11618_v42 }
 0x624   : > { %5599 = vmatpush1.bf16.msra.mxu0 %v11621_v44  ;;  %5436 = vmatprep.subr.bf16.mxu1 %v11626_v45 }
 0x625   : > { %5600 = vmatprep.subr.bf16.mxu0 %v11629_v23 }
 0x627   : > { %5437 = vmatpush1.bf16.msra.mxu1 %v11624_v46 }
 0x628   : > { %5601 = vmatpush1.bf16.msra.mxu0 %v11627_v48  ;;  %5438 = vmatprep.subr.bf16.mxu1 %v11632_v50 }
 0x629   : > { %5602 = vmatprep.subr.bf16.mxu0 %v11635_v51 }
 0x62b   : > { %5439 = vmatpush1.bf16.msra.mxu1 %v11630_v52 }
 0x62c   : > { %5603 = vmatpush1.bf16.msra.mxu0 %v11633_v53  ;;  %5440 = vmatprep.subr.bf16.mxu1 %v11638_v2 }
 0x62d   : > { %5604 = vmatprep.subr.bf16.mxu0 %v11641_v56 }
 0x62f   : > { %5441 = vmatpush1.bf16.msra.mxu1 %v11636_v57 }
 0x630   : > { %5605 = vmatpush1.bf16.msra.mxu0 %v11639_v59  ;;  %5442 = vmatprep.subr.bf16.mxu1 %v11644_v61 }
 0x631   : > { %5606 = vmatprep.subr.bf16.mxu0 %v11647_v62 }
 0x633   : > { %5443 = vmatpush1.bf16.msra.mxu1 %v11642_v63 }
 0x634   : > { %5607 = vmatpush1.bf16.msra.mxu0 %v11645_v0  ;;  %5444 = vmatprep.subr.bf16.mxu1 %v11650_v1 }
 0x635   : > { %5608 = vmatprep.subr.bf16.mxu0 %v11653_v49 }
 0x637   : > { %5445 = vmatpush1.bf16.msra.mxu1 %v11648_v4 }
 0x638   : > { %5609 = vmatpush1.bf16.msra.mxu0 %v11651_v47  ;;  %5446 = vmatprep.subr.bf16.mxu1 %v11656_v25 }
 0x639   : > { %5610 = vmatprep.subr.bf16.mxu0 %v11659_v5 }
 0x63b   : > { %5447 = vmatpush1.bf16.msra.mxu1 %v11654_v6 }
 0x63c   : > { %5611 = vmatpush1.bf16.msra.mxu0 %v11657_v7  ;;  %5448 = vmatprep.subr.bf16.mxu1 %v11662_v8 }
 0x63d   : > { %5612 = vmatprep.subr.bf16.mxu0 %v11665_v10 }
 0x63f   : > { %5449 = vmatpush1.bf16.msra.mxu1 %v11660_v27 }
 0x640   : > { %5613 = vmatpush1.bf16.msra.mxu0 %v11663_v16 }
 0x642   : > { %5451 = vmatmul.mubr.bf16.vlgmr.msra.gmra.mrb[136].mxu1 %v3735_v18 }
 0x643   : > { %5615 = vmatmul.mubr.bf16.vlgmr.msra.gmra.mrb[84].mxu0 %v3735_v18 }
 0x715   : > { %v5452_v60 = vpop.f32.mrb[136].mxu1 }
 0x716   : > { %v11034_v3 = vadd.f32 %v5452_v60, %v3998_v22  ;;  %v5616_v9 = vpop.f32.mrb[84].mxu0  ;;  %v5454_v24 = vpop.f32.mrb[137].mxu1 }
 0x717   : > { %v11036_v26 = vadd.f32 %v5616_v9, %v4006_v15  ;;  %v11035_v29 = vadd.f32 %v5454_v24, %v4002_v17  ;;  %v5618_v19 = vpop.f32.mrb[85].mxu0  ;;  %v5456_v31 = vpop.f32.mrb[138].mxu1 }
 0x718   : > { %v5623_v32 = vmax.f32 %v11034_v3, 0.0  ;;  %v11037_v33 = vadd.f32 %v5618_v19, %v4010_v58  ;;  %v5620_v11 = vpop.f32.mrb[86].mxu0  ;;  %v5457_v34 = vpop.f32.mrb[139].mxu1 }
 0x719   : > { %v5625_v28 = vmax.f32 %v11036_v26, 0.0  ;;  %v5624_v35 = vmax.f32 %v11035_v29, 0.0  ;;  %v5621_v55 = vpop.f32.mrb[87].mxu0 }
 0x71a   : > { %v5626_v36 = vmax.f32 %v11037_v33, 0.0 }
 0x71b   : > { %v5631_v37 = vcombine.low %v5623_v32, %v5624_v35 }
 0x71c   : > { %v5632_v12 = vcombine.low %v5625_v28, %v5626_v36 }
 0x71d   : > { %v5639_v13 = vrot.slane %v5631_v37, %v14030_v43 }
 0x71e   : > { %v5646_v38 = vrot.slane %v5632_v12, %v14030_v43 }
 0x720   : > { %v5647_v39 = vcombine.low %v5639_v13, %v5646_v38 }
 0x722   : > { %5649 = vst [vmem:[#allocation11] sm:$0xff] %v5647_v39 }
 0x723 PF: > { %v5677_v30 = vld [vmem:[%s12930_s20] sm:$0xff]  ;;  %v5678_v40 = vld [vmem:[%s12930_s20 + $0x8] sm:$0xff]  ;;  %v11764_v10 = vmov 1983009808   ;;  %v5656_v16 = vlaneseq }
 0x724   : > { %v5685_v21 = vld [vmem:[%s12930_s20 + $0x40] sm:$0xff]  ;;  %v5686_v43 = vld [vmem:[%s12930_s20 + $0x48] sm:$0xff]  ;;  %v5654_v27 = vunpack.c.l.s4 %v11764_v10 }
 0x725   : > { %v10119_v41 = vcombine.high %v5677_v30, %v5685_v21  ;;  %v10118_v42 = vcombine.low %v5677_v30, %v5685_v21  ;;  %v5693_v44 = vld [vmem:[%s12930_s20 + $0x80] sm:$0xff]  ;;  %v10121_v23 = vcombine.high %v5678_v40, %v5686_v43  ;;  %v10120_v46 = vcombine.low %v5678_v40, %v5686_v43  ;;  %v5694_v50 = vld [vmem:[%s12930_s20 + $0x88] sm:$0xff] }
 0x726   : > { %v5701_v45 = vld [vmem:[%s12930_s20 + $0xc0] sm:$0xff]  ;;  %v5702_v51 = vld [vmem:[%s12930_s20 + $0xc8] sm:$0xff]  ;;  %v5655_v60 = vunpack.c.0.s8 %v5654_v27  ;;  %v14662_v3 = vshrl.u32 %v5656_v16, 7 }
 0x727   : > { %v10135_v48 = vcombine.high %v5693_v44, %v5701_v45  ;;  %v5709_v52 = vld [vmem:[%s12930_s20 + $0x100] sm:$0xff]  ;;  %8833 = vmatprep.subr.bf16.mxu0 %v10119_v41  ;;  %v10137_v53 = vcombine.high %v5694_v50, %v5702_v51  ;;  %v5710_v56 = vld [vmem:[%s12930_s20 + $0x108] sm:$0xff]  ;;  %8915 = vmatprep.subr.bf16.mxu1 %v10121_v23  ;;  %v10134_v59 = vcombine.low %v5693_v44, %v5701_v45 }
 0x728   : > { %v5717_v2 = vld [vmem:[%s12930_s20 + $0x140] sm:$0xff]  ;;  %v5718_v57 = vld [vmem:[%s12930_s20 + $0x148] sm:$0xff]  ;;  %8834 = vmatpush1.bf16.msra.mxu0 %v10118_v42  ;;  %8916 = vmatpush1.bf16.msra.mxu1 %v10120_v46  ;;  %v10136_v61 = vcombine.low %v5694_v50, %v5702_v51  ;;  %v14669_v11 = vsub.s32 %v5655_v60, %v14662_v3 }
 0x729   : > { %8835 = vmatprep.subr.bf16.mxu0 %v10135_v48  ;;  %v10151_v62 = vcombine.high %v5709_v52, %v5717_v2  ;;  %8917 = vmatprep.subr.bf16.mxu1 %v10137_v53  ;;  %v10153_v63 = vcombine.high %v5710_v56, %v5718_v57  ;;  %v5725_v0 = vld [vmem:[%s12930_s20 + $0x180] sm:$0xff]  ;;  %v5726_v49 = vld [vmem:[%s12930_s20 + $0x188] sm:$0xff]  ;;  %v10150_v47 = vcombine.low %v5709_v52, %v5717_v2 }
 0x72a   : > { %v5733_v1 = vld [vmem:[%s12930_s20 + $0x1c0] sm:$0xff]  ;;  %v5734_v4 = vld [vmem:[%s12930_s20 + $0x1c8] sm:$0xff]  ;;  %v10152_v25 = vcombine.low %v5710_v56, %v5718_v57 }
 0x72b   : > { %v10167_v5 = vcombine.high %v5725_v0, %v5733_v1  ;;  %v10169_v6 = vcombine.high %v5726_v49, %v5734_v4  ;;  %v5741_v7 = vld [vmem:[%s12930_s20 + $0x200] sm:$0xff]  ;;  %v5742_v18 = vld [vmem:[%s12930_s20 + $0x208] sm:$0xff]  ;;  %v10166_v20 = vcombine.low %v5725_v0, %v5733_v1  ;;  %v10168_v14 = vcombine.low %v5726_v49, %v5734_v4 }
 0x72c   : > { %8836 = vmatpush1.bf16.msra.mxu0 %v10134_v59  ;;  %8918 = vmatpush1.bf16.msra.mxu1 %v10136_v61  ;;  %v5749_v8 = vld [vmem:[%s12930_s20 + $0x240] sm:$0xff]  ;;  %v5750_v54 = vld [vmem:[%s12930_s20 + $0x248] sm:$0xff] }
 0x72d   : > { %8837 = vmatprep.subr.bf16.mxu0 %v10151_v62  ;;  %8919 = vmatprep.subr.bf16.mxu1 %v10153_v63  ;;  %v10183_v22 = vcombine.high %v5741_v7, %v5749_v8  ;;  %v10185_v15 = vcombine.high %v5742_v18, %v5750_v54  ;;  %v5757_v17 = vld [vmem:[%s12930_s20 + $0x280] sm:$0xff]  ;;  %v5758_v9 = vld [vmem:[%s12930_s20 + $0x288] sm:$0xff]  ;;  %v10182_v26 = vcombine.low %v5741_v7, %v5749_v8 }
 0x72e   : > { %v5765_v58 = vld [vmem:[%s12930_s20 + $0x2c0] sm:$0xff]  ;;  %v5766_v24 = vld [vmem:[%s12930_s20 + $0x2c8] sm:$0xff]  ;;  %v10184_v29 = vcombine.low %v5742_v18, %v5750_v54 }
 0x72f   : > { %v10199_v19 = vcombine.high %v5757_v17, %v5765_v58  ;;  %v10201_v31 = vcombine.high %v5758_v9, %v5766_v24  ;;  %v5773_v32 = vld [vmem:[%s12930_s20 + $0x300] sm:$0xff]  ;;  %v5774_v34 = vld [vmem:[%s12930_s20 + $0x308] sm:$0xff]  ;;  %v10198_v35 = vcombine.low %v5757_v17, %v5765_v58  ;;  %v10200_v55 = vcombine.low %v5758_v9, %v5766_v24 }
 0x730   : > { %8838 = vmatpush1.bf16.msra.mxu0 %v10150_v47  ;;  %8920 = vmatpush1.bf16.msra.mxu1 %v10152_v25  ;;  %v5781_v33 = vld [vmem:[%s12930_s20 + $0x340] sm:$0xff]  ;;  %v5782_v28 = vld [vmem:[%s12930_s20 + $0x348] sm:$0xff] }
 0x731   : > { %8839 = vmatprep.subr.bf16.mxu0 %v10167_v5  ;;  %8921 = vmatprep.subr.bf16.mxu1 %v10169_v6  ;;  %v10215_v36 = vcombine.high %v5773_v32, %v5781_v33  ;;  %v14673_v37 = vld [vmem:[#allocation11] sm:$0xff]  ;;  %v10217_v12 = vcombine.high %v5774_v34, %v5782_v28  ;;  %v5790_v30 = vld [vmem:[%s12930_s20 + $0x388] sm:$0xff]  ;;  %v10214_v40 = vcombine.low %v5773_v32, %v5781_v33 }
 0x732   : > { %v5789_v13 = vld [vmem:[%s12930_s20 + $0x380] sm:$0xff]  ;;  %v14679_v39 = vrot.slane %v14673_v37, %v14669_v11  ;;  %v5798_v21 = vld [vmem:[%s12930_s20 + $0x3c8] sm:$0xff]  ;;  %v10216_v43 = vcombine.low %v5774_v34, %v5782_v28 }
 0x733   : > { %v5797_v38 = vld [vmem:[%s12930_s20 + $0x3c0] sm:$0xff]  ;;  %v10233_v44 = vcombine.high %v5790_v30, %v5798_v21  ;;  %v5806_v48 = vld [vmem:[%s12930_s20 + $0x408] sm:$0xff]  ;;  %v10232_v52 = vcombine.low %v5790_v30, %v5798_v21 }
 0x734   : > { %8840 = vmatpush1.bf16.msra.mxu0 %v10166_v20  ;;  %8922 = vmatpush1.bf16.msra.mxu1 %v10168_v14  ;;  %v5667_v41 = vcombine.high %v14679_v39, %v14679_v39  ;;  %v10231_v42 = vcombine.high %v5789_v13, %v5797_v38  ;;  %v5805_v45 = vld [vmem:[%s12930_s20 + $0x400] sm:$0xff]  ;;  %v5814_v50 = vld [vmem:[%s12930_s20 + $0x448] sm:$0xff]  ;;  %v10230_v51 = vcombine.low %v5789_v13, %v5797_v38 }
 0x735   : > { %8841 = vmatprep.subr.bf16.mxu0 %v10183_v22  ;;  %8923 = vmatprep.subr.bf16.mxu1 %v10185_v15  ;;  %v5813_v23 = vld [vmem:[%s12930_s20 + $0x440] sm:$0xff]  ;;  %v10249_v2 = vcombine.high %v5806_v48, %v5814_v50  ;;  %v5822_v59 = vld [vmem:[%s12930_s20 + $0x488] sm:$0xff]  ;;  %v10248_v63 = vcombine.low %v5806_v48, %v5814_v50 }
 0x736   : > { %v14687_v46 = vpack.c.bf16 %v5667_v41, %v5667_v41  ;;  %v10247_v53 = vcombine.high %v5805_v45, %v5813_v23  ;;  %v5821_v56 = vld [vmem:[%s12930_s20 + $0x480] sm:$0xff]  ;;  %v5830_v61 = vld [vmem:[%s12930_s20 + $0x4c8] sm:$0xff]  ;;  %v10246_v62 = vcombine.low %v5805_v45, %v5813_v23 }
 0x737   : > { %v5829_v57 = vld [vmem:[%s12930_s20 + $0x4c0] sm:$0xff]  ;;  %v10265_v1 = vcombine.high %v5822_v59, %v5830_v61  ;;  %v5838_v47 = vld [vmem:[%s12930_s20 + $0x508] sm:$0xff]  ;;  %v10264_v6 = vcombine.low %v5822_v59, %v5830_v61 }
 0x738   : > { %8842 = vmatpush1.bf16.msra.mxu0 %v10182_v26  ;;  %8924 = vmatpush1.bf16.msra.mxu1 %v10184_v29  ;;  %v10263_v0 = vcombine.high %v5821_v56, %v5829_v57  ;;  %v5837_v49 = vld [vmem:[%s12930_s20 + $0x500] sm:$0xff]  ;;  %v5846_v25 = vld [vmem:[%s12930_s20 + $0x548] sm:$0xff]  ;;  %v10262_v5 = vcombine.low %v5821_v56, %v5829_v57 }
 0x739   : > { %8843 = vmatprep.subr.bf16.mxu0 %v10199_v19  ;;  %8925 = vmatprep.subr.bf16.mxu1 %v10201_v31  ;;  %v5845_v4 = vld [vmem:[%s12930_s20 + $0x540] sm:$0xff]  ;;  %v10281_v8 = vcombine.high %v5838_v47, %v5846_v25  ;;  %v5854_v16 = vld [vmem:[%s12930_s20 + $0x588] sm:$0xff]  ;;  %v10280_v20 = vcombine.low %v5838_v47, %v5846_v25 }
 0x73a   : > { %8865 = vmatprep.mubr.bf16.mxu0 %v14687_v46  ;;  %8947 = vmatprep.mubr.bf16.mxu1 %v14687_v46  ;;  %v10279_v7 = vcombine.high %v5837_v49, %v5845_v4  ;;  %v5853_v10 = vld [vmem:[%s12930_s20 + $0x580] sm:$0xff]  ;;  %v5862_v18 = vld [vmem:[%s12930_s20 + $0x5c8] sm:$0xff]  ;;  %v10278_v54 = vcombine.low %v5837_v49, %v5845_v4  ;;  %v14736_v4 = vpack.c.bf16 %v14679_v39, %v14679_v39 }
 0x73b   : > { %v5861_v27 = vld [vmem:[%s12930_s20 + $0x5c0] sm:$0xff]  ;;  %v10297_v22 = vcombine.high %v5854_v16, %v5862_v18  ;;  %v5870_v58 = vld [vmem:[%s12930_s20 + $0x608] sm:$0xff]  ;;  %v10296_v24 = vcombine.low %v5854_v16, %v5862_v18 }
 0x73c   : > { %8844 = vmatpush1.bf16.msra.mxu0 %v10198_v35  ;;  %8926 = vmatpush1.bf16.msra.mxu1 %v10200_v55  ;;  %v10295_v14 = vcombine.high %v5853_v10, %v5861_v27  ;;  %v5869_v15 = vld [vmem:[%s12930_s20 + $0x600] sm:$0xff]  ;;  %v5878_v60 = vld [vmem:[%s12930_s20 + $0x648] sm:$0xff]  ;;  %v10294_v9 = vcombine.low %v5853_v10, %v5861_v27 }
 0x73d   : > { %8845 = vmatprep.subr.bf16.mxu0 %v10215_v36  ;;  %8927 = vmatprep.subr.bf16.mxu1 %v10217_v12  ;;  %v5877_v17 = vld [vmem:[%s12930_s20 + $0x640] sm:$0xff]  ;;  %v10313_v29 = vcombine.high %v5870_v58, %v5878_v60  ;;  %v5886_v32 = vld [vmem:[%s12930_s20 + $0x688] sm:$0xff]  ;;  %v10312_v28 = vcombine.low %v5870_v58, %v5878_v60 }
 0x73e   : > { %v10311_v26 = vcombine.high %v5869_v15, %v5877_v17  ;;  %v5885_v19 = vld [vmem:[%s12930_s20 + $0x680] sm:$0xff]  ;;  %v5894_v33 = vld [vmem:[%s12930_s20 + $0x6c8] sm:$0xff]  ;;  %v10310_v34 = vcombine.low %v5869_v15, %v5877_v17 }
 0x73f   : > { %v5893_v31 = vld [vmem:[%s12930_s20 + $0x6c0] sm:$0xff]  ;;  %v10329_v55 = vcombine.high %v5886_v32, %v5894_v33  ;;  %v5902_v13 = vld [vmem:[%s12930_s20 + $0x708] sm:$0xff]  ;;  %v10328_v21 = vcombine.low %v5886_v32, %v5894_v33 }
 0x740   : > { %8846 = vmatpush1.bf16.msra.mxu0 %v10214_v40  ;;  %8928 = vmatpush1.bf16.msra.mxu1 %v10216_v43  ;;  %v10327_v35 = vcombine.high %v5885_v19, %v5893_v31  ;;  %v5901_v36 = vld [vmem:[%s12930_s20 + $0x700] sm:$0xff]  ;;  %v5910_v38 = vld [vmem:[%s12930_s20 + $0x748] sm:$0xff]  ;;  %v10326_v30 = vcombine.low %v5885_v19, %v5893_v31 }
 0x741   : > { %8847 = vmatprep.subr.bf16.mxu0 %v10231_v42  ;;  %8929 = vmatprep.subr.bf16.mxu1 %v10233_v44  ;;  %v5909_v12 = vld [vmem:[%s12930_s20 + $0x740] sm:$0xff]  ;;  %v10345_v41 = vcombine.high %v5902_v13, %v5910_v38  ;;  %v5652_v44 = vcombine.high %v14673_v37, %v14673_v37  ;;  %v5918_v45 = vld [vmem:[%s12930_s20 + $0x788] sm:$0xff]  ;;  %v10344_v50 = vcombine.low %v5902_v13, %v5910_v38 }
 0x742   : > { %v10343_v40 = vcombine.high %v5901_v36, %v5909_v12  ;;  %v5917_v43 = vld [vmem:[%s12930_s20 + $0x780] sm:$0xff]  ;;  %v5926_v23 = vld [vmem:[%s12930_s20 + $0x7c8] sm:$0xff]  ;;  %v10342_v48 = vcombine.low %v5901_v36, %v5909_v12 }
 0x743   : > { %v5925_v42 = vld [vmem:[%s12930_s20 + $0x7c0] sm:$0xff]  ;;  %v14726_v56 = vrot.slane %v5652_v44, %v14669_v11  ;;  %v5934_v37 = vld [vmem:[%s12930_s20 + $0x808] sm:$0xff]  ;;  %v10360_v61 = vcombine.low %v5918_v45, %v5926_v23 }
 0x744   : > { %8848 = vmatpush1.bf16.msra.mxu0 %v10230_v51  ;;  %8930 = vmatpush1.bf16.msra.mxu1 %v10232_v52  ;;  %v10359_v51 = vcombine.high %v5917_v43, %v5925_v42  ;;  %v10361_v52 = vcombine.high %v5918_v45, %v5926_v23  ;;  %v5942_v57 = vld [vmem:[%s12930_s20 + $0x848] sm:$0xff]  ;;  %v10358_v59 = vcombine.low %v5917_v43, %v5925_v42  ;;  %v5965_v10 = vld [vmem:[%s12930_s20 + $0x900] sm:$0xff] }
 0x745   : > { %8849 = vmatprep.subr.bf16.mxu0 %v10247_v53  ;;  %8931 = vmatprep.subr.bf16.mxu1 %v10249_v2  ;;  %v5933_v53 = vld [vmem:[%s12930_s20 + $0x800] sm:$0xff]  ;;  %v5668_v49 = vcombine.high %v14726_v56, %v14726_v56  ;;  %v5950_v47 = vld [vmem:[%s12930_s20 + $0x888] sm:$0xff] }
 0x746   : > { %v5941_v2 = vld [vmem:[%s12930_s20 + $0x840] sm:$0xff]  ;;  %v5958_v25 = vld [vmem:[%s12930_s20 + $0x8c8] sm:$0xff] }
 0x747   : > { %v5973_v27 = vld [vmem:[%s12930_s20 + $0x940] sm:$0xff]  ;;  %v14742_v16 = vpack.c.bf16 %v5668_v49, %v5668_v49  ;;  %v5966_v39 = vld [vmem:[%s12930_s20 + $0x908] sm:$0xff] }
 0x748   : > { %8850 = vmatpush1.bf16.msra.mxu0 %v10246_v62  ;;  %8932 = vmatpush1.bf16.msra.mxu1 %v10248_v63  ;;  %v10375_v62 = vcombine.high %v5933_v53, %v5941_v2  ;;  %v10377_v63 = vcombine.high %v5934_v37, %v5942_v57  ;;  %v5974_v18 = vld [vmem:[%s12930_s20 + $0x948] sm:$0xff]  ;;  %v5981_v15 = vld [vmem:[%s12930_s20 + $0x980] sm:$0xff] }
 0x749   : > { %8851 = vmatprep.subr.bf16.mxu0 %v10263_v0  ;;  %8933 = vmatprep.subr.bf16.mxu1 %v10265_v1  ;;  %v5949_v0 = vld [vmem:[%s12930_s20 + $0x880] sm:$0xff]  ;;  %v5982_v58 = vld [vmem:[%s12930_s20 + $0x988] sm:$0xff] }
 0x74a   : > { %v5957_v1 = vld [vmem:[%s12930_s20 + $0x8c0] sm:$0xff]  ;;  %v5990_v60 = vld [vmem:[%s12930_s20 + $0x9c8] sm:$0xff] }
 0x74b   : > { %v5989_v17 = vld [vmem:[%s12930_s20 + $0x9c0] sm:$0xff]  ;;  %v5998_v32 = vld [vmem:[%s12930_s20 + $0xa08] sm:$0xff] }
 0x74c   : > { %8852 = vmatpush1.bf16.msra.mxu0 %v10262_v5  ;;  %8934 = vmatpush1.bf16.msra.mxu1 %v10264_v6  ;;  %v10374_v5 = vcombine.low %v5933_v53, %v5941_v2  ;;  %v10376_v6 = vcombine.low %v5934_v37, %v5942_v57  ;;  %v5997_v19 = vld [vmem:[%s12930_s20 + $0xa00] sm:$0xff]  ;;  %v6006_v33 = vld [vmem:[%s12930_s20 + $0xa48] sm:$0xff] }
 0x74d   : > { %8853 = vmatprep.subr.bf16.mxu0 %v10279_v7  ;;  %8935 = vmatprep.subr.bf16.mxu1 %v10281_v8  ;;  %v10391_v7 = vcombine.high %v5949_v0, %v5957_v1  ;;  %v10393_v8 = vcombine.high %v5950_v47, %v5958_v25  ;;  %v6005_v31 = vld [vmem:[%s12930_s20 + $0xa40] sm:$0xff]  ;;  %v6014_v13 = vld [vmem:[%s12930_s20 + $0xa88] sm:$0xff] }
 0x74e   : > { %v6013_v36 = vld [vmem:[%s12930_s20 + $0xa80] sm:$0xff]  ;;  %v6022_v38 = vld [vmem:[%s12930_s20 + $0xac8] sm:$0xff] }
 0x74f   : > { %v6021_v12 = vld [vmem:[%s12930_s20 + $0xac0] sm:$0xff]  ;;  %v6030_v44 = vld [vmem:[%s12930_s20 + $0xb08] sm:$0xff] }
 0x750   : > { %8854 = vmatpush1.bf16.msra.mxu0 %v10278_v54  ;;  %8936 = vmatpush1.bf16.msra.mxu1 %v10280_v20  ;;  %v10390_v54 = vcombine.low %v5949_v0, %v5957_v1  ;;  %v10392_v20 = vcombine.low %v5950_v47, %v5958_v25  ;;  %v6029_v43 = vld [vmem:[%s12930_s20 + $0xb00] sm:$0xff]  ;;  %v6038_v45 = vld [vmem:[%s12930_s20 + $0xb48] sm:$0xff]  ;;  %v10454_v23 = vcombine.low %v6013_v36, %v6021_v12 }
 0x751   : > { %8855 = vmatprep.subr.bf16.mxu0 %v10295_v14  ;;  %8937 = vmatprep.subr.bf16.mxu1 %v10297_v22  ;;  %v10407_v14 = vcombine.high %v5965_v10, %v5973_v27  ;;  %v10409_v22 = vcombine.high %v5966_v39, %v5974_v18  ;;  %v6037_v42 = vld [vmem:[%s12930_s20 + $0xb40] sm:$0xff]  ;;  %v6046_v2 = vld [vmem:[%s12930_s20 + $0xb88] sm:$0xff] }
 0x752   : > { %v6053_v53 = vld [vmem:[%s12930_s20 + $0xbc0] sm:$0xff]  ;;  %v6054_v37 = vld [vmem:[%s12930_s20 + $0xbc8] sm:$0xff]  ;;  %v10470_v57 = vcombine.low %v6029_v43, %v6037_v42 }
 0x753   : > { %v6069_v0 = vld [vmem:[%s12930_s20 + $0xc40] sm:$0xff]  ;;  %v6062_v1 = vld [vmem:[%s12930_s20 + $0xc08] sm:$0xff]  ;;  %v10488_v25 = vcombine.low %v6046_v2, %v6054_v37 }
 0x754   : > { %8856 = vmatpush1.bf16.msra.mxu0 %v10294_v9  ;;  %8938 = vmatpush1.bf16.msra.mxu1 %v10296_v24  ;;  %v10406_v9 = vcombine.low %v5965_v10, %v5973_v27  ;;  %v10408_v24 = vcombine.low %v5966_v39, %v5974_v18  ;;  %v6070_v49 = vld [vmem:[%s12930_s20 + $0xc48] sm:$0xff] }
 0x755   : > { %8857 = vmatprep.subr.bf16.mxu0 %v10311_v26  ;;  %8939 = vmatprep.subr.bf16.mxu1 %v10313_v29  ;;  %v10423_v26 = vcombine.high %v5981_v15, %v5989_v17  ;;  %v10425_v29 = vcombine.high %v5982_v58, %v5990_v60  ;;  %v6078_v10 = vld [vmem:[%s12930_s20 + $0xc88] sm:$0xff]  ;;  %v10504_v18 = vcombine.low %v6062_v1, %v6070_v49 }
 0x756   : > { %v6086_v27 = vld [vmem:[%s12930_s20 + $0xcc8] sm:$0xff] }
 0x758   : > { %8858 = vmatpush1.bf16.msra.mxu0 %v10310_v34  ;;  %8940 = vmatpush1.bf16.msra.mxu1 %v10312_v28  ;;  %v10422_v34 = vcombine.low %v5981_v15, %v5989_v17  ;;  %v10424_v28 = vcombine.low %v5982_v58, %v5990_v60  ;;  %v6094_v15 = vld [vmem:[%s12930_s20 + $0xd08] sm:$0xff]  ;;  %v10520_v60 = vcombine.low %v6078_v10, %v6086_v27 }
 0x759   : > { %8859 = vmatprep.subr.bf16.mxu0 %v10327_v35  ;;  %8941 = vmatprep.subr.bf16.mxu1 %v10329_v55  ;;  %v10439_v35 = vcombine.high %v5997_v19, %v6005_v31  ;;  %v10441_v55 = vcombine.high %v5998_v32, %v6006_v33  ;;  %v6102_v17 = vld [vmem:[%s12930_s20 + $0xd48] sm:$0xff] }
 0x75c   : > { %8860 = vmatpush1.bf16.msra.mxu0 %v10326_v30  ;;  %8942 = vmatpush1.bf16.msra.mxu1 %v10328_v21  ;;  %v10438_v30 = vcombine.low %v5997_v19, %v6005_v31  ;;  %v10440_v21 = vcombine.low %v5998_v32, %v6006_v33  ;;  %v6110_v19 = vld [vmem:[%s12930_s20 + $0xd88] sm:$0xff]  ;;  %v10536_v33 = vcombine.low %v6094_v15, %v6102_v17 }
 0x75d   : > { %8861 = vmatprep.subr.bf16.mxu0 %v10343_v40  ;;  %8943 = vmatprep.subr.bf16.mxu1 %v10345_v41  ;;  %v10455_v40 = vcombine.high %v6013_v36, %v6021_v12  ;;  %v10457_v41 = vcombine.high %v6014_v13, %v6022_v38  ;;  %v6118_v31 = vld [vmem:[%s12930_s20 + $0xdc8] sm:$0xff] }
 0x75e   : > { %v6126_v36 = vld [vmem:[%s12930_s20 + $0xe08] sm:$0xff] }
 0x75f   : > { %v6134_v12 = vld [vmem:[%s12930_s20 + $0xe48] sm:$0xff] }
 0x760   : > { %8862 = vmatpush1.bf16.msra.mxu0 %v10342_v48  ;;  %8944 = vmatpush1.bf16.msra.mxu1 %v10344_v50  ;;  %v10456_v48 = vcombine.low %v6014_v13, %v6022_v38  ;;  %v10471_v50 = vcombine.high %v6029_v43, %v6037_v42  ;;  %v10552_v38 = vcombine.low %v6110_v19, %v6118_v31  ;;  %v6142_v43 = vld [vmem:[%s12930_s20 + $0xe88] sm:$0xff] }
 0x761   : > { %8863 = vmatprep.subr.bf16.mxu0 %v10359_v51  ;;  %8945 = vmatprep.subr.bf16.mxu1 %v10361_v52  ;;  %v10473_v51 = vcombine.high %v6030_v44, %v6038_v45  ;;  %v6045_v52 = vld [vmem:[%s12930_s20 + $0xb80] sm:$0xff]  ;;  %v6150_v42 = vld [vmem:[%s12930_s20 + $0xec8] sm:$0xff] }
 0x762   : > { %v10486_v47 = vcombine.low %v6045_v52, %v6053_v53 }
 0x764   : > { %8864 = vmatpush1.bf16.msra.mxu0 %v10358_v59  ;;  %8946 = vmatpush1.bf16.msra.mxu1 %v10360_v61  ;;  %v10472_v59 = vcombine.low %v6030_v44, %v6038_v45  ;;  %v10487_v61 = vcombine.high %v6045_v52, %v6053_v53  ;;  %v10568_v45 = vcombine.low %v6126_v36, %v6134_v12  ;;  %v6158_v52 = vld [vmem:[%s12930_s20 + $0xf08] sm:$0xff] }
 0x765   : > { %8874 = vmatprep.subr.bf16.mxu0 %v10375_v62  ;;  %8956 = vmatprep.subr.bf16.mxu1 %v10377_v63  ;;  %v10489_v62 = vcombine.high %v6046_v2, %v6054_v37  ;;  %v6061_v63 = vld [vmem:[%s12930_s20 + $0xc00] sm:$0xff]  ;;  %v6166_v53 = vld [vmem:[%s12930_s20 + $0xf48] sm:$0xff]  ;;  %v10584_v37 = vcombine.low %v6142_v43, %v6150_v42 }
 0x766   : > { %v10502_v39 = vcombine.low %v6061_v63, %v6069_v0 }
 0x767   : > { %8866 = vmatmul.mubr.bf16.vlgmr.msra.gmra.mrb[0].mxu0 %v14736_v4  ;;  %8948 = vmatmul.mubr.bf16.vlgmr.msra.gmra.mrb[0].mxu1 %v14736_v4 }
 0x768   : > { %8875 = vmatpush1.bf16.msra.mxu0 %v10374_v5  ;;  %8957 = vmatpush1.bf16.msra.mxu1 %v10376_v6  ;;  %v10503_v5 = vcombine.high %v6061_v63, %v6069_v0  ;;  %v10505_v6 = vcombine.high %v6062_v1, %v6070_v49  ;;  %v6174_v63 = vld [vmem:[%s12930_s20 + $0xf88] sm:$0xff]  ;;  %v10600_v49 = vcombine.low %v6158_v52, %v6166_v53 }
 0x769   : > { %8876 = vmatprep.subr.bf16.mxu0 %v10391_v7  ;;  %8958 = vmatprep.subr.bf16.mxu1 %v10393_v8  ;;  %v6077_v7 = vld [vmem:[%s12930_s20 + $0xc80] sm:$0xff]  ;;  %v6182_v0 = vld [vmem:[%s12930_s20 + $0xfc8] sm:$0xff] }
 0x76a   : > { %8906 = vmatprep.mubr.bf16.mxu0 %v14742_v16  ;;  %8988 = vmatprep.mubr.bf16.mxu1 %v14742_v16  ;;  %v6085_v8 = vld [vmem:[%s12930_s20 + $0xcc0] sm:$0xff] }
 0x76b   : > { %v10518_v58 = vcombine.low %v6077_v7, %v6085_v8 }
 0x76c   : > { %8877 = vmatpush1.bf16.msra.mxu0 %v10390_v54  ;;  %8959 = vmatpush1.bf16.msra.mxu1 %v10392_v20  ;;  %v10519_v54 = vcombine.high %v6077_v7, %v6085_v8  ;;  %v10521_v20 = vcombine.high %v6078_v10, %v6086_v27  ;;  %v5680_v7 = vld [vmem:[%s12930_s20 + $0x18] sm:$0xff]  ;;  %v10616_v27 = vcombine.low %v6174_v63, %v6182_v0 }
 0x76d   : > { %8878 = vmatprep.subr.bf16.mxu0 %v10407_v14  ;;  %8960 = vmatprep.subr.bf16.mxu1 %v10409_v22  ;;  %v6093_v14 = vld [vmem:[%s12930_s20 + $0xd00] sm:$0xff]  ;;  %v5688_v8 = vld [vmem:[%s12930_s20 + $0x58] sm:$0xff] }
 0x76e   : > { %v6101_v22 = vld [vmem:[%s12930_s20 + $0xd40] sm:$0xff] }
 0x76f   : > { %v10534_v32 = vcombine.low %v6093_v14, %v6101_v22 }
 0x770   : > { %8879 = vmatpush1.bf16.msra.mxu0 %v10406_v9  ;;  %8961 = vmatpush1.bf16.msra.mxu1 %v10408_v24  ;;  %v10535_v9 = vcombine.high %v6093_v14, %v6101_v22  ;;  %v10537_v24 = vcombine.high %v6094_v15, %v6102_v17  ;;  %v14810_v14 = vpack.c.bf16 %v14726_v56, %v14726_v56  ;;  %v5696_v22 = vld [vmem:[%s12930_s20 + $0x98] sm:$0xff] }
 0x771   : > { %8880 = vmatprep.subr.bf16.mxu0 %v10423_v26  ;;  %8962 = vmatprep.subr.bf16.mxu1 %v10425_v29  ;;  %v6109_v26 = vld [vmem:[%s12930_s20 + $0xd80] sm:$0xff]  ;;  %v5704_v15 = vld [vmem:[%s12930_s20 + $0xd8] sm:$0xff] }
 0x772   : > { %v6117_v29 = vld [vmem:[%s12930_s20 + $0xdc0] sm:$0xff]  ;;  %v5712_v56 = vld [vmem:[%s12930_s20 + $0x118] sm:$0xff] }
 0x773   : > { %v10550_v13 = vcombine.low %v6109_v26, %v6117_v29 }
 0x774   : > { %8881 = vmatpush1.bf16.msra.mxu0 %v10422_v34  ;;  %8963 = vmatpush1.bf16.msra.mxu1 %v10424_v28  ;;  %v10551_v34 = vcombine.high %v6109_v26, %v6117_v29  ;;  %v10553_v28 = vcombine.high %v6110_v19, %v6118_v31  ;;  %v5719_v26 = vld [vmem:[%s12930_s20 + $0x150] sm:$0xff]  ;;  %v5720_v29 = vld [vmem:[%s12930_s20 + $0x158] sm:$0xff]  ;;  %v10140_v31 = vcombine.low %v5696_v22, %v5704_v15 }
 0x775   : > { %8882 = vmatprep.subr.bf16.mxu0 %v10439_v35  ;;  %8964 = vmatprep.subr.bf16.mxu1 %v10441_v55  ;;  %v6125_v35 = vld [vmem:[%s12930_s20 + $0xe00] sm:$0xff] }
 0x776   : > { %v6133_v55 = vld [vmem:[%s12930_s20 + $0xe40] sm:$0xff] }
 0x777   : > { %v10566_v44 = vcombine.low %v6125_v35, %v6133_v55 }
 0x778   : > { %8883 = vmatpush1.bf16.msra.mxu0 %v10438_v30  ;;  %8965 = vmatpush1.bf16.msra.mxu1 %v10440_v21  ;;  %v10567_v30 = vcombine.high %v6125_v35, %v6133_v55  ;;  %v10569_v21 = vcombine.high %v6126_v36, %v6134_v12  ;;  %v5728_v35 = vld [vmem:[%s12930_s20 + $0x198] sm:$0xff]  ;;  %v10156_v12 = vcombine.low %v5712_v56, %v5720_v29 }
 0x779   : > { %8884 = vmatprep.subr.bf16.mxu0 %v10455_v40  ;;  %8966 = vmatprep.subr.bf16.mxu1 %v10457_v41  ;;  %v6141_v40 = vld [vmem:[%s12930_s20 + $0xe80] sm:$0xff]  ;;  %v5736_v55 = vld [vmem:[%s12930_s20 + $0x1d8] sm:$0xff] }
 0x77a   : > { %v6149_v41 = vld [vmem:[%s12930_s20 + $0xec0] sm:$0xff] }
 0x77b   : > { %v10582_v2 = vcombine.low %v6141_v40, %v6149_v41 }
 0x77c   : > { %8885 = vmatpush1.bf16.msra.mxu0 %v10454_v23  ;;  %8967 = vmatpush1.bf16.msra.mxu1 %v10456_v48  ;;  %v10583_v23 = vcombine.high %v6141_v40, %v6149_v41  ;;  %v10585_v48 = vcombine.high %v6142_v43, %v6150_v42  ;;  %v5744_v40 = vld [vmem:[%s12930_s20 + $0x218] sm:$0xff]  ;;  %v10172_v42 = vcombine.low %v5728_v35, %v5736_v55 }
 0x77d   : > { %8886 = vmatprep.subr.bf16.mxu0 %v10471_v50  ;;  %8968 = vmatprep.subr.bf16.mxu1 %v10473_v51  ;;  %v6157_v50 = vld [vmem:[%s12930_s20 + $0xf00] sm:$0xff]  ;;  %v5752_v41 = vld [vmem:[%s12930_s20 + $0x258] sm:$0xff] }
 0x77e   : > { %v6165_v51 = vld [vmem:[%s12930_s20 + $0xf40] sm:$0xff] }
 0x77f   : > { %v10598_v1 = vcombine.low %v6157_v50, %v6165_v51 }
 0x780   : > { %8887 = vmatpush1.bf16.msra.mxu0 %v10470_v57  ;;  %8969 = vmatpush1.bf16.msra.mxu1 %v10472_v59  ;;  %v10599_v57 = vcombine.high %v6157_v50, %v6165_v51  ;;  %v10601_v59 = vcombine.high %v6158_v52, %v6166_v53  ;;  %v5760_v50 = vld [vmem:[%s12930_s20 + $0x298] sm:$0xff]  ;;  %v10188_v53 = vcombine.low %v5744_v40, %v5752_v41 }
 0x781   : > { %8888 = vmatprep.subr.bf16.mxu0 %v10487_v61  ;;  %8970 = vmatprep.subr.bf16.mxu1 %v10489_v62  ;;  %v6173_v61 = vld [vmem:[%s12930_s20 + $0xf80] sm:$0xff]  ;;  %v5768_v51 = vld [vmem:[%s12930_s20 + $0x2d8] sm:$0xff] }
 0x782   : > { %v6181_v62 = vld [vmem:[%s12930_s20 + $0xfc0] sm:$0xff] }
 0x783   : > { %v10614_v10 = vcombine.low %v6173_v61, %v6181_v62 }
 0x784   : > { %8889 = vmatpush1.bf16.msra.mxu0 %v10486_v47  ;;  %8971 = vmatpush1.bf16.msra.mxu1 %v10488_v25  ;;  %v10615_v47 = vcombine.high %v6173_v61, %v6181_v62  ;;  %v10617_v25 = vcombine.high %v6174_v63, %v6182_v0  ;;  %v5776_v61 = vld [vmem:[%s12930_s20 + $0x318] sm:$0xff]  ;;  %v10204_v0 = vcombine.low %v5760_v50, %v5768_v51 }
 0x785   : > { %8890 = vmatprep.subr.bf16.mxu0 %v10503_v5  ;;  %8972 = vmatprep.subr.bf16.mxu1 %v10505_v6  ;;  %v5679_v5 = vld [vmem:[%s12930_s20 + $0x10] sm:$0xff]  ;;  %v5784_v62 = vld [vmem:[%s12930_s20 + $0x358] sm:$0xff] }
 0x786   : > { %v5687_v6 = vld [vmem:[%s12930_s20 + $0x50] sm:$0xff] }
 0x787   : > { %v10122_v17 = vcombine.low %v5679_v5, %v5687_v6 }
 0x788   : > { %8891 = vmatpush1.bf16.msra.mxu0 %v10502_v39  ;;  %8973 = vmatpush1.bf16.msra.mxu1 %v10504_v18  ;;  %v10123_v39 = vcombine.high %v5679_v5, %v5687_v6  ;;  %v10125_v18 = vcombine.high %v5680_v7, %v5688_v8  ;;  %v5792_v5 = vld [vmem:[%s12930_s20 + $0x398] sm:$0xff] }
 0x789   : > { %8892 = vmatprep.subr.bf16.mxu0 %v10519_v54  ;;  %8974 = vmatprep.subr.bf16.mxu1 %v10521_v20  ;;  %v5695_v54 = vld [vmem:[%s12930_s20 + $0x90] sm:$0xff]  ;;  %v5800_v6 = vld [vmem:[%s12930_s20 + $0x3d8] sm:$0xff] }
 0x78a   : > { %v5703_v20 = vld [vmem:[%s12930_s20 + $0xd0] sm:$0xff] }
 0x78b   : > { %v10138_v19 = vcombine.low %v5695_v54, %v5703_v20 }
 0x78c   : > { %8893 = vmatpush1.bf16.msra.mxu0 %v10518_v58  ;;  %8975 = vmatpush1.bf16.msra.mxu1 %v10520_v60  ;;  %v10124_v58 = vcombine.low %v5680_v7, %v5688_v8  ;;  %v10139_v60 = vcombine.high %v5695_v54, %v5703_v20  ;;  %v10220_v8 = vcombine.low %v5776_v61, %v5784_v62  ;;  %v5808_v54 = vld [vmem:[%s12930_s20 + $0x418] sm:$0xff] }
 0x78d   : > { %8894 = vmatprep.subr.bf16.mxu0 %v10535_v9  ;;  %8976 = vmatprep.subr.bf16.mxu1 %v10537_v24  ;;  %v10141_v9 = vcombine.high %v5696_v22, %v5704_v15  ;;  %v5711_v24 = vld [vmem:[%s12930_s20 + $0x110] sm:$0xff]  ;;  %v5816_v20 = vld [vmem:[%s12930_s20 + $0x458] sm:$0xff]  ;;  %v10236_v15 = vcombine.low %v5792_v5, %v5800_v6 }
 0x78e   : > { %v10154_v36 = vcombine.low %v5711_v24, %v5719_v26 }
 0x790   : > { %8895 = vmatpush1.bf16.msra.mxu0 %v10534_v32  ;;  %8977 = vmatpush1.bf16.msra.mxu1 %v10536_v33  ;;  %v10155_v32 = vcombine.high %v5711_v24, %v5719_v26  ;;  %v10157_v33 = vcombine.high %v5712_v56, %v5720_v29  ;;  %v5824_v24 = vld [vmem:[%s12930_s20 + $0x498] sm:$0xff]  ;;  %v10252_v29 = vcombine.low %v5808_v54, %v5816_v20 }
 0x791   : > { %8896 = vmatprep.subr.bf16.mxu0 %v10551_v34  ;;  %8978 = vmatprep.subr.bf16.mxu1 %v10553_v28  ;;  %v5727_v34 = vld [vmem:[%s12930_s20 + $0x190] sm:$0xff]  ;;  %v5832_v26 = vld [vmem:[%s12930_s20 + $0x4d8] sm:$0xff] }
 0x792   : > { %v5735_v28 = vld [vmem:[%s12930_s20 + $0x1d0] sm:$0xff] }
 0x793   : > { %v10170_v43 = vcombine.low %v5727_v34, %v5735_v28 }
 0x794   : > { %8897 = vmatpush1.bf16.msra.mxu0 %v10550_v13  ;;  %8979 = vmatpush1.bf16.msra.mxu1 %v10552_v38  ;;  %v10171_v13 = vcombine.high %v5727_v34, %v5735_v28  ;;  %v10173_v38 = vcombine.high %v5728_v35, %v5736_v55  ;;  %v5840_v34 = vld [vmem:[%s12930_s20 + $0x518] sm:$0xff]  ;;  %v10268_v55 = vcombine.low %v5824_v24, %v5832_v26 }
 0x795   : > { %8898 = vmatprep.subr.bf16.mxu0 %v10567_v30  ;;  %8980 = vmatprep.subr.bf16.mxu1 %v10569_v21  ;;  %v5743_v30 = vld [vmem:[%s12930_s20 + $0x210] sm:$0xff]  ;;  %v5848_v28 = vld [vmem:[%s12930_s20 + $0x558] sm:$0xff] }
 0x796   : > { %v5751_v21 = vld [vmem:[%s12930_s20 + $0x250] sm:$0xff] }
 0x797   : > { %v10186_v52 = vcombine.low %v5743_v30, %v5751_v21 }
 0x798   : > { %8899 = vmatpush1.bf16.msra.mxu0 %v10566_v44  ;;  %8981 = vmatpush1.bf16.msra.mxu1 %v10568_v45  ;;  %v10187_v44 = vcombine.high %v5743_v30, %v5751_v21  ;;  %v10189_v45 = vcombine.high %v5744_v40, %v5752_v41  ;;  %v5856_v30 = vld [vmem:[%s12930_s20 + $0x598] sm:$0xff]  ;;  %v10284_v41 = vcombine.low %v5840_v34, %v5848_v28 }
 0x799   : > { %8900 = vmatprep.subr.bf16.mxu0 %v10583_v23  ;;  %8982 = vmatprep.subr.bf16.mxu1 %v10585_v48  ;;  %v5759_v23 = vld [vmem:[%s12930_s20 + $0x290] sm:$0xff]  ;;  %v5864_v21 = vld [vmem:[%s12930_s20 + $0x5d8] sm:$0xff] }
 0x79a   : > { %v5767_v48 = vld [vmem:[%s12930_s20 + $0x2d0] sm:$0xff] }
 0x79b   : > { %v10202_v63 = vcombine.low %v5759_v23, %v5767_v48 }
 0x79c   : > { %8901 = vmatpush1.bf16.msra.mxu0 %v10582_v2  ;;  %8983 = vmatpush1.bf16.msra.mxu1 %v10584_v37  ;;  %v10203_v2 = vcombine.high %v5759_v23, %v5767_v48  ;;  %v10205_v37 = vcombine.high %v5760_v50, %v5768_v51  ;;  %v5872_v23 = vld [vmem:[%s12930_s20 + $0x618] sm:$0xff]  ;;  %v10300_v51 = vcombine.low %v5856_v30, %v5864_v21 }
 0x79d   : > { %8902 = vmatprep.subr.bf16.mxu0 %v10599_v57  ;;  %8984 = vmatprep.subr.bf16.mxu1 %v10601_v59  ;;  %v5775_v57 = vld [vmem:[%s12930_s20 + $0x310] sm:$0xff]  ;;  %v5880_v48 = vld [vmem:[%s12930_s20 + $0x658] sm:$0xff] }
 0x79e   : > { %v5783_v59 = vld [vmem:[%s12930_s20 + $0x350] sm:$0xff] }
 0x79f   : > { %v10218_v7 = vcombine.low %v5775_v57, %v5783_v59 }
 0x7a0   : > { %8903 = vmatpush1.bf16.msra.mxu0 %v10598_v1  ;;  %8985 = vmatpush1.bf16.msra.mxu1 %v10600_v49  ;;  %v10219_v1 = vcombine.high %v5775_v57, %v5783_v59  ;;  %v10221_v49 = vcombine.high %v5776_v61, %v5784_v62  ;;  %v5888_v57 = vld [vmem:[%s12930_s20 + $0x698] sm:$0xff]  ;;  %v10316_v62 = vcombine.low %v5872_v23, %v5880_v48 }
 0x7a1   : > { %8904 = vmatprep.subr.bf16.mxu0 %v10615_v47  ;;  %8986 = vmatprep.subr.bf16.mxu1 %v10617_v25  ;;  %v5791_v47 = vld [vmem:[%s12930_s20 + $0x390] sm:$0xff]  ;;  %v5896_v59 = vld [vmem:[%s12930_s20 + $0x6d8] sm:$0xff] }
 0x7a2   : > { %v5799_v25 = vld [vmem:[%s12930_s20 + $0x3d0] sm:$0xff] }
 0x7a3   : > { %v10234_v22 = vcombine.low %v5791_v47, %v5799_v25 }
 0x7a4   : > { %8905 = vmatpush1.bf16.msra.mxu0 %v10614_v10  ;;  %8987 = vmatpush1.bf16.msra.mxu1 %v10616_v27  ;;  %v10235_v10 = vcombine.high %v5791_v47, %v5799_v25  ;;  %v10237_v27 = vcombine.high %v5792_v5, %v5800_v6  ;;  %v5904_v47 = vld [vmem:[%s12930_s20 + $0x718] sm:$0xff]  ;;  %v10332_v6 = vcombine.low %v5888_v57, %v5896_v59 }
 0x7a5   : > { %8997 = vmatprep.subr.bf16.mxu0 %v10123_v39  ;;  %9079 = vmatprep.subr.bf16.mxu1 %v10125_v18  ;;  %v5807_v39 = vld [vmem:[%s12930_s20 + $0x410] sm:$0xff]  ;;  %v5912_v25 = vld [vmem:[%s12930_s20 + $0x758] sm:$0xff] }
 0x7a6   : > { %v5815_v18 = vld [vmem:[%s12930_s20 + $0x450] sm:$0xff] }
 0x7a7   : > { %8907 = vmatmul.mubr.bf16.vlgmr.msra.gmra.mrb[0].mxu0 %v14810_v14  ;;  %8989 = vmatmul.mubr.bf16.vlgmr.msra.gmra.mrb[0].mxu1 %v14810_v14  ;;  %v10250_v56 = vcombine.low %v5807_v39, %v5815_v18 }
 0x7a8   : > { %8998 = vmatpush1.bf16.msra.mxu0 %v10122_v17  ;;  %9080 = vmatpush1.bf16.msra.mxu1 %v10124_v58  ;;  %v10251_v17 = vcombine.high %v5807_v39, %v5815_v18  ;;  %v10253_v58 = vcombine.high %v5808_v54, %v5816_v20  ;;  %v5920_v39 = vld [vmem:[%s12930_s20 + $0x798] sm:$0xff]  ;;  %v10348_v20 = vcombine.low %v5904_v47, %v5912_v25 }
 0x7a9   : > { %8999 = vmatprep.subr.bf16.mxu0 %v10139_v60  ;;  %9081 = vmatprep.subr.bf16.mxu1 %v10141_v9  ;;  %v5823_v60 = vld [vmem:[%s12930_s20 + $0x490] sm:$0xff]  ;;  %v5928_v18 = vld [vmem:[%s12930_s20 + $0x7d8] sm:$0xff] }
 0x7aa   : > { %9029 = vmatprep.mubr.bf16.mxu0 %v14687_v46  ;;  %9111 = vmatprep.mubr.bf16.mxu1 %v14687_v46  ;;  %v5831_v9 = vld [vmem:[%s12930_s20 + $0x4d0] sm:$0xff] }
 0x7ab   : > { %v10266_v35 = vcombine.low %v5823_v60, %v5831_v9 }
 0x7ac   : > { %9000 = vmatpush1.bf16.msra.mxu0 %v10138_v19  ;;  %9082 = vmatpush1.bf16.msra.mxu1 %v10140_v31  ;;  %v10267_v19 = vcombine.high %v5823_v60, %v5831_v9  ;;  %v10269_v31 = vcombine.high %v5824_v24, %v5832_v26  ;;  %v5936_v60 = vld [vmem:[%s12930_s20 + $0x818] sm:$0xff]  ;;  %v10364_v26 = vcombine.low %v5920_v39, %v5928_v18 }
 0x7ad   : > { %9001 = vmatprep.subr.bf16.mxu0 %v10155_v32  ;;  %9083 = vmatprep.subr.bf16.mxu1 %v10157_v33  ;;  %v5839_v32 = vld [vmem:[%s12930_s20 + $0x510] sm:$0xff]  ;;  %v5944_v9 = vld [vmem:[%s12930_s20 + $0x858] sm:$0xff] }
 0x7ae   : > { %v5847_v33 = vld [vmem:[%s12930_s20 + $0x550] sm:$0xff] }
 0x7af   : > { %v10282_v40 = vcombine.low %v5839_v32, %v5847_v33 }
 0x7b0   : > { %9002 = vmatpush1.bf16.msra.mxu0 %v10154_v36  ;;  %9084 = vmatpush1.bf16.msra.mxu1 %v10156_v12  ;;  %v10283_v36 = vcombine.high %v5839_v32, %v5847_v33  ;;  %v10285_v12 = vcombine.high %v5840_v34, %v5848_v28  ;;  %v5952_v32 = vld [vmem:[%s12930_s20 + $0x898] sm:$0xff]  ;;  %v10380_v28 = vcombine.low %v5936_v60, %v5944_v9 }
 0x7b1   : > { %9003 = vmatprep.subr.bf16.mxu0 %v10171_v13  ;;  %9085 = vmatprep.subr.bf16.mxu1 %v10173_v38  ;;  %v5855_v13 = vld [vmem:[%s12930_s20 + $0x590] sm:$0xff]  ;;  %v5960_v33 = vld [vmem:[%s12930_s20 + $0x8d8] sm:$0xff] }
 0x7b2   : > { %v5863_v38 = vld [vmem:[%s12930_s20 + $0x5d0] sm:$0xff] }
 0x7b3   : > { %v10298_v50 = vcombine.low %v5855_v13, %v5863_v38 }
 0x7b4   : > { %9004 = vmatpush1.bf16.msra.mxu0 %v10170_v43  ;;  %9086 = vmatpush1.bf16.msra.mxu1 %v10172_v42  ;;  %v10299_v43 = vcombine.high %v5855_v13, %v5863_v38  ;;  %v10301_v42 = vcombine.high %v5856_v30, %v5864_v21  ;;  %v5968_v13 = vld [vmem:[%s12930_s20 + $0x918] sm:$0xff]  ;;  %v10396_v21 = vcombine.low %v5952_v32, %v5960_v33 }
 0x7b5   : > { %9005 = vmatprep.subr.bf16.mxu0 %v10187_v44  ;;  %9087 = vmatprep.subr.bf16.mxu1 %v10189_v45  ;;  %v5871_v44 = vld [vmem:[%s12930_s20 + $0x610] sm:$0xff]  ;;  %v5976_v38 = vld [vmem:[%s12930_s20 + $0x958] sm:$0xff] }
 0x7b6   : > { %v5879_v45 = vld [vmem:[%s12930_s20 + $0x650] sm:$0xff] }
 0x7b7   : > { %v10314_v61 = vcombine.low %v5871_v44, %v5879_v45 }
 0x7b8   : > { %9006 = vmatpush1.bf16.msra.mxu0 %v10186_v52  ;;  %9088 = vmatpush1.bf16.msra.mxu1 %v10188_v53  ;;  %v10315_v52 = vcombine.high %v5871_v44, %v5879_v45  ;;  %v10317_v53 = vcombine.high %v5872_v23, %v5880_v48  ;;  %v5984_v44 = vld [vmem:[%s12930_s20 + $0x998] sm:$0xff]  ;;  %v10412_v48 = vcombine.low %v5968_v13, %v5976_v38 }
 0x7b9   : > { %9007 = vmatprep.subr.bf16.mxu0 %v10203_v2  ;;  %9089 = vmatprep.subr.bf16.mxu1 %v10205_v37  ;;  %v5887_v2 = vld [vmem:[%s12930_s20 + $0x690] sm:$0xff]  ;;  %v5992_v45 = vld [vmem:[%s12930_s20 + $0x9d8] sm:$0xff] }
 0x7ba   : > { %v5895_v37 = vld [vmem:[%s12930_s20 + $0x6d0] sm:$0xff] }
 0x7bb   : > { %v10330_v5 = vcombine.low %v5887_v2, %v5895_v37 }
 0x7bc   : > { %9008 = vmatpush1.bf16.msra.mxu0 %v10202_v63  ;;  %9090 = vmatpush1.bf16.msra.mxu1 %v10204_v0  ;;  %v10331_v63 = vcombine.high %v5887_v2, %v5895_v37  ;;  %v10333_v0 = vcombine.high %v5888_v57, %v5896_v59  ;;  %v6000_v2 = vld [vmem:[%s12930_s20 + $0xa18] sm:$0xff]  ;;  %v10428_v59 = vcombine.low %v5984_v44, %v5992_v45 }
 0x7bd   : > { %9009 = vmatprep.subr.bf16.mxu0 %v10219_v1  ;;  %9091 = vmatprep.subr.bf16.mxu1 %v10221_v49  ;;  %v5903_v1 = vld [vmem:[%s12930_s20 + $0x710] sm:$0xff]  ;;  %v6008_v37 = vld [vmem:[%s12930_s20 + $0xa58] sm:$0xff] }
 0x7be   : > { %v5911_v49 = vld [vmem:[%s12930_s20 + $0x750] sm:$0xff] }
 0x7bf   : > { %v10346_v54 = vcombine.low %v5903_v1, %v5911_v49 }
 0x7c0   : > { %9010 = vmatpush1.bf16.msra.mxu0 %v10218_v7  ;;  %9092 = vmatpush1.bf16.msra.mxu1 %v10220_v8  ;;  %v10347_v7 = vcombine.high %v5903_v1, %v5911_v49  ;;  %v10349_v8 = vcombine.high %v5904_v47, %v5912_v25  ;;  %v6016_v1 = vld [vmem:[%s12930_s20 + $0xa98] sm:$0xff]  ;;  %v10444_v25 = vcombine.low %v6000_v2, %v6008_v37 }
 0x7c1   : > { %9011 = vmatprep.subr.bf16.mxu0 %v10235_v10  ;;  %9093 = vmatprep.subr.bf16.mxu1 %v10237_v27  ;;  %v5919_v10 = vld [vmem:[%s12930_s20 + $0x790] sm:$0xff]  ;;  %v6024_v49 = vld [vmem:[%s12930_s20 + $0xad8] sm:$0xff] }
 0x7c2   : > { %v5927_v27 = vld [vmem:[%s12930_s20 + $0x7d0] sm:$0xff] }
 0x7c3   : > { %v10362_v24 = vcombine.low %v5919_v10, %v5927_v27 }
 0x7c4   : > { %9012 = vmatpush1.bf16.msra.mxu0 %v10234_v22  ;;  %9094 = vmatpush1.bf16.msra.mxu1 %v10236_v15  ;;  %v10363_v22 = vcombine.high %v5919_v10, %v5927_v27  ;;  %v10365_v15 = vcombine.high %v5920_v39, %v5928_v18  ;;  %v6032_v10 = vld [vmem:[%s12930_s20 + $0xb18] sm:$0xff]  ;;  %v10460_v18 = vcombine.low %v6016_v1, %v6024_v49 }
 0x7c5   : > { %9013 = vmatprep.subr.bf16.mxu0 %v10251_v17  ;;  %9095 = vmatprep.subr.bf16.mxu1 %v10253_v58  ;;  %v5935_v17 = vld [vmem:[%s12930_s20 + $0x810] sm:$0xff]  ;;  %v6040_v27 = vld [vmem:[%s12930_s20 + $0xb58] sm:$0xff] }
 0x7c6   : > { %v5943_v58 = vld [vmem:[%s12930_s20 + $0x850] sm:$0xff] }
 0x7c7   : > { %v10378_v34 = vcombine.low %v5935_v17, %v5943_v58 }
 0x7c8   : > { %9014 = vmatpush1.bf16.msra.mxu0 %v10250_v56  ;;  %9096 = vmatpush1.bf16.msra.mxu1 %v10252_v29  ;;  %v10379_v56 = vcombine.high %v5935_v17, %v5943_v58  ;;  %v10381_v29 = vcombine.high %v5936_v60, %v5944_v9  ;;  %v6048_v17 = vld [vmem:[%s12930_s20 + $0xb98] sm:$0xff]  ;;  %v10476_v9 = vcombine.low %v6032_v10, %v6040_v27 }
 0x7c9   : > { %9015 = vmatprep.subr.bf16.mxu0 %v10267_v19  ;;  %9097 = vmatprep.subr.bf16.mxu1 %v10269_v31  ;;  %v5951_v19 = vld [vmem:[%s12930_s20 + $0x890] sm:$0xff]  ;;  %v6056_v58 = vld [vmem:[%s12930_s20 + $0xbd8] sm:$0xff] }
 0x7ca   : > { %v5959_v31 = vld [vmem:[%s12930_s20 + $0x8d0] sm:$0xff] }
 0x7cb   : > { %v10394_v30 = vcombine.low %v5951_v19, %v5959_v31 }
 0x7cc   : > { %9016 = vmatpush1.bf16.msra.mxu0 %v10266_v35  ;;  %9098 = vmatpush1.bf16.msra.mxu1 %v10268_v55  ;;  %v10395_v35 = vcombine.high %v5951_v19, %v5959_v31  ;;  %v10397_v55 = vcombine.high %v5952_v32, %v5960_v33  ;;  %v6064_v19 = vld [vmem:[%s12930_s20 + $0xc18] sm:$0xff]  ;;  %v10492_v33 = vcombine.low %v6048_v17, %v6056_v58 }
 0x7cd   : > { %9017 = vmatprep.subr.bf16.mxu0 %v10283_v36  ;;  %9099 = vmatprep.subr.bf16.mxu1 %v10285_v12  ;;  %v5967_v36 = vld [vmem:[%s12930_s20 + $0x910] sm:$0xff]  ;;  %v6072_v31 = vld [vmem:[%s12930_s20 + $0xc58] sm:$0xff] }
 0x7ce   : > { %v5975_v12 = vld [vmem:[%s12930_s20 + $0x950] sm:$0xff] }
 0x7cf   : > { %v10410_v23 = vcombine.low %v5967_v36, %v5975_v12 }
 0x7d0   : > { %9018 = vmatpush1.bf16.msra.mxu0 %v10282_v40  ;;  %9100 = vmatpush1.bf16.msra.mxu1 %v10284_v41  ;;  %v10411_v40 = vcombine.high %v5967_v36, %v5975_v12  ;;  %v10413_v41 = vcombine.high %v5968_v13, %v5976_v38  ;;  %v6080_v36 = vld [vmem:[%s12930_s20 + $0xc98] sm:$0xff]  ;;  %v10508_v38 = vcombine.low %v6064_v19, %v6072_v31 }
 0x7d1   : > { %9019 = vmatprep.subr.bf16.mxu0 %v10299_v43  ;;  %9101 = vmatprep.subr.bf16.mxu1 %v10301_v42  ;;  %v5983_v43 = vld [vmem:[%s12930_s20 + $0x990] sm:$0xff]  ;;  %v6088_v12 = vld [vmem:[%s12930_s20 + $0xcd8] sm:$0xff] }
 0x7d2   : > { %v5991_v42 = vld [vmem:[%s12930_s20 + $0x9d0] sm:$0xff] }
 0x7d3   : > { %v10426_v57 = vcombine.low %v5983_v43, %v5991_v42 }
 0x7d4   : > { %9020 = vmatpush1.bf16.msra.mxu0 %v10298_v50  ;;  %9102 = vmatpush1.bf16.msra.mxu1 %v10300_v51  ;;  %v10427_v50 = vcombine.high %v5983_v43, %v5991_v42  ;;  %v10429_v51 = vcombine.high %v5984_v44, %v5992_v45  ;;  %v6096_v43 = vld [vmem:[%s12930_s20 + $0xd18] sm:$0xff]  ;;  %v10524_v45 = vcombine.low %v6080_v36, %v6088_v12 }
 0x7d5   : > { %9021 = vmatprep.subr.bf16.mxu0 %v10315_v52  ;;  %9103 = vmatprep.subr.bf16.mxu1 %v10317_v53  ;;  %v5999_v52 = vld [vmem:[%s12930_s20 + $0xa10] sm:$0xff]  ;;  %v6104_v42 = vld [vmem:[%s12930_s20 + $0xd58] sm:$0xff] }
 0x7d6   : > { %v6007_v53 = vld [vmem:[%s12930_s20 + $0xa50] sm:$0xff] }
 0x7d7   : > { %v10442_v47 = vcombine.low %v5999_v52, %v6007_v53 }
 0x7d8   : > { %9022 = vmatpush1.bf16.msra.mxu0 %v10314_v61  ;;  %9104 = vmatpush1.bf16.msra.mxu1 %v10316_v62  ;;  %v10443_v61 = vcombine.high %v5999_v52, %v6007_v53  ;;  %v10445_v62 = vcombine.high %v6000_v2, %v6008_v37  ;;  %v6112_v52 = vld [vmem:[%s12930_s20 + $0xd98] sm:$0xff]  ;;  %v10540_v37 = vcombine.low %v6096_v43, %v6104_v42 }
 0x7d9   : > { %9023 = vmatprep.subr.bf16.mxu0 %v10331_v63  ;;  %9105 = vmatprep.subr.bf16.mxu1 %v10333_v0  ;;  %v6015_v63 = vld [vmem:[%s12930_s20 + $0xa90] sm:$0xff]  ;;  %v6120_v53 = vld [vmem:[%s12930_s20 + $0xdd8] sm:$0xff] }
 0x7da   : > { %v6023_v0 = vld [vmem:[%s12930_s20 + $0xad0] sm:$0xff] }
 0x7db   : > { %v10458_v39 = vcombine.low %v6015_v63, %v6023_v0 }
 0x7dc   : > { %9024 = vmatpush1.bf16.msra.mxu0 %v10330_v5  ;;  %9106 = vmatpush1.bf16.msra.mxu1 %v10332_v6  ;;  %v10459_v5 = vcombine.high %v6015_v63, %v6023_v0  ;;  %v10461_v6 = vcombine.high %v6016_v1, %v6024_v49  ;;  %v6128_v63 = vld [vmem:[%s12930_s20 + $0xe18] sm:$0xff]  ;;  %v10556_v49 = vcombine.low %v6112_v52, %v6120_v53 }
 0x7dd   : > { %9025 = vmatprep.subr.bf16.mxu0 %v10347_v7  ;;  %9107 = vmatprep.subr.bf16.mxu1 %v10349_v8  ;;  %v6031_v7 = vld [vmem:[%s12930_s20 + $0xb10] sm:$0xff]  ;;  %v6136_v0 = vld [vmem:[%s12930_s20 + $0xe58] sm:$0xff] }
 0x7de   : > { %v6039_v8 = vld [vmem:[%s12930_s20 + $0xb50] sm:$0xff] }
 0x7df   : > { %v10474_v60 = vcombine.low %v6031_v7, %v6039_v8 }
 0x7e0   : > { %9026 = vmatpush1.bf16.msra.mxu0 %v10346_v54  ;;  %9108 = vmatpush1.bf16.msra.mxu1 %v10348_v20  ;;  %v10475_v54 = vcombine.high %v6031_v7, %v6039_v8  ;;  %v10477_v20 = vcombine.high %v6032_v10, %v6040_v27  ;;  %v6144_v7 = vld [vmem:[%s12930_s20 + $0xe98] sm:$0xff]  ;;  %v10572_v27 = vcombine.low %v6128_v63, %v6136_v0 }
 0x7e1   : > { %9027 = vmatprep.subr.bf16.mxu0 %v10363_v22  ;;  %9109 = vmatprep.subr.bf16.mxu1 %v10365_v15  ;;  %v6047_v22 = vld [vmem:[%s12930_s20 + $0xb90] sm:$0xff]  ;;  %v6152_v8 = vld [vmem:[%s12930_s20 + $0xed8] sm:$0xff] }
 0x7e2   : > { %v6055_v15 = vld [vmem:[%s12930_s20 + $0xbd0] sm:$0xff] }
 0x7e3   : > { %v10490_v32 = vcombine.low %v6047_v22, %v6055_v15 }
 0x7e4   : > { %9028 = vmatpush1.bf16.msra.mxu0 %v10362_v24  ;;  %9110 = vmatpush1.bf16.msra.mxu1 %v10364_v26  ;;  %v10491_v24 = vcombine.high %v6047_v22, %v6055_v15  ;;  %v10493_v26 = vcombine.high %v6048_v17, %v6056_v58  ;;  %v6160_v22 = vld [vmem:[%s12930_s20 + $0xf18] sm:$0xff]  ;;  %v10588_v58 = vcombine.low %v6144_v7, %v6152_v8 }
 0x7e5   : > { %9038 = vmatprep.subr.bf16.mxu0 %v10379_v56  ;;  %9120 = vmatprep.subr.bf16.mxu1 %v10381_v29  ;;  %v6063_v56 = vld [vmem:[%s12930_s20 + $0xc10] sm:$0xff]  ;;  %v6168_v15 = vld [vmem:[%s12930_s20 + $0xf58] sm:$0xff] }
 0x7e6   : > { %v6071_v29 = vld [vmem:[%s12930_s20 + $0xc50] sm:$0xff] }
 0x7e7   : > { %9030 = vmatmul.mubr.bf16.vlgmr.msra.gmra.mrb[4].mxu0 %v14736_v4  ;;  %9112 = vmatmul.mubr.bf16.vlgmr.msra.gmra.mrb[4].mxu1 %v14736_v4  ;;  %v10506_v13 = vcombine.low %v6063_v56, %v6071_v29 }
 0x7e8   : > { %9039 = vmatpush1.bf16.msra.mxu0 %v10378_v34  ;;  %9121 = vmatpush1.bf16.msra.mxu1 %v10380_v28  ;;  %v10507_v34 = vcombine.high %v6063_v56, %v6071_v29  ;;  %v10509_v28 = vcombine.high %v6064_v19, %v6072_v31  ;;  %v6176_v56 = vld [vmem:[%s12930_s20 + $0xf98] sm:$0xff]  ;;  %v10604_v31 = vcombine.low %v6160_v22, %v6168_v15 }
 0x7e9   : > { %9040 = vmatprep.subr.bf16.mxu0 %v10395_v35  ;;  %9122 = vmatprep.subr.bf16.mxu1 %v10397_v55  ;;  %v6079_v35 = vld [vmem:[%s12930_s20 + $0xc90] sm:$0xff]  ;;  %v6184_v29 = vld [vmem:[%s12930_s20 + $0xfd8] sm:$0xff] }
 0x7ea   : > { %9070 = vmatprep.mubr.bf16.mxu0 %v14742_v16  ;;  %9152 = vmatprep.mubr.bf16.mxu1 %v14742_v16  ;;  %v6087_v55 = vld [vmem:[%s12930_s20 + $0xcd0] sm:$0xff] }
 0x7eb   : > { %v10522_v44 = vcombine.low %v6079_v35, %v6087_v55 }
 0x7ec   : > { %9041 = vmatpush1.bf16.msra.mxu0 %v10394_v30  ;;  %9123 = vmatpush1.bf16.msra.mxu1 %v10396_v21  ;;  %v10523_v30 = vcombine.high %v6079_v35, %v6087_v55  ;;  %v10525_v21 = vcombine.high %v6080_v36, %v6088_v12  ;;  %v5682_v35 = vld [vmem:[%s12930_s20 + $0x28] sm:$0xff]  ;;  %v10620_v12 = vcombine.low %v6176_v56, %v6184_v29 }
 0x7ed   : > { %9042 = vmatprep.subr.bf16.mxu0 %v10411_v40  ;;  %9124 = vmatprep.subr.bf16.mxu1 %v10413_v41  ;;  %v6095_v40 = vld [vmem:[%s12930_s20 + $0xd10] sm:$0xff]  ;;  %v5690_v55 = vld [vmem:[%s12930_s20 + $0x68] sm:$0xff] }
 0x7ee   : > { %v6103_v41 = vld [vmem:[%s12930_s20 + $0xd50] sm:$0xff] }
 0x7ef   : > { %v10538_v2 = vcombine.low %v6095_v40, %v6103_v41 }
 0x7f0   : > { %9043 = vmatpush1.bf16.msra.mxu0 %v10410_v23  ;;  %9125 = vmatpush1.bf16.msra.mxu1 %v10412_v48  ;;  %v10539_v23 = vcombine.high %v6095_v40, %v6103_v41  ;;  %v10541_v48 = vcombine.high %v6096_v43, %v6104_v42  ;;  %v5698_v40 = vld [vmem:[%s12930_s20 + $0xa8] sm:$0xff]  ;;  %v10128_v42 = vcombine.low %v5682_v35, %v5690_v55 }
 0x7f1   : > { %9044 = vmatprep.subr.bf16.mxu0 %v10427_v50  ;;  %9126 = vmatprep.subr.bf16.mxu1 %v10429_v51  ;;  %v6111_v50 = vld [vmem:[%s12930_s20 + $0xd90] sm:$0xff]  ;;  %v5706_v41 = vld [vmem:[%s12930_s20 + $0xe8] sm:$0xff] }
 0x7f2   : > { %v6119_v51 = vld [vmem:[%s12930_s20 + $0xdd0] sm:$0xff] }
 0x7f3   : > { %v10554_v1 = vcombine.low %v6111_v50, %v6119_v51 }
 0x7f4   : > { %9045 = vmatpush1.bf16.msra.mxu0 %v10426_v57  ;;  %9127 = vmatpush1.bf16.msra.mxu1 %v10428_v59  ;;  %v10555_v57 = vcombine.high %v6111_v50, %v6119_v51  ;;  %v10557_v59 = vcombine.high %v6112_v52, %v6120_v53  ;;  %v5714_v50 = vld [vmem:[%s12930_s20 + $0x128] sm:$0xff]  ;;  %v10144_v53 = vcombine.low %v5698_v40, %v5706_v41 }
 0x7f5   : > { %9046 = vmatprep.subr.bf16.mxu0 %v10443_v61  ;;  %9128 = vmatprep.subr.bf16.mxu1 %v10445_v62  ;;  %v6127_v61 = vld [vmem:[%s12930_s20 + $0xe10] sm:$0xff]  ;;  %v5722_v51 = vld [vmem:[%s12930_s20 + $0x168] sm:$0xff] }
 0x7f6   : > { %v6135_v62 = vld [vmem:[%s12930_s20 + $0xe50] sm:$0xff] }
 0x7f7   : > { %v10570_v10 = vcombine.low %v6127_v61, %v6135_v62 }
 0x7f8   : > { %9047 = vmatpush1.bf16.msra.mxu0 %v10442_v47  ;;  %9129 = vmatpush1.bf16.msra.mxu1 %v10444_v25  ;;  %v10571_v47 = vcombine.high %v6127_v61, %v6135_v62  ;;  %v10573_v25 = vcombine.high %v6128_v63, %v6136_v0  ;;  %v5730_v61 = vld [vmem:[%s12930_s20 + $0x1a8] sm:$0xff]  ;;  %v10160_v0 = vcombine.low %v5714_v50, %v5722_v51 }
 0x7f9   : > { %9048 = vmatprep.subr.bf16.mxu0 %v10459_v5  ;;  %9130 = vmatprep.subr.bf16.mxu1 %v10461_v6  ;;  %v6143_v5 = vld [vmem:[%s12930_s20 + $0xe90] sm:$0xff]  ;;  %v5738_v62 = vld [vmem:[%s12930_s20 + $0x1e8] sm:$0xff] }
 0x7fa   : > { %v6151_v6 = vld [vmem:[%s12930_s20 + $0xed0] sm:$0xff] }
 0x7fb   : > { %v10586_v17 = vcombine.low %v6143_v5, %v6151_v6 }
 0x7fc   : > { %9049 = vmatpush1.bf16.msra.mxu0 %v10458_v39  ;;  %9131 = vmatpush1.bf16.msra.mxu1 %v10460_v18  ;;  %v10587_v39 = vcombine.high %v6143_v5, %v6151_v6  ;;  %v10589_v18 = vcombine.high %v6144_v7, %v6152_v8  ;;  %v5746_v5 = vld [vmem:[%s12930_s20 + $0x228] sm:$0xff]  ;;  %v10176_v8 = vcombine.low %v5730_v61, %v5738_v62 }
 0x7fd   : > { %9050 = vmatprep.subr.bf16.mxu0 %v10475_v54  ;;  %9132 = vmatprep.subr.bf16.mxu1 %v10477_v20  ;;  %v6159_v54 = vld [vmem:[%s12930_s20 + $0xf10] sm:$0xff]  ;;  %v5754_v6 = vld [vmem:[%s12930_s20 + $0x268] sm:$0xff] }
 0x7fe   : > { %v6167_v20 = vld [vmem:[%s12930_s20 + $0xf50] sm:$0xff] }
 0x7ff   : > { %v10602_v19 = vcombine.low %v6159_v54, %v6167_v20 }
 0x800   : > { %9051 = vmatpush1.bf16.msra.mxu0 %v10474_v60  ;;  %9133 = vmatpush1.bf16.msra.mxu1 %v10476_v9  ;;  %v10603_v60 = vcombine.high %v6159_v54, %v6167_v20  ;;  %v10605_v9 = vcombine.high %v6160_v22, %v6168_v15  ;;  %v5762_v54 = vld [vmem:[%s12930_s20 + $0x2a8] sm:$0xff]  ;;  %v10192_v15 = vcombine.low %v5746_v5, %v5754_v6 }
 0x801   : > { %9052 = vmatprep.subr.bf16.mxu0 %v10491_v24  ;;  %9134 = vmatprep.subr.bf16.mxu1 %v10493_v26  ;;  %v6175_v24 = vld [vmem:[%s12930_s20 + $0xf90] sm:$0xff]  ;;  %v5770_v20 = vld [vmem:[%s12930_s20 + $0x2e8] sm:$0xff] }
 0x802   : > { %v6183_v26 = vld [vmem:[%s12930_s20 + $0xfd0] sm:$0xff] }
 0x803   : > { %v10618_v36 = vcombine.low %v6175_v24, %v6183_v26 }
 0x804   : > { %9053 = vmatpush1.bf16.msra.mxu0 %v10490_v32  ;;  %9135 = vmatpush1.bf16.msra.mxu1 %v10492_v33  ;;  %v10619_v32 = vcombine.high %v6175_v24, %v6183_v26  ;;  %v10621_v33 = vcombine.high %v6176_v56, %v6184_v29  ;;  %v5778_v24 = vld [vmem:[%s12930_s20 + $0x328] sm:$0xff]  ;;  %v10208_v29 = vcombine.low %v5762_v54, %v5770_v20 }
 0x805   : > { %9054 = vmatprep.subr.bf16.mxu0 %v10507_v34  ;;  %9136 = vmatprep.subr.bf16.mxu1 %v10509_v28  ;;  %v5681_v34 = vld [vmem:[%s12930_s20 + $0x20] sm:$0xff]  ;;  %v5786_v26 = vld [vmem:[%s12930_s20 + $0x368] sm:$0xff] }
 0x806   : > { %v5689_v28 = vld [vmem:[%s12930_s20 + $0x60] sm:$0xff] }
 0x807   : > { %v10126_v43 = vcombine.low %v5681_v34, %v5689_v28 }
 0x808   : > { %9055 = vmatpush1.bf16.msra.mxu0 %v10506_v13  ;;  %9137 = vmatpush1.bf16.msra.mxu1 %v10508_v38  ;;  %v10127_v13 = vcombine.high %v5681_v34, %v5689_v28  ;;  %v10129_v38 = vcombine.high %v5682_v35, %v5690_v55  ;;  %v5794_v34 = vld [vmem:[%s12930_s20 + $0x3a8] sm:$0xff]  ;;  %v10224_v55 = vcombine.low %v5778_v24, %v5786_v26 }
 0x809   : > { %9056 = vmatprep.subr.bf16.mxu0 %v10523_v30  ;;  %9138 = vmatprep.subr.bf16.mxu1 %v10525_v21  ;;  %v5697_v30 = vld [vmem:[%s12930_s20 + $0xa0] sm:$0xff]  ;;  %v5802_v28 = vld [vmem:[%s12930_s20 + $0x3e8] sm:$0xff] }
 0x80a   : > { %v5705_v21 = vld [vmem:[%s12930_s20 + $0xe0] sm:$0xff] }
 0x80b   : > { %v10142_v52 = vcombine.low %v5697_v30, %v5705_v21 }
 0x80c   : > { %9057 = vmatpush1.bf16.msra.mxu0 %v10522_v44  ;;  %9139 = vmatpush1.bf16.msra.mxu1 %v10524_v45  ;;  %v10143_v44 = vcombine.high %v5697_v30, %v5705_v21  ;;  %v10145_v45 = vcombine.high %v5698_v40, %v5706_v41  ;;  %v5810_v30 = vld [vmem:[%s12930_s20 + $0x428] sm:$0xff]  ;;  %v10240_v41 = vcombine.low %v5794_v34, %v5802_v28 }
 0x80d   : > { %9058 = vmatprep.subr.bf16.mxu0 %v10539_v23  ;;  %9140 = vmatprep.subr.bf16.mxu1 %v10541_v48  ;;  %v5713_v23 = vld [vmem:[%s12930_s20 + $0x120] sm:$0xff]  ;;  %v5818_v21 = vld [vmem:[%s12930_s20 + $0x468] sm:$0xff] }
 0x80e   : > { %v5721_v48 = vld [vmem:[%s12930_s20 + $0x160] sm:$0xff] }
 0x80f   : > { %v10158_v63 = vcombine.low %v5713_v23, %v5721_v48 }
 0x810   : > { %9059 = vmatpush1.bf16.msra.mxu0 %v10538_v2  ;;  %9141 = vmatpush1.bf16.msra.mxu1 %v10540_v37  ;;  %v10159_v2 = vcombine.high %v5713_v23, %v5721_v48  ;;  %v10161_v37 = vcombine.high %v5714_v50, %v5722_v51  ;;  %v5826_v23 = vld [vmem:[%s12930_s20 + $0x4a8] sm:$0xff]  ;;  %v10256_v51 = vcombine.low %v5810_v30, %v5818_v21 }
 0x811   : > { %9060 = vmatprep.subr.bf16.mxu0 %v10555_v57  ;;  %9142 = vmatprep.subr.bf16.mxu1 %v10557_v59  ;;  %v5729_v57 = vld [vmem:[%s12930_s20 + $0x1a0] sm:$0xff]  ;;  %v5834_v48 = vld [vmem:[%s12930_s20 + $0x4e8] sm:$0xff] }
 0x812   : > { %v5737_v59 = vld [vmem:[%s12930_s20 + $0x1e0] sm:$0xff] }
 0x813   : > { %v10174_v7 = vcombine.low %v5729_v57, %v5737_v59 }
 0x814   : > { %9061 = vmatpush1.bf16.msra.mxu0 %v10554_v1  ;;  %9143 = vmatpush1.bf16.msra.mxu1 %v10556_v49  ;;  %v10175_v1 = vcombine.high %v5729_v57, %v5737_v59  ;;  %v10177_v49 = vcombine.high %v5730_v61, %v5738_v62  ;;  %v5842_v57 = vld [vmem:[%s12930_s20 + $0x528] sm:$0xff]  ;;  %v10272_v62 = vcombine.low %v5826_v23, %v5834_v48 }
 0x815   : > { %9062 = vmatprep.subr.bf16.mxu0 %v10571_v47  ;;  %9144 = vmatprep.subr.bf16.mxu1 %v10573_v25  ;;  %v5745_v47 = vld [vmem:[%s12930_s20 + $0x220] sm:$0xff]  ;;  %v5850_v59 = vld [vmem:[%s12930_s20 + $0x568] sm:$0xff] }
 0x816   : > { %v5753_v25 = vld [vmem:[%s12930_s20 + $0x260] sm:$0xff] }
 0x817   : > { %v10190_v22 = vcombine.low %v5745_v47, %v5753_v25 }
 0x818   : > { %9063 = vmatpush1.bf16.msra.mxu0 %v10570_v10  ;;  %9145 = vmatpush1.bf16.msra.mxu1 %v10572_v27  ;;  %v10191_v10 = vcombine.high %v5745_v47, %v5753_v25  ;;  %v10193_v27 = vcombine.high %v5746_v5, %v5754_v6  ;;  %v5858_v47 = vld [vmem:[%s12930_s20 + $0x5a8] sm:$0xff]  ;;  %v10288_v6 = vcombine.low %v5842_v57, %v5850_v59 }
 0x819   : > { %9064 = vmatprep.subr.bf16.mxu0 %v10587_v39  ;;  %9146 = vmatprep.subr.bf16.mxu1 %v10589_v18  ;;  %v5761_v39 = vld [vmem:[%s12930_s20 + $0x2a0] sm:$0xff]  ;;  %v5866_v25 = vld [vmem:[%s12930_s20 + $0x5e8] sm:$0xff] }
 0x81a   : > { %v5769_v18 = vld [vmem:[%s12930_s20 + $0x2e0] sm:$0xff] }
 0x81b   : > { %v10206_v56 = vcombine.low %v5761_v39, %v5769_v18 }
 0x81c   : > { %9065 = vmatpush1.bf16.msra.mxu0 %v10586_v17  ;;  %9147 = vmatpush1.bf16.msra.mxu1 %v10588_v58  ;;  %v10207_v17 = vcombine.high %v5761_v39, %v5769_v18  ;;  %v10209_v58 = vcombine.high %v5762_v54, %v5770_v20  ;;  %v5874_v39 = vld [vmem:[%s12930_s20 + $0x628] sm:$0xff]  ;;  %v10304_v20 = vcombine.low %v5858_v47, %v5866_v25 }
 0x81d   : > { %9066 = vmatprep.subr.bf16.mxu0 %v10603_v60  ;;  %9148 = vmatprep.subr.bf16.mxu1 %v10605_v9  ;;  %v5777_v60 = vld [vmem:[%s12930_s20 + $0x320] sm:$0xff]  ;;  %v5882_v18 = vld [vmem:[%s12930_s20 + $0x668] sm:$0xff] }
 0x81e   : > { %v5785_v9 = vld [vmem:[%s12930_s20 + $0x360] sm:$0xff] }
 0x81f   : > { %v10222_v35 = vcombine.low %v5777_v60, %v5785_v9 }
 0x820   : > { %9067 = vmatpush1.bf16.msra.mxu0 %v10602_v19  ;;  %9149 = vmatpush1.bf16.msra.mxu1 %v10604_v31  ;;  %v10223_v19 = vcombine.high %v5777_v60, %v5785_v9  ;;  %v10225_v31 = vcombine.high %v5778_v24, %v5786_v26  ;;  %v5890_v60 = vld [vmem:[%s12930_s20 + $0x6a8] sm:$0xff]  ;;  %v10320_v26 = vcombine.low %v5874_v39, %v5882_v18 }
 0x821   : > { %9068 = vmatprep.subr.bf16.mxu0 %v10619_v32  ;;  %9150 = vmatprep.subr.bf16.mxu1 %v10621_v33  ;;  %v5793_v32 = vld [vmem:[%s12930_s20 + $0x3a0] sm:$0xff]  ;;  %v5898_v9 = vld [vmem:[%s12930_s20 + $0x6e8] sm:$0xff] }
 0x822   : > { %v5801_v33 = vld [vmem:[%s12930_s20 + $0x3e0] sm:$0xff] }
 0x823   : > { %v10238_v40 = vcombine.low %v5793_v32, %v5801_v33 }
 0x824   : > { %9069 = vmatpush1.bf16.msra.mxu0 %v10618_v36  ;;  %9151 = vmatpush1.bf16.msra.mxu1 %v10620_v12  ;;  %v10239_v36 = vcombine.high %v5793_v32, %v5801_v33  ;;  %v10241_v12 = vcombine.high %v5794_v34, %v5802_v28  ;;  %v5906_v32 = vld [vmem:[%s12930_s20 + $0x728] sm:$0xff]  ;;  %v10336_v28 = vcombine.low %v5890_v60, %v5898_v9 }
 0x825   : > { %9161 = vmatprep.subr.bf16.mxu0 %v10127_v13  ;;  %9243 = vmatprep.subr.bf16.mxu1 %v10129_v38  ;;  %v5809_v13 = vld [vmem:[%s12930_s20 + $0x420] sm:$0xff]  ;;  %v5914_v33 = vld [vmem:[%s12930_s20 + $0x768] sm:$0xff] }
 0x826   : > { %v5817_v38 = vld [vmem:[%s12930_s20 + $0x460] sm:$0xff] }
 0x827   : > { %9071 = vmatmul.mubr.bf16.vlgmr.msra.gmra.mrb[4].mxu0 %v14810_v14  ;;  %9153 = vmatmul.mubr.bf16.vlgmr.msra.gmra.mrb[4].mxu1 %v14810_v14  ;;  %v10254_v50 = vcombine.low %v5809_v13, %v5817_v38 }
 0x828   : > { %9162 = vmatpush1.bf16.msra.mxu0 %v10126_v43  ;;  %9244 = vmatpush1.bf16.msra.mxu1 %v10128_v42  ;;  %v10255_v43 = vcombine.high %v5809_v13, %v5817_v38  ;;  %v10257_v42 = vcombine.high %v5810_v30, %v5818_v21  ;;  %v5922_v13 = vld [vmem:[%s12930_s20 + $0x7a8] sm:$0xff]  ;;  %v10352_v21 = vcombine.low %v5906_v32, %v5914_v33 }
 0x829   : > { %9163 = vmatprep.subr.bf16.mxu0 %v10143_v44  ;;  %9245 = vmatprep.subr.bf16.mxu1 %v10145_v45  ;;  %v5825_v44 = vld [vmem:[%s12930_s20 + $0x4a0] sm:$0xff]  ;;  %v5930_v38 = vld [vmem:[%s12930_s20 + $0x7e8] sm:$0xff] }
 0x82a   : > { %9193 = vmatprep.mubr.bf16.mxu0 %v14687_v46  ;;  %9275 = vmatprep.mubr.bf16.mxu1 %v14687_v46  ;;  %v5833_v45 = vld [vmem:[%s12930_s20 + $0x4e0] sm:$0xff] }
 0x82b   : > { %v10270_v61 = vcombine.low %v5825_v44, %v5833_v45 }
 0x82c   : > { %9164 = vmatpush1.bf16.msra.mxu0 %v10142_v52  ;;  %9246 = vmatpush1.bf16.msra.mxu1 %v10144_v53  ;;  %v10271_v52 = vcombine.high %v5825_v44, %v5833_v45  ;;  %v10273_v53 = vcombine.high %v5826_v23, %v5834_v48  ;;  %v5938_v44 = vld [vmem:[%s12930_s20 + $0x828] sm:$0xff]  ;;  %v10368_v48 = vcombine.low %v5922_v13, %v5930_v38 }
 0x82d   : > { %9165 = vmatprep.subr.bf16.mxu0 %v10159_v2  ;;  %9247 = vmatprep.subr.bf16.mxu1 %v10161_v37  ;;  %v5841_v2 = vld [vmem:[%s12930_s20 + $0x520] sm:$0xff]  ;;  %v5946_v45 = vld [vmem:[%s12930_s20 + $0x868] sm:$0xff] }
 0x82e   : > { %v5849_v37 = vld [vmem:[%s12930_s20 + $0x560] sm:$0xff] }
 0x82f   : > { %v10286_v5 = vcombine.low %v5841_v2, %v5849_v37 }
 0x830   : > { %9166 = vmatpush1.bf16.msra.mxu0 %v10158_v63  ;;  %9248 = vmatpush1.bf16.msra.mxu1 %v10160_v0  ;;  %v10287_v63 = vcombine.high %v5841_v2, %v5849_v37  ;;  %v10289_v0 = vcombine.high %v5842_v57, %v5850_v59  ;;  %v5954_v2 = vld [vmem:[%s12930_s20 + $0x8a8] sm:$0xff]  ;;  %v10384_v59 = vcombine.low %v5938_v44, %v5946_v45 }
 0x831   : > { %9167 = vmatprep.subr.bf16.mxu0 %v10175_v1  ;;  %9249 = vmatprep.subr.bf16.mxu1 %v10177_v49  ;;  %v5857_v1 = vld [vmem:[%s12930_s20 + $0x5a0] sm:$0xff]  ;;  %v5962_v37 = vld [vmem:[%s12930_s20 + $0x8e8] sm:$0xff] }
 0x832   : > { %v5865_v49 = vld [vmem:[%s12930_s20 + $0x5e0] sm:$0xff] }
 0x833   : > { %v10302_v54 = vcombine.low %v5857_v1, %v5865_v49 }
 0x834   : > { %9168 = vmatpush1.bf16.msra.mxu0 %v10174_v7  ;;  %9250 = vmatpush1.bf16.msra.mxu1 %v10176_v8  ;;  %v10303_v7 = vcombine.high %v5857_v1, %v5865_v49  ;;  %v10305_v8 = vcombine.high %v5858_v47, %v5866_v25  ;;  %v5970_v1 = vld [vmem:[%s12930_s20 + $0x928] sm:$0xff]  ;;  %v10400_v25 = vcombine.low %v5954_v2, %v5962_v37 }
 0x835   : > { %9169 = vmatprep.subr.bf16.mxu0 %v10191_v10  ;;  %9251 = vmatprep.subr.bf16.mxu1 %v10193_v27  ;;  %v5873_v10 = vld [vmem:[%s12930_s20 + $0x620] sm:$0xff]  ;;  %v5978_v49 = vld [vmem:[%s12930_s20 + $0x968] sm:$0xff] }
 0x836   : > { %v5881_v27 = vld [vmem:[%s12930_s20 + $0x660] sm:$0xff] }
 0x837   : > { %v10318_v24 = vcombine.low %v5873_v10, %v5881_v27 }
 0x838   : > { %9170 = vmatpush1.bf16.msra.mxu0 %v10190_v22  ;;  %9252 = vmatpush1.bf16.msra.mxu1 %v10192_v15  ;;  %v10319_v22 = vcombine.high %v5873_v10, %v5881_v27  ;;  %v10321_v15 = vcombine.high %v5874_v39, %v5882_v18  ;;  %v5986_v10 = vld [vmem:[%s12930_s20 + $0x9a8] sm:$0xff]  ;;  %v10416_v18 = vcombine.low %v5970_v1, %v5978_v49 }
 0x839   : > { %9171 = vmatprep.subr.bf16.mxu0 %v10207_v17  ;;  %9253 = vmatprep.subr.bf16.mxu1 %v10209_v58  ;;  %v5889_v17 = vld [vmem:[%s12930_s20 + $0x6a0] sm:$0xff]  ;;  %v5994_v27 = vld [vmem:[%s12930_s20 + $0x9e8] sm:$0xff] }
 0x83a   : > { %v5897_v58 = vld [vmem:[%s12930_s20 + $0x6e0] sm:$0xff] }
 0x83b   : > { %v10334_v34 = vcombine.low %v5889_v17, %v5897_v58 }
 0x83c   : > { %9172 = vmatpush1.bf16.msra.mxu0 %v10206_v56  ;;  %9254 = vmatpush1.bf16.msra.mxu1 %v10208_v29  ;;  %v10335_v56 = vcombine.high %v5889_v17, %v5897_v58  ;;  %v10337_v29 = vcombine.high %v5890_v60, %v5898_v9  ;;  %v6002_v17 = vld [vmem:[%s12930_s20 + $0xa28] sm:$0xff]  ;;  %v10432_v9 = vcombine.low %v5986_v10, %v5994_v27 }
 0x83d   : > { %9173 = vmatprep.subr.bf16.mxu0 %v10223_v19  ;;  %9255 = vmatprep.subr.bf16.mxu1 %v10225_v31  ;;  %v5905_v19 = vld [vmem:[%s12930_s20 + $0x720] sm:$0xff]  ;;  %v6010_v58 = vld [vmem:[%s12930_s20 + $0xa68] sm:$0xff] }
 0x83e   : > { %v5913_v31 = vld [vmem:[%s12930_s20 + $0x760] sm:$0xff] }
 0x83f   : > { %v10350_v30 = vcombine.low %v5905_v19, %v5913_v31 }
 0x840   : > { %9174 = vmatpush1.bf16.msra.mxu0 %v10222_v35  ;;  %9256 = vmatpush1.bf16.msra.mxu1 %v10224_v55  ;;  %v10351_v35 = vcombine.high %v5905_v19, %v5913_v31  ;;  %v10353_v55 = vcombine.high %v5906_v32, %v5914_v33  ;;  %v6195_v19 = vsub.s32 0, %v14662_v3  ;;  %v6018_v31 = vld [vmem:[%s12930_s20 + $0xaa8] sm:$0xff] }
 0x841   : > { %9175 = vmatprep.subr.bf16.mxu0 %v10239_v36  ;;  %9257 = vmatprep.subr.bf16.mxu1 %v10241_v12  ;;  %v5921_v36 = vld [vmem:[%s12930_s20 + $0x7a0] sm:$0xff]  ;;  %v6026_v32 = vld [vmem:[%s12930_s20 + $0xae8] sm:$0xff] }
 0x842   : > { %v5929_v12 = vld [vmem:[%s12930_s20 + $0x7e0] sm:$0xff] }
 0x843   : > { %v10366_v23 = vcombine.low %v5921_v36, %v5929_v12 }
 0x844   : > { %9176 = vmatpush1.bf16.msra.mxu0 %v10238_v40  ;;  %9258 = vmatpush1.bf16.msra.mxu1 %v10240_v41  ;;  %v10367_v40 = vcombine.high %v5921_v36, %v5929_v12  ;;  %v10369_v41 = vcombine.high %v5922_v13, %v5930_v38  ;;  %v6207_v36 = vsub.s32 3, %v14662_v3  ;;  %v10465_v13 = vcombine.high %v6018_v31, %v6026_v32  ;;  %v6033_v38 = vld [vmem:[%s12930_s20 + $0xb20] sm:$0xff] }
 0x845   : > { %9177 = vmatprep.subr.bf16.mxu0 %v10255_v43  ;;  %9259 = vmatprep.subr.bf16.mxu1 %v10257_v42  ;;  %v5937_v43 = vld [vmem:[%s12930_s20 + $0x820] sm:$0xff] }
 0x846   : > { %v5945_v42 = vld [vmem:[%s12930_s20 + $0x860] sm:$0xff] }
 0x847   : > { %v10382_v57 = vcombine.low %v5937_v43, %v5945_v42 }
 0x848   : > { %9178 = vmatpush1.bf16.msra.mxu0 %v10254_v50  ;;  %9260 = vmatpush1.bf16.msra.mxu1 %v10256_v51  ;;  %v10383_v50 = vcombine.high %v5937_v43, %v5945_v42  ;;  %v10385_v51 = vcombine.high %v5938_v44, %v5946_v45 }
 0x849   : > { %9179 = vmatprep.subr.bf16.mxu0 %v10271_v52  ;;  %9261 = vmatprep.subr.bf16.mxu1 %v10273_v53  ;;  %v5953_v52 = vld [vmem:[%s12930_s20 + $0x8a0] sm:$0xff] }
 0x84a   : > { %v5961_v53 = vld [vmem:[%s12930_s20 + $0x8e0] sm:$0xff] }
 0x84b   : > { %v10398_v47 = vcombine.low %v5953_v52, %v5961_v53 }
 0x84c   : > { %9180 = vmatpush1.bf16.msra.mxu0 %v10270_v61  ;;  %9262 = vmatpush1.bf16.msra.mxu1 %v10272_v62  ;;  %v10399_v61 = vcombine.high %v5953_v52, %v5961_v53  ;;  %v10401_v62 = vcombine.high %v5954_v2, %v5962_v37  ;;  %v6049_v52 = vld [vmem:[%s12930_s20 + $0xba0] sm:$0xff] }
 0x84d   : > { %9181 = vmatprep.subr.bf16.mxu0 %v10287_v63  ;;  %9263 = vmatprep.subr.bf16.mxu1 %v10289_v0  ;;  %v5969_v63 = vld [vmem:[%s12930_s20 + $0x920] sm:$0xff] }
 0x84e   : > { %v5977_v0 = vld [vmem:[%s12930_s20 + $0x960] sm:$0xff] }
 0x84f   : > { %v10414_v39 = vcombine.low %v5969_v63, %v5977_v0  ;;  %v6057_v53 = vld [vmem:[%s12930_s20 + $0xbe0] sm:$0xff] }
 0x850   : > { %9182 = vmatpush1.bf16.msra.mxu0 %v10286_v5  ;;  %9264 = vmatpush1.bf16.msra.mxu1 %v10288_v6  ;;  %v10415_v5 = vcombine.high %v5969_v63, %v5977_v0  ;;  %v10417_v6 = vcombine.high %v5970_v1, %v5978_v49 }
 0x851   : > { %9183 = vmatprep.subr.bf16.mxu0 %v10303_v7  ;;  %9265 = vmatprep.subr.bf16.mxu1 %v10305_v8  ;;  %v5985_v7 = vld [vmem:[%s12930_s20 + $0x9a0] sm:$0xff] }
 0x852   : > { %v5993_v8 = vld [vmem:[%s12930_s20 + $0x9e0] sm:$0xff] }
 0x853   : > { %v10430_v60 = vcombine.low %v5985_v7, %v5993_v8 }
 0x854   : > { %9184 = vmatpush1.bf16.msra.mxu0 %v10302_v54  ;;  %9266 = vmatpush1.bf16.msra.mxu1 %v10304_v20  ;;  %v10431_v54 = vcombine.high %v5985_v7, %v5993_v8  ;;  %v10433_v20 = vcombine.high %v5986_v10, %v5994_v27  ;;  %v10495_v7 = vcombine.high %v6049_v52, %v6057_v53 }
 0x855   : > { %9185 = vmatprep.subr.bf16.mxu0 %v10319_v22  ;;  %9267 = vmatprep.subr.bf16.mxu1 %v10321_v15  ;;  %v6001_v22 = vld [vmem:[%s12930_s20 + $0xa20] sm:$0xff] }
 0x856   : > { %v6009_v15 = vld [vmem:[%s12930_s20 + $0xa60] sm:$0xff] }
 0x857   : > { %v10446_v33 = vcombine.low %v6001_v22, %v6009_v15 }
 0x858   : > { %9186 = vmatpush1.bf16.msra.mxu0 %v10318_v24  ;;  %9268 = vmatpush1.bf16.msra.mxu1 %v10320_v26  ;;  %v10447_v24 = vcombine.high %v6001_v22, %v6009_v15  ;;  %v10449_v26 = vcombine.high %v6002_v17, %v6010_v58  ;;  %v6074_v22 = vld [vmem:[%s12930_s20 + $0xc68] sm:$0xff] }
 0x859   : > { %9187 = vmatprep.subr.bf16.mxu0 %v10335_v56  ;;  %9269 = vmatprep.subr.bf16.mxu1 %v10337_v29  ;;  %v6017_v56 = vld [vmem:[%s12930_s20 + $0xaa0] sm:$0xff] }
 0x85a   : > { %v6025_v29 = vld [vmem:[%s12930_s20 + $0xae0] sm:$0xff] }
 0x85b   : > { %v10463_v12 = vcombine.high %v6017_v56, %v6025_v29  ;;  %v10462_v44 = vcombine.low %v6017_v56, %v6025_v29  ;;  %v6089_v56 = vld [vmem:[%s12930_s20 + $0xce0] sm:$0xff] }
 0x85c   : > { %9188 = vmatpush1.bf16.msra.mxu0 %v10334_v34  ;;  %9270 = vmatpush1.bf16.msra.mxu1 %v10336_v28  ;;  %v15040_v34 = vld [vmem:[%s12928_s19] sm:$0xff]  ;;  %v6203_v28 = vsub.s32 2, %v14662_v3 }
 0x85d   : > { %9189 = vmatprep.subr.bf16.mxu0 %v10351_v35  ;;  %9271 = vmatprep.subr.bf16.mxu1 %v10353_v55  ;;  %v6199_v35 = vsub.s32 1, %v14662_v3  ;;  %v10448_v55 = vcombine.low %v6002_v17, %v6010_v58  ;;  %v6208_v45 = vrot.slane %v15040_v34, %v6207_v36  ;;  %v10494_v17 = vcombine.low %v6049_v52, %v6057_v53 }
 0x85e   : > { %v6204_v43 = vrot.slane %v15040_v34, %v6203_v28 }
 0x85f   : > { %v6200_v42 = vrot.slane %v15040_v34, %v6199_v35 }
 0x860   : > { %9190 = vmatpush1.bf16.msra.mxu0 %v10350_v30  ;;  %9272 = vmatpush1.bf16.msra.mxu1 %v10352_v21  ;;  %v6041_v30 = vld [vmem:[%s12930_s20 + $0xb60] sm:$0xff]  ;;  %v6196_v21 = vrot.slane %v15040_v34, %v6195_v19 }
 0x861   : > { %9191 = vmatprep.subr.bf16.mxu0 %v10367_v40  ;;  %9273 = vmatprep.subr.bf16.mxu1 %v10369_v41  ;;  %v6034_v40 = vld [vmem:[%s12930_s20 + $0xb28] sm:$0xff]  ;;  %v10478_v49 = vcombine.low %v6033_v38, %v6041_v30 }
 0x862   : > { %v6042_v41 = vld [vmem:[%s12930_s20 + $0xb68] sm:$0xff] }
 0x864   : > { %9192 = vmatpush1.bf16.msra.mxu0 %v10366_v23  ;;  %9274 = vmatpush1.bf16.msra.mxu1 %v10368_v48  ;;  %v10464_v23 = vcombine.low %v6018_v31, %v6026_v32  ;;  %v10479_v48 = vcombine.high %v6033_v38, %v6041_v30  ;;  %v6082_v31 = vld [vmem:[%s12930_s20 + $0xca8] sm:$0xff]  ;;  %v6097_v38 = vld [vmem:[%s12930_s20 + $0xd20] sm:$0xff] }
 0x865   : > { %9202 = vmatprep.subr.bf16.mxu0 %v10383_v50  ;;  %9284 = vmatprep.subr.bf16.mxu1 %v10385_v51  ;;  %v10481_v51 = vcombine.high %v6034_v40, %v6042_v41  ;;  %v6090_v32 = vld [vmem:[%s12930_s20 + $0xce8] sm:$0xff]  ;;  %v6105_v30 = vld [vmem:[%s12930_s20 + $0xd60] sm:$0xff] }
 0x867   : > { %9194 = vmatmul.mubr.bf16.vlgmr.msra.gmra.mrb[8].mxu0 %v14736_v4  ;;  %9276 = vmatmul.mubr.bf16.vlgmr.msra.gmra.mrb[8].mxu1 %v14736_v4 }
 0x868   : > { %9203 = vmatpush1.bf16.msra.mxu0 %v10382_v57  ;;  %9285 = vmatpush1.bf16.msra.mxu1 %v10384_v59  ;;  %v6050_v59 = vld [vmem:[%s12930_s20 + $0xba8] sm:$0xff] }
 0x869   : > { %9204 = vmatprep.subr.bf16.mxu0 %v10399_v61  ;;  %9286 = vmatprep.subr.bf16.mxu1 %v10401_v62  ;;  %v6058_v61 = vld [vmem:[%s12930_s20 + $0xbe8] sm:$0xff] }
 0x86a   : > { %9234 = vmatprep.mubr.bf16.mxu0 %v14742_v16  ;;  %9316 = vmatprep.mubr.bf16.mxu1 %v14742_v16  ;;  %v10497_v27 = vcombine.high %v6050_v59, %v6058_v61 }
 0x86c   : > { %9205 = vmatpush1.bf16.msra.mxu0 %v10398_v47  ;;  %9287 = vmatpush1.bf16.msra.mxu1 %v10400_v25 }
 0x86d   : > { %9206 = vmatprep.subr.bf16.mxu0 %v10415_v5  ;;  %9288 = vmatprep.subr.bf16.mxu1 %v10417_v6  ;;  %v10480_v6 = vcombine.low %v6034_v40, %v6042_v41  ;;  %v6106_v40 = vld [vmem:[%s12930_s20 + $0xd68] sm:$0xff] }
 0x870   : > { %9207 = vmatpush1.bf16.msra.mxu0 %v10414_v39  ;;  %9289 = vmatpush1.bf16.msra.mxu1 %v10416_v18  ;;  %v6065_v39 = vld [vmem:[%s12930_s20 + $0xc20] sm:$0xff] }
 0x871   : > { %9208 = vmatprep.subr.bf16.mxu0 %v10431_v54  ;;  %9290 = vmatprep.subr.bf16.mxu1 %v10433_v20  ;;  %v6073_v18 = vld [vmem:[%s12930_s20 + $0xc60] sm:$0xff]  ;;  %v6066_v20 = vld [vmem:[%s12930_s20 + $0xc28] sm:$0xff] }
 0x874   : > { %9209 = vmatpush1.bf16.msra.mxu0 %v10430_v60  ;;  %9291 = vmatpush1.bf16.msra.mxu1 %v10432_v9  ;;  %v10496_v60 = vcombine.low %v6050_v59, %v6058_v61  ;;  %v10511_v9 = vcombine.high %v6065_v39, %v6073_v18  ;;  %v6130_v59 = vld [vmem:[%s12930_s20 + $0xe28] sm:$0xff] }
 0x875   : > { %9210 = vmatprep.subr.bf16.mxu0 %v10447_v24  ;;  %9292 = vmatprep.subr.bf16.mxu1 %v10449_v26  ;;  %v10513_v24 = vcombine.high %v6066_v20, %v6074_v22  ;;  %v6081_v26 = vld [vmem:[%s12930_s20 + $0xca0] sm:$0xff]  ;;  %v6138_v61 = vld [vmem:[%s12930_s20 + $0xe68] sm:$0xff] }
 0x876   : > { %v10526_v41 = vcombine.low %v6081_v26, %v6089_v56 }
 0x878   : > { %9211 = vmatpush1.bf16.msra.mxu0 %v10446_v33  ;;  %9293 = vmatpush1.bf16.msra.mxu1 %v10448_v55  ;;  %v10510_v33 = vcombine.low %v6065_v39, %v6073_v18  ;;  %v10512_v55 = vcombine.low %v6066_v20, %v6074_v22  ;;  %v6169_v39 = vld [vmem:[%s12930_s20 + $0xf60] sm:$0xff]  ;;  %v6162_v18 = vld [vmem:[%s12930_s20 + $0xf28] sm:$0xff] }
 0x879   : > { %9212 = vmatprep.subr.bf16.mxu0 %v10463_v12  ;;  %9294 = vmatprep.subr.bf16.mxu1 %v10465_v13  ;;  %v10527_v12 = vcombine.high %v6081_v26, %v6089_v56  ;;  %v10529_v13 = vcombine.high %v6082_v31, %v6090_v32 }
 0x87a   : > { %v8908_v50 = vpop.f32.mrb[0].mxu0  ;;  %v8990_v37 = vpop.f32.mrb[0].mxu1 }
 0x87b   : > { %v11070_v2 = vadd.f32 %v8908_v50, %v6196_v21  ;;  %v8910_v57 = vpop.f32.mrb[1].mxu0  ;;  %v11072_v62 = vadd.f32 %v8990_v37, %v6204_v43  ;;  %v8992_v0 = vpop.f32.mrb[1].mxu1  ;;  %v6098_v21 = vld [vmem:[%s12930_s20 + $0xd28] sm:$0xff]  ;;  %v10528_v43 = vcombine.low %v6082_v31, %v6090_v32  ;;  %v6129_v37 = vld [vmem:[%s12930_s20 + $0xe20] sm:$0xff]  ;;  %v5683_v32 = vld [vmem:[%s12930_s20 + $0x30] sm:$0xff] }
 0x87c   : > { %v11071_v63 = vadd.f32 %v8910_v57, %v6200_v42  ;;  %v8912_v1 = vpop.f32.mrb[2].mxu0  ;;  %9213 = vmatpush1.bf16.msra.mxu0 %v10462_v44  ;;  %v11073_v47 = vadd.f32 %v8992_v0, %v6208_v45  ;;  %v8994_v25 = vpop.f32.mrb[2].mxu1  ;;  %9295 = vmatpush1.bf16.msra.mxu1 %v10464_v23  ;;  %v10543_v42 = vcombine.high %v6097_v38, %v6105_v30  ;;  %v6113_v45 = vld [vmem:[%s12930_s20 + $0xda0] sm:$0xff]  ;;  %v6122_v50 = vld [vmem:[%s12930_s20 + $0xde8] sm:$0xff] }
 0x87d   : > { %v8913_v5 = vpop.f32.mrb[3].mxu0  ;;  %9214 = vmatprep.subr.bf16.mxu0 %v10479_v48  ;;  %v8995_v10 = vpop.f32.mrb[3].mxu1  ;;  %9296 = vmatprep.subr.bf16.mxu1 %v10481_v51  ;;  %v10545_v44 = vcombine.high %v6098_v21, %v6106_v40  ;;  %v6121_v23 = vld [vmem:[%s12930_s20 + $0xde0] sm:$0xff]  ;;  %v6114_v48 = vld [vmem:[%s12930_s20 + $0xda8] sm:$0xff]  ;;  %v10542_v51 = vcombine.low %v6097_v38, %v6105_v30  ;;  %v10544_v52 = vcombine.low %v6098_v21, %v6106_v40  ;;  %v5699_v40 = vld [vmem:[%s12930_s20 + $0xb0] sm:$0xff] }
 0x87e   : > { %v9505_v8 = vcombine.low %v11070_v2, %v11071_v63  ;;  %v9506_v54 = vcombine.low %v11072_v62, %v11073_v47  ;;  %v10559_v53 = vcombine.high %v6113_v45, %v6121_v23  ;;  %v10561_v2 = vcombine.high %v6114_v48, %v6122_v50  ;;  %v6137_v57 = vld [vmem:[%s12930_s20 + $0xe60] sm:$0xff]  ;;  %v6146_v25 = vld [vmem:[%s12930_s20 + $0xea8] sm:$0xff] }
 0x87f   : > { %v10558_v62 = vcombine.low %v6113_v45, %v6121_v23  ;;  %v10560_v63 = vcombine.low %v6114_v48, %v6122_v50  ;;  %v10575_v0 = vcombine.high %v6129_v37, %v6137_v57  ;;  %v10577_v1 = vcombine.high %v6130_v59, %v6138_v61  ;;  %v6153_v47 = vld [vmem:[%s12930_s20 + $0xee0] sm:$0xff]  ;;  %v6154_v5 = vld [vmem:[%s12930_s20 + $0xee8] sm:$0xff]  ;;  %v5715_v50 = vld [vmem:[%s12930_s20 + $0x130] sm:$0xff] }
 0x880   : > { %v9513_v15 = vrot.slane %v9505_v8, %v14669_v11  ;;  %9215 = vmatpush1.bf16.msra.mxu0 %v10478_v49  ;;  %v9520_v58 = vrot.slane %v9506_v54, %v14669_v11  ;;  %9297 = vmatpush1.bf16.msra.mxu1 %v10480_v6  ;;  %v6145_v49 = vld [vmem:[%s12930_s20 + $0xea0] sm:$0xff]  ;;  %v10574_v6 = vcombine.low %v6129_v37, %v6137_v57  ;;  %v6170_v54 = vld [vmem:[%s12930_s20 + $0xf68] sm:$0xff] }
 0x881   : > { %9216 = vmatprep.subr.bf16.mxu0 %v10495_v7  ;;  %9298 = vmatprep.subr.bf16.mxu1 %v10497_v27  ;;  %v10576_v7 = vcombine.low %v6130_v59, %v6138_v61  ;;  %v10591_v8 = vcombine.high %v6145_v49, %v6153_v47  ;;  %v10593_v10 = vcombine.high %v6146_v25, %v6154_v5  ;;  %v6161_v27 = vld [vmem:[%s12930_s20 + $0xf20] sm:$0xff]  ;;  %v5731_v61 = vld [vmem:[%s12930_s20 + $0x1b0] sm:$0xff] }
 0x882   : > { %v9521_v29 = vcombine.low %v9513_v15, %v9520_v58  ;;  %v10590_v20 = vcombine.low %v6145_v49, %v6153_v47  ;;  %v10592_v22 = vcombine.low %v6146_v25, %v6154_v5  ;;  %v10607_v15 = vcombine.high %v6161_v27, %v6169_v39  ;;  %v6177_v58 = vld [vmem:[%s12930_s20 + $0xfa0] sm:$0xff]  ;;  %v5747_v5 = vld [vmem:[%s12930_s20 + $0x230] sm:$0xff] }
 0x883   : > { %v10606_v26 = vcombine.low %v6161_v27, %v6169_v39  ;;  %v10608_v56 = vcombine.low %v6162_v18, %v6170_v54 }
 0x884   : > { %9217 = vmatpush1.bf16.msra.mxu0 %v10494_v17  ;;  %9577 = vst [vmem:[%s12932_s26] sm:$0xff] %v9521_v29  ;;  %9299 = vmatpush1.bf16.msra.mxu1 %v10496_v60  ;;  %v10609_v17 = vcombine.high %v6162_v18, %v6170_v54  ;;  %v6185_v60 = vld [vmem:[%s12930_s20 + $0xfe0] sm:$0xff]  ;;  %v5763_v18 = vld [vmem:[%s12930_s20 + $0x2b0] sm:$0xff] }
 0x885   : > { %9218 = vmatprep.subr.bf16.mxu0 %v10511_v9  ;;  %9300 = vmatprep.subr.bf16.mxu1 %v10513_v24  ;;  %v6178_v9 = vld [vmem:[%s12930_s20 + $0xfa8] sm:$0xff]  ;;  %v10623_v29 = vcombine.high %v6177_v58, %v6185_v60  ;;  %v5771_v54 = vld [vmem:[%s12930_s20 + $0x2f0] sm:$0xff] }
 0x886   : > { %v6186_v24 = vld [vmem:[%s12930_s20 + $0xfe8] sm:$0xff] }
 0x887   : > { %v10625_v31 = vcombine.high %v6178_v9, %v6186_v24  ;;  %v10624_v38 = vcombine.low %v6178_v9, %v6186_v24  ;;  %v5779_v9 = vld [vmem:[%s12930_s20 + $0x330] sm:$0xff] }
 0x888   : > { %9219 = vmatpush1.bf16.msra.mxu0 %v10510_v33  ;;  %9301 = vmatpush1.bf16.msra.mxu1 %v10512_v55  ;;  %v5691_v33 = vld [vmem:[%s12930_s20 + $0x70] sm:$0xff]  ;;  %v5684_v55 = vld [vmem:[%s12930_s20 + $0x38] sm:$0xff] }
 0x889   : > { %9220 = vmatprep.subr.bf16.mxu0 %v10527_v12  ;;  %9302 = vmatprep.subr.bf16.mxu1 %v10529_v13  ;;  %v5692_v12 = vld [vmem:[%s12930_s20 + $0x78] sm:$0xff]  ;;  %v10622_v13 = vcombine.low %v6177_v58, %v6185_v60  ;;  %v10131_v30 = vcombine.high %v5683_v32, %v5691_v33  ;;  %v10211_v58 = vcombine.high %v5763_v18, %v5771_v54  ;;  %v5787_v24 = vld [vmem:[%s12930_s20 + $0x370] sm:$0xff] }
 0x88a   : > { %v10133_v21 = vcombine.high %v5684_v55, %v5692_v12  ;;  %v10132_v45 = vcombine.low %v5684_v55, %v5692_v12  ;;  %v5795_v55 = vld [vmem:[%s12930_s20 + $0x3b0] sm:$0xff] }
 0x88b   : > { %v5803_v12 = vld [vmem:[%s12930_s20 + $0x3f0] sm:$0xff] }
 0x88c   : > { %9221 = vmatpush1.bf16.msra.mxu0 %v10526_v41  ;;  %9303 = vmatpush1.bf16.msra.mxu1 %v10528_v43  ;;  %v5707_v41 = vld [vmem:[%s12930_s20 + $0xf0] sm:$0xff]  ;;  %v5700_v43 = vld [vmem:[%s12930_s20 + $0xb8] sm:$0xff] }
 0x88d   : > { %9222 = vmatprep.subr.bf16.mxu0 %v10543_v42  ;;  %9304 = vmatprep.subr.bf16.mxu1 %v10545_v44  ;;  %v5708_v42 = vld [vmem:[%s12930_s20 + $0xf8] sm:$0xff]  ;;  %v10130_v44 = vcombine.low %v5683_v32, %v5691_v33  ;;  %v10147_v23 = vcombine.high %v5699_v40, %v5707_v41  ;;  %v10227_v32 = vcombine.high %v5779_v9, %v5787_v24 }
 0x88e   : > { %v10149_v48 = vcombine.high %v5700_v43, %v5708_v42  ;;  %v10148_v37 = vcombine.low %v5700_v43, %v5708_v42  ;;  %v5811_v43 = vld [vmem:[%s12930_s20 + $0x430] sm:$0xff] }
 0x88f   : > { %v5819_v42 = vld [vmem:[%s12930_s20 + $0x470] sm:$0xff] }
 0x890   : > { %9223 = vmatpush1.bf16.msra.mxu0 %v10542_v51  ;;  %9305 = vmatpush1.bf16.msra.mxu1 %v10544_v52  ;;  %v5723_v51 = vld [vmem:[%s12930_s20 + $0x170] sm:$0xff]  ;;  %v5716_v52 = vld [vmem:[%s12930_s20 + $0x138] sm:$0xff] }
 0x891   : > { %9224 = vmatprep.subr.bf16.mxu0 %v10559_v53  ;;  %9306 = vmatprep.subr.bf16.mxu1 %v10561_v2  ;;  %v5724_v53 = vld [vmem:[%s12930_s20 + $0x178] sm:$0xff]  ;;  %v10146_v2 = vcombine.low %v5699_v40, %v5707_v41  ;;  %v10163_v57 = vcombine.high %v5715_v50, %v5723_v51  ;;  %v10243_v40 = vcombine.high %v5795_v55, %v5803_v12 }
 0x892   : > { %v10165_v59 = vcombine.high %v5716_v52, %v5724_v53  ;;  %v10164_v49 = vcombine.low %v5716_v52, %v5724_v53  ;;  %v5827_v52 = vld [vmem:[%s12930_s20 + $0x4b0] sm:$0xff] }
 0x893   : > { %v5835_v53 = vld [vmem:[%s12930_s20 + $0x4f0] sm:$0xff] }
 0x894   : > { %9225 = vmatpush1.bf16.msra.mxu0 %v10558_v62  ;;  %9307 = vmatpush1.bf16.msra.mxu1 %v10560_v63  ;;  %v5739_v62 = vld [vmem:[%s12930_s20 + $0x1f0] sm:$0xff]  ;;  %v5732_v63 = vld [vmem:[%s12930_s20 + $0x1b8] sm:$0xff] }
 0x895   : > { %9226 = vmatprep.subr.bf16.mxu0 %v10575_v0  ;;  %9308 = vmatprep.subr.bf16.mxu1 %v10577_v1  ;;  %v5740_v0 = vld [vmem:[%s12930_s20 + $0x1f8] sm:$0xff]  ;;  %v10162_v1 = vcombine.low %v5715_v50, %v5723_v51  ;;  %v10179_v47 = vcombine.high %v5731_v61, %v5739_v62  ;;  %v10259_v50 = vcombine.high %v5811_v43, %v5819_v42 }
 0x896   : > { %v10181_v25 = vcombine.high %v5732_v63, %v5740_v0 }
 0x898   : > { %9227 = vmatpush1.bf16.msra.mxu0 %v10574_v6  ;;  %9309 = vmatpush1.bf16.msra.mxu1 %v10576_v7  ;;  %v5755_v6 = vld [vmem:[%s12930_s20 + $0x270] sm:$0xff]  ;;  %v5748_v7 = vld [vmem:[%s12930_s20 + $0x238] sm:$0xff] }
 0x899   : > { %9228 = vmatprep.subr.bf16.mxu0 %v10591_v8  ;;  %9310 = vmatprep.subr.bf16.mxu1 %v10593_v10  ;;  %v5756_v8 = vld [vmem:[%s12930_s20 + $0x278] sm:$0xff]  ;;  %v10178_v10 = vcombine.low %v5731_v61, %v5739_v62  ;;  %v10195_v27 = vcombine.high %v5747_v5, %v5755_v6  ;;  %v10275_v61 = vcombine.high %v5827_v52, %v5835_v53 }
 0x89a   : > { %v10197_v39 = vcombine.high %v5748_v7, %v5756_v8 }
 0x89c   : > { %9229 = vmatpush1.bf16.msra.mxu0 %v10590_v20  ;;  %9311 = vmatpush1.bf16.msra.mxu1 %v10592_v22  ;;  %v5764_v20 = vld [vmem:[%s12930_s20 + $0x2b8] sm:$0xff] }
 0x89d   : > { %9230 = vmatprep.subr.bf16.mxu0 %v10607_v15  ;;  %9312 = vmatprep.subr.bf16.mxu1 %v10609_v17  ;;  %v5772_v22 = vld [vmem:[%s12930_s20 + $0x2f8] sm:$0xff]  ;;  %v10194_v15 = vcombine.low %v5747_v5, %v5755_v6  ;;  %v10196_v17 = vcombine.low %v5748_v7, %v5756_v8  ;;  %v5859_v7 = vld [vmem:[%s12930_s20 + $0x5b0] sm:$0xff] }
 0x89e   : > { %v10213_v60 = vcombine.high %v5764_v20, %v5772_v22  ;;  %v5867_v8 = vld [vmem:[%s12930_s20 + $0x5f0] sm:$0xff] }
 0x8a0   : > { %9231 = vmatpush1.bf16.msra.mxu0 %v10606_v26  ;;  %9313 = vmatpush1.bf16.msra.mxu1 %v10608_v56  ;;  %v5780_v26 = vld [vmem:[%s12930_s20 + $0x338] sm:$0xff] }
 0x8a1   : > { %9232 = vmatprep.subr.bf16.mxu0 %v10623_v29  ;;  %9314 = vmatprep.subr.bf16.mxu1 %v10625_v31  ;;  %v5788_v56 = vld [vmem:[%s12930_s20 + $0x378] sm:$0xff]  ;;  %v10210_v29 = vcombine.low %v5763_v18, %v5771_v54  ;;  %v10212_v31 = vcombine.low %v5764_v20, %v5772_v22  ;;  %v10307_v18 = vcombine.high %v5859_v7, %v5867_v8  ;;  %v5875_v20 = vld [vmem:[%s12930_s20 + $0x630] sm:$0xff] }
 0x8a2   : > { %v10229_v33 = vcombine.high %v5780_v26, %v5788_v56  ;;  %v5883_v22 = vld [vmem:[%s12930_s20 + $0x670] sm:$0xff] }
 0x8a4   : > { %9233 = vmatpush1.bf16.msra.mxu0 %v10622_v13  ;;  %9315 = vmatpush1.bf16.msra.mxu1 %v10624_v38  ;;  %v5796_v13 = vld [vmem:[%s12930_s20 + $0x3b8] sm:$0xff] }
 0x8a5   : > { %9325 = vmatprep.subr.bf16.mxu0 %v10131_v30  ;;  %9407 = vmatprep.subr.bf16.mxu1 %v10133_v21  ;;  %v5804_v38 = vld [vmem:[%s12930_s20 + $0x3f8] sm:$0xff]  ;;  %v10226_v30 = vcombine.low %v5779_v9, %v5787_v24  ;;  %v10228_v21 = vcombine.low %v5780_v26, %v5788_v56  ;;  %v10323_v9 = vcombine.high %v5875_v20, %v5883_v22  ;;  %v5891_v26 = vld [vmem:[%s12930_s20 + $0x6b0] sm:$0xff] }
 0x8a6   : > { %v10245_v41 = vcombine.high %v5796_v13, %v5804_v38  ;;  %v5899_v56 = vld [vmem:[%s12930_s20 + $0x6f0] sm:$0xff] }
 0x8a7   : > { %9235 = vmatmul.mubr.bf16.vlgmr.msra.gmra.mrb[8].mxu0 %v14810_v14  ;;  %9317 = vmatmul.mubr.bf16.vlgmr.msra.gmra.mrb[8].mxu1 %v14810_v14 }
 0x8a8   : > { %9326 = vmatpush1.bf16.msra.mxu0 %v10130_v44  ;;  %9408 = vmatpush1.bf16.msra.mxu1 %v10132_v45  ;;  %v5812_v44 = vld [vmem:[%s12930_s20 + $0x438] sm:$0xff] }
 0x8a9   : > { %9327 = vmatprep.subr.bf16.mxu0 %v10147_v23  ;;  %9409 = vmatprep.subr.bf16.mxu1 %v10149_v48  ;;  %v5820_v45 = vld [vmem:[%s12930_s20 + $0x478] sm:$0xff]  ;;  %v10242_v23 = vcombine.low %v5795_v55, %v5803_v12  ;;  %v10244_v48 = vcombine.low %v5796_v13, %v5804_v38  ;;  %v10339_v55 = vcombine.high %v5891_v26, %v5899_v56  ;;  %v5907_v13 = vld [vmem:[%s12930_s20 + $0x730] sm:$0xff] }
 0x8aa   : > { %9357 = vmatprep.mubr.bf16.mxu0 %v14687_v46  ;;  %9439 = vmatprep.mubr.bf16.mxu1 %v14687_v46  ;;  %v10180_v46 = vcombine.low %v5732_v63, %v5740_v0  ;;  %v10261_v51 = vcombine.high %v5812_v44, %v5820_v45  ;;  %v5843_v63 = vld [vmem:[%s12930_s20 + $0x530] sm:$0xff] }
 0x8ab   : > { %v5851_v0 = vld [vmem:[%s12930_s20 + $0x570] sm:$0xff] }
 0x8ac   : > { %9328 = vmatpush1.bf16.msra.mxu0 %v10146_v2  ;;  %9410 = vmatpush1.bf16.msra.mxu1 %v10148_v37  ;;  %v5828_v2 = vld [vmem:[%s12930_s20 + $0x4b8] sm:$0xff]  ;;  %v10291_v5 = vcombine.high %v5843_v63, %v5851_v0  ;;  %v5915_v38 = vld [vmem:[%s12930_s20 + $0x770] sm:$0xff] }
 0x8ad   : > { %9329 = vmatprep.subr.bf16.mxu0 %v10163_v57  ;;  %9411 = vmatprep.subr.bf16.mxu1 %v10165_v59  ;;  %v5836_v37 = vld [vmem:[%s12930_s20 + $0x4f8] sm:$0xff]  ;;  %v10258_v57 = vcombine.low %v5811_v43, %v5819_v42  ;;  %v10260_v59 = vcombine.low %v5812_v44, %v5820_v45  ;;  %v10355_v43 = vcombine.high %v5907_v13, %v5915_v38  ;;  %v5923_v44 = vld [vmem:[%s12930_s20 + $0x7b0] sm:$0xff] }
 0x8ae   : > { %v10277_v62 = vcombine.high %v5828_v2, %v5836_v37  ;;  %v5931_v45 = vld [vmem:[%s12930_s20 + $0x7f0] sm:$0xff] }
 0x8b0   : > { %9330 = vmatpush1.bf16.msra.mxu0 %v10162_v1  ;;  %9412 = vmatpush1.bf16.msra.mxu1 %v10164_v49  ;;  %v5844_v1 = vld [vmem:[%s12930_s20 + $0x538] sm:$0xff] }
 0x8b1   : > { %9331 = vmatprep.subr.bf16.mxu0 %v10179_v47  ;;  %9413 = vmatprep.subr.bf16.mxu1 %v10181_v25  ;;  %v5852_v49 = vld [vmem:[%s12930_s20 + $0x578] sm:$0xff]  ;;  %v10274_v47 = vcombine.low %v5827_v52, %v5835_v53  ;;  %v10276_v25 = vcombine.low %v5828_v2, %v5836_v37  ;;  %v10371_v52 = vcombine.high %v5923_v44, %v5931_v45  ;;  %v5939_v2 = vld [vmem:[%s12930_s20 + $0x830] sm:$0xff] }
 0x8b2   : > { %v10293_v6 = vcombine.high %v5844_v1, %v5852_v49  ;;  %v5947_v37 = vld [vmem:[%s12930_s20 + $0x870] sm:$0xff] }
 0x8b4   : > { %9332 = vmatpush1.bf16.msra.mxu0 %v10178_v10  ;;  %9414 = vmatpush1.bf16.msra.mxu1 %v10180_v46  ;;  %v5860_v10 = vld [vmem:[%s12930_s20 + $0x5b8] sm:$0xff] }
 0x8b5   : > { %9333 = vmatprep.subr.bf16.mxu0 %v10195_v27  ;;  %9415 = vmatprep.subr.bf16.mxu1 %v10197_v39  ;;  %v5868_v46 = vld [vmem:[%s12930_s20 + $0x5f8] sm:$0xff]  ;;  %v10290_v27 = vcombine.low %v5843_v63, %v5851_v0  ;;  %v10292_v39 = vcombine.low %v5844_v1, %v5852_v49  ;;  %v10387_v63 = vcombine.high %v5939_v2, %v5947_v37  ;;  %v5955_v1 = vld [vmem:[%s12930_s20 + $0x8b0] sm:$0xff] }
 0x8b6   : > { %v10309_v54 = vcombine.high %v5860_v10, %v5868_v46  ;;  %v5963_v49 = vld [vmem:[%s12930_s20 + $0x8f0] sm:$0xff] }
 0x8b8   : > { %9334 = vmatpush1.bf16.msra.mxu0 %v10194_v15  ;;  %9416 = vmatpush1.bf16.msra.mxu1 %v10196_v17  ;;  %v5876_v15 = vld [vmem:[%s12930_s20 + $0x638] sm:$0xff] }
 0x8b9   : > { %9335 = vmatprep.subr.bf16.mxu0 %v10211_v58  ;;  %9417 = vmatprep.subr.bf16.mxu1 %v10213_v60  ;;  %v5884_v17 = vld [vmem:[%s12930_s20 + $0x678] sm:$0xff]  ;;  %v10306_v58 = vcombine.low %v5859_v7, %v5867_v8  ;;  %v10308_v60 = vcombine.low %v5860_v10, %v5868_v46  ;;  %v10403_v7 = vcombine.high %v5955_v1, %v5963_v49  ;;  %v5971_v10 = vld [vmem:[%s12930_s20 + $0x930] sm:$0xff] }
 0x8ba   : > { %v10325_v24 = vcombine.high %v5876_v15, %v5884_v17  ;;  %v5979_v46 = vld [vmem:[%s12930_s20 + $0x970] sm:$0xff] }
 0x8bc   : > { %9336 = vmatpush1.bf16.msra.mxu0 %v10210_v29  ;;  %9418 = vmatpush1.bf16.msra.mxu1 %v10212_v31  ;;  %v5892_v29 = vld [vmem:[%s12930_s20 + $0x6b8] sm:$0xff] }
 0x8bd   : > { %9337 = vmatprep.subr.bf16.mxu0 %v10227_v32  ;;  %9419 = vmatprep.subr.bf16.mxu1 %v10229_v33  ;;  %v5900_v31 = vld [vmem:[%s12930_s20 + $0x6f8] sm:$0xff]  ;;  %v10322_v32 = vcombine.low %v5875_v20, %v5883_v22  ;;  %v10324_v33 = vcombine.low %v5876_v15, %v5884_v17  ;;  %v10419_v20 = vcombine.high %v5971_v10, %v5979_v46  ;;  %v5987_v15 = vld [vmem:[%s12930_s20 + $0x9b0] sm:$0xff] }
 0x8be   : > { %v10341_v12 = vcombine.high %v5892_v29, %v5900_v31  ;;  %v5995_v17 = vld [vmem:[%s12930_s20 + $0x9f0] sm:$0xff] }
 0x8c0   : > { %9338 = vmatpush1.bf16.msra.mxu0 %v10226_v30  ;;  %9420 = vmatpush1.bf16.msra.mxu1 %v10228_v21  ;;  %v5908_v30 = vld [vmem:[%s12930_s20 + $0x738] sm:$0xff] }
 0x8c1   : > { %9339 = vmatprep.subr.bf16.mxu0 %v10243_v40  ;;  %9421 = vmatprep.subr.bf16.mxu1 %v10245_v41  ;;  %v5916_v21 = vld [vmem:[%s12930_s20 + $0x778] sm:$0xff]  ;;  %v10338_v40 = vcombine.low %v5891_v26, %v5899_v56  ;;  %v10340_v41 = vcombine.low %v5892_v29, %v5900_v31  ;;  %v6003_v56 = vld [vmem:[%s12930_s20 + $0xa30] sm:$0xff] }
 0x8c2   : > { %v10357_v42 = vcombine.high %v5908_v30, %v5916_v21  ;;  %v6011_v29 = vld [vmem:[%s12930_s20 + $0xa70] sm:$0xff]  ;;  %v6004_v31 = vld [vmem:[%s12930_s20 + $0xa38] sm:$0xff] }
 0x8c4   : > { %9340 = vmatpush1.bf16.msra.mxu0 %v10242_v23  ;;  %9422 = vmatpush1.bf16.msra.mxu1 %v10244_v48  ;;  %v5924_v23 = vld [vmem:[%s12930_s20 + $0x7b8] sm:$0xff] }
 0x8c5   : > { %9341 = vmatprep.subr.bf16.mxu0 %v10259_v50  ;;  %9423 = vmatprep.subr.bf16.mxu1 %v10261_v51  ;;  %v5932_v48 = vld [vmem:[%s12930_s20 + $0x7f8] sm:$0xff]  ;;  %v10354_v50 = vcombine.low %v5907_v13, %v5915_v38  ;;  %v10356_v51 = vcombine.low %v5908_v30, %v5916_v21  ;;  %v6019_v13 = vld [vmem:[%s12930_s20 + $0xab0] sm:$0xff]  ;;  %v6211_v30 = vsub.s32 4, %v14662_v3 }
 0x8c6   : > { %v10373_v53 = vcombine.high %v5924_v23, %v5932_v48  ;;  %v6027_v38 = vld [vmem:[%s12930_s20 + $0xaf0] sm:$0xff]  ;;  %v6020_v21 = vld [vmem:[%s12930_s20 + $0xab8] sm:$0xff] }
 0x8c8   : > { %9342 = vmatpush1.bf16.msra.mxu0 %v10258_v57  ;;  %9424 = vmatpush1.bf16.msra.mxu1 %v10260_v59  ;;  %v5940_v57 = vld [vmem:[%s12930_s20 + $0x838] sm:$0xff] }
 0x8c9   : > { %9343 = vmatprep.subr.bf16.mxu0 %v10275_v61  ;;  %9425 = vmatprep.subr.bf16.mxu1 %v10277_v62  ;;  %v5948_v59 = vld [vmem:[%s12930_s20 + $0x878] sm:$0xff]  ;;  %v10370_v61 = vcombine.low %v5923_v44, %v5931_v45  ;;  %v10372_v62 = vcombine.low %v5924_v23, %v5932_v48  ;;  %v6223_v45 = vsub.s32 7, %v14662_v3  ;;  %v10467_v23 = vcombine.high %v6019_v13, %v6027_v38 }
 0x8ca   : > { %v10389_v0 = vcombine.high %v5940_v57, %v5948_v59 }
 0x8cc   : > { %9344 = vmatpush1.bf16.msra.mxu0 %v10274_v47  ;;  %9426 = vmatpush1.bf16.msra.mxu1 %v10276_v25  ;;  %v5956_v47 = vld [vmem:[%s12930_s20 + $0x8b8] sm:$0xff] }
 0x8cd   : > { %9345 = vmatprep.subr.bf16.mxu0 %v10291_v5  ;;  %9427 = vmatprep.subr.bf16.mxu1 %v10293_v6  ;;  %v5964_v25 = vld [vmem:[%s12930_s20 + $0x8f8] sm:$0xff]  ;;  %v10386_v5 = vcombine.low %v5939_v2, %v5947_v37  ;;  %v10388_v6 = vcombine.low %v5940_v57, %v5948_v59  ;;  %v10466_v59 = vcombine.low %v6019_v13, %v6027_v38  ;;  %v6091_v13 = vld [vmem:[%s12930_s20 + $0xcf0] sm:$0xff] }
 0x8ce   : > { %v10405_v8 = vcombine.high %v5956_v47, %v5964_v25  ;;  %v6044_v2 = vld [vmem:[%s12930_s20 + $0xb78] sm:$0xff] }
 0x8d0   : > { %9346 = vmatpush1.bf16.msra.mxu0 %v10290_v27  ;;  %9428 = vmatpush1.bf16.msra.mxu1 %v10292_v39  ;;  %v5972_v27 = vld [vmem:[%s12930_s20 + $0x938] sm:$0xff] }
 0x8d1   : > { %9347 = vmatprep.subr.bf16.mxu0 %v10307_v18  ;;  %9429 = vmatprep.subr.bf16.mxu1 %v10309_v54  ;;  %v5980_v39 = vld [vmem:[%s12930_s20 + $0x978] sm:$0xff]  ;;  %v10402_v18 = vcombine.low %v5955_v1, %v5963_v49  ;;  %v10404_v54 = vcombine.low %v5956_v47, %v5964_v25  ;;  %v6051_v49 = vld [vmem:[%s12930_s20 + $0xbb0] sm:$0xff] }
 0x8d2   : > { %v10421_v22 = vcombine.high %v5972_v27, %v5980_v39  ;;  %v6059_v47 = vld [vmem:[%s12930_s20 + $0xbf0] sm:$0xff] }
 0x8d4   : > { %9348 = vmatpush1.bf16.msra.mxu0 %v10306_v58  ;;  %9430 = vmatpush1.bf16.msra.mxu1 %v10308_v60  ;;  %v5988_v58 = vld [vmem:[%s12930_s20 + $0x9b8] sm:$0xff] }
 0x8d5   : > { %9349 = vmatprep.subr.bf16.mxu0 %v10323_v9  ;;  %9431 = vmatprep.subr.bf16.mxu1 %v10325_v24  ;;  %v5996_v60 = vld [vmem:[%s12930_s20 + $0x9f8] sm:$0xff]  ;;  %v10420_v9 = vcombine.low %v5972_v27, %v5980_v39  ;;  %v10435_v24 = vcombine.high %v5987_v15, %v5995_v17 }
 0x8d6   : > { %v10437_v26 = vcombine.high %v5988_v58, %v5996_v60 }
 0x8d8   : > { %9350 = vmatpush1.bf16.msra.mxu0 %v10322_v32  ;;  %9432 = vmatpush1.bf16.msra.mxu1 %v10324_v33  ;;  %v6012_v32 = vld [vmem:[%s12930_s20 + $0xa78] sm:$0xff]  ;;  %v10434_v33 = vcombine.low %v5987_v15, %v5995_v17  ;;  %v10499_v15 = vcombine.high %v6051_v49, %v6059_v47 }
 0x8d9   : > { %9351 = vmatprep.subr.bf16.mxu0 %v10339_v55  ;;  %9433 = vmatprep.subr.bf16.mxu1 %v10341_v12  ;;  %v10451_v55 = vcombine.high %v6003_v56, %v6011_v29  ;;  %v10453_v12 = vcombine.high %v6004_v31, %v6012_v32  ;;  %v10452_v44 = vcombine.low %v6004_v31, %v6012_v32 }
 0x8da   : > { %v10498_v31 = vcombine.low %v6051_v49, %v6059_v47 }
 0x8dc   : > { %9352 = vmatpush1.bf16.msra.mxu0 %v10338_v40  ;;  %9434 = vmatpush1.bf16.msra.mxu1 %v10340_v41  ;;  %v6028_v40 = vld [vmem:[%s12930_s20 + $0xaf8] sm:$0xff]  ;;  %v10450_v41 = vcombine.low %v6003_v56, %v6011_v29 }
 0x8dd   : > { %9353 = vmatprep.subr.bf16.mxu0 %v10355_v43  ;;  %9435 = vmatprep.subr.bf16.mxu1 %v10357_v42  ;;  %v6219_v43 = vsub.s32 6, %v14662_v3  ;;  %v6215_v42 = vsub.s32 5, %v14662_v3  ;;  %v10469_v48 = vcombine.high %v6020_v21, %v6028_v40  ;;  %v6076_v56 = vld [vmem:[%s12930_s20 + $0xc78] sm:$0xff] }
 0x8df   : > { %v6220_v37 = vrot.slane %v15040_v34, %v6219_v43  ;;  %v6216_v57 = vrot.slane %v15040_v34, %v6215_v42 }
 0x8e0   : > { %9354 = vmatpush1.bf16.msra.mxu0 %v10354_v50  ;;  %9436 = vmatpush1.bf16.msra.mxu1 %v10356_v51  ;;  %v6035_v50 = vld [vmem:[%s12930_s20 + $0xb30] sm:$0xff] }
 0x8e1   : > { %9355 = vmatprep.subr.bf16.mxu0 %v10371_v52  ;;  %9437 = vmatprep.subr.bf16.mxu1 %v10373_v53  ;;  %v6043_v51 = vld [vmem:[%s12930_s20 + $0xb70] sm:$0xff]  ;;  %v6212_v52 = vrot.slane %v15040_v34, %v6211_v30  ;;  %v6036_v53 = vld [vmem:[%s12930_s20 + $0xb38] sm:$0xff] }
 0x8e2   : > { %v10485_v1 = vcombine.high %v6036_v53, %v6044_v2 }
 0x8e4   : > { %9356 = vmatpush1.bf16.msra.mxu0 %v10370_v61  ;;  %9438 = vmatpush1.bf16.msra.mxu1 %v10372_v62  ;;  %v6224_v61 = vrot.slane %v15040_v34, %v6223_v45  ;;  %v10468_v62 = vcombine.low %v6020_v21, %v6028_v40  ;;  %v10482_v34 = vcombine.low %v6035_v50, %v6043_v51  ;;  %v6084_v21 = vld [vmem:[%s12930_s20 + $0xcb8] sm:$0xff] }
 0x8e5   : > { %9366 = vmatprep.subr.bf16.mxu0 %v10387_v63  ;;  %9448 = vmatprep.subr.bf16.mxu1 %v10389_v0  ;;  %v10483_v63 = vcombine.high %v6035_v50, %v6043_v51  ;;  %v6092_v40 = vld [vmem:[%s12930_s20 + $0xcf8] sm:$0xff]  ;;  %v6099_v50 = vld [vmem:[%s12930_s20 + $0xd30] sm:$0xff] }
 0x8e6   : > { %v6107_v51 = vld [vmem:[%s12930_s20 + $0xd70] sm:$0xff] }
 0x8e7   : > { %9358 = vmatmul.mubr.bf16.vlgmr.msra.gmra.mrb[12].mxu0 %v14736_v4  ;;  %9440 = vmatmul.mubr.bf16.vlgmr.msra.gmra.mrb[12].mxu1 %v14736_v4  ;;  %v10418_v4 = vcombine.low %v5971_v10, %v5979_v46 }
 0x8e8   : > { %9367 = vmatpush1.bf16.msra.mxu0 %v10386_v5  ;;  %9449 = vmatpush1.bf16.msra.mxu1 %v10388_v6 }
 0x8e9   : > { %9368 = vmatprep.subr.bf16.mxu0 %v10403_v7  ;;  %9450 = vmatprep.subr.bf16.mxu1 %v10405_v8  ;;  %v6052_v7 = vld [vmem:[%s12930_s20 + $0xbb8] sm:$0xff] }
 0x8ea   : > { %9398 = vmatprep.mubr.bf16.mxu0 %v14742_v16  ;;  %9480 = vmatprep.mubr.bf16.mxu1 %v14742_v16  ;;  %v10436_v16 = vcombine.low %v5988_v58, %v5996_v60  ;;  %v6060_v8 = vld [vmem:[%s12930_s20 + $0xbf8] sm:$0xff] }
 0x8eb   : > { %v10501_v60 = vcombine.high %v6052_v7, %v6060_v8 }
 0x8ec   : > { %9369 = vmatpush1.bf16.msra.mxu0 %v10402_v18  ;;  %9451 = vmatpush1.bf16.msra.mxu1 %v10404_v54 }
 0x8ed   : > { %9370 = vmatprep.subr.bf16.mxu0 %v10419_v20  ;;  %9452 = vmatprep.subr.bf16.mxu1 %v10421_v22  ;;  %v10484_v22 = vcombine.low %v6036_v53, %v6044_v2  ;;  %v6108_v53 = vld [vmem:[%s12930_s20 + $0xd78] sm:$0xff] }
 0x8f0   : > { %9371 = vmatpush1.bf16.msra.mxu0 %v10418_v4  ;;  %9453 = vmatpush1.bf16.msra.mxu1 %v10420_v9  ;;  %v6067_v4 = vld [vmem:[%s12930_s20 + $0xc30] sm:$0xff] }
 0x8f1   : > { %9372 = vmatprep.subr.bf16.mxu0 %v10435_v24  ;;  %9454 = vmatprep.subr.bf16.mxu1 %v10437_v26  ;;  %v6075_v9 = vld [vmem:[%s12930_s20 + $0xc70] sm:$0xff]  ;;  %v6068_v26 = vld [vmem:[%s12930_s20 + $0xc38] sm:$0xff] }
 0x8f4   : > { %9373 = vmatpush1.bf16.msra.mxu0 %v10434_v33  ;;  %9455 = vmatpush1.bf16.msra.mxu1 %v10436_v16  ;;  %v10500_v33 = vcombine.low %v6052_v7, %v6060_v8  ;;  %v10515_v16 = vcombine.high %v6067_v4, %v6075_v9  ;;  %v6132_v7 = vld [vmem:[%s12930_s20 + $0xe38] sm:$0xff] }
 0x8f5   : > { %9374 = vmatprep.subr.bf16.mxu0 %v10451_v55  ;;  %9456 = vmatprep.subr.bf16.mxu1 %v10453_v12  ;;  %v10517_v55 = vcombine.high %v6068_v26, %v6076_v56  ;;  %v6083_v12 = vld [vmem:[%s12930_s20 + $0xcb0] sm:$0xff]  ;;  %v6140_v8 = vld [vmem:[%s12930_s20 + $0xe78] sm:$0xff] }
 0x8f6   : > { %v10530_v2 = vcombine.low %v6083_v12, %v6091_v13 }
 0x8f8   : > { %9375 = vmatpush1.bf16.msra.mxu0 %v10450_v41  ;;  %9457 = vmatpush1.bf16.msra.mxu1 %v10452_v44  ;;  %v10514_v41 = vcombine.low %v6067_v4, %v6075_v9  ;;  %v10516_v44 = vcombine.low %v6068_v26, %v6076_v56  ;;  %v6171_v4 = vld [vmem:[%s12930_s20 + $0xf70] sm:$0xff]  ;;  %v6164_v9 = vld [vmem:[%s12930_s20 + $0xf38] sm:$0xff] }
 0x8f9   : > { %9376 = vmatprep.subr.bf16.mxu0 %v10467_v23  ;;  %9458 = vmatprep.subr.bf16.mxu1 %v10469_v48  ;;  %v10531_v23 = vcombine.high %v6083_v12, %v6091_v13  ;;  %v10533_v48 = vcombine.high %v6084_v21, %v6092_v40 }
 0x8fa   : > { %v9072_v0 = vpop.f32.mrb[4].mxu0  ;;  %v9154_v5 = vpop.f32.mrb[4].mxu1 }
 0x8fb   : > { %v11074_v25 = vadd.f32 %v9072_v0, %v6212_v52  ;;  %v9074_v6 = vpop.f32.mrb[5].mxu0  ;;  %v11076_v10 = vadd.f32 %v9154_v5, %v6220_v37  ;;  %v9156_v27 = vpop.f32.mrb[5].mxu1  ;;  %v6100_v52 = vld [vmem:[%s12930_s20 + $0xd38] sm:$0xff]  ;;  %v10532_v37 = vcombine.low %v6084_v21, %v6092_v40  ;;  %v6131_v5 = vld [vmem:[%s12930_s20 + $0xe30] sm:$0xff] }
 0x8fc   : > { %v11075_v46 = vadd.f32 %v9074_v6, %v6216_v57  ;;  %v9076_v39 = vpop.f32.mrb[6].mxu0  ;;  %9377 = vmatpush1.bf16.msra.mxu0 %v10466_v59  ;;  %v11077_v18 = vadd.f32 %v9156_v27, %v6224_v61  ;;  %v9158_v54 = vpop.f32.mrb[6].mxu1  ;;  %9459 = vmatpush1.bf16.msra.mxu1 %v10468_v62  ;;  %v10547_v57 = vcombine.high %v6099_v50, %v6107_v51  ;;  %v6115_v61 = vld [vmem:[%s12930_s20 + $0xdb0] sm:$0xff]  ;;  %v6124_v0 = vld [vmem:[%s12930_s20 + $0xdf8] sm:$0xff] }
 0x8fd   : > { %v9077_v20 = vpop.f32.mrb[7].mxu0  ;;  %9378 = vmatprep.subr.bf16.mxu0 %v10483_v63  ;;  %v9159_v58 = vpop.f32.mrb[7].mxu1  ;;  %9460 = vmatprep.subr.bf16.mxu1 %v10485_v1  ;;  %v10549_v59 = vcombine.high %v6100_v52, %v6108_v53  ;;  %v6123_v62 = vld [vmem:[%s12930_s20 + $0xdf0] sm:$0xff]  ;;  %v6116_v63 = vld [vmem:[%s12930_s20 + $0xdb8] sm:$0xff]  ;;  %v10546_v1 = vcombine.low %v6099_v50, %v6107_v51  ;;  %v10548_v49 = vcombine.low %v6100_v52, %v6108_v53 }
 0x8fe   : > { %v9522_v17 = vcombine.low %v11074_v25, %v11075_v46  ;;  %v9523_v24 = vcombine.low %v11076_v10, %v11077_v18  ;;  %v10563_v47 = vcombine.high %v6115_v61, %v6123_v62  ;;  %v10565_v25 = vcombine.high %v6116_v63, %v6124_v0  ;;  %v6139_v6 = vld [vmem:[%s12930_s20 + $0xe70] sm:$0xff]  ;;  %v6148_v54 = vld [vmem:[%s12930_s20 + $0xeb8] sm:$0xff] }
 0x8ff   : > { %v10562_v10 = vcombine.low %v6115_v61, %v6123_v62  ;;  %v10564_v46 = vcombine.low %v6116_v63, %v6124_v0  ;;  %v10579_v27 = vcombine.high %v6131_v5, %v6139_v6  ;;  %v10581_v39 = vcombine.high %v6132_v7, %v6140_v8  ;;  %v6155_v18 = vld [vmem:[%s12930_s20 + $0xef0] sm:$0xff]  ;;  %v6156_v20 = vld [vmem:[%s12930_s20 + $0xef8] sm:$0xff] }
 0x900   : > { %v9530_v29 = vrot.slane %v9522_v17, %v14669_v11  ;;  %9379 = vmatpush1.bf16.msra.mxu0 %v10482_v34  ;;  %v9537_v32 = vrot.slane %v9523_v24, %v14669_v11  ;;  %9461 = vmatpush1.bf16.msra.mxu1 %v10484_v22  ;;  %v6147_v34 = vld [vmem:[%s12930_s20 + $0xeb0] sm:$0xff]  ;;  %v10578_v22 = vcombine.low %v6131_v5, %v6139_v6  ;;  %v6172_v24 = vld [vmem:[%s12930_s20 + $0xf78] sm:$0xff] }
 0x901   : > { %9380 = vmatprep.subr.bf16.mxu0 %v10499_v15  ;;  %9462 = vmatprep.subr.bf16.mxu1 %v10501_v60  ;;  %v10580_v15 = vcombine.low %v6132_v7, %v6140_v8  ;;  %v10595_v17 = vcombine.high %v6147_v34, %v6155_v18  ;;  %v10597_v58 = vcombine.high %v6148_v54, %v6156_v20  ;;  %v6163_v60 = vld [vmem:[%s12930_s20 + $0xf30] sm:$0xff] }
 0x902   : > { %v9538_v38 = vcombine.low %v9530_v29, %v9537_v32  ;;  %v10594_v26 = vcombine.low %v6147_v34, %v6155_v18  ;;  %v10596_v56 = vcombine.low %v6148_v54, %v6156_v20  ;;  %v10611_v29 = vcombine.high %v6163_v60, %v6171_v4  ;;  %v6179_v32 = vld [vmem:[%s12930_s20 + $0xfb0] sm:$0xff] }
 0x903   : > { %v10610_v12 = vcombine.low %v6163_v60, %v6171_v4  ;;  %v10612_v13 = vcombine.low %v6164_v9, %v6172_v24 }
 0x904   : > { %9381 = vmatpush1.bf16.msra.mxu0 %v10498_v31  ;;  %9578 = vst [vmem:[%s12932_s26 + $0x8] sm:$0xff] %v9538_v38  ;;  %9463 = vmatpush1.bf16.msra.mxu1 %v10500_v33  ;;  %v10613_v31 = vcombine.high %v6164_v9, %v6172_v24  ;;  %v6187_v33 = vld [vmem:[%s12930_s20 + $0xff0] sm:$0xff] }
 0x905   : > { %9382 = vmatprep.subr.bf16.mxu0 %v10515_v16  ;;  %9464 = vmatprep.subr.bf16.mxu1 %v10517_v55  ;;  %v6180_v16 = vld [vmem:[%s12930_s20 + $0xfb8] sm:$0xff]  ;;  %v10627_v38 = vcombine.high %v6179_v32, %v6187_v33  ;;  %v10626_v40 = vcombine.low %v6179_v32, %v6187_v33 }
 0x906   : > { %v6188_v55 = vld [vmem:[%s12930_s20 + $0xff8] sm:$0xff] }
 0x907   : > { %v10629_v21 = vcombine.high %v6180_v16, %v6188_v55 }
 0x908   : > { %9383 = vmatpush1.bf16.msra.mxu0 %v10514_v41  ;;  %9465 = vmatpush1.bf16.msra.mxu1 %v10516_v44  ;;  %v10628_v41 = vcombine.low %v6180_v16, %v6188_v55  ;;  %v6190_v44 = vld [vmem:[%s12928_s19 + $0x8] sm:$0xff]  ;;  %s11765_s19 = smov [#allocation11]  }
 0x909   : > { %9384 = vmatprep.subr.bf16.mxu0 %v10531_v23  ;;  %9466 = vmatprep.subr.bf16.mxu1 %v10533_v48  ;;  %v6228_v23 = vrot.slane %v6190_v44, %v6195_v19  ;;  %v6236_v48 = vrot.slane %v6190_v44, %v6203_v28  ;;  %v6232_v50 = vrot.slane %v6190_v44, %v6199_v35  ;;  %s9607_s20 = sshll.u32 %s11765_s19, 4  ;;  %s9608_s20 = int_to_ptr.vmem [resolvable:$true] %s9607_s20 }
 0x90a   : > { %v6240_v51 = vrot.slane %v6190_v44, %v6207_v36  ;;  %s11667_s30 = scalar_lea.vmem %s9608_s20, 128  ;;  %p11674_p5 = scmp.lt.s32.totalorder %s9608_s20, %s9608_s20 }
 0x90b   : > { %p11668_p1 = scmp.ne.s32.totalorder %s9608_s20, %s11667_s30  ;;  %p11675_p7 = scmp.lt.s32.totalorder %s11667_s30, %s11667_s30 }
 0x90c   : > { %9385 = vmatpush1.bf16.msra.mxu0 %v10530_v2  ;;  %9467 = vmatpush1.bf16.msra.mxu1 %v10532_v37 }
 0x90d   : > { %9386 = vmatprep.subr.bf16.mxu0 %v10547_v57  ;;  %9468 = vmatprep.subr.bf16.mxu1 %v10549_v59  ;;  %p11669_p2 = pnand %p11668_p1, %p286_p3  ;;  %p11676_p10 = por %p11675_p7, %p11674_p5 }
 0x90f   : > { %p11670_p4 = pneg %p11669_p2 }
 0x910   : > { %9387 = vmatpush1.bf16.msra.mxu0 %v10546_v1  ;;  %9469 = vmatpush1.bf16.msra.mxu1 %v10548_v49 }
 0x911   : > { %9388 = vmatprep.subr.bf16.mxu0 %v10563_v47  ;;  %9470 = vmatprep.subr.bf16.mxu1 %v10565_v25  ;;  %p11677_p11 = pnand %p11676_p10, %p11670_p4 }
 0x914   : > { %9389 = vmatpush1.bf16.msra.mxu0 %v10562_v10  ;;  %9471 = vmatpush1.bf16.msra.mxu1 %v10564_v46 }
 0x915   : > { %9390 = vmatprep.subr.bf16.mxu0 %v10579_v27  ;;  %9472 = vmatprep.subr.bf16.mxu1 %v10581_v39 }
 0x918   : > { %9391 = vmatpush1.bf16.msra.mxu0 %v10578_v22  ;;  %9473 = vmatpush1.bf16.msra.mxu1 %v10580_v15 }
 0x919   : > { %9392 = vmatprep.subr.bf16.mxu0 %v10595_v17  ;;  %9474 = vmatprep.subr.bf16.mxu1 %v10597_v58 }
 0x91c   : > { %9393 = vmatpush1.bf16.msra.mxu0 %v10594_v26  ;;  %9475 = vmatpush1.bf16.msra.mxu1 %v10596_v56 }
 0x91d   : > { %9394 = vmatprep.subr.bf16.mxu0 %v10611_v29  ;;  %9476 = vmatprep.subr.bf16.mxu1 %v10613_v31 }
 0x920   : > { %9395 = vmatpush1.bf16.msra.mxu0 %v10610_v12  ;;  %9477 = vmatpush1.bf16.msra.mxu1 %v10612_v13 }
 0x921   : > { %9396 = vmatprep.subr.bf16.mxu0 %v10627_v38  ;;  %9478 = vmatprep.subr.bf16.mxu1 %v10629_v21 }
 0x924   : > { %9397 = vmatpush1.bf16.msra.mxu0 %v10626_v40  ;;  %9479 = vmatpush1.bf16.msra.mxu1 %v10628_v41 }
 0x927   : > { %9399 = vmatmul.mubr.bf16.vlgmr.msra.gmra.mrb[12].mxu0 %v14810_v14  ;;  %9481 = vmatmul.mubr.bf16.vlgmr.msra.gmra.mrb[12].mxu1 %v14810_v14 }
 0x97a   : > { %v9236_v52 = vpop.f32.mrb[8].mxu0  ;;  %v9318_v2 = vpop.f32.mrb[8].mxu1 }
 0x97b   : > { %v11078_v53 = vadd.f32 %v9236_v52, %v6228_v23  ;;  %v9238_v37 = vpop.f32.mrb[9].mxu0  ;;  %v11080_v57 = vadd.f32 %v9318_v2, %v6236_v48  ;;  %v9320_v59 = vpop.f32.mrb[9].mxu1 }
 0x97c   : > { %v11079_v14 = vadd.f32 %v9238_v37, %v6232_v50  ;;  %v9240_v61 = vpop.f32.mrb[10].mxu0  ;;  %v11081_v19 = vadd.f32 %v9320_v59, %v6240_v51  ;;  %v9322_v62 = vpop.f32.mrb[10].mxu1 }
 0x97d   : > { %v9241_v63 = vpop.f32.mrb[11].mxu0  ;;  %v9323_v0 = vpop.f32.mrb[11].mxu1 }
 0x97e   : > { %v9539_v28 = vcombine.low %v11078_v53, %v11079_v14  ;;  %v9540_v1 = vcombine.low %v11080_v57, %v11081_v19 }
 0x980   : > { %v9547_v35 = vrot.slane %v9539_v28, %v14669_v11  ;;  %v9554_v36 = vrot.slane %v9540_v1, %v14669_v11 }
 0x982   : > { %v9555_v49 = vcombine.low %v9547_v35, %v9554_v36 }
 0x984   : > { %9579 = vst [vmem:[%s12932_s26 + $0x10] sm:$0xff] %v9555_v49 }
 0x985   : > { %11680 = shalt.err (!%p11677_p11)
}
 0x986   : > { %s11681_s16 = scalar_lea.hbm %s15363_s12, 128 }
 0x987   : > { %p11682_p12 = scmp.ne.s32.totalorder %s15363_s12, %s11681_s16  ;;  %p11687_p1 = scmp.lt.u32.totalorder %s11681_s16, %s15363_s12 }
 0x989   : > { %p11683_p13 = pnand %p11682_p12, %p286_p3 }
 0x98b   : > { %p11684_p0 = pneg %p11683_p13 }
 0x98d   : > { %p11689_p2 = pnand %p11687_p1, %p11684_p0 }
 0x98f   : > { %11692 = shalt.err (!%p11689_p2)
}
 0x990   : > { %11120 = dma.vmem_to_hbm [thread:$0]  (%p286_p3), %s9608_s20, 128, %s15363_s12, [#allocation12]   ;;  %v6244_v47 = vrot.slane %v6190_v44, %v6211_v30  ;;  %v6252_v25 = vrot.slane %v6190_v44, %v6219_v43  ;;  %v6248_v5 = vrot.slane %v6190_v44, %v6215_v42  ;;  %v6256_v6 = vrot.slane %v6190_v44, %v6223_v45 }
 0x991   : > { %s10638_s19 = sshll.u32 %s11853_s25, 9  ;;  %s9596_s20 = sshll.u32 %s12932_s26, 4  ;;  %s15304_s20 = int_to_ptr.vmem [resolvable:$true] %s9596_s20 }
 0x992   : > { %s15302_s15 = scalar_lea.hbm %s15362_s11, %s10638_s19  ;;  %s9582_s16 = scalar_lea.sflag [#allocation10], %s12920_s28 }
 0x993   : > { %s11693_s17 = scalar_lea.vmem %s15304_s20, 512  ;;  %s11766_s18 = smov [#allocation9]  }
 0x994   : > { %p11694_p4 = scmp.ne.s32.totalorder %s15304_s20, %s11693_s17  ;;  %s11697_s9 = sshll.u32 %s11766_s18, 4  ;;  %s11698_s9 = int_to_ptr.vmem [resolvable:$false] %s11697_s9 }
 0x995   : > { %s11699_s22 = scalar_lea.vmem %s11698_s9, 1024  ;;  %p11700_p10 = scmp.lt.s32.totalorder %s15304_s20, %s11698_s9 }
 0x996   : > { %p11695_p5 = pnand %p11694_p4, %p11873_p6  ;;  %p11701_p11 = scmp.lt.s32.totalorder %s11699_s22, %s11693_s17 }
 0x998   : > { %p11696_p7 = pneg %p11695_p5  ;;  %p11702_p12 = por %p11701_p11, %p11700_p10 }
 0x99a   : > { %p11703_p13 = pnand %p11702_p12, %p11696_p7 }
 0x9fa   : > { %v9400_v7 = vpop.f32.mrb[12].mxu0  ;;  %v9482_v10 = vpop.f32.mrb[12].mxu1 }
 0x9fb   : > { %v11082_v8 = vadd.f32 %v9400_v7, %v6244_v47  ;;  %v9402_v46 = vpop.f32.mrb[13].mxu0  ;;  %v11084_v27 = vadd.f32 %v9482_v10, %v6252_v25  ;;  %v9484_v34 = vpop.f32.mrb[13].mxu1 }
 0x9fc   : > { %v11083_v39 = vadd.f32 %v9402_v46, %v6248_v5  ;;  %v9404_v30 = vpop.f32.mrb[14].mxu0  ;;  %v11085_v18 = vadd.f32 %v9484_v34, %v6256_v6  ;;  %v9486_v43 = vpop.f32.mrb[14].mxu1 }
 0x9fd   : > { %v9405_v54 = vpop.f32.mrb[15].mxu0  ;;  %v9487_v20 = vpop.f32.mrb[15].mxu1 }
 0x9fe   : > { %v9556_v42 = vcombine.low %v11082_v8, %v11083_v39  ;;  %v9557_v3 = vcombine.low %v11084_v27, %v11085_v18 }
 0xa00   : > { %v9564_v45 = vrot.slane %v9556_v42, %v14669_v11  ;;  %v9571_v22 = vrot.slane %v9557_v3, %v14669_v11 }
 0xa02   : > { %v9572_v15 = vcombine.low %v9564_v45, %v9571_v22 }
 0xa04   : > { %9580 = vst [vmem:[%s12932_s26 + $0x18] sm:$0xff] %v9572_v15 }
 0xa05   : > { %11706 = shalt.err (!%p11703_p13)
}
 0xa06   : > { %s11707_s28 = scalar_lea.hbm %s15302_s15, 512  ;;  %s11711_s23 = scalar_lea.hbm %s15362_s11, 1024 }
 0xa07   : > { %p11708_p0 = scmp.ne.s32.totalorder %s15302_s15, %s11707_s28  ;;  %p11712_p4 = scmp.lt.u32.totalorder %s15302_s15, %s15362_s11 }
 0xa08   : > { %p11713_p5 = scmp.lt.u32.totalorder %s11711_s23, %s11707_s28  ;;  %p11715_p10 = scmp.lt.u32.totalorder %s11707_s28, %s15302_s15 }
 0xa09   : > { %p11709_p1 = pnand %p11708_p0, %p11873_p6 }
 0xa0a   : > { %p11714_p7 = por %p11713_p5, %p11712_p4 }
 0xa0b   : > { %p11710_p2 = pneg %p11709_p1 }
 0xa0c   : > { %p11716_p11 = por %p11715_p10, %p11714_p7 }
 0xa0e   : > { %p11717_p12 = pnand %p11716_p11, %p11710_p2 }
 0xa10   : > { %11720 = shalt.err (!%p11717_p12)
}
 0xa11   : > { %11118 = dma.vmem_to_hbm [thread:$0]  (%p11873_p6), %s15304_s20, 512, %s15302_s15, %s9582_s16  }
 0xa12   : > { %11738 = dma.done.wait (%p286_p3), [#allocation12], 128  }
 0xa13   : > { %11740 = vsyncadd (%p286_p3), [#allocation12], 4294967168 }
 0xa14 PF: > { %s9623_s29 = sand.u32 1, %s11747_s21   ;;  %p11125_p13 = pnand %p9694_p9, %p11877_p8 }
 0xa15   : > { %s9624_s17 = scalar_lea.sflag [#allocation10], %s9623_s29 }
 0xa16   : > { %11742 = dma.done.wait (!%p11125_p13), %s9624_s17, 512  }
 0xa17   : > { %11744 = vsyncadd (!%p11125_p13), %s9624_s17, 4294966784  ;;  %s15377_s21 = sld [smem:[#allocation15_spill]]  ;;  %s15378_s22 = sld [smem:[#allocation16_spill]] }
 0xa18   : > { %s15379_s23 = sld [smem:[#allocation17_spill]]  ;;  %p24_p6 = scmp.ge.s32.totalorder %s11857_s27, 4  }
 0xa19   : > { %s15380_s24 = smov %s11857_s27 }
 0xa1a   :  { %26 = sbr.rel (!%p24_p6) target bundleno = 7 (0x7), region = 237 }
 0xa21   :  { %9629 = vsyncpa [#allocation10], 1 }
 0xa22   :  { %9631 = vsyncpa [#allocation10 + $0x1], 1 }
 0xa23   :  { %9632 = vsyncpa [#allocation12], 1 }

</bundles_post_ra>
